<compile_context>
chip_gen: v7x
topology: tpu7x:2x2x1
jax: 0.10.0
libtpu: 0.0.40
codegen_flags: <defaults>
</compile_context>

<pallas_src>
import functools

import jax
import jax.numpy as jnp
from jax.experimental import pallas as pl
from jax.experimental.pallas import tpu as pltpu

C = 128            # per-branch in/out channels (fixed by caspp.__init__)
DILS = (2, 4, 6)   # dilations of brc1 / brc2 / brc3
PADH = 8           # row halo  (major dim -> no tile-alignment constraint)
PADW = 16          # column halo (bf16 sublane pack = 16 -> aligned interior store)
EPS = 1e-5

assert PADH >= max(DILS), "row halo must cover the largest dilation"
assert PADW >= max(DILS), "column halo must cover the largest dilation"


# ---------------------------------------------------------------------------
# Fused kernel: [BN+ReLU -> dilated 3x3 conv -> BN+ReLU -> partial 1x1] x3
# ---------------------------------------------------------------------------
def _caspp_kernel(x_ref, x_hbm_ref, sc_br_ref, sh_br_ref, w9_ref,
                  sc_out_ref, sh_out_ref, w1_ref, b_out_ref,
                  o_ref,
                  pad_ref, col_ref, acc_ref, halo_ref, sem_ref,
                  *, H, W, TH):
    # x_ref:        (1, TH, W, C)  f32 interior rows of this H tile
    # x_hbm_ref:    (N, H, W, C)   f32 raw HBM view (halo-row DMA source)
    # sc_br/sh_br:  (3, C)         folded branch BN scale/shift
    # w9_ref:       (3, 9*C, C)    bf16 branch conv weights, im2col row order
    # sc_out/sh_out:(3, C)         folded output BN (branch conv bias folded in)
    # w1_ref:       (3*C, C)       bf16 1x1 fuse conv weight
    # b_out_ref:    (1, C)         f32 final conv bias
    # pad_ref:      (TH+2*PADH, W+2*PADW, C) bf16 zero-halo activation scratch
    # col_ref:      (TH, W, 9*C)   bf16 im2col slab
    # acc_ref:      (TH*W, C)      f32 fused 1x1 accumulator
    # halo_ref:     (2, PADH, W, C) f32 raw halo rows (top / bottom)
    n = pl.program_id(0)
    h = pl.program_id(1)
    n_h = pl.num_programs(1)
    top_valid = h > 0
    bot_valid = h < n_h - 1

    # ---- kick off halo-row DMAs (raw x rows just above / below this tile) ---
    top_start = jnp.maximum(h * TH - PADH, 0)          # clamp: harmless when unused
    bot_start = jnp.minimum((h + 1) * TH, H - PADH)
    top_copy = pltpu.make_async_copy(
        x_hbm_ref.at[n, pl.ds(top_start, PADH)], halo_ref.at[0], sem_ref.at[0])
    bot_copy = pltpu.make_async_copy(
        x_hbm_ref.at[n, pl.ds(bot_start, PADH)], halo_ref.at[1], sem_ref.at[1])

    @pl.when(top_valid)
    def _():
        top_copy.start()

    @pl.when(bot_valid)
    def _():
        bot_copy.start()

    # ---- zero ONLY the halo frame (interior is overwritten per branch) ------
    # Padding must be applied AFTER BN+ReLU (ReLU(shift) != 0), so the halo of
    # the activation buffer is explicitly zeroed; it overlaps the halo DMAs.
    zcol = jnp.zeros((TH + 2 * PADH, PADW, C), jnp.bfloat16)
    zrow = jnp.zeros((PADH, W, C), jnp.bfloat16)
    pad_ref[:, 0:PADW, :] = zcol
    pad_ref[:, PADW + W:PADW + W + PADW, :] = zcol
    pad_ref[0:PADH, PADW:PADW + W, :] = zrow
    pad_ref[PADH + TH:PADH + TH + PADH, PADW:PADW + W, :] = zrow

    @pl.when(top_valid)
    def _():
        top_copy.wait()

    @pl.when(bot_valid)
    def _():
        bot_copy.wait()

    x = x_ref[0]                                        # (TH, W, C) f32

    for i, d in enumerate(DILS):
        sc = sc_br_ref[i, :].reshape(1, 1, C)
        sh = sh_br_ref[i, :].reshape(1, 1, C)

        # --- branch BN + ReLU (VPU), stored once as bf16 into the padded buf -
        pad_ref[PADH:PADH + TH, PADW:PADW + W, :] = (
            jnp.maximum(x * sc + sh, 0.0).astype(jnp.bfloat16))

        @pl.when(top_valid)
        def _(sc=sc, sh=sh):                            # real rows above the tile
            pad_ref[0:PADH, PADW:PADW + W, :] = (
                jnp.maximum(halo_ref[0] * sc + sh, 0.0).astype(jnp.bfloat16))

        @pl.when(bot_valid)
        def _(sc=sc, sh=sh):                            # real rows below the tile
            pad_ref[PADH + TH:PADH + TH + PADH, PADW:PADW + W, :] = (
                jnp.maximum(halo_ref[1] * sc + sh, 0.0).astype(jnp.bfloat16))

        # --- im2col: 9 shifted bf16 views, pure lane-slice stores (static) ---
        for kh in range(3):
            for kw in range(3):
                oh = (PADH - d) + kh * d
                ow = (PADW - d) + kw * d
                t = kh * 3 + kw
                col_ref[:, :, t * C:(t + 1) * C] = pad_ref[oh:oh + TH,
                                                           ow:ow + W, :]

        # --- one long-K MXU matmul per branch: (TH*W, 1152) x (1152, 128) ----
        y = jnp.dot(col_ref[...].reshape(TH * W, 9 * C), w9_ref[i],
                    preferred_element_type=jnp.float32)        # (TH*W, C) f32

        # --- output-BN chunk (branch conv bias folded into shift) + ReLU -----
        z = jnp.maximum(y * sc_out_ref[i, :].reshape(1, C)
                        + sh_out_ref[i, :].reshape(1, C),
                        0.0).astype(jnp.bfloat16)

        # --- 1x1 fuse conv folded into the branch loop (no (HW,3C) slab) -----
        contrib = jnp.dot(z, w1_ref[i * C:(i + 1) * C, :],
                          preferred_element_type=jnp.float32)  # (TH*W, C) f32
        if i == 0:
            acc_ref[...] = contrib
        else:
            acc_ref[...] += contrib

    o_ref[...] = (acc_ref[...] + b_out_ref[...]).reshape(1, TH, W, C)


# ---------------------------------------------------------------------------
# Parameter folding + wrappers
# ---------------------------------------------------------------------------
def _fold_bn(gamma, beta, mean, var):
    scale = gamma / jnp.sqrt(var + EPS)
    shift = beta - mean * scale
    return scale, shift


def init_params(key):
    ks = jax.random.split(key, 24)
    p = {}
    for i in range(3):
        k0, k1, k2, k3, k4, k5 = ks[6 * i:6 * i + 6]
        p[f"bn{i}"] = dict(
            gamma=1.0 + 0.1 * jax.random.normal(k0, (C,), jnp.float32),
            beta=0.1 * jax.random.normal(k1, (C,), jnp.float32),
            mean=0.1 * jax.random.normal(k2, (C,), jnp.float32),
            var=0.5 + jax.random.uniform(k3, (C,), jnp.float32),
        )
        p[f"conv{i}"] = dict(                      # PyTorch OIHW layout
            w=0.05 * jax.random.normal(k4, (C, C, 3, 3), jnp.float32),
            b=0.05 * jax.random.normal(k5, (C,), jnp.float32),
        )
    k0, k1, k2, k3, k4, k5 = ks[18:24]
    p["bn_out"] = dict(
        gamma=1.0 + 0.1 * jax.random.normal(k0, (3 * C,), jnp.float32),
        beta=0.1 * jax.random.normal(k1, (3 * C,), jnp.float32),
        mean=0.1 * jax.random.normal(k2, (3 * C,), jnp.float32),
        var=0.5 + jax.random.uniform(k3, (3 * C,), jnp.float32),
    )
    p["conv_out"] = dict(
        w=0.05 * jax.random.normal(k4, (C, 3 * C, 1, 1), jnp.float32),
        b=0.05 * jax.random.normal(k5, (C,), jnp.float32),
    )
    return p


def caspp_forward_nhwc(x_nhwc, params, tile_h=None):
    x = x_nhwc.astype(jnp.float32)
    N, H, W, Cin = x.shape
    assert Cin == C
    if tile_h is None:
        tile_h = H if H <= 32 else 32
    TH = int(tile_h)
    assert H % TH == 0, "H must be divisible by tile_h"
    n_h = H // TH
    assert n_h == 1 or TH >= PADH, "tile_h must be >= PADH when H is tiled"

    # fold branch BNs -> (3, C) scale / shift
    scs, shs = [], []
    for i in range(3):
        bn = params[f"bn{i}"]
        sc, sh = _fold_bn(bn["gamma"], bn["beta"], bn["mean"], bn["var"])
        scs.append(sc)
        shs.append(sh)
    sc_br = jnp.stack(scs)
    sh_br = jnp.stack(shs)

    # branch conv weights OIHW -> im2col layout (3, 9*C, C), bf16
    w9 = jnp.stack([
        jnp.transpose(params[f"conv{i}"]["w"], (2, 3, 1, 0)).reshape(9 * C, C)
        for i in range(3)
    ]).astype(jnp.bfloat16)

    # output BN folded, with the branch conv biases folded into the shift
    bn = params["bn_out"]
    sc_o, sh_o = _fold_bn(bn["gamma"], bn["beta"], bn["mean"], bn["var"])
    sc_out = sc_o.reshape(3, C)
    b_br = jnp.stack([params[f"conv{i}"]["b"] for i in range(3)])   # (3, C)
    sh_out = sh_o.reshape(3, C) + sc_out * b_br

    # 1x1 conv: (Cout, 3C) -> (3C, Cout), bf16; bias stays f32
    w1 = jnp.transpose(params["conv_out"]["w"].reshape(C, 3 * C),
                       (1, 0)).astype(jnp.bfloat16)
    b_out = params["conv_out"]["b"].reshape(1, C).astype(jnp.float32)

    # VMEM budget: double-buffered blocked tiles + scratch, with headroom.
    f32b, bf16b = 4, 2
    needed = (
        2 * TH * W * C * f32b                              # x tile (x2 buffers)
        + 2 * TH * W * C * f32b                            # out tile
        + 2 * (3 * 9 * C * C) * bf16b                      # w9
        + 2 * (3 * C * C) * bf16b                          # w1
        + 2 * 4 * (3 * C) * f32b + 2 * C * f32b            # scales/shifts/bias
        + (TH + 2 * PADH) * (W + 2 * PADW) * C * bf16b     # pad_ref
        + TH * W * 9 * C * bf16b                           # col_ref
        + TH * W * C * f32b                                # acc_ref
        + 2 * PADH * W * C * f32b                          # halo_ref
    )
    vmem_limit = int(min(max(needed * 3 // 2 + (4 << 20), 32 << 20), 64 << 20))

    kernel = functools.partial(_caspp_kernel, H=H, W=W, TH=TH)
    y = pl.pallas_call(
        kernel,
        grid=(N, n_h),
        in_specs=[
            pl.BlockSpec((1, TH, W, C), lambda n, h: (n, h, 0, 0)),   # x tile
            pl.BlockSpec(memory_space=pl.ANY),                        # x in HBM
            pl.BlockSpec((3, C), lambda n, h: (0, 0)),                # sc_br
            pl.BlockSpec((3, C), lambda n, h: (0, 0)),                # sh_br
            pl.BlockSpec((3, 9 * C, C), lambda n, h: (0, 0, 0)),      # w9
            pl.BlockSpec((3, C), lambda n, h: (0, 0)),                # sc_out
            pl.BlockSpec((3, C), lambda n, h: (0, 0)),                # sh_out
            pl.BlockSpec((3 * C, C), lambda n, h: (0, 0)),            # w1
            pl.BlockSpec((1, C), lambda n, h: (0, 0)),                # b_out
        ],
        out_specs=pl.BlockSpec((1, TH, W, C), lambda n, h: (n, h, 0, 0)),
        out_shape=jax.ShapeDtypeStruct((N, H, W, C), jnp.float32),
        scratch_shapes=[
            pltpu.VMEM((TH + 2 * PADH, W + 2 * PADW, C), jnp.bfloat16),  # pad
            pltpu.VMEM((TH, W, 9 * C), jnp.bfloat16),                    # im2col
            pltpu.VMEM((TH * W, C), jnp.float32),                        # 1x1 acc
            pltpu.VMEM((2, PADH, W, C), jnp.float32),                    # halo rows
            pltpu.SemaphoreType.DMA((2,)),
        ],
        compiler_params=pltpu.CompilerParams(
            dimension_semantics=("parallel", "parallel"),
            vmem_limit_bytes=vmem_limit),
    )(x, x, sc_br, sh_br, w9, sc_out, sh_out, w1, b_out)
    return y


def caspp_forward(x_nchw, params, tile_h=None):
    # NCHW wrapper that mirrors the PyTorch module's interface.
    x = jnp.transpose(x_nchw, (0, 2, 3, 1))                 # NCHW -> NHWC
    y = caspp_forward_nhwc(x, params, tile_h=tile_h)
    return jnp.transpose(y, (0, 3, 1, 2))                   # NHWC -> NCHW


# ---------------------------------------------------------------------------
# Pure-JAX references (eval-mode BN folding) for verification.
# ---------------------------------------------------------------------------
def caspp_reference(x_nchw, params, compute_dtype=jnp.bfloat16,
                    precision=None):
    x = jnp.transpose(x_nchw, (0, 2, 3, 1)).astype(jnp.float32)
    outs = []
    for i, d in enumerate(DILS):
        bn = params[f"bn{i}"]
        sc, sh = _fold_bn(bn["gamma"], bn["beta"], bn["mean"], bn["var"])
        a = jnp.maximum(x * sc + sh, 0.0).astype(compute_dtype)
        w_hwio = jnp.transpose(params[f"conv{i}"]["w"],
                               (2, 3, 1, 0)).astype(compute_dtype)
        y = jax.lax.conv_general_dilated(
            a, w_hwio, window_strides=(1, 1), padding=[(d, d), (d, d)],
            rhs_dilation=(d, d), dimension_numbers=("NHWC", "HWIO", "NHWC"),
            preferred_element_type=jnp.float32, precision=precision)
        outs.append(y + params[f"conv{i}"]["b"])
    cat = jnp.concatenate(outs, axis=-1)                             # (N,H,W,384)
    bn = params["bn_out"]
    sc, sh = _fold_bn(bn["gamma"], bn["beta"], bn["mean"], bn["var"])
    a = jnp.maximum(cat * sc + sh, 0.0).astype(compute_dtype)
    N, H, W, _ = a.shape
    w_out = jnp.transpose(params["conv_out"]["w"].reshape(C, 3 * C),
                          (1, 0)).astype(compute_dtype)
    y = jnp.dot(a.reshape(N * H * W, 3 * C), w_out,
                preferred_element_type=jnp.float32,
                precision=precision) + params["conv_out"]["b"]
    return jnp.transpose(y.reshape(N, H, W, C), (0, 3, 1, 2))


if __name__ == "__main__":
    key = jax.random.PRNGKey(0)
    kx, kp = jax.random.split(key)
    N, H, W = 2, 16, 16
    x = jax.random.normal(kx, (N, C, H, W), jnp.float32)   # NCHW, like PyTorch
    params = init_params(kp)

    # tile_h=8 -> two H tiles per image: exercises the halo-DMA path too.
    out = caspp_forward(x, params, tile_h=8)
    out = jax.block_until_ready(out)
    assert out.shape == (N, C, H, W)

    # Tight check against a bf16-in / f32-acc reference (same numerics).
    ref_matched = caspp_reference(x, params, compute_dtype=jnp.bfloat16)
    err_matched = float(jnp.max(jnp.abs(out - ref_matched)))
    assert err_matched < 2e-3, f"max abs error vs bf16 reference {err_matched}"

    # Loose sanity check against full-f32 HIGHEST math.
    ref_f32 = caspp_reference(x, params, compute_dtype=jnp.float32,
                              precision=jax.lax.Precision.HIGHEST)
    err_f32 = float(jnp.max(jnp.abs(out - ref_f32)))
    assert err_f32 < 1e-1, f"max abs error vs f32 reference {err_f32}"

    print("KERNEL_OK")
</pallas_src>

<mosaic_0001>
module attributes {stable_mosaic.version = 11 : i64} {
  func.func @_caspp_kernel(%arg0: i32, %arg1: i32, %arg2: memref<1x8x16x128xf32, #tpu.memory_space<vmem>>, %arg3: memref<2x16x16x128xf32, #tpu.memory_space<any>>, %arg4: memref<3x128xf32, #tpu.memory_space<vmem>>, %arg5: memref<3x128xf32, #tpu.memory_space<vmem>>, %arg6: memref<3x1152x128xbf16, #tpu.memory_space<vmem>>, %arg7: memref<3x128xf32, #tpu.memory_space<vmem>>, %arg8: memref<3x128xf32, #tpu.memory_space<vmem>>, %arg9: memref<384x128xbf16, #tpu.memory_space<vmem>>, %arg10: memref<1x128xf32, #tpu.memory_space<vmem>>, %arg11: memref<1x8x16x128xf32, #tpu.memory_space<vmem>>, %arg12: memref<24x48x128xbf16, #tpu.memory_space<vmem>>, %arg13: memref<8x16x1152xbf16, #tpu.memory_space<vmem>>, %arg14: memref<128x128xf32, #tpu.memory_space<vmem>>, %arg15: memref<2x8x16x128xf32, #tpu.memory_space<vmem>>, %arg16: memref<2x!tpu.dma_semaphore, #tpu.memory_space<semaphore_mem>>) attributes {dimension_semantics = [#tpu.dimension_semantics<parallel>, #tpu.dimension_semantics<parallel>], iteration_bounds = array<i64: 2, 2>, scalar_prefetch = 0 : i64, scratch_operands = 5 : i64, tpu.core_type = #tpu.core_type<tc>, window_params = [{transform_indices = @transform_0, window_bounds = array<i64: 1, 8, 16, 128>}, {}, {pipeline_mode = #tpu.pipeline_mode<synchronous>, transform_indices = @transform_2, window_bounds = array<i64: 3, 128>}, {pipeline_mode = #tpu.pipeline_mode<synchronous>, transform_indices = @transform_3, window_bounds = array<i64: 3, 128>}, {pipeline_mode = #tpu.pipeline_mode<synchronous>, transform_indices = @transform_4, window_bounds = array<i64: 3, 1152, 128>}, {pipeline_mode = #tpu.pipeline_mode<synchronous>, transform_indices = @transform_5, window_bounds = array<i64: 3, 128>}, {pipeline_mode = #tpu.pipeline_mode<synchronous>, transform_indices = @transform_6, window_bounds = array<i64: 3, 128>}, {pipeline_mode = #tpu.pipeline_mode<synchronous>, transform_indices = @transform_7, window_bounds = array<i64: 384, 128>}, {pipeline_mode = #tpu.pipeline_mode<synchronous>, transform_indices = @transform_8, window_bounds = array<i64: 1, 128>}, {transform_indices = @transform_9, window_bounds = array<i64: 1, 8, 16, 128>}]} {
    %c0_i32 = arith.constant 0 : i32
    %0 = arith.cmpi sgt, %arg1, %c0_i32 : i32
    %c1_i32 = arith.constant 1 : i32
    %1 = arith.cmpi slt, %arg1, %c1_i32 : i32
    %c8_i32 = arith.constant 8 : i32
    %2 = arith.muli %arg1, %c8_i32 : i32
    %c8_i32_0 = arith.constant 8 : i32
    %3 = arith.subi %2, %c8_i32_0 : i32
    %c0_i32_1 = arith.constant 0 : i32
    %4 = arith.maxsi %3, %c0_i32_1 : i32
    %c1_i32_2 = arith.constant 1 : i32
    %5 = arith.addi %arg1, %c1_i32_2 : i32
    %c8_i32_3 = arith.constant 8 : i32
    %6 = arith.muli %5, %c8_i32_3 : i32
    %c8_i32_4 = arith.constant 8 : i32
    %7 = arith.minsi %6, %c8_i32_4 : i32
    %8 = arith.extui %0 : i1 to i32
    %c0_i32_5 = arith.constant 0 : i32
    %c0_i32_6 = arith.constant 0 : i32
    %c0_i32_7 = arith.constant 0 : i32
    %9 = arith.cmpi ne, %8, %c0_i32_7 : i32
    scf.if %9 {
      %c0_i32_267 = arith.constant 0 : i32
      %c0_i32_268 = arith.constant 0 : i32
      %205 = tpu.memref_slice %arg3[%arg0, %4, %c0_i32_267, %c0_i32_268] : memref<2x16x16x128xf32, #tpu.memory_space<any>> -> memref<1x8x16x128xf32, #tpu.memory_space<any>>
      %206 = tpu.memref_squeeze %205 : memref<1x8x16x128xf32, #tpu.memory_space<any>> -> memref<8x16x128xf32, #tpu.memory_space<any>>
      %c0_i32_269 = arith.constant 0 : i32
      %c0_i32_270 = arith.constant 0 : i32
      %c0_i32_271 = arith.constant 0 : i32
      %207 = tpu.memref_slice %arg15[%c0_i32_5, %c0_i32_269, %c0_i32_270, %c0_i32_271] : memref<2x8x16x128xf32, #tpu.memory_space<vmem>> -> memref<1x8x16x128xf32, #tpu.memory_space<vmem>>
      %208 = tpu.memref_squeeze %207 : memref<1x8x16x128xf32, #tpu.memory_space<vmem>> -> memref<8x16x128xf32, #tpu.memory_space<vmem>>
      %209 = tpu.memref_slice %arg16[%c0_i32_6] : memref<2x!tpu.dma_semaphore, #tpu.memory_space<semaphore_mem>> -> memref<1x!tpu.dma_semaphore, #tpu.memory_space<semaphore_mem>>
      %210 = tpu.memref_squeeze %209 : memref<1x!tpu.dma_semaphore, #tpu.memory_space<semaphore_mem>> -> memref<!tpu.dma_semaphore, #tpu.memory_space<semaphore_mem>>
      tpu.enqueue_dma source(%206 : memref<8x16x128xf32, #tpu.memory_space<any>>) target(%208 : memref<8x16x128xf32, #tpu.memory_space<vmem>>) target_semaphore(%210 : memref<!tpu.dma_semaphore, #tpu.memory_space<semaphore_mem>>)
    } else {
    }
    %10 = arith.extui %1 : i1 to i32
    %c1_i32_8 = arith.constant 1 : i32
    %c1_i32_9 = arith.constant 1 : i32
    %c0_i32_10 = arith.constant 0 : i32
    %11 = arith.cmpi ne, %10, %c0_i32_10 : i32
    scf.if %11 {
      %c0_i32_267 = arith.constant 0 : i32
      %c0_i32_268 = arith.constant 0 : i32
      %205 = tpu.memref_slice %arg3[%arg0, %7, %c0_i32_267, %c0_i32_268] : memref<2x16x16x128xf32, #tpu.memory_space<any>> -> memref<1x8x16x128xf32, #tpu.memory_space<any>>
      %206 = tpu.memref_squeeze %205 : memref<1x8x16x128xf32, #tpu.memory_space<any>> -> memref<8x16x128xf32, #tpu.memory_space<any>>
      %c0_i32_269 = arith.constant 0 : i32
      %c0_i32_270 = arith.constant 0 : i32
      %c0_i32_271 = arith.constant 0 : i32
      %207 = tpu.memref_slice %arg15[%c1_i32_8, %c0_i32_269, %c0_i32_270, %c0_i32_271] : memref<2x8x16x128xf32, #tpu.memory_space<vmem>> -> memref<1x8x16x128xf32, #tpu.memory_space<vmem>>
      %208 = tpu.memref_squeeze %207 : memref<1x8x16x128xf32, #tpu.memory_space<vmem>> -> memref<8x16x128xf32, #tpu.memory_space<vmem>>
      %209 = tpu.memref_slice %arg16[%c1_i32_9] : memref<2x!tpu.dma_semaphore, #tpu.memory_space<semaphore_mem>> -> memref<1x!tpu.dma_semaphore, #tpu.memory_space<semaphore_mem>>
      %210 = tpu.memref_squeeze %209 : memref<1x!tpu.dma_semaphore, #tpu.memory_space<semaphore_mem>> -> memref<!tpu.dma_semaphore, #tpu.memory_space<semaphore_mem>>
      tpu.enqueue_dma source(%206 : memref<8x16x128xf32, #tpu.memory_space<any>>) target(%208 : memref<8x16x128xf32, #tpu.memory_space<vmem>>) target_semaphore(%210 : memref<!tpu.dma_semaphore, #tpu.memory_space<semaphore_mem>>)
    } else {
    }
    %cst = arith.constant 0.000000e+00 : bf16
    %12 = vector.broadcast %cst : bf16 to vector<24x16x128xbf16>
    %cst_11 = arith.constant 0.000000e+00 : bf16
    %13 = vector.broadcast %cst_11 : bf16 to vector<8x16x128xbf16>
    %c0 = arith.constant 0 : index
    %c0_12 = arith.constant 0 : index
    %c0_13 = arith.constant 0 : index
    %14 = vector.load %arg12[%c0, %c0_12, %c0_13] : memref<24x48x128xbf16, #tpu.memory_space<vmem>>, vector<24x16x128xbf16>
    tpu.vector_store %arg12[%c0, %c0_12, %c0_13], %12 {strides = array<i32>} : memref<24x48x128xbf16, #tpu.memory_space<vmem>>, vector<24x16x128xbf16>,
    %c0_14 = arith.constant 0 : index
    %c32 = arith.constant 32 : index
    %c0_15 = arith.constant 0 : index
    %15 = vector.load %arg12[%c0_14, %c32, %c0_15] : memref<24x48x128xbf16, #tpu.memory_space<vmem>>, vector<24x16x128xbf16>
    tpu.vector_store %arg12[%c0_14, %c32, %c0_15], %12 {strides = array<i32>} : memref<24x48x128xbf16, #tpu.memory_space<vmem>>, vector<24x16x128xbf16>,
    %c0_16 = arith.constant 0 : index
    %c16 = arith.constant 16 : index
    %c0_17 = arith.constant 0 : index
    %16 = vector.load %arg12[%c0_16, %c16, %c0_17] : memref<24x48x128xbf16, #tpu.memory_space<vmem>>, vector<8x16x128xbf16>
    tpu.vector_store %arg12[%c0_16, %c16, %c0_17], %13 {strides = array<i32>} : memref<24x48x128xbf16, #tpu.memory_space<vmem>>, vector<8x16x128xbf16>,
    %c16_18 = arith.constant 16 : index
    %c16_19 = arith.constant 16 : index
    %c0_20 = arith.constant 0 : index
    %17 = vector.load %arg12[%c16_18, %c16_19, %c0_20] : memref<24x48x128xbf16, #tpu.memory_space<vmem>>, vector<8x16x128xbf16>
    tpu.vector_store %arg12[%c16_18, %c16_19, %c0_20], %13 {strides = array<i32>} : memref<24x48x128xbf16, #tpu.memory_space<vmem>>, vector<8x16x128xbf16>,
    %18 = arith.extui %0 : i1 to i32
    %c0_i32_21 = arith.constant 0 : i32
    %c0_i32_22 = arith.constant 0 : i32
    %c0_i32_23 = arith.constant 0 : i32
    %19 = arith.cmpi ne, %18, %c0_i32_23 : i32
    scf.if %19 {
      %c0_i32_267 = arith.constant 0 : i32
      %c0_i32_268 = arith.constant 0 : i32
      %205 = tpu.memref_slice %arg3[%arg0, %4, %c0_i32_267, %c0_i32_268] : memref<2x16x16x128xf32, #tpu.memory_space<any>> -> memref<1x8x16x128xf32, #tpu.memory_space<any>>
      %206 = tpu.memref_squeeze %205 : memref<1x8x16x128xf32, #tpu.memory_space<any>> -> memref<8x16x128xf32, #tpu.memory_space<any>>
      %c0_i32_269 = arith.constant 0 : i32
      %c0_i32_270 = arith.constant 0 : i32
      %c0_i32_271 = arith.constant 0 : i32
      %207 = tpu.memref_slice %arg15[%c0_i32_21, %c0_i32_269, %c0_i32_270, %c0_i32_271] : memref<2x8x16x128xf32, #tpu.memory_space<vmem>> -> memref<1x8x16x128xf32, #tpu.memory_space<vmem>>
      %208 = tpu.memref_squeeze %207 : memref<1x8x16x128xf32, #tpu.memory_space<vmem>> -> memref<8x16x128xf32, #tpu.memory_space<vmem>>
      %209 = tpu.memref_slice %arg16[%c0_i32_22] : memref<2x!tpu.dma_semaphore, #tpu.memory_space<semaphore_mem>> -> memref<1x!tpu.dma_semaphore, #tpu.memory_space<semaphore_mem>>
      %210 = tpu.memref_squeeze %209 : memref<1x!tpu.dma_semaphore, #tpu.memory_space<semaphore_mem>> -> memref<!tpu.dma_semaphore, #tpu.memory_space<semaphore_mem>>
      tpu.wait_dma2 semaphore(%210 : memref<!tpu.dma_semaphore, #tpu.memory_space<semaphore_mem>>) src(%206 : memref<8x16x128xf32, #tpu.memory_space<any>>) dst(%208 : memref<8x16x128xf32, #tpu.memory_space<vmem>>)
    } else {
    }
    %20 = arith.extui %1 : i1 to i32
    %c1_i32_24 = arith.constant 1 : i32
    %c1_i32_25 = arith.constant 1 : i32
    %c0_i32_26 = arith.constant 0 : i32
    %21 = arith.cmpi ne, %20, %c0_i32_26 : i32
    scf.if %21 {
      %c0_i32_267 = arith.constant 0 : i32
      %c0_i32_268 = arith.constant 0 : i32
      %205 = tpu.memref_slice %arg3[%arg0, %7, %c0_i32_267, %c0_i32_268] : memref<2x16x16x128xf32, #tpu.memory_space<any>> -> memref<1x8x16x128xf32, #tpu.memory_space<any>>
      %206 = tpu.memref_squeeze %205 : memref<1x8x16x128xf32, #tpu.memory_space<any>> -> memref<8x16x128xf32, #tpu.memory_space<any>>
      %c0_i32_269 = arith.constant 0 : i32
      %c0_i32_270 = arith.constant 0 : i32
      %c0_i32_271 = arith.constant 0 : i32
      %207 = tpu.memref_slice %arg15[%c1_i32_24, %c0_i32_269, %c0_i32_270, %c0_i32_271] : memref<2x8x16x128xf32, #tpu.memory_space<vmem>> -> memref<1x8x16x128xf32, #tpu.memory_space<vmem>>
      %208 = tpu.memref_squeeze %207 : memref<1x8x16x128xf32, #tpu.memory_space<vmem>> -> memref<8x16x128xf32, #tpu.memory_space<vmem>>
      %209 = tpu.memref_slice %arg16[%c1_i32_25] : memref<2x!tpu.dma_semaphore, #tpu.memory_space<semaphore_mem>> -> memref<1x!tpu.dma_semaphore, #tpu.memory_space<semaphore_mem>>
      %210 = tpu.memref_squeeze %209 : memref<1x!tpu.dma_semaphore, #tpu.memory_space<semaphore_mem>> -> memref<!tpu.dma_semaphore, #tpu.memory_space<semaphore_mem>>
      tpu.wait_dma2 semaphore(%210 : memref<!tpu.dma_semaphore, #tpu.memory_space<semaphore_mem>>) src(%206 : memref<8x16x128xf32, #tpu.memory_space<any>>) dst(%208 : memref<8x16x128xf32, #tpu.memory_space<vmem>>)
    } else {
    }
    %c0_27 = arith.constant 0 : index
    %c0_28 = arith.constant 0 : index
    %c0_29 = arith.constant 0 : index
    %c0_30 = arith.constant 0 : index
    %22 = vector.load %arg2[%c0_27, %c0_28, %c0_29, %c0_30] : memref<1x8x16x128xf32, #tpu.memory_space<vmem>>, vector<1x8x16x128xf32>
    %23 = vector.shape_cast %22 : vector<1x8x16x128xf32> to vector<8x16x128xf32>
    %c0_31 = arith.constant 0 : index
    %c0_32 = arith.constant 0 : index
    %24 = vector.load %arg4[%c0_31, %c0_32] : memref<3x128xf32, #tpu.memory_space<vmem>>, vector<1x128xf32>
    %25 = vector.shape_cast %24 : vector<1x128xf32> to vector<128xf32>
    %26 = vector.shape_cast %25 : vector<128xf32> to vector<1x1x128xf32>
    %c0_33 = arith.constant 0 : index
    %c0_34 = arith.constant 0 : index
    %27 = vector.load %arg5[%c0_33, %c0_34] : memref<3x128xf32, #tpu.memory_space<vmem>>, vector<1x128xf32>
    %28 = vector.shape_cast %27 : vector<1x128xf32> to vector<128xf32>
    %29 = vector.shape_cast %28 : vector<128xf32> to vector<1x1x128xf32>
    %30 = vector.broadcast %26 : vector<1x1x128xf32> to vector<8x16x128xf32>
    %31 = arith.mulf %23, %30 : vector<8x16x128xf32>
    %32 = vector.broadcast %29 : vector<1x1x128xf32> to vector<8x16x128xf32>
    %33 = arith.addf %31, %32 : vector<8x16x128xf32>
    %cst_35 = arith.constant 0.000000e+00 : f32
    %34 = vector.broadcast %cst_35 : f32 to vector<8x16x128xf32>
    %35 = arith.maximumf %33, %34 : vector<8x16x128xf32>
    %36 = arith.truncf %35 : vector<8x16x128xf32> to vector<8x16x128xbf16>
    %c8 = arith.constant 8 : index
    %c16_36 = arith.constant 16 : index
    %c0_37 = arith.constant 0 : index
    %37 = vector.load %arg12[%c8, %c16_36, %c0_37] : memref<24x48x128xbf16, #tpu.memory_space<vmem>>, vector<8x16x128xbf16>
    tpu.vector_store %arg12[%c8, %c16_36, %c0_37], %36 {strides = array<i32>} : memref<24x48x128xbf16, #tpu.memory_space<vmem>>, vector<8x16x128xbf16>,
    %38 = arith.extui %0 : i1 to i32
    %c0_i32_38 = arith.constant 0 : i32
    %39 = arith.cmpi ne, %38, %c0_i32_38 : i32
    scf.if %39 {
      %c0_267 = arith.constant 0 : index
      %c0_268 = arith.constant 0 : index
      %c0_269 = arith.constant 0 : index
      %c0_270 = arith.constant 0 : index
      %205 = vector.load %arg15[%c0_267, %c0_268, %c0_269, %c0_270] : memref<2x8x16x128xf32, #tpu.memory_space<vmem>>, vector<1x8x16x128xf32>
      %206 = vector.shape_cast %205 : vector<1x8x16x128xf32> to vector<8x16x128xf32>
      %207 = vector.broadcast %26 : vector<1x1x128xf32> to vector<8x16x128xf32>
      %208 = arith.mulf %206, %207 : vector<8x16x128xf32>
      %209 = vector.broadcast %29 : vector<1x1x128xf32> to vector<8x16x128xf32>
      %210 = arith.addf %208, %209 : vector<8x16x128xf32>
      %cst_271 = arith.constant 0.000000e+00 : f32
      %211 = vector.broadcast %cst_271 : f32 to vector<8x16x128xf32>
      %212 = arith.maximumf %210, %211 : vector<8x16x128xf32>
      %213 = arith.truncf %212 : vector<8x16x128xf32> to vector<8x16x128xbf16>
      %c0_272 = arith.constant 0 : index
      %c16_273 = arith.constant 16 : index
      %c0_274 = arith.constant 0 : index
      %214 = vector.load %arg12[%c0_272, %c16_273, %c0_274] : memref<24x48x128xbf16, #tpu.memory_space<vmem>>, vector<8x16x128xbf16>
      tpu.vector_store %arg12[%c0_272, %c16_273, %c0_274], %213 {strides = array<i32>} : memref<24x48x128xbf16, #tpu.memory_space<vmem>>, vector<8x16x128xbf16>,
    } else {
    }
    %40 = arith.extui %1 : i1 to i32
    %c0_i32_39 = arith.constant 0 : i32
    %41 = arith.cmpi ne, %40, %c0_i32_39 : i32
    scf.if %41 {
      %c1_267 = arith.constant 1 : index
      %c0_268 = arith.constant 0 : index
      %c0_269 = arith.constant 0 : index
      %c0_270 = arith.constant 0 : index
      %205 = vector.load %arg15[%c1_267, %c0_268, %c0_269, %c0_270] : memref<2x8x16x128xf32, #tpu.memory_space<vmem>>, vector<1x8x16x128xf32>
      %206 = vector.shape_cast %205 : vector<1x8x16x128xf32> to vector<8x16x128xf32>
      %207 = vector.broadcast %26 : vector<1x1x128xf32> to vector<8x16x128xf32>
      %208 = arith.mulf %206, %207 : vector<8x16x128xf32>
      %209 = vector.broadcast %29 : vector<1x1x128xf32> to vector<8x16x128xf32>
      %210 = arith.addf %208, %209 : vector<8x16x128xf32>
      %cst_271 = arith.constant 0.000000e+00 : f32
      %211 = vector.broadcast %cst_271 : f32 to vector<8x16x128xf32>
      %212 = arith.maximumf %210, %211 : vector<8x16x128xf32>
      %213 = arith.truncf %212 : vector<8x16x128xf32> to vector<8x16x128xbf16>
      %c16_272 = arith.constant 16 : index
      %c16_273 = arith.constant 16 : index
      %c0_274 = arith.constant 0 : index
      %214 = vector.load %arg12[%c16_272, %c16_273, %c0_274] : memref<24x48x128xbf16, #tpu.memory_space<vmem>>, vector<8x16x128xbf16>
      tpu.vector_store %arg12[%c16_272, %c16_273, %c0_274], %213 {strides = array<i32>} : memref<24x48x128xbf16, #tpu.memory_space<vmem>>, vector<8x16x128xbf16>,
    } else {
    }
    %c6 = arith.constant 6 : index
    %c14 = arith.constant 14 : index
    %c0_40 = arith.constant 0 : index
    %42 = vector.load %arg12[%c6, %c14, %c0_40] : memref<24x48x128xbf16, #tpu.memory_space<vmem>>, vector<8x16x128xbf16>
    %c0_41 = arith.constant 0 : index
    %c0_42 = arith.constant 0 : index
    %c0_43 = arith.constant 0 : index
    %43 = vector.load %arg13[%c0_41, %c0_42, %c0_43] : memref<8x16x1152xbf16, #tpu.memory_space<vmem>>, vector<8x16x128xbf16>
    tpu.vector_store %arg13[%c0_41, %c0_42, %c0_43], %42 {strides = array<i32>} : memref<8x16x1152xbf16, #tpu.memory_space<vmem>>, vector<8x16x128xbf16>,
    %c6_44 = arith.constant 6 : index
    %c16_45 = arith.constant 16 : index
    %c0_46 = arith.constant 0 : index
    %44 = vector.load %arg12[%c6_44, %c16_45, %c0_46] : memref<24x48x128xbf16, #tpu.memory_space<vmem>>, vector<8x16x128xbf16>
    %c0_47 = arith.constant 0 : index
    %c0_48 = arith.constant 0 : index
    %c128 = arith.constant 128 : index
    %45 = vector.load %arg13[%c0_47, %c0_48, %c128] : memref<8x16x1152xbf16, #tpu.memory_space<vmem>>, vector<8x16x128xbf16>
    tpu.vector_store %arg13[%c0_47, %c0_48, %c128], %44 {strides = array<i32>} : memref<8x16x1152xbf16, #tpu.memory_space<vmem>>, vector<8x16x128xbf16>,
    %c6_49 = arith.constant 6 : index
    %c18 = arith.constant 18 : index
    %c0_50 = arith.constant 0 : index
    %46 = vector.load %arg12[%c6_49, %c18, %c0_50] : memref<24x48x128xbf16, #tpu.memory_space<vmem>>, vector<8x16x128xbf16>
    %c0_51 = arith.constant 0 : index
    %c0_52 = arith.constant 0 : index
    %c256 = arith.constant 256 : index
    %47 = vector.load %arg13[%c0_51, %c0_52, %c256] : memref<8x16x1152xbf16, #tpu.memory_space<vmem>>, vector<8x16x128xbf16>
    tpu.vector_store %arg13[%c0_51, %c0_52, %c256], %46 {strides = array<i32>} : memref<8x16x1152xbf16, #tpu.memory_space<vmem>>, vector<8x16x128xbf16>,
    %c8_53 = arith.constant 8 : index
    %c14_54 = arith.constant 14 : index
    %c0_55 = arith.constant 0 : index
    %48 = vector.load %arg12[%c8_53, %c14_54, %c0_55] : memref<24x48x128xbf16, #tpu.memory_space<vmem>>, vector<8x16x128xbf16>
    %c0_56 = arith.constant 0 : index
    %c0_57 = arith.constant 0 : index
    %c384 = arith.constant 384 : index
    %49 = vector.load %arg13[%c0_56, %c0_57, %c384] : memref<8x16x1152xbf16, #tpu.memory_space<vmem>>, vector<8x16x128xbf16>
    tpu.vector_store %arg13[%c0_56, %c0_57, %c384], %48 {strides = array<i32>} : memref<8x16x1152xbf16, #tpu.memory_space<vmem>>, vector<8x16x128xbf16>,
    %c8_58 = arith.constant 8 : index
    %c16_59 = arith.constant 16 : index
    %c0_60 = arith.constant 0 : index
    %50 = vector.load %arg12[%c8_58, %c16_59, %c0_60] : memref<24x48x128xbf16, #tpu.memory_space<vmem>>, vector<8x16x128xbf16>
    %c0_61 = arith.constant 0 : index
    %c0_62 = arith.constant 0 : index
    %c512 = arith.constant 512 : index
    %51 = vector.load %arg13[%c0_61, %c0_62, %c512] : memref<8x16x1152xbf16, #tpu.memory_space<vmem>>, vector<8x16x128xbf16>
    tpu.vector_store %arg13[%c0_61, %c0_62, %c512], %50 {strides = array<i32>} : memref<8x16x1152xbf16, #tpu.memory_space<vmem>>, vector<8x16x128xbf16>,
    %c8_63 = arith.constant 8 : index
    %c18_64 = arith.constant 18 : index
    %c0_65 = arith.constant 0 : index
    %52 = vector.load %arg12[%c8_63, %c18_64, %c0_65] : memref<24x48x128xbf16, #tpu.memory_space<vmem>>, vector<8x16x128xbf16>
    %c0_66 = arith.constant 0 : index
    %c0_67 = arith.constant 0 : index
    %c640 = arith.constant 640 : index
    %53 = vector.load %arg13[%c0_66, %c0_67, %c640] : memref<8x16x1152xbf16, #tpu.memory_space<vmem>>, vector<8x16x128xbf16>
    tpu.vector_store %arg13[%c0_66, %c0_67, %c640], %52 {strides = array<i32>} : memref<8x16x1152xbf16, #tpu.memory_space<vmem>>, vector<8x16x128xbf16>,
    %c10 = arith.constant 10 : index
    %c14_68 = arith.constant 14 : index
    %c0_69 = arith.constant 0 : index
    %54 = vector.load %arg12[%c10, %c14_68, %c0_69] : memref<24x48x128xbf16, #tpu.memory_space<vmem>>, vector<8x16x128xbf16>
    %c0_70 = arith.constant 0 : index
    %c0_71 = arith.constant 0 : index
    %c768 = arith.constant 768 : index
    %55 = vector.load %arg13[%c0_70, %c0_71, %c768] : memref<8x16x1152xbf16, #tpu.memory_space<vmem>>, vector<8x16x128xbf16>
    tpu.vector_store %arg13[%c0_70, %c0_71, %c768], %54 {strides = array<i32>} : memref<8x16x1152xbf16, #tpu.memory_space<vmem>>, vector<8x16x128xbf16>,
    %c10_72 = arith.constant 10 : index
    %c16_73 = arith.constant 16 : index
    %c0_74 = arith.constant 0 : index
    %56 = vector.load %arg12[%c10_72, %c16_73, %c0_74] : memref<24x48x128xbf16, #tpu.memory_space<vmem>>, vector<8x16x128xbf16>
    %c0_75 = arith.constant 0 : index
    %c0_76 = arith.constant 0 : index
    %c896 = arith.constant 896 : index
    %57 = vector.load %arg13[%c0_75, %c0_76, %c896] : memref<8x16x1152xbf16, #tpu.memory_space<vmem>>, vector<8x16x128xbf16>
    tpu.vector_store %arg13[%c0_75, %c0_76, %c896], %56 {strides = array<i32>} : memref<8x16x1152xbf16, #tpu.memory_space<vmem>>, vector<8x16x128xbf16>,
    %c10_77 = arith.constant 10 : index
    %c18_78 = arith.constant 18 : index
    %c0_79 = arith.constant 0 : index
    %58 = vector.load %arg12[%c10_77, %c18_78, %c0_79] : memref<24x48x128xbf16, #tpu.memory_space<vmem>>, vector<8x16x128xbf16>
    %c0_80 = arith.constant 0 : index
    %c0_81 = arith.constant 0 : index
    %c1024 = arith.constant 1024 : index
    %59 = vector.load %arg13[%c0_80, %c0_81, %c1024] : memref<8x16x1152xbf16, #tpu.memory_space<vmem>>, vector<8x16x128xbf16>
    tpu.vector_store %arg13[%c0_80, %c0_81, %c1024], %58 {strides = array<i32>} : memref<8x16x1152xbf16, #tpu.memory_space<vmem>>, vector<8x16x128xbf16>,
    %c0_82 = arith.constant 0 : index
    %c0_83 = arith.constant 0 : index
    %c0_84 = arith.constant 0 : index
    %60 = vector.load %arg13[%c0_82, %c0_83, %c0_84] : memref<8x16x1152xbf16, #tpu.memory_space<vmem>>, vector<8x16x1152xbf16>
    %61 = vector.shape_cast %60 : vector<8x16x1152xbf16> to vector<128x1152xbf16>
    %c0_85 = arith.constant 0 : index
    %c0_86 = arith.constant 0 : index
    %c0_87 = arith.constant 0 : index
    %62 = vector.load %arg6[%c0_85, %c0_86, %c0_87] : memref<3x1152x128xbf16, #tpu.memory_space<vmem>>, vector<1x1152x128xbf16>
    %63 = vector.shape_cast %62 : vector<1x1152x128xbf16> to vector<1152x128xbf16>
    %cst_88 = arith.constant dense<0.000000e+00> : vector<128x128xf32>
    %64 = tpu.matmul %61, %63, %cst_88 {dimension_numbers = #tpu.dot_dimension_numbers<[1], [0], [0], [1], [0, 0, 1, 1], [], []>} : vector<128x1152xbf16>, vector<1152x128xbf16>, vector<128x128xf32> -> vector<128x128xf32>
    %c0_89 = arith.constant 0 : index
    %c0_90 = arith.constant 0 : index
    %65 = vector.load %arg7[%c0_89, %c0_90] : memref<3x128xf32, #tpu.memory_space<vmem>>, vector<1x128xf32>
    %66 = vector.shape_cast %65 : vector<1x128xf32> to vector<128xf32>
    %67 = vector.shape_cast %66 : vector<128xf32> to vector<1x128xf32>
    %68 = vector.broadcast %67 : vector<1x128xf32> to vector<128x128xf32>
    %69 = arith.mulf %64, %68 : vector<128x128xf32>
    %c0_91 = arith.constant 0 : index
    %c0_92 = arith.constant 0 : index
    %70 = vector.load %arg8[%c0_91, %c0_92] : memref<3x128xf32, #tpu.memory_space<vmem>>, vector<1x128xf32>
    %71 = vector.shape_cast %70 : vector<1x128xf32> to vector<128xf32>
    %72 = vector.shape_cast %71 : vector<128xf32> to vector<1x128xf32>
    %73 = vector.broadcast %72 : vector<1x128xf32> to vector<128x128xf32>
    %74 = arith.addf %69, %73 : vector<128x128xf32>
    %cst_93 = arith.constant 0.000000e+00 : f32
    %75 = vector.broadcast %cst_93 : f32 to vector<128x128xf32>
    %76 = arith.maximumf %74, %75 : vector<128x128xf32>
    %77 = arith.truncf %76 : vector<128x128xf32> to vector<128x128xbf16>
    %c0_94 = arith.constant 0 : index
    %c0_95 = arith.constant 0 : index
    %78 = vector.load %arg9[%c0_94, %c0_95] : memref<384x128xbf16, #tpu.memory_space<vmem>>, vector<128x128xbf16>
    %cst_96 = arith.constant dense<0.000000e+00> : vector<128x128xf32>
    %79 = tpu.matmul %77, %78, %cst_96 {dimension_numbers = #tpu.dot_dimension_numbers<[1], [0], [0], [1], [0, 0, 1, 1], [], []>} : vector<128x128xbf16>, vector<128x128xbf16>, vector<128x128xf32> -> vector<128x128xf32>
    %c0_97 = arith.constant 0 : index
    %c0_98 = arith.constant 0 : index
    %80 = vector.load %arg14[%c0_97, %c0_98] : memref<128x128xf32, #tpu.memory_space<vmem>>, vector<128x128xf32>
    tpu.vector_store %arg14[%c0_97, %c0_98], %79 {strides = array<i32>} : memref<128x128xf32, #tpu.memory_space<vmem>>, vector<128x128xf32>,
    %c1 = arith.constant 1 : index
    %c0_99 = arith.constant 0 : index
    %81 = vector.load %arg4[%c1, %c0_99] : memref<3x128xf32, #tpu.memory_space<vmem>>, vector<1x128xf32>
    %82 = vector.shape_cast %81 : vector<1x128xf32> to vector<128xf32>
    %83 = vector.shape_cast %82 : vector<128xf32> to vector<1x1x128xf32>
    %c1_100 = arith.constant 1 : index
    %c0_101 = arith.constant 0 : index
    %84 = vector.load %arg5[%c1_100, %c0_101] : memref<3x128xf32, #tpu.memory_space<vmem>>, vector<1x128xf32>
    %85 = vector.shape_cast %84 : vector<1x128xf32> to vector<128xf32>
    %86 = vector.shape_cast %85 : vector<128xf32> to vector<1x1x128xf32>
    %87 = vector.broadcast %83 : vector<1x1x128xf32> to vector<8x16x128xf32>
    %88 = arith.mulf %23, %87 : vector<8x16x128xf32>
    %89 = vector.broadcast %86 : vector<1x1x128xf32> to vector<8x16x128xf32>
    %90 = arith.addf %88, %89 : vector<8x16x128xf32>
    %cst_102 = arith.constant 0.000000e+00 : f32
    %91 = vector.broadcast %cst_102 : f32 to vector<8x16x128xf32>
    %92 = arith.maximumf %90, %91 : vector<8x16x128xf32>
    %93 = arith.truncf %92 : vector<8x16x128xf32> to vector<8x16x128xbf16>
    %c8_103 = arith.constant 8 : index
    %c16_104 = arith.constant 16 : index
    %c0_105 = arith.constant 0 : index
    %94 = vector.load %arg12[%c8_103, %c16_104, %c0_105] : memref<24x48x128xbf16, #tpu.memory_space<vmem>>, vector<8x16x128xbf16>
    tpu.vector_store %arg12[%c8_103, %c16_104, %c0_105], %93 {strides = array<i32>} : memref<24x48x128xbf16, #tpu.memory_space<vmem>>, vector<8x16x128xbf16>,
    %95 = arith.extui %0 : i1 to i32
    %c0_i32_106 = arith.constant 0 : i32
    %96 = arith.cmpi ne, %95, %c0_i32_106 : i32
    scf.if %96 {
      %c0_267 = arith.constant 0 : index
      %c0_268 = arith.constant 0 : index
      %c0_269 = arith.constant 0 : index
      %c0_270 = arith.constant 0 : index
      %205 = vector.load %arg15[%c0_267, %c0_268, %c0_269, %c0_270] : memref<2x8x16x128xf32, #tpu.memory_space<vmem>>, vector<1x8x16x128xf32>
      %206 = vector.shape_cast %205 : vector<1x8x16x128xf32> to vector<8x16x128xf32>
      %207 = vector.broadcast %83 : vector<1x1x128xf32> to vector<8x16x128xf32>
      %208 = arith.mulf %206, %207 : vector<8x16x128xf32>
      %209 = vector.broadcast %86 : vector<1x1x128xf32> to vector<8x16x128xf32>
      %210 = arith.addf %208, %209 : vector<8x16x128xf32>
      %cst_271 = arith.constant 0.000000e+00 : f32
      %211 = vector.broadcast %cst_271 : f32 to vector<8x16x128xf32>
      %212 = arith.maximumf %210, %211 : vector<8x16x128xf32>
      %213 = arith.truncf %212 : vector<8x16x128xf32> to vector<8x16x128xbf16>
      %c0_272 = arith.constant 0 : index
      %c16_273 = arith.constant 16 : index
      %c0_274 = arith.constant 0 : index
      %214 = vector.load %arg12[%c0_272, %c16_273, %c0_274] : memref<24x48x128xbf16, #tpu.memory_space<vmem>>, vector<8x16x128xbf16>
      tpu.vector_store %arg12[%c0_272, %c16_273, %c0_274], %213 {strides = array<i32>} : memref<24x48x128xbf16, #tpu.memory_space<vmem>>, vector<8x16x128xbf16>,
    } else {
    }
    %97 = arith.extui %1 : i1 to i32
    %c0_i32_107 = arith.constant 0 : i32
    %98 = arith.cmpi ne, %97, %c0_i32_107 : i32
    scf.if %98 {
      %c1_267 = arith.constant 1 : index
      %c0_268 = arith.constant 0 : index
      %c0_269 = arith.constant 0 : index
      %c0_270 = arith.constant 0 : index
      %205 = vector.load %arg15[%c1_267, %c0_268, %c0_269, %c0_270] : memref<2x8x16x128xf32, #tpu.memory_space<vmem>>, vector<1x8x16x128xf32>
      %206 = vector.shape_cast %205 : vector<1x8x16x128xf32> to vector<8x16x128xf32>
      %207 = vector.broadcast %83 : vector<1x1x128xf32> to vector<8x16x128xf32>
      %208 = arith.mulf %206, %207 : vector<8x16x128xf32>
      %209 = vector.broadcast %86 : vector<1x1x128xf32> to vector<8x16x128xf32>
      %210 = arith.addf %208, %209 : vector<8x16x128xf32>
      %cst_271 = arith.constant 0.000000e+00 : f32
      %211 = vector.broadcast %cst_271 : f32 to vector<8x16x128xf32>
      %212 = arith.maximumf %210, %211 : vector<8x16x128xf32>
      %213 = arith.truncf %212 : vector<8x16x128xf32> to vector<8x16x128xbf16>
      %c16_272 = arith.constant 16 : index
      %c16_273 = arith.constant 16 : index
      %c0_274 = arith.constant 0 : index
      %214 = vector.load %arg12[%c16_272, %c16_273, %c0_274] : memref<24x48x128xbf16, #tpu.memory_space<vmem>>, vector<8x16x128xbf16>
      tpu.vector_store %arg12[%c16_272, %c16_273, %c0_274], %213 {strides = array<i32>} : memref<24x48x128xbf16, #tpu.memory_space<vmem>>, vector<8x16x128xbf16>,
    } else {
    }
    %c4 = arith.constant 4 : index
    %c12 = arith.constant 12 : index
    %c0_108 = arith.constant 0 : index
    %99 = vector.load %arg12[%c4, %c12, %c0_108] : memref<24x48x128xbf16, #tpu.memory_space<vmem>>, vector<8x16x128xbf16>
    %c0_109 = arith.constant 0 : index
    %c0_110 = arith.constant 0 : index
    %c0_111 = arith.constant 0 : index
    %100 = vector.load %arg13[%c0_109, %c0_110, %c0_111] : memref<8x16x1152xbf16, #tpu.memory_space<vmem>>, vector<8x16x128xbf16>
    tpu.vector_store %arg13[%c0_109, %c0_110, %c0_111], %99 {strides = array<i32>} : memref<8x16x1152xbf16, #tpu.memory_space<vmem>>, vector<8x16x128xbf16>,
    %c4_112 = arith.constant 4 : index
    %c16_113 = arith.constant 16 : index
    %c0_114 = arith.constant 0 : index
    %101 = vector.load %arg12[%c4_112, %c16_113, %c0_114] : memref<24x48x128xbf16, #tpu.memory_space<vmem>>, vector<8x16x128xbf16>
    %c0_115 = arith.constant 0 : index
    %c0_116 = arith.constant 0 : index
    %c128_117 = arith.constant 128 : index
    %102 = vector.load %arg13[%c0_115, %c0_116, %c128_117] : memref<8x16x1152xbf16, #tpu.memory_space<vmem>>, vector<8x16x128xbf16>
    tpu.vector_store %arg13[%c0_115, %c0_116, %c128_117], %101 {strides = array<i32>} : memref<8x16x1152xbf16, #tpu.memory_space<vmem>>, vector<8x16x128xbf16>,
    %c4_118 = arith.constant 4 : index
    %c20 = arith.constant 20 : index
    %c0_119 = arith.constant 0 : index
    %103 = vector.load %arg12[%c4_118, %c20, %c0_119] : memref<24x48x128xbf16, #tpu.memory_space<vmem>>, vector<8x16x128xbf16>
    %c0_120 = arith.constant 0 : index
    %c0_121 = arith.constant 0 : index
    %c256_122 = arith.constant 256 : index
    %104 = vector.load %arg13[%c0_120, %c0_121, %c256_122] : memref<8x16x1152xbf16, #tpu.memory_space<vmem>>, vector<8x16x128xbf16>
    tpu.vector_store %arg13[%c0_120, %c0_121, %c256_122], %103 {strides = array<i32>} : memref<8x16x1152xbf16, #tpu.memory_space<vmem>>, vector<8x16x128xbf16>,
    %c8_123 = arith.constant 8 : index
    %c12_124 = arith.constant 12 : index
    %c0_125 = arith.constant 0 : index
    %105 = vector.load %arg12[%c8_123, %c12_124, %c0_125] : memref<24x48x128xbf16, #tpu.memory_space<vmem>>, vector<8x16x128xbf16>
    %c0_126 = arith.constant 0 : index
    %c0_127 = arith.constant 0 : index
    %c384_128 = arith.constant 384 : index
    %106 = vector.load %arg13[%c0_126, %c0_127, %c384_128] : memref<8x16x1152xbf16, #tpu.memory_space<vmem>>, vector<8x16x128xbf16>
    tpu.vector_store %arg13[%c0_126, %c0_127, %c384_128], %105 {strides = array<i32>} : memref<8x16x1152xbf16, #tpu.memory_space<vmem>>, vector<8x16x128xbf16>,
    %c8_129 = arith.constant 8 : index
    %c16_130 = arith.constant 16 : index
    %c0_131 = arith.constant 0 : index
    %107 = vector.load %arg12[%c8_129, %c16_130, %c0_131] : memref<24x48x128xbf16, #tpu.memory_space<vmem>>, vector<8x16x128xbf16>
    %c0_132 = arith.constant 0 : index
    %c0_133 = arith.constant 0 : index
    %c512_134 = arith.constant 512 : index
    %108 = vector.load %arg13[%c0_132, %c0_133, %c512_134] : memref<8x16x1152xbf16, #tpu.memory_space<vmem>>, vector<8x16x128xbf16>
    tpu.vector_store %arg13[%c0_132, %c0_133, %c512_134], %107 {strides = array<i32>} : memref<8x16x1152xbf16, #tpu.memory_space<vmem>>, vector<8x16x128xbf16>,
    %c8_135 = arith.constant 8 : index
    %c20_136 = arith.constant 20 : index
    %c0_137 = arith.constant 0 : index
    %109 = vector.load %arg12[%c8_135, %c20_136, %c0_137] : memref<24x48x128xbf16, #tpu.memory_space<vmem>>, vector<8x16x128xbf16>
    %c0_138 = arith.constant 0 : index
    %c0_139 = arith.constant 0 : index
    %c640_140 = arith.constant 640 : index
    %110 = vector.load %arg13[%c0_138, %c0_139, %c640_140] : memref<8x16x1152xbf16, #tpu.memory_space<vmem>>, vector<8x16x128xbf16>
    tpu.vector_store %arg13[%c0_138, %c0_139, %c640_140], %109 {strides = array<i32>} : memref<8x16x1152xbf16, #tpu.memory_space<vmem>>, vector<8x16x128xbf16>,
    %c12_141 = arith.constant 12 : index
    %c12_142 = arith.constant 12 : index
    %c0_143 = arith.constant 0 : index
    %111 = vector.load %arg12[%c12_141, %c12_142, %c0_143] : memref<24x48x128xbf16, #tpu.memory_space<vmem>>, vector<8x16x128xbf16>
    %c0_144 = arith.constant 0 : index
    %c0_145 = arith.constant 0 : index
    %c768_146 = arith.constant 768 : index
    %112 = vector.load %arg13[%c0_144, %c0_145, %c768_146] : memref<8x16x1152xbf16, #tpu.memory_space<vmem>>, vector<8x16x128xbf16>
    tpu.vector_store %arg13[%c0_144, %c0_145, %c768_146], %111 {strides = array<i32>} : memref<8x16x1152xbf16, #tpu.memory_space<vmem>>, vector<8x16x128xbf16>,
    %c12_147 = arith.constant 12 : index
    %c16_148 = arith.constant 16 : index
    %c0_149 = arith.constant 0 : index
    %113 = vector.load %arg12[%c12_147, %c16_148, %c0_149] : memref<24x48x128xbf16, #tpu.memory_space<vmem>>, vector<8x16x128xbf16>
    %c0_150 = arith.constant 0 : index
    %c0_151 = arith.constant 0 : index
    %c896_152 = arith.constant 896 : index
    %114 = vector.load %arg13[%c0_150, %c0_151, %c896_152] : memref<8x16x1152xbf16, #tpu.memory_space<vmem>>, vector<8x16x128xbf16>
    tpu.vector_store %arg13[%c0_150, %c0_151, %c896_152], %113 {strides = array<i32>} : memref<8x16x1152xbf16, #tpu.memory_space<vmem>>, vector<8x16x128xbf16>,
    %c12_153 = arith.constant 12 : index
    %c20_154 = arith.constant 20 : index
    %c0_155 = arith.constant 0 : index
    %115 = vector.load %arg12[%c12_153, %c20_154, %c0_155] : memref<24x48x128xbf16, #tpu.memory_space<vmem>>, vector<8x16x128xbf16>
    %c0_156 = arith.constant 0 : index
    %c0_157 = arith.constant 0 : index
    %c1024_158 = arith.constant 1024 : index
    %116 = vector.load %arg13[%c0_156, %c0_157, %c1024_158] : memref<8x16x1152xbf16, #tpu.memory_space<vmem>>, vector<8x16x128xbf16>
    tpu.vector_store %arg13[%c0_156, %c0_157, %c1024_158], %115 {strides = array<i32>} : memref<8x16x1152xbf16, #tpu.memory_space<vmem>>, vector<8x16x128xbf16>,
    %c0_159 = arith.constant 0 : index
    %c0_160 = arith.constant 0 : index
    %c0_161 = arith.constant 0 : index
    %117 = vector.load %arg13[%c0_159, %c0_160, %c0_161] : memref<8x16x1152xbf16, #tpu.memory_space<vmem>>, vector<8x16x1152xbf16>
    %118 = vector.shape_cast %117 : vector<8x16x1152xbf16> to vector<128x1152xbf16>
    %c1_162 = arith.constant 1 : index
    %c0_163 = arith.constant 0 : index
    %c0_164 = arith.constant 0 : index
    %119 = vector.load %arg6[%c1_162, %c0_163, %c0_164] : memref<3x1152x128xbf16, #tpu.memory_space<vmem>>, vector<1x1152x128xbf16>
    %120 = vector.shape_cast %119 : vector<1x1152x128xbf16> to vector<1152x128xbf16>
    %cst_165 = arith.constant dense<0.000000e+00> : vector<128x128xf32>
    %121 = tpu.matmul %118, %120, %cst_165 {dimension_numbers = #tpu.dot_dimension_numbers<[1], [0], [0], [1], [0, 0, 1, 1], [], []>} : vector<128x1152xbf16>, vector<1152x128xbf16>, vector<128x128xf32> -> vector<128x128xf32>
    %c1_166 = arith.constant 1 : index
    %c0_167 = arith.constant 0 : index
    %122 = vector.load %arg7[%c1_166, %c0_167] : memref<3x128xf32, #tpu.memory_space<vmem>>, vector<1x128xf32>
    %123 = vector.shape_cast %122 : vector<1x128xf32> to vector<128xf32>
    %124 = vector.shape_cast %123 : vector<128xf32> to vector<1x128xf32>
    %125 = vector.broadcast %124 : vector<1x128xf32> to vector<128x128xf32>
    %126 = arith.mulf %121, %125 : vector<128x128xf32>
    %c1_168 = arith.constant 1 : index
    %c0_169 = arith.constant 0 : index
    %127 = vector.load %arg8[%c1_168, %c0_169] : memref<3x128xf32, #tpu.memory_space<vmem>>, vector<1x128xf32>
    %128 = vector.shape_cast %127 : vector<1x128xf32> to vector<128xf32>
    %129 = vector.shape_cast %128 : vector<128xf32> to vector<1x128xf32>
    %130 = vector.broadcast %129 : vector<1x128xf32> to vector<128x128xf32>
    %131 = arith.addf %126, %130 : vector<128x128xf32>
    %cst_170 = arith.constant 0.000000e+00 : f32
    %132 = vector.broadcast %cst_170 : f32 to vector<128x128xf32>
    %133 = arith.maximumf %131, %132 : vector<128x128xf32>
    %134 = arith.truncf %133 : vector<128x128xf32> to vector<128x128xbf16>
    %c128_171 = arith.constant 128 : index
    %c0_172 = arith.constant 0 : index
    %135 = vector.load %arg9[%c128_171, %c0_172] : memref<384x128xbf16, #tpu.memory_space<vmem>>, vector<128x128xbf16>
    %cst_173 = arith.constant dense<0.000000e+00> : vector<128x128xf32>
    %136 = tpu.matmul %134, %135, %cst_173 {dimension_numbers = #tpu.dot_dimension_numbers<[1], [0], [0], [1], [0, 0, 1, 1], [], []>} : vector<128x128xbf16>, vector<128x128xbf16>, vector<128x128xf32> -> vector<128x128xf32>
    %c0_174 = arith.constant 0 : index
    %c0_175 = arith.constant 0 : index
    %137 = vector.load %arg14[%c0_174, %c0_175] : memref<128x128xf32, #tpu.memory_space<vmem>>, vector<128x128xf32>
    %138 = arith.addf %137, %136 : vector<128x128xf32>
    %c0_176 = arith.constant 0 : index
    %c0_177 = arith.constant 0 : index
    %139 = vector.load %arg14[%c0_176, %c0_177] : memref<128x128xf32, #tpu.memory_space<vmem>>, vector<128x128xf32>
    tpu.vector_store %arg14[%c0_176, %c0_177], %138 {strides = array<i32>} : memref<128x128xf32, #tpu.memory_space<vmem>>, vector<128x128xf32>,
    %c2 = arith.constant 2 : index
    %c0_178 = arith.constant 0 : index
    %140 = vector.load %arg4[%c2, %c0_178] : memref<3x128xf32, #tpu.memory_space<vmem>>, vector<1x128xf32>
    %141 = vector.shape_cast %140 : vector<1x128xf32> to vector<128xf32>
    %142 = vector.shape_cast %141 : vector<128xf32> to vector<1x1x128xf32>
    %c2_179 = arith.constant 2 : index
    %c0_180 = arith.constant 0 : index
    %143 = vector.load %arg5[%c2_179, %c0_180] : memref<3x128xf32, #tpu.memory_space<vmem>>, vector<1x128xf32>
    %144 = vector.shape_cast %143 : vector<1x128xf32> to vector<128xf32>
    %145 = vector.shape_cast %144 : vector<128xf32> to vector<1x1x128xf32>
    %146 = vector.broadcast %142 : vector<1x1x128xf32> to vector<8x16x128xf32>
    %147 = arith.mulf %23, %146 : vector<8x16x128xf32>
    %148 = vector.broadcast %145 : vector<1x1x128xf32> to vector<8x16x128xf32>
    %149 = arith.addf %147, %148 : vector<8x16x128xf32>
    %cst_181 = arith.constant 0.000000e+00 : f32
    %150 = vector.broadcast %cst_181 : f32 to vector<8x16x128xf32>
    %151 = arith.maximumf %149, %150 : vector<8x16x128xf32>
    %152 = arith.truncf %151 : vector<8x16x128xf32> to vector<8x16x128xbf16>
    %c8_182 = arith.constant 8 : index
    %c16_183 = arith.constant 16 : index
    %c0_184 = arith.constant 0 : index
    %153 = vector.load %arg12[%c8_182, %c16_183, %c0_184] : memref<24x48x128xbf16, #tpu.memory_space<vmem>>, vector<8x16x128xbf16>
    tpu.vector_store %arg12[%c8_182, %c16_183, %c0_184], %152 {strides = array<i32>} : memref<24x48x128xbf16, #tpu.memory_space<vmem>>, vector<8x16x128xbf16>,
    %154 = arith.extui %0 : i1 to i32
    %c0_i32_185 = arith.constant 0 : i32
    %155 = arith.cmpi ne, %154, %c0_i32_185 : i32
    scf.if %155 {
      %c0_267 = arith.constant 0 : index
      %c0_268 = arith.constant 0 : index
      %c0_269 = arith.constant 0 : index
      %c0_270 = arith.constant 0 : index
      %205 = vector.load %arg15[%c0_267, %c0_268, %c0_269, %c0_270] : memref<2x8x16x128xf32, #tpu.memory_space<vmem>>, vector<1x8x16x128xf32>
      %206 = vector.shape_cast %205 : vector<1x8x16x128xf32> to vector<8x16x128xf32>
      %207 = vector.broadcast %142 : vector<1x1x128xf32> to vector<8x16x128xf32>
      %208 = arith.mulf %206, %207 : vector<8x16x128xf32>
      %209 = vector.broadcast %145 : vector<1x1x128xf32> to vector<8x16x128xf32>
      %210 = arith.addf %208, %209 : vector<8x16x128xf32>
      %cst_271 = arith.constant 0.000000e+00 : f32
      %211 = vector.broadcast %cst_271 : f32 to vector<8x16x128xf32>
      %212 = arith.maximumf %210, %211 : vector<8x16x128xf32>
      %213 = arith.truncf %212 : vector<8x16x128xf32> to vector<8x16x128xbf16>
      %c0_272 = arith.constant 0 : index
      %c16_273 = arith.constant 16 : index
      %c0_274 = arith.constant 0 : index
      %214 = vector.load %arg12[%c0_272, %c16_273, %c0_274] : memref<24x48x128xbf16, #tpu.memory_space<vmem>>, vector<8x16x128xbf16>
      tpu.vector_store %arg12[%c0_272, %c16_273, %c0_274], %213 {strides = array<i32>} : memref<24x48x128xbf16, #tpu.memory_space<vmem>>, vector<8x16x128xbf16>,
    } else {
    }
    %156 = arith.extui %1 : i1 to i32
    %c0_i32_186 = arith.constant 0 : i32
    %157 = arith.cmpi ne, %156, %c0_i32_186 : i32
    scf.if %157 {
      %c1_267 = arith.constant 1 : index
      %c0_268 = arith.constant 0 : index
      %c0_269 = arith.constant 0 : index
      %c0_270 = arith.constant 0 : index
      %205 = vector.load %arg15[%c1_267, %c0_268, %c0_269, %c0_270] : memref<2x8x16x128xf32, #tpu.memory_space<vmem>>, vector<1x8x16x128xf32>
      %206 = vector.shape_cast %205 : vector<1x8x16x128xf32> to vector<8x16x128xf32>
      %207 = vector.broadcast %142 : vector<1x1x128xf32> to vector<8x16x128xf32>
      %208 = arith.mulf %206, %207 : vector<8x16x128xf32>
      %209 = vector.broadcast %145 : vector<1x1x128xf32> to vector<8x16x128xf32>
      %210 = arith.addf %208, %209 : vector<8x16x128xf32>
      %cst_271 = arith.constant 0.000000e+00 : f32
      %211 = vector.broadcast %cst_271 : f32 to vector<8x16x128xf32>
      %212 = arith.maximumf %210, %211 : vector<8x16x128xf32>
      %213 = arith.truncf %212 : vector<8x16x128xf32> to vector<8x16x128xbf16>
      %c16_272 = arith.constant 16 : index
      %c16_273 = arith.constant 16 : index
      %c0_274 = arith.constant 0 : index
      %214 = vector.load %arg12[%c16_272, %c16_273, %c0_274] : memref<24x48x128xbf16, #tpu.memory_space<vmem>>, vector<8x16x128xbf16>
      tpu.vector_store %arg12[%c16_272, %c16_273, %c0_274], %213 {strides = array<i32>} : memref<24x48x128xbf16, #tpu.memory_space<vmem>>, vector<8x16x128xbf16>,
    } else {
    }
    %c2_187 = arith.constant 2 : index
    %c10_188 = arith.constant 10 : index
    %c0_189 = arith.constant 0 : index
    %158 = vector.load %arg12[%c2_187, %c10_188, %c0_189] : memref<24x48x128xbf16, #tpu.memory_space<vmem>>, vector<8x16x128xbf16>
    %c0_190 = arith.constant 0 : index
    %c0_191 = arith.constant 0 : index
    %c0_192 = arith.constant 0 : index
    %159 = vector.load %arg13[%c0_190, %c0_191, %c0_192] : memref<8x16x1152xbf16, #tpu.memory_space<vmem>>, vector<8x16x128xbf16>
    tpu.vector_store %arg13[%c0_190, %c0_191, %c0_192], %158 {strides = array<i32>} : memref<8x16x1152xbf16, #tpu.memory_space<vmem>>, vector<8x16x128xbf16>,
    %c2_193 = arith.constant 2 : index
    %c16_194 = arith.constant 16 : index
    %c0_195 = arith.constant 0 : index
    %160 = vector.load %arg12[%c2_193, %c16_194, %c0_195] : memref<24x48x128xbf16, #tpu.memory_space<vmem>>, vector<8x16x128xbf16>
    %c0_196 = arith.constant 0 : index
    %c0_197 = arith.constant 0 : index
    %c128_198 = arith.constant 128 : index
    %161 = vector.load %arg13[%c0_196, %c0_197, %c128_198] : memref<8x16x1152xbf16, #tpu.memory_space<vmem>>, vector<8x16x128xbf16>
    tpu.vector_store %arg13[%c0_196, %c0_197, %c128_198], %160 {strides = array<i32>} : memref<8x16x1152xbf16, #tpu.memory_space<vmem>>, vector<8x16x128xbf16>,
    %c2_199 = arith.constant 2 : index
    %c22 = arith.constant 22 : index
    %c0_200 = arith.constant 0 : index
    %162 = vector.load %arg12[%c2_199, %c22, %c0_200] : memref<24x48x128xbf16, #tpu.memory_space<vmem>>, vector<8x16x128xbf16>
    %c0_201 = arith.constant 0 : index
    %c0_202 = arith.constant 0 : index
    %c256_203 = arith.constant 256 : index
    %163 = vector.load %arg13[%c0_201, %c0_202, %c256_203] : memref<8x16x1152xbf16, #tpu.memory_space<vmem>>, vector<8x16x128xbf16>
    tpu.vector_store %arg13[%c0_201, %c0_202, %c256_203], %162 {strides = array<i32>} : memref<8x16x1152xbf16, #tpu.memory_space<vmem>>, vector<8x16x128xbf16>,
    %c8_204 = arith.constant 8 : index
    %c10_205 = arith.constant 10 : index
    %c0_206 = arith.constant 0 : index
    %164 = vector.load %arg12[%c8_204, %c10_205, %c0_206] : memref<24x48x128xbf16, #tpu.memory_space<vmem>>, vector<8x16x128xbf16>
    %c0_207 = arith.constant 0 : index
    %c0_208 = arith.constant 0 : index
    %c384_209 = arith.constant 384 : index
    %165 = vector.load %arg13[%c0_207, %c0_208, %c384_209] : memref<8x16x1152xbf16, #tpu.memory_space<vmem>>, vector<8x16x128xbf16>
    tpu.vector_store %arg13[%c0_207, %c0_208, %c384_209], %164 {strides = array<i32>} : memref<8x16x1152xbf16, #tpu.memory_space<vmem>>, vector<8x16x128xbf16>,
    %c8_210 = arith.constant 8 : index
    %c16_211 = arith.constant 16 : index
    %c0_212 = arith.constant 0 : index
    %166 = vector.load %arg12[%c8_210, %c16_211, %c0_212] : memref<24x48x128xbf16, #tpu.memory_space<vmem>>, vector<8x16x128xbf16>
    %c0_213 = arith.constant 0 : index
    %c0_214 = arith.constant 0 : index
    %c512_215 = arith.constant 512 : index
    %167 = vector.load %arg13[%c0_213, %c0_214, %c512_215] : memref<8x16x1152xbf16, #tpu.memory_space<vmem>>, vector<8x16x128xbf16>
    tpu.vector_store %arg13[%c0_213, %c0_214, %c512_215], %166 {strides = array<i32>} : memref<8x16x1152xbf16, #tpu.memory_space<vmem>>, vector<8x16x128xbf16>,
    %c8_216 = arith.constant 8 : index
    %c22_217 = arith.constant 22 : index
    %c0_218 = arith.constant 0 : index
    %168 = vector.load %arg12[%c8_216, %c22_217, %c0_218] : memref<24x48x128xbf16, #tpu.memory_space<vmem>>, vector<8x16x128xbf16>
    %c0_219 = arith.constant 0 : index
    %c0_220 = arith.constant 0 : index
    %c640_221 = arith.constant 640 : index
    %169 = vector.load %arg13[%c0_219, %c0_220, %c640_221] : memref<8x16x1152xbf16, #tpu.memory_space<vmem>>, vector<8x16x128xbf16>
    tpu.vector_store %arg13[%c0_219, %c0_220, %c640_221], %168 {strides = array<i32>} : memref<8x16x1152xbf16, #tpu.memory_space<vmem>>, vector<8x16x128xbf16>,
    %c14_222 = arith.constant 14 : index
    %c10_223 = arith.constant 10 : index
    %c0_224 = arith.constant 0 : index
    %170 = vector.load %arg12[%c14_222, %c10_223, %c0_224] : memref<24x48x128xbf16, #tpu.memory_space<vmem>>, vector<8x16x128xbf16>
    %c0_225 = arith.constant 0 : index
    %c0_226 = arith.constant 0 : index
    %c768_227 = arith.constant 768 : index
    %171 = vector.load %arg13[%c0_225, %c0_226, %c768_227] : memref<8x16x1152xbf16, #tpu.memory_space<vmem>>, vector<8x16x128xbf16>
    tpu.vector_store %arg13[%c0_225, %c0_226, %c768_227], %170 {strides = array<i32>} : memref<8x16x1152xbf16, #tpu.memory_space<vmem>>, vector<8x16x128xbf16>,
    %c14_228 = arith.constant 14 : index
    %c16_229 = arith.constant 16 : index
    %c0_230 = arith.constant 0 : index
    %172 = vector.load %arg12[%c14_228, %c16_229, %c0_230] : memref<24x48x128xbf16, #tpu.memory_space<vmem>>, vector<8x16x128xbf16>
    %c0_231 = arith.constant 0 : index
    %c0_232 = arith.constant 0 : index
    %c896_233 = arith.constant 896 : index
    %173 = vector.load %arg13[%c0_231, %c0_232, %c896_233] : memref<8x16x1152xbf16, #tpu.memory_space<vmem>>, vector<8x16x128xbf16>
    tpu.vector_store %arg13[%c0_231, %c0_232, %c896_233], %172 {strides = array<i32>} : memref<8x16x1152xbf16, #tpu.memory_space<vmem>>, vector<8x16x128xbf16>,
    %c14_234 = arith.constant 14 : index
    %c22_235 = arith.constant 22 : index
    %c0_236 = arith.constant 0 : index
    %174 = vector.load %arg12[%c14_234, %c22_235, %c0_236] : memref<24x48x128xbf16, #tpu.memory_space<vmem>>, vector<8x16x128xbf16>
    %c0_237 = arith.constant 0 : index
    %c0_238 = arith.constant 0 : index
    %c1024_239 = arith.constant 1024 : index
    %175 = vector.load %arg13[%c0_237, %c0_238, %c1024_239] : memref<8x16x1152xbf16, #tpu.memory_space<vmem>>, vector<8x16x128xbf16>
    tpu.vector_store %arg13[%c0_237, %c0_238, %c1024_239], %174 {strides = array<i32>} : memref<8x16x1152xbf16, #tpu.memory_space<vmem>>, vector<8x16x128xbf16>,
    %c0_240 = arith.constant 0 : index
    %c0_241 = arith.constant 0 : index
    %c0_242 = arith.constant 0 : index
    %176 = vector.load %arg13[%c0_240, %c0_241, %c0_242] : memref<8x16x1152xbf16, #tpu.memory_space<vmem>>, vector<8x16x1152xbf16>
    %177 = vector.shape_cast %176 : vector<8x16x1152xbf16> to vector<128x1152xbf16>
    %c2_243 = arith.constant 2 : index
    %c0_244 = arith.constant 0 : index
    %c0_245 = arith.constant 0 : index
    %178 = vector.load %arg6[%c2_243, %c0_244, %c0_245] : memref<3x1152x128xbf16, #tpu.memory_space<vmem>>, vector<1x1152x128xbf16>
    %179 = vector.shape_cast %178 : vector<1x1152x128xbf16> to vector<1152x128xbf16>
    %cst_246 = arith.constant dense<0.000000e+00> : vector<128x128xf32>
    %180 = tpu.matmul %177, %179, %cst_246 {dimension_numbers = #tpu.dot_dimension_numbers<[1], [0], [0], [1], [0, 0, 1, 1], [], []>} : vector<128x1152xbf16>, vector<1152x128xbf16>, vector<128x128xf32> -> vector<128x128xf32>
    %c2_247 = arith.constant 2 : index
    %c0_248 = arith.constant 0 : index
    %181 = vector.load %arg7[%c2_247, %c0_248] : memref<3x128xf32, #tpu.memory_space<vmem>>, vector<1x128xf32>
    %182 = vector.shape_cast %181 : vector<1x128xf32> to vector<128xf32>
    %183 = vector.shape_cast %182 : vector<128xf32> to vector<1x128xf32>
    %184 = vector.broadcast %183 : vector<1x128xf32> to vector<128x128xf32>
    %185 = arith.mulf %180, %184 : vector<128x128xf32>
    %c2_249 = arith.constant 2 : index
    %c0_250 = arith.constant 0 : index
    %186 = vector.load %arg8[%c2_249, %c0_250] : memref<3x128xf32, #tpu.memory_space<vmem>>, vector<1x128xf32>
    %187 = vector.shape_cast %186 : vector<1x128xf32> to vector<128xf32>
    %188 = vector.shape_cast %187 : vector<128xf32> to vector<1x128xf32>
    %189 = vector.broadcast %188 : vector<1x128xf32> to vector<128x128xf32>
    %190 = arith.addf %185, %189 : vector<128x128xf32>
    %cst_251 = arith.constant 0.000000e+00 : f32
    %191 = vector.broadcast %cst_251 : f32 to vector<128x128xf32>
    %192 = arith.maximumf %190, %191 : vector<128x128xf32>
    %193 = arith.truncf %192 : vector<128x128xf32> to vector<128x128xbf16>
    %c256_252 = arith.constant 256 : index
    %c0_253 = arith.constant 0 : index
    %194 = vector.load %arg9[%c256_252, %c0_253] : memref<384x128xbf16, #tpu.memory_space<vmem>>, vector<128x128xbf16>
    %cst_254 = arith.constant dense<0.000000e+00> : vector<128x128xf32>
    %195 = tpu.matmul %193, %194, %cst_254 {dimension_numbers = #tpu.dot_dimension_numbers<[1], [0], [0], [1], [0, 0, 1, 1], [], []>} : vector<128x128xbf16>, vector<128x128xbf16>, vector<128x128xf32> -> vector<128x128xf32>
    %c0_255 = arith.constant 0 : index
    %c0_256 = arith.constant 0 : index
    %196 = vector.load %arg14[%c0_255, %c0_256] : memref<128x128xf32, #tpu.memory_space<vmem>>, vector<128x128xf32>
    %197 = arith.addf %196, %195 : vector<128x128xf32>
    %c0_257 = arith.constant 0 : index
    %c0_258 = arith.constant 0 : index
    %198 = vector.load %arg14[%c0_257, %c0_258] : memref<128x128xf32, #tpu.memory_space<vmem>>, vector<128x128xf32>
    tpu.vector_store %arg14[%c0_257, %c0_258], %197 {strides = array<i32>} : memref<128x128xf32, #tpu.memory_space<vmem>>, vector<128x128xf32>,
    %c0_259 = arith.constant 0 : index
    %c0_260 = arith.constant 0 : index
    %199 = vector.load %arg14[%c0_259, %c0_260] : memref<128x128xf32, #tpu.memory_space<vmem>>, vector<128x128xf32>
    %c0_261 = arith.constant 0 : index
    %c0_262 = arith.constant 0 : index
    %200 = vector.load %arg10[%c0_261, %c0_262] : memref<1x128xf32, #tpu.memory_space<vmem>>, vector<1x128xf32>
    %201 = vector.broadcast %200 : vector<1x128xf32> to vector<128x128xf32>
    %202 = arith.addf %199, %201 : vector<128x128xf32>
    %203 = vector.shape_cast %202 : vector<128x128xf32> to vector<1x8x16x128xf32>
    %c0_263 = arith.constant 0 : index
    %c0_264 = arith.constant 0 : index
    %c0_265 = arith.constant 0 : index
    %c0_266 = arith.constant 0 : index
    %204 = vector.load %arg11[%c0_263, %c0_264, %c0_265, %c0_266] : memref<1x8x16x128xf32, #tpu.memory_space<vmem>>, vector<1x8x16x128xf32>
    tpu.vector_store %arg11[%c0_263, %c0_264, %c0_265, %c0_266], %203 {strides = array<i32>} : memref<1x8x16x128xf32, #tpu.memory_space<vmem>>, vector<1x8x16x128xf32>,
    return
  }
  func.func @transform_0(%arg0: i32, %arg1: i32) -> (i32, i32, i32, i32) {
    %c0_i32 = arith.constant 0 : i32
    %c0_i32_0 = arith.constant 0 : i32
    %c0_i32_1 = arith.constant 0 : i32
    return %arg0, %arg1, %c0_i32, %c0_i32_0 : i32, i32, i32, i32
  }
  func.func @transform_2(%arg0: i32, %arg1: i32) -> (i32, i32) {
    %c0_i32 = arith.constant 0 : i32
    %c0_i32_0 = arith.constant 0 : i32
    %c0_i32_1 = arith.constant 0 : i32
    return %c0_i32, %c0_i32_0 : i32, i32
  }
  func.func @transform_3(%arg0: i32, %arg1: i32) -> (i32, i32) {
    %c0_i32 = arith.constant 0 : i32
    %c0_i32_0 = arith.constant 0 : i32
    %c0_i32_1 = arith.constant 0 : i32
    return %c0_i32, %c0_i32_0 : i32, i32
  }
  func.func @transform_4(%arg0: i32, %arg1: i32) -> (i32, i32, i32) {
    %c0_i32 = arith.constant 0 : i32
    %c0_i32_0 = arith.constant 0 : i32
    %c0_i32_1 = arith.constant 0 : i32
    %c0_i32_2 = arith.constant 0 : i32
    return %c0_i32, %c0_i32_0, %c0_i32_1 : i32, i32, i32
  }
  func.func @transform_5(%arg0: i32, %arg1: i32) -> (i32, i32) {
    %c0_i32 = arith.constant 0 : i32
    %c0_i32_0 = arith.constant 0 : i32
    %c0_i32_1 = arith.constant 0 : i32
    return %c0_i32, %c0_i32_0 : i32, i32
  }
  func.func @transform_6(%arg0: i32, %arg1: i32) -> (i32, i32) {
    %c0_i32 = arith.constant 0 : i32
    %c0_i32_0 = arith.constant 0 : i32
    %c0_i32_1 = arith.constant 0 : i32
    return %c0_i32, %c0_i32_0 : i32, i32
  }
  func.func @transform_7(%arg0: i32, %arg1: i32) -> (i32, i32) {
    %c0_i32 = arith.constant 0 : i32
    %c0_i32_0 = arith.constant 0 : i32
    %c0_i32_1 = arith.constant 0 : i32
    return %c0_i32, %c0_i32_0 : i32, i32
  }
  func.func @transform_8(%arg0: i32, %arg1: i32) -> (i32, i32) {
    %c0_i32 = arith.constant 0 : i32
    %c0_i32_0 = arith.constant 0 : i32
    %c0_i32_1 = arith.constant 0 : i32
    return %c0_i32, %c0_i32_0 : i32, i32
  }
  func.func @transform_9(%arg0: i32, %arg1: i32) -> (i32, i32, i32, i32) {
    %c0_i32 = arith.constant 0 : i32
    %c0_i32_0 = arith.constant 0 : i32
    %c0_i32_1 = arith.constant 0 : i32
    return %arg0, %arg1, %c0_i32, %c0_i32_0 : i32, i32, i32, i32
  }
}

</mosaic_0001>

<bundles_post_ra>
// kernel: tpu_custom_call.1
= control target key start
LH: loop header
LB: loop body
LE: loop exit
PB: predicated region body
PF: predicated region fallthrough
CT: control target
= control target key end

     0   :  { %s10747_s0 = inlined_call_operand.hbm [shape: f32[2,16,16,128], index: 0, kind: input, shape index: {}]   ;;  %s10748_s1 = inlined_call_operand.hbm [shape: f32[2,16,16,128], index: 1, kind: input, shape index: {}]   ;;  %s10749_s2 = inlined_call_operand.vmem [shape: f32[3,128], index: 2, kind: input, shape index: {}]   ;;  %s10750_s3 = inlined_call_operand.vmem [shape: f32[3,128], index: 3, kind: input, shape index: {}]   ;;  %s10751_s4 = inlined_call_operand.hbm [shape: bf16[3,1152,128], index: 4, kind: input, shape index: {}]   ;;  %s10752_s5 = inlined_call_operand.vmem [shape: f32[3,128], index: 5, kind: input, shape index: {}]   ;;  %s10753_s6 = inlined_call_operand.vmem [shape: f32[3,128], index: 6, kind: input, shape index: {}]   ;;  %s10754_s7 = inlined_call_operand.hbm [shape: bf16[384,128], index: 7, kind: input, shape index: {}]   ;;  %s10755_s8 = inlined_call_operand.vmem [shape: f32[1,128], index: 8, kind: input, shape index: {}]   ;;  %s10756_s9 = inlined_call_operand.hbm [shape: f32[2,16,16,128], index: 9, kind: output, shape index: {}]  }
   0x1   :  { %10772 = sst [smem:[#allocation32_spill]] %s10750_s3 }
   0x2   :  { %10773 = sst [smem:[#allocation33_spill]] %s10751_s4 }
   0x3   :  { %10774 = sst [smem:[#allocation34_spill]] %s10752_s5 }
   0x4   :  { %10775 = sst [smem:[#allocation35_spill]] %s10753_s6 }
   0x5   :  { %10776 = sst [smem:[#allocation36_spill]] %s10754_s7 }
   0x6   :  { %10777 = sst [smem:[#allocation37_spill]] %s10755_s8 }
   0x7   :  { %10778 = sst [smem:[#allocation38_spill]] %s10756_s9 }
   0x8   :  { %14 = vsyncpa [#allocation8], 0 }
   0x9   :  { %16 = vsyncpa [#allocation8 + $0x1], 0 }
   0xa   :  { %17 = vsyncpa [#allocation11], 0 }
   0xb   :  { %18 = vsyncpa [#allocation9], 0 }
   0xc   :  { %20 = vsyncpa [#allocation9 + $0x1], 0  ;;  %s9162_s30 = smov 0   ;;  %s9164_s10 = smov 0  }
   0xd   :  { %s9166_s11 = smov 0   ;;  %s9168_s12 = smov 0  }
   0xe   :  { %s9170_s13 = smov 0   ;;  %s9172_s14 = smov 0  }
   0xf   :  { %s9174_s15 = smov 0   ;;  %s9176_s16 = smov 0  }
  0x10 LB: > { %10779 = sst [smem:[#allocation25_spill]] %s9069_s30  ;;  %s7096_s17 = sadd.s32 4294967295, %s9097_s16   ;;  %s9097_s16 = sphi %s9176_s16, %s26_s16   ;;  %s9093_s15 = sphi %s9174_s15, %s10835_s15   ;;  %s9089_s14 = sphi %s9172_s14, %s10834_s14   ;;  %s9085_s13 = sphi %s9170_s13, %s10833_s13   ;;  %s9081_s12 = sphi %s9168_s12, %s10832_s12   ;;  %s9077_s11 = sphi %s9166_s11, %s10831_s11   ;;  %s9073_s10 = sphi %s9164_s10, %s10830_s10   ;;  %s9069_s30 = sphi %s9162_s30, %s10829_s30  }
  0x11   : > { %s7097_s18 = sadd.s32 4294967294, %s9097_s16   ;;  %p60_p0 = scmp.ne.s32.totalorder %s9073_s10, %s9069_s30 }
  0x12   : > { %p9206_p1 = scmp.eq.s32.totalorder %s7096_s17, 0  ;;  %p9210_p2 = scmp.eq.s32.totalorder %s7096_s17, 3 }
  0x13   : > { %p239_p3 = scmp.eq.s32.totalorder %s7097_s18, 3  ;;  %p7098_p5 = scmp.ge.s32.totalorder %s9097_s16, 1 }
  0x14   : > { %s10780_s19 = scalar_select %p9206_p1, 1, 0 }
  0x15   : > { %s10781_s20 = scalar_select %p9210_p2, 1, 0 }
  0x16   : > { %p9216_p4 = por %p9206_p1, %p60_p0  ;;  %p9221_p6 = por %p239_p3, %p60_p0 }
  0x17   : > { %p246_p7 = scmp.lt.s32.totalorder %s9097_s16, 5  ;;  %s9099_s24 = smov [#allocation10]  }
  0x18   : > { %s10782_s21 = scalar_select %p9216_p4, 1, 0 }
  0x19   : > { %s10783_s22 = scalar_select %p9221_p6, 1, 0 }
  0x1a   : > { %p9226_p8 = pnand %p7098_p5, %p246_p7  ;;  %s264_s25 = sshll.u32 %s9099_s24, 4  ;;  %s265_s25 = int_to_ptr.vmem [resolvable:$true] %s264_s25 }
  0x1b   : > { %10784 = sst [smem:[#allocation26_spill]] %s10783_s22  ;;  %s9100_s27 = smov [#allocation12]  }
  0x1c   : > { %s10785_s23 = scalar_select %p9226_p8, 1, 0 }
  0x1d   : > { %p8505_p9 = pneg %p9226_p8  ;;  %s283_s28 = sshll.u32 %s9100_s27, 4  ;;  %s9238_s28 = int_to_ptr.vmem [resolvable:$true] %s283_s28 }
  0x1e   : > { %s10787_s4 = sld [smem:[#allocation33_spill]] }
  0x1f   : > { %p9234_p10 = pnand %p8505_p9, %p9206_p1 }
  0x21   : > { %p8847_p12 = pneg %p9234_p10 }
  0x24   : > { %s8845_s18 = scalar_lea.hbm %s10787_s4, 27648 }
  0x25   : > { %p8846_p11 = scmp.ne.s32.totalorder %s10787_s4, %s8845_s18  ;;  %p8852_p3 = scmp.lt.u32.totalorder %s8845_s18, %s10787_s4 }
  0x27   : > { %p8848_p13 = pnand %p8847_p12, %p8846_p11 }
  0x29   : > { %p8849_p0 = pneg %p8848_p13 }
  0x2b   : > { %p8854_p5 = pnand %p8852_p3, %p8849_p0 }
  0x2d   : > { %8857 = shalt.err (!%p8854_p5)
}
  0x2e   : > { %s8858_s27 = scalar_lea.vmem %s265_s25, 27648  ;;  %p8866_p1 = scmp.lt.s32.totalorder %s265_s25, %s265_s25 }
  0x2f   : > { %p8859_p7 = scmp.ne.s32.totalorder %s265_s25, %s8858_s27  ;;  %p8867_p4 = scmp.lt.s32.totalorder %s8858_s27, %s8858_s27 }
  0x31   : > { %p8861_p9 = pnand %p8859_p7, %p8847_p12  ;;  %p8868_p8 = por %p8867_p4, %p8866_p1 }
  0x33   : > { %p8862_p6 = pneg %p8861_p9 }
  0x35   : > { %p8869_p2 = pnand %p8868_p8, %p8862_p6 }
  0x37   : > { %8872 = shalt.err (!%p8869_p2)
}
  0x38   : > { %s9101_s22 = smov 64   ;;  %s9102_s29 = smov 4  }
  0x39   : > { %8508 = dma.hbm_to_vmem [thread:$0]  (!%p9234_p10), %s10787_s4, 27648, %s265_s25, [#allocation11], %s9101_s22, %s9101_s22, %s9102_s29  }
  0x3a   : > { %s10788_s7 = sld [smem:[#allocation36_spill]] }
  0x40   : > { %s8873_s24 = scalar_lea.hbm %s10788_s7, 3072 }
  0x41   : > { %p8874_p11 = scmp.ne.s32.totalorder %s10788_s7, %s8873_s24  ;;  %p8880_p4 = scmp.lt.u32.totalorder %s8873_s24, %s10788_s7 }
  0x43   : > { %p8876_p1 = pnand %p8874_p11, %p8847_p12 }
  0x45   : > { %p8877_p2 = pneg %p8876_p1 }
  0x47   : > { %p8882_p6 = pnand %p8880_p4, %p8877_p2 }
  0x49   : > { %8885 = shalt.err (!%p8882_p6)
}
  0x4a   : > { %s8886_s25 = scalar_lea.vmem %s9238_s28, 3072  ;;  %p8894_p3 = scmp.lt.s32.totalorder %s9238_s28, %s9238_s28 }
  0x4b   : > { %p8887_p8 = scmp.ne.s32.totalorder %s9238_s28, %s8886_s25  ;;  %p8895_p5 = scmp.lt.s32.totalorder %s8886_s25, %s8886_s25 }
  0x4d   : > { %p8889_p13 = pnand %p8887_p8, %p8847_p12  ;;  %p8896_p7 = por %p8895_p5, %p8894_p3 }
  0x4f   : > { %p8890_p0 = pneg %p8889_p13 }
  0x51   : > { %p8897_p9 = pnand %p8896_p7, %p8890_p0 }
  0x53   : > { %8900 = shalt.err (!%p8897_p9)
}
  0x54   : > { %8511 = dma.hbm_to_vmem [thread:$0]  (!%p9234_p10), %s10788_s7, 3072, %s9238_s28, [#allocation11], %s9101_s22, %s9101_s22, %s9102_s29  }
  0x55   : > { %s35_s8 = sadd.s32 1, %s9089_s14  ;;  %s38_s9 = sadd.s32 1, %s9093_s15 }
  0x56   : > { %p36_p12 = scmp.ge.s32.totalorder %s35_s8, 2  ;;  %s47_s26 = sadd.s32 1, %s9077_s11 }
  0x57   : > { %p54_p11 = scmp.ne.s32.totalorder %s9077_s11, %s9073_s10  ;;  %p55_p1 = scmp.eq.s32.totalorder %s9097_s16, 0 }
  0x58   : > { %s10837_s8 = smov (%p36_p12, %s35_s8), 0  ;;  %s10839_s9 = smov (!%p36_p12, %s38_s9), %s9093_s15 }
  0x59   : > { %10789 = sst [smem:[#allocation27_spill]] %s10837_s8  ;;  %s43_s30 = ssub.s32 %s9089_s14, %s10837_s8 }
  0x5a   : > { %p9298_p2 = por %p55_p1, %p54_p11  ;;  %p40_p10 = scmp.ge.s32.totalorder %s10839_s9, 2 }
  0x5b   : > { %p10791_p4 = scmp.ne.s32.totalorder %s10781_s20, 0  ;;  %p8522_p8 = scmp.lt.s32.totalorder %s9097_s16, 4 }
  0x5c   : > { %s300_s22 = sand.u32 1, %s9077_s11   ;;  %s10841_s9 = smov (%p40_p10, %s10839_s9), 0 }
  0x5d   : > { %p9304_p6 = por %p10791_p4, %p54_p11  ;;  %s7102_s29 = sshll.u32 %s300_s22, 7 }
  0x5e   : > { %s42_s18 = ssub.s32 %s9093_s15, %s10841_s9  ;;  %s7393_s27 = sshll.u32 %s9089_s14, 4 }
  0x5f   : > { %s10792_s28 = scalar_select %p9304_p6, 1, 0 }
  0x60   : > { %s44_s24 = sor.u32 %s43_s30, %s42_s18  ;;  %s7105_s25 = sshll.u32 %s9093_s15, 5 }
  0x61   : > { %10793 = sst [smem:[#allocation28_spill]] %s10792_s28  ;;  %p45_p13 = scmp.eq.s32.totalorder %s44_s24, 0 }
  0x62   : > { %s311_s5 = sadd.s32 %s7393_s27, %s7105_s25  ;;  %s304_s6 = scalar_lea.vmem [#allocation7], %s7102_s29 }
  0x63   : > { %s314_s20 = sshll.u32 %s304_s6, 4  ;;  %s7106_s7 = sshll.u32 %s311_s5, 7  ;;  %s9319_s20 = int_to_ptr.vmem [resolvable:$true] %s314_s20 }
  0x64   : > { %s9317_s4 = scalar_select %p45_p13, %s9077_s11, %s47_s26  }
  0x65   : > { %s9324_s3 = scalar_lea.hbm %s10747_s0, %s7106_s7  ;;  %p9330_p0 = pnand %p8522_p8, %p9298_p2 }
  0x66   : > { %s9334_s26 = scalar_lea.sflag [#allocation8], %s300_s22  ;;  %s8901_s29 = scalar_lea.hbm %s9324_s3, 2048 }
  0x67   : > { %p8902_p3 = scmp.ne.s32.totalorder %s9324_s3, %s8901_s29  ;;  %p8903_p5 = pneg %p9330_p0 }
  0x68   : > { %s8906_s17 = scalar_lea.hbm %s10747_s0, 8192  ;;  %p8907_p12 = scmp.lt.u32.totalorder %s9324_s3, %s10747_s0 }
  0x69   : > { %p8904_p7 = pnand %p8903_p5, %p8902_p3  ;;  %p8908_p11 = scmp.lt.u32.totalorder %s8906_s17, %s8901_s29 }
  0x6a   : > { %p8910_p2 = scmp.lt.u32.totalorder %s8901_s29, %s9324_s3 }
  0x6b   : > { %p8905_p9 = pneg %p8904_p7  ;;  %p8909_p1 = por %p8908_p11, %p8907_p12 }
  0x6d   : > { %p8911_p10 = por %p8910_p2, %p8909_p1 }
  0x6f   : > { %p8912_p4 = pnand %p8911_p10, %p8905_p9 }
  0x71   : > { %8915 = shalt.err (!%p8912_p4)
}
  0x72   : > { %s8916_s22 = scalar_lea.vmem %s9319_s20, 2048  ;;  %s9103_s24 = smov [#allocation7]  }
  0x73   : > { %p8917_p8 = scmp.ne.s32.totalorder %s9319_s20, %s8916_s22  ;;  %s8921_s27 = sshll.u32 %s9103_s24, 4  ;;  %s8922_s27 = int_to_ptr.vmem [resolvable:$false] %s8921_s27 }
  0x74   : > { %s8923_s25 = scalar_lea.vmem %s8922_s27, 4096  ;;  %p8924_p7 = scmp.lt.s32.totalorder %s9319_s20, %s8922_s27 }
  0x75   : > { %p8919_p13 = pnand %p8917_p8, %p8903_p5  ;;  %p8925_p12 = scmp.lt.s32.totalorder %s8923_s25, %s8916_s22 }
  0x77   : > { %p8920_p3 = pneg %p8919_p13  ;;  %p8926_p11 = por %p8925_p12, %p8924_p7 }
  0x79   : > { %p8927_p1 = pnand %p8926_p11, %p8920_p3 }
  0x7b   : > { %8930 = shalt.err (!%p8927_p1)
}
  0x7c   : > { %s9104_s5 = smov 128   ;;  %s9105_s6 = smov 8  }
  0x7d   : > { %8515 = dma.hbm_to_vmem [thread:$0]  (!%p9330_p0), %s9324_s3, 2048, %s9319_s20, %s9334_s26, %s9104_s5, %s9104_s5, %s9105_s6  }
  0x7e   : > { %p10795_p5 = scmp.ne.s32.totalorder %s10785_s23, 0 }
  0x80   : > { %326 = sbr.rel (%p10795_p5) target bundleno = 1779 (0x6f3), region = 52 }
  0x87   : > { %s9365_s29 = sand.u32 1, %s9073_s10   ;;  %p10796_p9 = scmp.ne.s32.totalorder %s10782_s21, 0 }
  0x88   : > { %s7108_s7 = sshll.u32 %s9365_s29, 7  ;;  %s329_s8 = scalar_lea.sflag [#allocation8], %s9365_s29 }
  0x89   : > { %s9371_s17 = scalar_lea.vmem [#allocation7], %s7108_s7 }
  0x8a   : > { %9048 = dma.done.wait (%p10796_p9), %s329_s8, 2048  }
  0x8b   : > { %9050 = vsyncadd (%p10796_p9), %s329_s8, 4294965248  ;;  %p10797_p0 = scmp.ne.s32.totalorder %s10780_s19, 0 }
  0x8d   : > { %9052 = dma.done.wait (%p10797_p0), [#allocation11], 30720  }
  0x8e   : > { %9054 = vsyncadd (%p10797_p0), [#allocation11], 4294936576  ;;  %s7112_s3 = sshll.u32 %s9081_s12, 3  ;;  %v9106_v0 = vmov 0   ;;  %p10767_p8 = scmp.gt.s32.totalorder %s9081_s12, 0 }
  0x8f   : > { %s9382_s23 = sadd.s32 4294967288, %s7112_s3  ;;  %s9384_s20 = sadd.s32 8, %s7112_s3  ;;  %428 = vst [vmem:[#allocation2 + $0x30] sm:$0xff] %v9106_v0  ;;  %429 = vst [vmem:[#allocation2 + $0x48] sm:$0xff] %v9106_v0 }
  0x90   : > { %430 = vst [vmem:[#allocation2 + $0x60] sm:$0xff] %v9106_v0  ;;  %431 = vst [vmem:[#allocation2 + $0x78] sm:$0xff] %v9106_v0  ;;  %p380_p2 = scmp.gt.s32.totalorder %s9382_s23, 0  ;;  %p384_p10 = scmp.lt.s32.totalorder %s9384_s20, 8 }
  0x91   : > { %432 = vst [vmem:[#allocation2 + $0x90] sm:$0xff] %v9106_v0  ;;  %433 = vst [vmem:[#allocation2 + $0xa8] sm:$0xff] %v9106_v0  ;;  %s7117_s21 = sshll.u32 %s9085_s13, 8  ;;  %s9107_s28 = smov [#allocation5]  }
  0x92   : > { %434 = vst [vmem:[#allocation2 + $0xc0] sm:$0xff] %v9106_v0  ;;  %435 = vst [vmem:[#allocation2 + $0xd8] sm:$0xff] %v9106_v0  ;;  %s10843_s23 = smov (!%p380_p2, %s9382_s23), 0  ;;  %s10845_s20 = smov (!%p384_p10, %s9384_s20), 8 }
  0x93   : > { %436 = vst [vmem:[#allocation2 + $0xf0] sm:$0xff] %v9106_v0  ;;  %437 = vst [vmem:[#allocation2 + $0x108] sm:$0xff] %v9106_v0  ;;  %s7116_s19 = sshll.u32 %s10843_s23, 4  ;;  %s401_s18 = sshll.u32 %s9107_s28, 4  ;;  %s9400_s18 = int_to_ptr.vmem [resolvable:$true] %s401_s18 }
  0x94   : > { %438 = vst [vmem:[#allocation2 + $0x120] sm:$0xff] %v9106_v0  ;;  %439 = vst [vmem:[#allocation2 + $0x138] sm:$0xff] %v9106_v0  ;;  %s391_s30 = sadd.s32 %s7117_s21, %s7116_s19  ;;  %s8935_s8 = scalar_lea.hbm %s10748_s1, 8192 }
  0x95   : > { %440 = vst [vmem:[#allocation2 + $0x150] sm:$0xff] %v9106_v0  ;;  %441 = vst [vmem:[#allocation2 + $0x168] sm:$0xff] %v9106_v0  ;;  %s7118_s26 = sshll.u32 %s391_s30, 4 }
  0x96   : > { %442 = vst [vmem:[#allocation2 + $0x180] sm:$0xff] %v9106_v0  ;;  %443 = vst [vmem:[#allocation2 + $0x198] sm:$0xff] %v9106_v0  ;;  %s393_s27 = scalar_lea.hbm %s10748_s1, %s7118_s26 }
  0x97   : > { %444 = vst [vmem:[#allocation2 + $0x1b0] sm:$0xff] %v9106_v0  ;;  %445 = vst [vmem:[#allocation2 + $0x1c8] sm:$0xff] %v9106_v0  ;;  %s8931_s25 = scalar_lea.hbm %s393_s27, 2048  ;;  %p8936_p12 = scmp.lt.u32.totalorder %s393_s27, %s10748_s1 }
  0x98   : > { %446 = vst [vmem:[#allocation2 + $0x1e0] sm:$0xff] %v9106_v0  ;;  %447 = vst [vmem:[#allocation2 + $0x1f8] sm:$0xff] %v9106_v0  ;;  %p8932_p13 = scmp.ne.s32.totalorder %s393_s27, %s8931_s25  ;;  %p8937_p11 = scmp.lt.u32.totalorder %s8935_s8, %s8931_s25 }
  0x99   : > { %452 = vst [vmem:[#allocation2 + $0x40] sm:$0xff] %v9106_v0  ;;  %453 = vst [vmem:[#allocation2 + $0x58] sm:$0xff] %v9106_v0  ;;  %p8939_p5 = scmp.lt.u32.totalorder %s8931_s25, %s393_s27 }
  0x9a   : > { %454 = vst [vmem:[#allocation2 + $0x70] sm:$0xff] %v9106_v0  ;;  %455 = vst [vmem:[#allocation2 + $0x88] sm:$0xff] %v9106_v0  ;;  %p8933_p3 = pnand %p8932_p13, %p10767_p8  ;;  %p8938_p1 = por %p8937_p11, %p8936_p12 }
  0x9b   : > { %456 = vst [vmem:[#allocation2 + $0xa0] sm:$0xff] %v9106_v0  ;;  %457 = vst [vmem:[#allocation2 + $0xb8] sm:$0xff] %v9106_v0 }
  0x9c   : > { %458 = vst [vmem:[#allocation2 + $0xd0] sm:$0xff] %v9106_v0  ;;  %459 = vst [vmem:[#allocation2 + $0xe8] sm:$0xff] %v9106_v0  ;;  %p8934_p7 = pneg %p8933_p3  ;;  %p8940_p9 = por %p8939_p5, %p8938_p1 }
  0x9d   : > { %460 = vst [vmem:[#allocation2 + $0x100] sm:$0xff] %v9106_v0  ;;  %461 = vst [vmem:[#allocation2 + $0x118] sm:$0xff] %v9106_v0 }
  0x9e   : > { %462 = vst [vmem:[#allocation2 + $0x130] sm:$0xff] %v9106_v0  ;;  %463 = vst [vmem:[#allocation2 + $0x148] sm:$0xff] %v9106_v0  ;;  %p8941_p0 = pnand %p8940_p9, %p8934_p7 }
  0x9f   : > { %464 = vst [vmem:[#allocation2 + $0x160] sm:$0xff] %v9106_v0  ;;  %465 = vst [vmem:[#allocation2 + $0x178] sm:$0xff] %v9106_v0 }
  0xa0   : > { %466 = vst [vmem:[#allocation2 + $0x190] sm:$0xff] %v9106_v0  ;;  %467 = vst [vmem:[#allocation2 + $0x1a8] sm:$0xff] %v9106_v0 }
  0xa1   : > { %468 = vst [vmem:[#allocation2 + $0x1c0] sm:$0xff] %v9106_v0  ;;  %469 = vst [vmem:[#allocation2 + $0x1d8] sm:$0xff] %v9106_v0 }
  0xa2   : > { %470 = vst [vmem:[#allocation2 + $0x1f0] sm:$0xff] %v9106_v0  ;;  %471 = vst [vmem:[#allocation2 + $0x208] sm:$0xff] %v9106_v0 }
  0xa3   : > { %476 = vst [vmem:[#allocation2 + $0x38] sm:$0xff] %v9106_v0  ;;  %477 = vst [vmem:[#allocation2 + $0x50] sm:$0xff] %v9106_v0 }
  0xa4   : > { %478 = vst [vmem:[#allocation2 + $0x68] sm:$0xff] %v9106_v0  ;;  %479 = vst [vmem:[#allocation2 + $0x80] sm:$0xff] %v9106_v0 }
  0xa5   : > { %480 = vst [vmem:[#allocation2 + $0x98] sm:$0xff] %v9106_v0  ;;  %481 = vst [vmem:[#allocation2 + $0xb0] sm:$0xff] %v9106_v0 }
  0xa6   : > { %483 = vst [vmem:[#allocation2 + $0x188] sm:$0xff] %v9106_v0  ;;  %484 = vst [vmem:[#allocation2 + $0x1a0] sm:$0xff] %v9106_v0 }
  0xa7   : > { %485 = vst [vmem:[#allocation2 + $0x1b8] sm:$0xff] %v9106_v0  ;;  %486 = vst [vmem:[#allocation2 + $0x1d0] sm:$0xff] %v9106_v0 }
  0xa8   : > { %487 = vst [vmem:[#allocation2 + $0x1e8] sm:$0xff] %v9106_v0  ;;  %488 = vst [vmem:[#allocation2 + $0x200] sm:$0xff] %v9106_v0 }
  0xa9   : > { %8944 = shalt.err (!%p8941_p0)  }
  0xaa   : > { %s8945_s26 = scalar_lea.vmem %s9400_s18, 2048  ;;  %s8951_s28 = scalar_lea.vmem %s9400_s18, 4096 }
  0xab   : > { %p8946_p2 = scmp.ne.s32.totalorder %s9400_s18, %s8945_s26  ;;  %p8952_p3 = scmp.lt.s32.totalorder %s9400_s18, %s9400_s18 }
  0xac   : > { %p8953_p12 = scmp.lt.s32.totalorder %s8951_s28, %s8945_s26 }
  0xad   : > { %p8947_p10 = pnand %p8946_p2, %p10767_p8 }
  0xae   : > { %p8954_p11 = por %p8953_p12, %p8952_p3 }
  0xaf   : > { %p8948_p13 = pneg %p8947_p10 }
  0xb1   : > { %p8955_p1 = pnand %p8954_p11, %p8948_p13 }
  0xb3   : > { %8958 = shalt.err (!%p8955_p1)  }
  0xb4   : > { %8496 = dma.hbm_to_vmem [thread:$0]  (%p10767_p8), %s393_s27, 2048, %s9400_s18, [#allocation6] }
  0xb5   : > { %s7120_s22 = sshll.u32 %s10845_s20, 4  ;;  %p8526_p5 = scmp.lt.s32.totalorder %s9081_s12, 1 }
  0xb6   : > { %s410_s24 = sadd.s32 %s7120_s22, %s7117_s21  ;;  %s9108_s23 = smov [#allocation5 + $0x80]  }
  0xb7   : > { %s7122_s25 = sshll.u32 %s410_s24, 4  ;;  %s422_s19 = sshll.u32 %s9108_s23, 4  ;;  %s423_s19 = int_to_ptr.vmem [resolvable:$true] %s422_s19 }
  0xb8   : > { %s412_s3 = scalar_lea.hbm %s10748_s1, %s7122_s25 }
  0xb9   : > { %s8959_s30 = scalar_lea.hbm %s412_s3, 2048  ;;  %p8964_p10 = scmp.lt.u32.totalorder %s412_s3, %s10748_s1 }
  0xba   : > { %p8960_p9 = scmp.ne.s32.totalorder %s412_s3, %s8959_s30  ;;  %p8965_p13 = scmp.lt.u32.totalorder %s8935_s8, %s8959_s30 }
  0xbb   : > { %p8967_p12 = scmp.lt.u32.totalorder %s8959_s30, %s412_s3 }
  0xbc   : > { %p8961_p0 = pnand %p8960_p9, %p8526_p5  ;;  %p8966_p3 = por %p8965_p13, %p8964_p10 }
  0xbe   : > { %p8962_p2 = pneg %p8961_p0  ;;  %p8968_p11 = por %p8967_p12, %p8966_p3 }
  0xc0   : > { %p8969_p1 = pnand %p8968_p11, %p8962_p2 }
  0xc2   : > { %8972 = shalt.err (!%p8969_p1)  }
  0xc3   : > { %s8973_s22 = scalar_lea.vmem %s423_s19, 2048  ;;  %p8980_p4 = scmp.lt.s32.totalorder %s423_s19, %s9400_s18 }
  0xc4   : > { %p8974_p9 = scmp.ne.s32.totalorder %s423_s19, %s8973_s22  ;;  %p8981_p8 = scmp.lt.s32.totalorder %s8951_s28, %s8973_s22 }
  0xc6   : > { %p8975_p0 = pnand %p8974_p9, %p8526_p5  ;;  %p8982_p6 = por %p8981_p8, %p8980_p4 }
  0xc8   : > { %p8976_p7 = pneg %p8975_p0 }
  0xca   : > { %p8983_p10 = pnand %p8982_p6, %p8976_p7 }
  0xcc   : > { %8986 = shalt.err (!%p8983_p10)  }
  0xcd   : > { %8498 = dma.hbm_to_vmem [thread:$0]  (%p8526_p5), %s412_s3, 2048, %s423_s19, [#allocation6 + $0x1] }
  0xce   : > { %s9452_s8 = scalar_lea.vmem [#allocation13], %s7108_s7  ;;  %p10798_p2 = scmp.gt.s32.totalorder %s9081_s12, 0 }
  0xd0   : > { %9056 = dma.done.wait (%p10798_p2), [#allocation6], 2048  ;;  %p10799_p13 = pmov %p10798_p2 }
  0xd2   : > { %9058 = vsyncadd (%p10799_p13), [#allocation6], 4294965248 }
  0xd3   : > { %9060 = dma.done.wait (%p8526_p5), [#allocation6 + $0x1], 2048 }
  0xd4   : > { %9062 = vsyncadd (%p8526_p5), [#allocation6 + $0x1], 4294965248  ;;  %v9463_v1 = vld [vmem:[%s9371_s17] sm:$0xff]  ;;  %v9466_v2 = vld [vmem:[%s9371_s17 + $0x8] sm:$0xff]  ;;  %s10800_s25 = sld [smem:[#allocation32_spill]]  ;;  %p10804_p6 = scmp.le.s32.totalorder %s9081_s12, 0 }
  0xd5   : > { %v9471_v3 = vld [vmem:[%s10749_s2] ss:$0 sm:$0xff]  ;;  %v9483_v7 = vld [vmem:[%s9371_s17 + $0x10] sm:$0xff]  ;;  %v9486_v8 = vld [vmem:[%s9371_s17 + $0x18] sm:$0xff] }
  0xd6   : > { %v528_v5 = vmul.f32 %v9471_v3, %v9463_v1  ;;  %v529_v6 = vmul.f32 %v9471_v3, %v9466_v2  ;;  %v530_v9 = vmul.f32 %v9471_v3, %v9483_v7  ;;  %v531_v10 = vmul.f32 %v9471_v3, %v9486_v8  ;;  %v9493_v11 = vld [vmem:[%s9371_s17 + $0x20] sm:$0xff]  ;;  %v9496_v12 = vld [vmem:[%s9371_s17 + $0x28] sm:$0xff]  ;;  %v9499_v13 = vld [vmem:[%s9371_s17 + $0x30] sm:$0xff] }
  0xd7   : > { %v532_v16 = vmul.f32 %v9471_v3, %v9493_v11  ;;  %v533_v17 = vmul.f32 %v9471_v3, %v9496_v12  ;;  %v9508_v18 = vld [vmem:[%s9371_s17 + $0x38] sm:$0xff]  ;;  %v534_v21 = vmul.f32 %v9471_v3, %v9499_v13  ;;  %v9517_v23 = vld [vmem:[%s9371_s17 + $0x40] sm:$0xff]  ;;  %v9522_v28 = vld [vmem:[%s9371_s17 + $0x48] sm:$0xff] }
  0xd8   : > { %v535_v22 = vmul.f32 %v9471_v3, %v9508_v18  ;;  %v9527_v33 = vld [vmem:[%s9371_s17 + $0x50] sm:$0xff]  ;;  %v9530_v34 = vld [vmem:[%s9371_s17 + $0x58] sm:$0xff]  ;;  %v536_v38 = vmul.f32 %v9471_v3, %v9517_v23  ;;  %v9535_v39 = vld [vmem:[%s9371_s17 + $0x60] sm:$0xff]  ;;  %v537_v44 = vmul.f32 %v9471_v3, %v9522_v28 }
  0xd9   : > { %v9538_v40 = vld [vmem:[%s9371_s17 + $0x68] sm:$0xff]  ;;  %v9543_v45 = vld [vmem:[%s9371_s17 + $0x70] sm:$0xff]  ;;  %v538_v48 = vmul.f32 %v9471_v3, %v9527_v33  ;;  %v539_v49 = vmul.f32 %v9471_v3, %v9530_v34  ;;  %v9551_v50 = vld [vmem:[%s9371_s17 + $0x78] sm:$0xff]  ;;  %v540_v53 = vmul.f32 %v9471_v3, %v9535_v39 }
  0xda   : > { %v9476_v4 = vld [vmem:[%s10800_s25] ss:$0 sm:$0xff]  ;;  %10801 = vst [vmem:[#allocation29_spill] sm:$0xff] %v9538_v40  ;;  %10802 = vst [vmem:[#allocation30_spill] sm:$0xff] %v9543_v45  ;;  %v541_v54 = vmul.f32 %v9471_v3, %v9538_v40  ;;  %v542_v58 = vmul.f32 %v9471_v3, %v9543_v45  ;;  %v543_v62 = vmul.f32 %v9471_v3, %v9551_v50 }
  0xdb   : > { %v548_v14 = vadd.f32 %v9476_v4, %v528_v5  ;;  %v549_v15 = vadd.f32 %v9476_v4, %v529_v6  ;;  %v550_v19 = vadd.f32 %v9476_v4, %v530_v9  ;;  %v551_v20 = vadd.f32 %v9476_v4, %v531_v10  ;;  %10803 = vst [vmem:[#allocation31_spill] sm:$0xff] %v9551_v50 }
  0xdc   : > { %v552_v26 = vadd.f32 %v9476_v4, %v532_v16  ;;  %v553_v27 = vadd.f32 %v9476_v4, %v533_v17  ;;  %v554_v31 = vadd.f32 %v9476_v4, %v534_v21  ;;  %v555_v32 = vadd.f32 %v9476_v4, %v535_v22  ;;  %v604_v21 = vld [vmem:[#allocation5 + $0x20] sm:$0xff] (!%p10804_p6)  ;;  %v605_v22 = vld [vmem:[#allocation5 + $0x28] sm:$0xff] (!%p10804_p6) }
  0xdd   : > { %v564_v24 = vmax.f32 %v548_v14, 0.0  ;;  %v565_v25 = vmax.f32 %v549_v15, 0.0  ;;  %v566_v29 = vmax.f32 %v550_v19, 0.0  ;;  %v567_v30 = vmax.f32 %v551_v20, 0.0 }
  0xde   : > { %v568_v36 = vmax.f32 %v552_v26, 0.0  ;;  %v569_v37 = vmax.f32 %v553_v27, 0.0  ;;  %v570_v42 = vmax.f32 %v554_v31, 0.0  ;;  %v571_v43 = vmax.f32 %v555_v32, 0.0  ;;  %v606_v26 = vld [vmem:[#allocation5 + $0x30] sm:$0xff] (!%p10804_p6)  ;;  %v607_v27 = vld [vmem:[#allocation5 + $0x38] sm:$0xff] (!%p10804_p6) }
  0xdf   : > { %v580_v35 = vpack.c.bf16 %v565_v25, %v564_v24  ;;  %v581_v41 = vpack.c.bf16 %v567_v30, %v566_v29  ;;  %v556_v47 = vadd.f32 %v9476_v4, %v536_v38  ;;  %v557_v52 = vadd.f32 %v9476_v4, %v537_v44  ;;  %v610_v38 = vld [vmem:[#allocation5 + $0x50] sm:$0xff] (!%p10804_p6)  ;;  %v611_v44 = vld [vmem:[#allocation5 + $0x58] sm:$0xff] (!%p10804_p6) }
  0xe0   : > { %v582_v46 = vpack.c.bf16 %v569_v37, %v568_v36  ;;  %v583_v51 = vpack.c.bf16 %v571_v43, %v570_v42  ;;  %v558_v56 = vadd.f32 %v9476_v4, %v538_v48  ;;  %v559_v57 = vadd.f32 %v9476_v4, %v539_v49  ;;  %v609_v36 = vld [vmem:[#allocation5 + $0x48] sm:$0xff] (!%p10804_p6) }
  0xe1   : > { %589 = vst [vmem:[#allocation2 + $0xc8] sm:$0xff] %v580_v35  ;;  %590 = vst [vmem:[#allocation2 + $0xe0] sm:$0xff] %v581_v41  ;;  %v572_v55 = vmax.f32 %v556_v47, 0.0  ;;  %v573_v59 = vmax.f32 %v557_v52, 0.0  ;;  %v560_v60 = vadd.f32 %v9476_v4, %v540_v53  ;;  %v561_v61 = vadd.f32 %v9476_v4, %v541_v54  ;;  %v608_v35 = vld [vmem:[#allocation5 + $0x40] sm:$0xff] (!%p10804_p6)  ;;  %v614_v52 = vld [vmem:[#allocation5 + $0x70] sm:$0xff] (!%p10804_p6) }
  0xe2   : > { %591 = vst [vmem:[#allocation2 + $0xf8] sm:$0xff] %v582_v46  ;;  %592 = vst [vmem:[#allocation2 + $0x110] sm:$0xff] %v583_v51  ;;  %v574_v63 = vmax.f32 %v558_v56, 0.0  ;;  %v575_v0 = vmax.f32 %v559_v57, 0.0  ;;  %v562_v5 = vadd.f32 %v9476_v4, %v542_v58  ;;  %v563_v14 = vadd.f32 %v9476_v4, %v543_v62  ;;  %599 = sbr.rel (%p10804_p6) target bundleno = 245 (0xf5), region = 92  ;;  %v612_v46 = vld [vmem:[#allocation5 + $0x60] sm:$0xff] (!%p10804_p6) }
  0xe3   : > { %v584_v6 = vpack.c.bf16 %v573_v59, %v572_v55  ;;  %v576_v9 = vmax.f32 %v560_v60, 0.0  ;;  %v577_v10 = vmax.f32 %v561_v61, 0.0  ;;  %v620_v24 = vmul.f32 (!%p10804_p6), %v9471_v3, %v604_v21  ;;  %v613_v51 = vld [vmem:[#allocation5 + $0x68] sm:$0xff] (!%p10804_p6)  ;;  %v615_v60 = vld [vmem:[#allocation5 + $0x78] sm:$0xff] (!%p10804_p6) }
  0xe4   : > { %v585_v15 = vpack.c.bf16 %v575_v0, %v574_v63  ;;  %v578_v16 = vmax.f32 %v562_v5, 0.0  ;;  %v579_v19 = vmax.f32 %v563_v14, 0.0  ;;  %v621_v25 = vmul.f32 (!%p10804_p6), %v9471_v3, %v605_v22 }
  0xe5   : > { %593 = vst [vmem:[#allocation2 + $0x128] sm:$0xff] %v584_v6  ;;  %v586_v17 = vpack.c.bf16 %v577_v10, %v576_v9  ;;  %v622_v29 = vmul.f32 (!%p10804_p6), %v9471_v3, %v606_v26  ;;  %v636_v30 = vadd.f32 (!%p10804_p6), %v9476_v4, %v620_v24  ;;  %v623_v32 = vmul.f32 (!%p10804_p6), %v9471_v3, %v607_v27 }
  0xe6   : > { %594 = vst [vmem:[#allocation2 + $0x140] sm:$0xff] %v585_v15  ;;  %v587_v20 = vpack.c.bf16 %v579_v19, %v578_v16  ;;  %v637_v31 = vadd.f32 (!%p10804_p6), %v9476_v4, %v621_v25  ;;  %v624_v48 = vmul.f32 (!%p10804_p6), %v9471_v3, %v608_v35  ;;  %v625_v49 = vmul.f32 (!%p10804_p6), %v9471_v3, %v609_v36 }
  0xe7   : > { %595 = vst [vmem:[#allocation2 + $0x158] sm:$0xff] %v586_v17  ;;  %v638_v37 = vadd.f32 (!%p10804_p6), %v9476_v4, %v622_v29  ;;  %v652_v41 = vmax.f32 (!%p10804_p6), %v636_v30, 0.0  ;;  %v639_v43 = vadd.f32 (!%p10804_p6), %v9476_v4, %v623_v32  ;;  %v626_v55 = vmul.f32 (!%p10804_p6), %v9471_v3, %v610_v38 }
  0xe8   : > { %596 = vst [vmem:[#allocation2 + $0x170] sm:$0xff] %v587_v20  ;;  %v653_v42 = vmax.f32 (!%p10804_p6), %v637_v31, 0.0  ;;  %v640_v56 = vadd.f32 (!%p10804_p6), %v9476_v4, %v624_v48  ;;  %v641_v57 = vadd.f32 (!%p10804_p6), %v9476_v4, %v625_v49  ;;  %v627_v58 = vmul.f32 (!%p10804_p6), %v9471_v3, %v611_v44 }
  0xe9   : > { %v654_v47 = vmax.f32 %v638_v37, 0.0  ;;  %v655_v54 = vmax.f32 %v639_v43, 0.0  ;;  %v628_v59 = vmul.f32 %v9471_v3, %v612_v46  ;;  %v642_v62 = vadd.f32 %v9476_v4, %v626_v55 }
  0xea   : > { %v666_v53 = vpack.c.bf16 %v653_v42, %v652_v41  ;;  %v629_v63 = vmul.f32 %v9471_v3, %v613_v51  ;;  %v630_v0 = vmul.f32 %v9471_v3, %v614_v52  ;;  %v656_v5 = vmax.f32 %v640_v56, 0.0 }
  0xeb   : > { %v667_v61 = vpack.c.bf16 %v655_v54, %v654_v47  ;;  %v657_v6 = vmax.f32 %v641_v57, 0.0  ;;  %v643_v9 = vadd.f32 %v9476_v4, %v627_v58  ;;  %v644_v10 = vadd.f32 %v9476_v4, %v628_v59 }
  0xec   : > { %674 = vst [vmem:[#allocation2 + $0x38] sm:$0xff] %v666_v53  ;;  %v658_v14 = vmax.f32 %v642_v62, 0.0  ;;  %v645_v15 = vadd.f32 %v9476_v4, %v629_v63  ;;  %v631_v16 = vmul.f32 %v9471_v3, %v615_v60  ;;  %v646_v17 = vadd.f32 %v9476_v4, %v630_v0 }
  0xed   : > { %675 = vst [vmem:[#allocation2 + $0x50] sm:$0xff] %v667_v61  ;;  %v668_v19 = vpack.c.bf16 %v657_v6, %v656_v5  ;;  %v659_v20 = vmax.f32 %v643_v9, 0.0  ;;  %v660_v21 = vmax.f32 %v644_v10, 0.0 }
  0xee   : > { %v661_v22 = vmax.f32 %v645_v15, 0.0  ;;  %v647_v24 = vadd.f32 %v9476_v4, %v631_v16  ;;  %v662_v25 = vmax.f32 %v646_v17, 0.0 }
  0xef   : > { %676 = vst [vmem:[#allocation2 + $0x68] sm:$0xff] %v668_v19  ;;  %v669_v26 = vpack.c.bf16 %v659_v20, %v658_v14 }
  0xf0   : > { %v670_v27 = vpack.c.bf16 %v661_v22, %v660_v21  ;;  %v663_v29 = vmax.f32 %v647_v24, 0.0 }
  0xf1   : > { %677 = vst [vmem:[#allocation2 + $0x80] sm:$0xff] %v669_v26 }
  0xf2   : > { %678 = vst [vmem:[#allocation2 + $0x98] sm:$0xff] %v670_v27  ;;  %v671_v30 = vpack.c.bf16 %v663_v29, %v662_v25 }
  0xf4   : > { %679 = vst [vmem:[#allocation2 + $0xb0] sm:$0xff] %v671_v30 }
  0xf5 PF: > { %p10805_p4 = scmp.ge.s32.totalorder %s9081_s12, 1 }
  0xf6   : > { %v684_v31 = vld [vmem:[#allocation5 + $0x80] sm:$0xff] (!%p10805_p4)  ;;  %v685_v32 = vld [vmem:[#allocation5 + $0x88] sm:$0xff] (!%p10805_p4)  ;;  %v686_v35 = vld [vmem:[#allocation5 + $0x90] sm:$0xff] (!%p10805_p4) }
  0xf7   : > { %682 = sbr.rel (%p10805_p4) target bundleno = 264 (0x108), region = 96  ;;  %v700_v36 = vmul.f32 (!%p10805_p4), %v9471_v3, %v684_v31  ;;  %v701_v37 = vmul.f32 (!%p10805_p4), %v9471_v3, %v685_v32  ;;  %v687_v38 = vld [vmem:[#allocation5 + $0x98] sm:$0xff] (!%p10805_p4)  ;;  %v702_v41 = vmul.f32 (!%p10805_p4), %v9471_v3, %v686_v35  ;;  %v688_v42 = vld [vmem:[#allocation5 + $0xa0] sm:$0xff] (!%p10805_p4)  ;;  %v689_v43 = vld [vmem:[#allocation5 + $0xa8] sm:$0xff] (!%p10805_p4) }
  0xf8   : > { %v703_v44 = vmul.f32 (!%p10805_p4), %v9471_v3, %v687_v38  ;;  %v704_v46 = vmul.f32 (!%p10805_p4), %v9471_v3, %v688_v42  ;;  %v705_v47 = vmul.f32 (!%p10805_p4), %v9471_v3, %v689_v43  ;;  %v690_v48 = vld [vmem:[#allocation5 + $0xb0] sm:$0xff] (!%p10805_p4)  ;;  %v691_v49 = vld [vmem:[#allocation5 + $0xb8] sm:$0xff] (!%p10805_p4)  ;;  %v692_v59 = vld [vmem:[#allocation5 + $0xc0] sm:$0xff] (!%p10805_p4) }
  0xf9   : > { %v716_v51 = vadd.f32 (!%p10805_p4), %v9476_v4, %v700_v36  ;;  %v717_v52 = vadd.f32 (!%p10805_p4), %v9476_v4, %v701_v37  ;;  %v718_v53 = vadd.f32 (!%p10805_p4), %v9476_v4, %v702_v41  ;;  %v706_v54 = vmul.f32 (!%p10805_p4), %v9471_v3, %v690_v48  ;;  %v693_v60 = vld [vmem:[#allocation5 + $0xc8] sm:$0xff] (!%p10805_p4)  ;;  %v694_v5 = vld [vmem:[#allocation5 + $0xd0] sm:$0xff] (!%p10805_p4)  ;;  %v695_v15 = vld [vmem:[#allocation5 + $0xd8] sm:$0xff] (!%p10805_p4) }
  0xfa   : > { %v719_v55 = vadd.f32 (!%p10805_p4), %v9476_v4, %v703_v44  ;;  %v720_v56 = vadd.f32 (!%p10805_p4), %v9476_v4, %v704_v46  ;;  %v721_v57 = vadd.f32 (!%p10805_p4), %v9476_v4, %v705_v47  ;;  %v707_v58 = vmul.f32 (!%p10805_p4), %v9471_v3, %v691_v49 }
  0xfb   : > { %v732_v61 = vmax.f32 (!%p10805_p4), %v716_v51, 0.0  ;;  %v733_v62 = vmax.f32 (!%p10805_p4), %v717_v52, 0.0  ;;  %v734_v63 = vmax.f32 (!%p10805_p4), %v718_v53, 0.0  ;;  %v722_v0 = vadd.f32 (!%p10805_p4), %v9476_v4, %v706_v54 }
  0xfc   : > { %v735_v6 = vmax.f32 (!%p10805_p4), %v719_v55, 0.0  ;;  %v736_v9 = vmax.f32 (!%p10805_p4), %v720_v56, 0.0  ;;  %v737_v10 = vmax.f32 (!%p10805_p4), %v721_v57, 0.0  ;;  %v723_v14 = vadd.f32 (!%p10805_p4), %v9476_v4, %v707_v58 }
  0xfd   : > { %v748_v16 = vpack.c.bf16 (!%p10805_p4), %v733_v62, %v732_v61  ;;  %v738_v17 = vmax.f32 (!%p10805_p4), %v722_v0, 0.0  ;;  %v708_v19 = vmul.f32 (!%p10805_p4), %v9471_v3, %v692_v59  ;;  %v709_v20 = vmul.f32 (!%p10805_p4), %v9471_v3, %v693_v60 }
  0xfe   : > { %v749_v21 = vpack.c.bf16 %v735_v6, %v734_v63  ;;  %v750_v22 = vpack.c.bf16 %v737_v10, %v736_v9  ;;  %v739_v24 = vmax.f32 %v723_v14, 0.0  ;;  %v710_v25 = vmul.f32 %v9471_v3, %v694_v5 }
  0xff   : > { %756 = vst [vmem:[#allocation2 + $0x188] sm:$0xff] %v748_v16  ;;  %v724_v26 = vadd.f32 %v9476_v4, %v708_v19  ;;  %v725_v27 = vadd.f32 %v9476_v4, %v709_v20  ;;  %v711_v29 = vmul.f32 %v9471_v3, %v695_v15 }
 0x100   : > { %757 = vst [vmem:[#allocation2 + $0x1a0] sm:$0xff] %v749_v21  ;;  %758 = vst [vmem:[#allocation2 + $0x1b8] sm:$0xff] %v750_v22  ;;  %v751_v30 = vpack.c.bf16 %v739_v24, %v738_v17  ;;  %v726_v31 = vadd.f32 %v9476_v4, %v710_v25 }
 0x101   : > { %v740_v32 = vmax.f32 %v724_v26, 0.0  ;;  %v741_v35 = vmax.f32 %v725_v27, 0.0  ;;  %v727_v36 = vadd.f32 %v9476_v4, %v711_v29 }
 0x102   : > { %759 = vst [vmem:[#allocation2 + $0x1d0] sm:$0xff] %v751_v30  ;;  %v742_v37 = vmax.f32 %v726_v31, 0.0 }
 0x103   : > { %v752_v38 = vpack.c.bf16 %v741_v35, %v740_v32  ;;  %v743_v41 = vmax.f32 %v727_v36, 0.0 }
 0x105   : > { %760 = vst [vmem:[#allocation2 + $0x1e8] sm:$0xff] %v752_v38  ;;  %v753_v42 = vpack.c.bf16 %v743_v41, %v742_v37 }
 0x107   : > { %761 = vst [vmem:[#allocation2 + $0x200] sm:$0xff] %v753_v42 }
 0x108 PF: > { %v8605_v43 = vld [vmem:[#allocation10 + $0x40] sm:$0xff]   ;;  %v8609_v47 = vld [vmem:[#allocation10 + $0x48] sm:$0xff]   ;;  %v8613_v51 = vld [vmem:[#allocation10 + $0x50] sm:$0xff]   ;;  %vm797_vm0 = vcmask 1040384   ;;  %vm886_vm1 = vcmask 1046528   ;;  %s10806_s23 = sld [smem:[#allocation32_spill]] }
 0x109   : > { %v8606_v44 = vld [vmem:[#allocation10 + $0xc0] sm:$0xff]   ;;  %7397 = vmatprep.subr.bf16.mxu0 %v8605_v43  ;;  %v8610_v48 = vld [vmem:[#allocation10 + $0xc8] sm:$0xff]   ;;  %v8614_v52 = vld [vmem:[#allocation10 + $0xd0] sm:$0xff]   ;;  %s10807_s26 = sld [smem:[#allocation34_spill]]  ;;  %s10808_s21 = sld [smem:[#allocation35_spill]] }
 0x10a   : > { %v8607_v3 = vld [vmem:[#allocation10] sm:$0xff]   ;;  %7461 = vmatprep.subr.bf16.mxu1 %v8606_v44  ;;  %v8611_v4 = vld [vmem:[#allocation10 + $0x8] sm:$0xff]   ;;  %v8615_v53 = vld [vmem:[#allocation10 + $0x10] sm:$0xff]   ;;  %p10809_p8 = scmp.le.s32.totalorder %s9081_s12, 0 }
 0x10b   : > { %v8608_v46 = vld [vmem:[#allocation10 + $0x80] sm:$0xff]   ;;  %7398 = vmatpush3.bf16.msra.mxu0 %v8607_v3  ;;  %v8612_v49 = vld [vmem:[#allocation10 + $0x88] sm:$0xff]   ;;  %v8616_v54 = vld [vmem:[#allocation10 + $0x90] sm:$0xff]  }
 0x10c   : > { %7462 = vmatpush3.bf16.msra.mxu1 %v8608_v46  ;;  %7399 = vmatprep.subr.bf16.mxu0 %v8609_v47  ;;  %v8617_v55 = vld [vmem:[#allocation10 + $0x58] sm:$0xff]   ;;  %v8621_v59 = vld [vmem:[#allocation10 + $0x60] sm:$0xff]   ;;  %v8625_v63 = vld [vmem:[#allocation10 + $0x68] sm:$0xff]  }
 0x10d   : > { %7463 = vmatprep.subr.bf16.mxu1 %v8610_v48  ;;  %v8618_v56 = vld [vmem:[#allocation10 + $0xd8] sm:$0xff]   ;;  %v8622_v60 = vld [vmem:[#allocation10 + $0xe0] sm:$0xff]   ;;  %v8626_v0 = vld [vmem:[#allocation10 + $0xe8] sm:$0xff]  }
 0x10e   : > { %v8619_v57 = vld [vmem:[#allocation10 + $0x18] sm:$0xff]   ;;  %v8623_v61 = vld [vmem:[#allocation10 + $0x20] sm:$0xff]   ;;  %v8627_v5 = vld [vmem:[#allocation10 + $0x28] sm:$0xff]  }
 0x10f   : > { %7400 = vmatpush3.bf16.msra.mxu0 %v8611_v4  ;;  %v8620_v58 = vld [vmem:[#allocation10 + $0x98] sm:$0xff]   ;;  %v8624_v62 = vld [vmem:[#allocation10 + $0xa0] sm:$0xff]   ;;  %v8628_v6 = vld [vmem:[#allocation10 + $0xa8] sm:$0xff]  }
 0x110   : > { %7464 = vmatpush3.bf16.msra.mxu1 %v8612_v49  ;;  %7401 = vmatprep.subr.bf16.mxu0 %v8613_v51  ;;  %v8629_v9 = vld [vmem:[#allocation10 + $0x70] sm:$0xff]   ;;  %v8633_v16 = vld [vmem:[#allocation10 + $0x78] sm:$0xff]   ;;  %v927_v22 = vld [vmem:[#allocation2 + $0xc0] sm:$0x80] }
 0x111   : > { %7465 = vmatprep.subr.bf16.mxu1 %v8614_v52  ;;  %v8630_v10 = vld [vmem:[#allocation10 + $0xf0] sm:$0xff]   ;;  %v8634_v17 = vld [vmem:[#allocation10 + $0xf8] sm:$0xff]   ;;  %v928_v24 = vld [vmem:[#allocation2 + $0xc8] sm:$0x7f]  ;;  %v959_v25 = vrot.slane %v927_v22, 7 }
 0x112   : > { %v8631_v14 = vld [vmem:[#allocation10 + $0x30] sm:$0xff]   ;;  %v8635_v19 = vld [vmem:[#allocation10 + $0x38] sm:$0xff]   ;;  %v960_v26 = vrot.slane %v928_v24, 7  ;;  %v855_v35 = vld [vmem:[#allocation2 + $0xa0] sm:$0x1] }
 0x113   : > { %7402 = vmatpush3.bf16.msra.mxu0 %v8615_v53  ;;  %v8632_v15 = vld [vmem:[#allocation10 + $0xb0] sm:$0xff]   ;;  %v8636_v20 = vld [vmem:[#allocation10 + $0xb8] sm:$0xff]   ;;  %v888_v38 = vrot.slane %v855_v35, 1  ;;  %v8637_v42 = vld [vmem:[#allocation10 + $0x140] sm:$0xff]  }
 0x114   : > { %7466 = vmatpush3.bf16.msra.mxu1 %v8616_v54  ;;  %7403 = vmatprep.subr.bf16.mxu0 %v8617_v55  ;;  %v838_v21 = vld [vmem:[#allocation2 + $0x98] sm:$0xff]  ;;  %v765_v27 = vld [vmem:[#allocation2 + $0x90] sm:$0x80]  ;;  %v961_v36 = vsel %vm797_vm0, %v959_v25, %v960_v26  ;;  %v8638_v44 = vld [vmem:[#allocation10 + $0x100] sm:$0xff]  }
 0x115   : > { %7467 = vmatprep.subr.bf16.mxu1 %v8618_v56  ;;  %1928 = vmatprep.mubr.bf16.mxu0 %v838_v21  ;;  %v766_v29 = vld [vmem:[#allocation2 + $0x98] sm:$0x7f]  ;;  %v798_v30 = vrot.slane %v765_v27, 7  ;;  %v839_v3 = vld [vmem:[#allocation2 + $0xb0] sm:$0xff]  ;;  %v929_v46 = vld [vmem:[#allocation2 + $0xd8] sm:$0x80] }
 0x116   : > { %v799_v31 = vrot.slane %v766_v29, 7  ;;  %v854_v32 = vld [vmem:[#allocation2 + $0x98] sm:$0xfe]  ;;  %2025 = vmatprep.mubr.bf16.mxu1 %v961_v36  ;;  %v930_v47 = vld [vmem:[#allocation2 + $0xe0] sm:$0x7f]  ;;  %v962_v48 = vrot.slane %v929_v46, 7 }
 0x117   : > { %7404 = vmatpush3.bf16.msra.mxu0 %v8619_v57  ;;  %v887_v37 = vrot.slane %v854_v32, 1  ;;  %v767_v4 = vld [vmem:[#allocation2 + $0xa8] sm:$0x80]  ;;  %v963_v51 = vrot.slane %v930_v47, 7  ;;  %v768_v52 = vld [vmem:[#allocation2 + $0xb0] sm:$0x7f] }
 0x118   : > { %7468 = vmatpush3.bf16.msra.mxu1 %v8620_v58  ;;  %7405 = vmatprep.subr.bf16.mxu0 %v8621_v59  ;;  %v800_v41 = vsel %vm797_vm0, %v798_v30, %v799_v31  ;;  %v8639_v49 = vld [vmem:[#allocation10 + $0x148] sm:$0xff]   ;;  %v801_v53 = vrot.slane %v767_v4, 7  ;;  %v856_v54 = vld [vmem:[#allocation2 + $0xb0] sm:$0xfe]  ;;  %v802_v55 = vrot.slane %v768_v52, 7  ;;  %v9631_v27 = vld [vmem:[#allocation2 + $0xe0] sm:$0xff] }
 0x119   : > { %7469 = vmatprep.subr.bf16.mxu1 %v8622_v60  ;;  %v889_v43 = vsel %vm886_vm1, %v887_v37, %v888_v38  ;;  %v857_v56 = vld [vmem:[#allocation2 + $0xb8] sm:$0x1]  ;;  %v890_v57 = vrot.slane %v856_v54, 1  ;;  %v964_v58 = vsel %vm797_vm0, %v962_v48, %v963_v51  ;;  %v8640_v60 = vld [vmem:[#allocation10 + $0x108] sm:$0xff]   ;;  %v8642_v25 = vld [vmem:[#allocation10 + $0x110] sm:$0xff]  }
 0x11a   : > { %v891_v59 = vrot.slane %v857_v56, 1  ;;  %v933_v29 = vld [vmem:[#allocation2 + $0x108] sm:$0x80]  ;;  %v934_v31 = vld [vmem:[#allocation2 + $0x110] sm:$0x7f]  ;;  %v8643_v36 = vld [vmem:[#allocation10 + $0x158] sm:$0xff]  }
 0x11b   : > { %7406 = vmatpush3.bf16.msra.mxu0 %v8623_v61  ;;  %v803_v61 = vsel %vm797_vm0, %v801_v53, %v802_v55  ;;  %v968_v32 = vrot.slane %v933_v29, 7  ;;  %v771_v35 = vld [vmem:[#allocation2 + $0xd8] sm:$0x80]  ;;  %v969_v37 = vrot.slane %v934_v31, 7  ;;  %v772_v38 = vld [vmem:[#allocation2 + $0xe0] sm:$0x7f] }
 0x11c   : > { %7470 = vmatpush3.bf16.msra.mxu1 %v8624_v62  ;;  %7407 = vmatprep.subr.bf16.mxu0 %v8625_v63  ;;  %v9625_v62 = vld [vmem:[#allocation2 + $0xc8] sm:$0xff]  ;;  %v931_v63 = vld [vmem:[#allocation2 + $0xf0] sm:$0x80]  ;;  %v8644_v48 = vld [vmem:[#allocation10 + $0x118] sm:$0xff]  }
 0x11d   : > { %7471 = vmatprep.subr.bf16.mxu1 %v8626_v0  ;;  %v892_v0 = vsel %vm886_vm1, %v890_v57, %v891_v59  ;;  %v970_v46 = vsel %vm797_vm0, %v968_v32, %v969_v37  ;;  %v8645_v51 = vld [vmem:[#allocation10 + $0x1c0] sm:$0xff]   ;;  %v9638_v53 = vld [vmem:[#allocation2 + $0xf8] sm:$0xff]  ;;  %v936_v55 = vld [vmem:[#allocation2 + $0x128] sm:$0x7f] }
 0x11e   : > { %v8646_v52 = vld [vmem:[#allocation10 + $0x180] sm:$0xff]   ;;  %v773_v57 = vld [vmem:[#allocation2 + $0xf0] sm:$0x80]  ;;  %v972_v59 = vrot.slane %v936_v55, 7 }
 0x11f   : > { %7408 = vmatpush3.bf16.msra.mxu0 %v8627_v5  ;;  %v932_v5 = vld [vmem:[#allocation2 + $0xf8] sm:$0x7f]  ;;  %v935_v54 = vld [vmem:[#allocation2 + $0x120] sm:$0x80]  ;;  %v864_v32 = vld [vmem:[#allocation2 + $0x110] sm:$0xfe] }
 0x120   : > { %7472 = vmatpush3.bf16.msra.mxu1 %v8628_v6  ;;  %7409 = vmatprep.subr.bf16.mxu0 %v8629_v9  ;;  %v965_v6 = vrot.slane %v931_v63, 7  ;;  %v769_v9 = vld [vmem:[#allocation2 + $0xc0] sm:$0x80]  ;;  %v971_v56 = vrot.slane %v935_v54, 7  ;;  %v862_v63 = vld [vmem:[#allocation2 + $0xf8] sm:$0xfe] }
 0x121   : > { %7473 = vmatprep.subr.bf16.mxu1 %v8630_v10  ;;  %v8641_v10 = vld [vmem:[#allocation10 + $0x150] sm:$0xff]   ;;  %v902_v37 = vrot.slane %v864_v32, 1  ;;  %v777_v55 = vld [vmem:[#allocation2 + $0x120] sm:$0x80] }
 0x123   : > { %7410 = vmatpush3.bf16.msra.mxu0 %v8631_v14  ;;  %v966_v14 = vrot.slane %v932_v5, 7  ;;  %v863_v5 = vld [vmem:[#allocation2 + $0x100] sm:$0x1] }
 0x124   : > { %7474 = vmatpush3.bf16.msra.mxu1 %v8632_v15  ;;  %7411 = vmatprep.subr.bf16.mxu0 %v8633_v16  ;;  %v770_v15 = vld [vmem:[#allocation2 + $0xc8] sm:$0x7f]  ;;  %v804_v16 = vrot.slane %v769_v9, 7  ;;  %v973_v9 = vsel %vm797_vm0, %v971_v56, %v972_v59  ;;  %v8657_v56 = vld [vmem:[#allocation10 + $0x170] sm:$0xff]  }
 0x125   : > { %7475 = vmatprep.subr.bf16.mxu1 %v8634_v17  ;;  %v858_v17 = vld [vmem:[#allocation2 + $0xc8] sm:$0xfe]  ;;  %v967_v22 = vsel %vm797_vm0, %v965_v6, %v966_v14  ;;  %v899_v6 = vrot.slane %v862_v63, 1  ;;  %v8648_v14 = vld [vmem:[#allocation10 + $0x120] sm:$0xff]  }
 0x126   : > { %v893_v21 = vrot.slane %v858_v17, 1  ;;  %v8649_v17 = vld [vmem:[#allocation10 + $0x1c8] sm:$0xff]  }
 0x127   : > { %7412 = vmatpush3.bf16.msra.mxu0 %v8635_v19  ;;  %v805_v19 = vrot.slane %v770_v15, 7  ;;  %v866_v59 = vld [vmem:[#allocation2 + $0x128] sm:$0xfe] }
 0x128   : > { %7476 = vmatpush3.bf16.msra.mxu1 %v8636_v20  ;;  %7525 = vmatprep.subr.bf16.mxu0 %v8637_v42  ;;  %v859_v20 = vld [vmem:[#allocation2 + $0xd0] sm:$0x1]  ;;  %v860_v42 = vld [vmem:[#allocation2 + $0xe0] sm:$0xfe] }
 0x129   : > { %v894_v24 = vrot.slane %v859_v20, 1  ;;  %v806_v26 = vsel %vm797_vm0, %v804_v16, %v805_v19  ;;  %7589 = vmatprep.subr.bf16.mxu1 %v8645_v51  ;;  %v8650_v19 = vld [vmem:[#allocation10 + $0x188] sm:$0xff]   ;;  %v9643_v20 = vld [vmem:[#allocation2 + $0x110] sm:$0xff] }
 0x12a   : > { %1929 = vmatmul.mubr.bf16.vlgmr.msra.gmra.mrb[0].mxu0 %v800_v41  ;;  %v807_v41 = vrot.slane %v771_v35, 7 }
 0x12b   : > { %2026 = vmatmul.mubr.bf16.vlgmr.msra.gmra.mrb[0].mxu1 %v889_v43  ;;  %7526 = vmatpush3.bf16.msra.mxu0 %v8638_v44  ;;  %v895_v30 = vsel %vm886_vm1, %v893_v21, %v894_v24  ;;  %v808_v43 = vrot.slane %v772_v38, 7  ;;  %v861_v44 = vld [vmem:[#allocation2 + $0xe8] sm:$0x1]  ;;  %v937_v21 = vld [vmem:[#allocation2 + $0x138] sm:$0x80] }
 0x12c   : > { %1936 = vmatprep.mubr.bf16.mxu0 %v839_v3  ;;  %7527 = vmatprep.subr.bf16.mxu0 %v8639_v49  ;;  %v896_v3 = vrot.slane %v860_v42, 1  ;;  %v897_v47 = vrot.slane %v861_v44, 1  ;;  %v974_v24 = vrot.slane %v937_v21, 7  ;;  %v8652_v42 = vld [vmem:[#allocation10 + $0x128] sm:$0xff]   ;;  %v942_v21 = vld [vmem:[#allocation2 + $0x170] sm:$0x7f] }
 0x12d   : > { %2033 = vmatprep.mubr.bf16.mxu1 %v964_v58  ;;  %v809_v4 = vsel %vm797_vm0, %v807_v41, %v808_v43  ;;  %v8647_v58 = vld [vmem:[#allocation10 + $0x160] sm:$0xff]   ;;  %7590 = vmatpush3.bf16.msra.mxu1 %v8646_v52  ;;  %v8656_v52 = vld [vmem:[#allocation10 + $0x198] sm:$0xff]  }
 0x12e   : > { %v898_v49 = vsel %vm886_vm1, %v896_v3, %v897_v47  ;;  %7591 = vmatprep.subr.bf16.mxu1 %v8649_v17  ;;  %v8653_v3 = vld [vmem:[#allocation10 + $0x1d0] sm:$0xff]   ;;  %v8655_v47 = vld [vmem:[#allocation10 + $0x1d8] sm:$0xff]   ;;  %v9656_v17 = vld [vmem:[#allocation2 + $0x140] sm:$0xff] }
 0x12f   : > { %7528 = vmatpush3.bf16.msra.mxu0 %v8640_v60  ;;  %v774_v60 = vld [vmem:[#allocation2 + $0xf8] sm:$0x7f] }
 0x130   : > { %7529 = vmatprep.subr.bf16.mxu0 %v8641_v10  ;;  %v900_v10 = vrot.slane %v863_v5, 1  ;;  %v905_v5 = vrot.slane %v866_v59, 1 }
 0x131   : > { %7592 = vmatpush3.bf16.msra.mxu1 %v8650_v19  ;;  %v941_v19 = vld [vmem:[#allocation2 + $0x168] sm:$0x80] }
 0x132   : > { %1937 = vmatmul.mubr.bf16.gmra.mrb[4].mxu0 %v803_v61  ;;  %v810_v61 = vrot.slane %v773_v57, 7  ;;  %v901_v16 = vsel %vm886_vm1, %v899_v6, %v900_v10  ;;  %7593 = vmatprep.subr.bf16.mxu1 %v8653_v3  ;;  %v778_v57 = vld [vmem:[#allocation2 + $0x128] sm:$0x7f]  ;;  %v8665_v3 = vld [vmem:[#allocation10 + $0x1f0] sm:$0xff]  }
 0x133   : > { %2034 = vmatmul.mubr.bf16.gmra.mrb[4].mxu1 %v892_v0  ;;  %1944 = vmatprep.mubr.bf16.mxu0 %v9625_v62  ;;  %v811_v0 = vrot.slane %v774_v60, 7  ;;  %v8658_v60 = vld [vmem:[#allocation10 + $0x130] sm:$0xff]   ;;  %v817_v63 = vrot.slane %v778_v57, 7 }
 0x134   : > { %2041 = vmatprep.mubr.bf16.mxu1 %v967_v22  ;;  %7530 = vmatpush3.bf16.msra.mxu0 %v8642_v25  ;;  %v938_v22 = vld [vmem:[#allocation2 + $0x140] sm:$0x7f]  ;;  %v775_v25 = vld [vmem:[#allocation2 + $0x108] sm:$0x80] }
 0x135   : > { %7531 = vmatprep.subr.bf16.mxu0 %v8643_v36  ;;  %v812_v15 = vsel %vm797_vm0, %v810_v61, %v811_v0  ;;  %v975_v29 = vrot.slane %v938_v22, 7  ;;  %v813_v31 = vrot.slane %v775_v25, 7  ;;  %v865_v36 = vld [vmem:[#allocation2 + $0x118] sm:$0x1]  ;;  %v867_v0 = vld [vmem:[#allocation2 + $0x130] sm:$0x1] }
 0x136   : > { %v903_v41 = vrot.slane %v865_v36, 1  ;;  %v906_v6 = vrot.slane %v867_v0, 1  ;;  %v980_v22 = vrot.slane %v941_v19, 7  ;;  %v8662_v25 = vld [vmem:[#allocation10 + $0x1a8] sm:$0xff]   ;;  %v1089_v0 = vld [vmem:[#allocation2 + $0xf8] sm:$0x7f] }
 0x137   : > { %v976_v38 = vsel %vm797_vm0, %v974_v24, %v975_v29  ;;  %v981_v24 = vrot.slane %v942_v21, 7  ;;  %v780_v29 = vld [vmem:[#allocation2 + $0x140] sm:$0x7f]  ;;  %v869_v36 = vld [vmem:[#allocation2 + $0x148] sm:$0x1] }
 0x138   : > { %7532 = vmatpush3.bf16.msra.mxu0 %v8644_v48  ;;  %v904_v44 = vsel %vm886_vm1, %v902_v37, %v903_v41  ;;  %v9649_v48 = vld [vmem:[#allocation2 + $0x128] sm:$0xff]  ;;  %v820_v32 = vrot.slane %v780_v29, 7 }
 0x139   : > { %7533 = vmatprep.subr.bf16.mxu0 %v8647_v58  ;;  %v816_v58 = vrot.slane %v777_v55, 7  ;;  %v9665_v55 = vld [vmem:[%s10749_s2 + $0x1] ss:$0 sm:$0xff] }
 0x13a   : > { %1945 = vmatmul.mubr.bf16.gmra.mrb[8].mxu0 %v806_v26  ;;  %v8651_v26 = vld [vmem:[#allocation10 + $0x168] sm:$0xff]   ;;  %v2631_v59 = vmul.f32 %v9665_v55, %v9466_v2 }
 0x13b   : > { %2042 = vmatmul.mubr.bf16.gmra.mrb[8].mxu1 %v895_v30  ;;  %1952 = vmatprep.mubr.bf16.mxu0 %v9631_v27  ;;  %v776_v30 = vld [vmem:[#allocation2 + $0x110] sm:$0x7f]  ;;  %v818_v10 = vsel %vm797_vm0, %v816_v58, %v817_v63  ;;  %v2630_v58 = vmul.f32 %v9665_v55, %v9463_v1  ;;  %v1088_v63 = vld [vmem:[#allocation2 + $0xf0] sm:$0x80] }
 0x13c   : > { %2049 = vmatprep.mubr.bf16.mxu1 %v970_v46  ;;  %7534 = vmatpush3.bf16.msra.mxu0 %v8648_v14  ;;  %v814_v35 = vrot.slane %v776_v30, 7  ;;  %v8654_v46 = vld [vmem:[#allocation10 + $0x190] sm:$0xff]   ;;  %v907_v14 = vsel %vm886_vm1, %v905_v5, %v906_v6  ;;  %v982_v30 = vsel %vm797_vm0, %v980_v22, %v981_v24  ;;  %v1017_v5 = vld [vmem:[#allocation2 + $0xe0] sm:$0xfe]  ;;  %v2633_v6 = vmul.f32 %v9665_v55, %v9486_v8 }
 0x13d   : > { %7535 = vmatprep.subr.bf16.mxu0 %v8651_v26  ;;  %7594 = vmatpush3.bf16.msra.mxu1 %v8654_v46  ;;  %v779_v26 = vld [vmem:[#allocation2 + $0x138] sm:$0x80]  ;;  %v8666_v46 = vld [vmem:[#allocation10 + $0x1b0] sm:$0xff]   ;;  %v1050_v19 = vrot.slane %v1017_v5, 1 }
 0x13e   : > { %v815_v43 = vsel %vm797_vm0, %v813_v31, %v814_v35  ;;  %7595 = vmatprep.subr.bf16.mxu1 %v8655_v47  ;;  %v819_v31 = vrot.slane %v779_v26, 7  ;;  %v868_v35 = vld [vmem:[#allocation2 + $0x140] sm:$0xfe]  ;;  %v8667_v47 = vld [vmem:[#allocation10 + $0x1f8] sm:$0xff]  }
 0x13f   : > { %v908_v37 = vrot.slane %v868_v35, 1  ;;  %v1094_v5 = vld [vmem:[#allocation2 + $0x138] sm:$0x80] }
 0x140   : > { %7536 = vmatpush3.bf16.msra.mxu0 %v8652_v42  ;;  %v821_v41 = vsel %vm797_vm0, %v819_v31, %v820_v32  ;;  %v8663_v42 = vld [vmem:[#allocation10 + $0x178] sm:$0xff]   ;;  %v1091_v31 = vld [vmem:[#allocation2 + $0x110] sm:$0x7f] }
 0x141   : > { %7537 = vmatprep.subr.bf16.mxu0 %v8657_v56  ;;  %7596 = vmatpush3.bf16.msra.mxu1 %v8656_v52  ;;  %v9670_v56 = vld [vmem:[%s10806_s23 + $0x1] ss:$0 sm:$0xff] }
 0x142   : > { %1953 = vmatmul.mubr.bf16.gmra.mrb[12].mxu0 %v809_v4  ;;  %v939_v4 = vld [vmem:[#allocation2 + $0x150] sm:$0x80]  ;;  %v2653_v24 = vadd.f32 %v9670_v56, %v2633_v6  ;;  %v2634_v6 = vmul.f32 %v9665_v55, %v9493_v11 }
 0x143   : > { %2050 = vmatmul.mubr.bf16.gmra.mrb[12].mxu1 %v898_v49  ;;  %1960 = vmatprep.mubr.bf16.mxu0 %v9638_v53  ;;  %v940_v49 = vld [vmem:[#allocation2 + $0x158] sm:$0x7f]  ;;  %v977_v51 = vrot.slane %v939_v4, 7  ;;  %v1015_v4 = vld [vmem:[#allocation2 + $0xc8] sm:$0xfe] }
 0x144   : > { %2057 = vmatprep.mubr.bf16.mxu1 %v973_v9  ;;  %v978_v54 = vrot.slane %v940_v49, 7  ;;  %7538 = vmatpush3.bf16.msra.mxu0 %v8658_v60  ;;  %v8659_v9 = vld [vmem:[#allocation10 + $0x1e0] sm:$0xff]   ;;  %v1016_v49 = vld [vmem:[#allocation2 + $0xd0] sm:$0x1] }
 0x145   : > { %7597 = vmatprep.subr.bf16.mxu1 %v8659_v9  ;;  %7539 = vmatprep.subr.bf16.mxu0 %v8663_v42  ;;  %v1048_v52 = vrot.slane %v1016_v49, 1  ;;  %v8669_v60 = vld [vmem:[#allocation10 + $0x200] sm:$0xff]   ;;  %v2650_v9 = vadd.f32 %v9670_v56, %v2630_v58  ;;  %v1124_v42 = vrot.slane %v1091_v31, 7 }
 0x146   : > { %v979_v61 = vsel %vm797_vm0, %v977_v51, %v978_v54  ;;  %v1047_v51 = vrot.slane %v1015_v4, 1  ;;  %v8668_v54 = vld [vmem:[#allocation10 + $0x1b8] sm:$0xff]   ;;  %v1092_v4 = vld [vmem:[#allocation2 + $0x120] sm:$0x80] }
 0x148   : > { %v1049_v57 = vsel %vm886_vm1, %v1047_v51, %v1048_v52  ;;  %v1093_v51 = vld [vmem:[#allocation2 + $0x128] sm:$0x7f]  ;;  %v1126_v52 = vrot.slane %v1092_v4, 7 }
 0x14a   : > { %1961 = vmatmul.mubr.bf16.gmra.mrb[16].mxu0 %v812_v15  ;;  %v8660_v15 = vld [vmem:[#allocation10 + $0x1a0] sm:$0xff]  }
 0x14b   : > { %2058 = vmatmul.mubr.bf16.gmra.mrb[16].mxu1 %v901_v16  ;;  %1968 = vmatprep.mubr.bf16.mxu0 %v9643_v20  ;;  %v8661_v16 = vld [vmem:[#allocation10 + $0x1e8] sm:$0xff]  }
 0x14c   : > { %2065 = vmatprep.mubr.bf16.mxu1 %v976_v38  ;;  %7598 = vmatpush3.bf16.msra.mxu1 %v8660_v15  ;;  %v909_v38 = vrot.slane %v869_v36, 1  ;;  %v1121_v15 = vrot.slane %v1089_v0, 7  ;;  %v2669_v36 = vmax.f32 %v2653_v24, 0.0  ;;  %v1024_v24 = vld [vmem:[#allocation2 + $0x130] sm:$0x1] }
 0x14d   : > { %7599 = vmatprep.subr.bf16.mxu1 %v8661_v16  ;;  %v1018_v16 = vld [vmem:[#allocation2 + $0xe8] sm:$0x1]  ;;  %v1060_v31 = vrot.slane %v1024_v24, 1  ;;  %v1028_v24 = vld [vmem:[#allocation2 + $0x160] sm:$0x1] }
 0x14e   : > { %v1051_v21 = vrot.slane %v1018_v16, 1  ;;  %v9702_v16 = vld [vmem:[#allocation2 + $0x170] sm:$0xff] }
 0x150   : > { %7600 = vmatpush3.bf16.msra.mxu1 %v8662_v25  ;;  %v2666_v25 = vmax.f32 %v2650_v9, 0.0  ;;  %v1052_v32 = vsel %vm886_vm1, %v1050_v19, %v1051_v21  ;;  %v2635_v19 = vmul.f32 %v9665_v55, %v9496_v12  ;;  %v2636_v21 = vmul.f32 %v9665_v55, %v9499_v13 }
 0x151   : > { %7601 = vmatprep.subr.bf16.mxu1 %v8665_v3 }
 0x152   : > { %1969 = vmatmul.mubr.bf16.gmra.mrb[20].mxu0 %v815_v43  ;;  %v910_v43 = vsel %vm886_vm1, %v908_v37, %v909_v38  ;;  %v1019_v38 = vld [vmem:[#allocation2 + $0xf8] sm:$0xfe] }
 0x153   : > { %2066 = vmatmul.mubr.bf16.gmra.mrb[20].mxu1 %v904_v44  ;;  %1976 = vmatprep.mubr.bf16.mxu0 %v9649_v48  ;;  %v8664_v44 = vld [vmem:[#allocation10 + $0x138] sm:$0xff]   ;;  %v1053_v3 = vrot.slane %v1019_v38, 1 }
 0x154   : > { %2073 = vmatprep.mubr.bf16.mxu1 %v979_v61  ;;  %7540 = vmatpush3.bf16.msra.mxu0 %v8664_v44  ;;  %v2632_v61 = vmul.f32 %v9665_v55, %v9483_v7  ;;  %v1020_v44 = vld [vmem:[#allocation2 + $0x100] sm:$0x1] }
 0x155   : > { %7602 = vmatpush3.bf16.msra.mxu1 %v8666_v46  ;;  %8261 = vmatprep.subr.bf16.mxu0 %v8669_v60  ;;  %v8670_v46 = vld [vmem:[#allocation10 + $0x208] sm:$0xff]  }
 0x156   : > { %7603 = vmatprep.subr.bf16.mxu1 %v8667_v47  ;;  %v2652_v22 = vadd.f32 %v9670_v56, %v2632_v61  ;;  %v1054_v47 = vrot.slane %v1020_v44, 1  ;;  %v1022_v61 = vld [vmem:[#allocation2 + $0x118] sm:$0x1]  ;;  %v2640_v44 = vmul.f32 %v9665_v55, %v9527_v33 }
 0x157   : > { %v1057_v0 = vrot.slane %v1022_v61, 1  ;;  %v2655_v61 = vadd.f32 %v9670_v56, %v2635_v19 }
 0x158   : > { %v2668_v35 = vmax.f32 %v2652_v22, 0.0  ;;  %v9694_v58 = vsel %vm886_vm1, %v1053_v3, %v1054_v47  ;;  %v1026_v47 = vld [vmem:[#allocation2 + $0x148] sm:$0x1] }
 0x159   : > { %7604 = vmatpush3.bf16.msra.mxu1 %v8668_v54  ;;  %v1021_v54 = vld [vmem:[#allocation2 + $0x110] sm:$0xfe] }
 0x15a   : > { %1977 = vmatmul.mubr.bf16.gmra.mrb[24].mxu0 %v818_v10  ;;  %v2651_v10 = vadd.f32 %v9670_v56, %v2631_v59  ;;  %v1127_v59 = vrot.slane %v1093_v51, 7  ;;  %v2641_v51 = vmul.f32 %v9665_v55, %v9530_v34 }
 0x15b   : > { %2074 = vmatmul.mubr.bf16.gmra.mrb[24].mxu1 %v907_v14  ;;  %1984 = vmatprep.mubr.bf16.mxu0 %v9656_v17  ;;  %v1120_v14 = vrot.slane %v1088_v63, 7  ;;  %v1056_v63 = vrot.slane %v1021_v54, 1  ;;  %v1063_v54 = vrot.slane %v1026_v47, 1 }
 0x15c   : > { %2081 = vmatprep.mubr.bf16.mxu1 %v982_v30  ;;  %v2667_v26 = vmax.f32 %v2651_v10, 0.0  ;;  %v1090_v30 = vld [vmem:[#allocation2 + $0x108] sm:$0x80]  ;;  %v9700_v9 = vsel %vm797_vm0, %v1126_v52, %v1127_v59  ;;  %v1095_v10 = vld [vmem:[#allocation2 + $0x140] sm:$0x7f]  ;;  %v8672_v52 = vld [vmem:[#allocation10 + $0x218] sm:$0xff]  }
 0x15d   : > { %v1122_v29 = vsel %vm797_vm0, %v1120_v14, %v1121_v15  ;;  %v1123_v37 = vrot.slane %v1090_v30, 7  ;;  %v1129_v14 = vrot.slane %v1094_v5, 7  ;;  %v1023_v15 = vld [vmem:[#allocation2 + $0x128] sm:$0xfe]  ;;  %v9709_v22 = vsel %vm886_vm1, %v1056_v63, %v1057_v0  ;;  %v8671_v30 = vld [vmem:[#allocation10 + $0x210] sm:$0xff]  }
 0x15e   : > { %v1098_v59 = vld [vmem:[#allocation2 + $0x168] sm:$0x80]  ;;  %v2656_v63 = vadd.f32 %v9670_v56, %v2636_v21 }
 0x15f   : > { %v9689_v49 = vsel %vm797_vm0, %v1123_v37, %v1124_v42  ;;  %v1097_v37 = vld [vmem:[#allocation2 + $0x158] sm:$0x7f]  ;;  %v9721_v42 = vld [vmem:[#allocation2 + $0x188] sm:$0xff] }
 0x162   : > { %1985 = vmatmul.mubr.bf16.gmra.mrb[28].mxu0 %v821_v41  ;;  %v2682_v41 = vpack.c.bf16 %v2667_v26, %v2666_v25  ;;  %v1059_v25 = vrot.slane %v1023_v15, 1  ;;  %v2637_v26 = vmul.f32 %v9665_v55, %v9508_v18  ;;  %v9737_v15 = vld [vmem:[#allocation2 + $0x1a0] sm:$0xff] }
 0x163   : > { %2082 = vmatmul.mubr.bf16.gmra.mrb[28].mxu1 %v910_v43  ;;  %2122 = vmatprep.mubr.bf16.mxu0 %v1049_v57  ;;  %v2683_v43 = vpack.c.bf16 %v2669_v36, %v2668_v35  ;;  %v9691_v57 = vld [vmem:[#allocation2 + $0x158] sm:$0xff]  ;;  %v1096_v35 = vld [vmem:[#allocation2 + $0x150] sm:$0x80]  ;;  %v2638_v36 = vmul.f32 %v9665_v55, %v9517_v23 }
 0x164   : > { %2219 = vmatprep.mubr.bf16.mxu1 %v9638_v53  ;;  %2690 = vst [vmem:[#allocation2 + $0xc8] sm:$0xff] %v2682_v41  ;;  %v1132_v38 = vrot.slane %v1096_v35, 7  ;;  %v1025_v41 = vld [vmem:[#allocation2 + $0x140] sm:$0xfe]  ;;  %v9727_v3 = vsel %vm886_vm1, %v1059_v25, %v1060_v31  ;;  %v2657_v0 = vadd.f32 %v9670_v56, %v2637_v26  ;;  %v2642_v26 = vmul.f32 %v9665_v55, %v9535_v39 }
 0x165   : > { %2691 = vst [vmem:[#allocation2 + $0xe0] sm:$0xff] %v2683_v43  ;;  %v1133_v43 = vrot.slane %v1097_v37, 7  ;;  %v1062_v4 = vrot.slane %v1025_v41, 1  ;;  %v1066_v31 = vrot.slane %v1028_v24, 1  ;;  %v1100_v35 = vld [vmem:[#allocation2 + $0x180] sm:$0x80] }
 0x166   : > { %v1138_v47 = vrot.slane %v1100_v35, 7  ;;  %v2645_v35 = vmul.f32 %v9665_v55, %v9551_v50  ;;  %v8674_v50 = vld [vmem:[#allocation10 + $0x228] sm:$0xff]  }
 0x167   : > { %v9735_v5 = vsel %vm797_vm0, %v1132_v38, %v1133_v43  ;;  %v9746_v19 = vsel %vm886_vm1, %v1062_v4, %v1063_v54  ;;  %v8673_v38 = vld [vmem:[#allocation10 + $0x220] sm:$0xff]   ;;  %v1101_v43 = vld [vmem:[#allocation2 + $0x188] sm:$0x7f]  ;;  %v2671_v4 = vmax.f32 %v2655_v61, 0.0  ;;  %v2644_v54 = vmul.f32 %v9665_v55, %v9543_v45 }
 0x168   : > { %v2672_v61 = vmax.f32 %v2656_v63, 0.0  ;;  %v1178_v63 = vld [vmem:[#allocation2 + $0x110] sm:$0xfe]  ;;  %v1180_v45 = vld [vmem:[#allocation2 + $0x128] sm:$0xfe] }
 0x16a   : > { %2123 = vmatmul.mubr.bf16.vlgmr.msra.gmra.mrb[32].mxu0 %v9625_v62  ;;  %v1130_v62 = vrot.slane %v1095_v10, 7  ;;  %v1135_v10 = vrot.slane %v1098_v59, 7 }
 0x16b   : > { %8262 = vmatpush3.bf16.msra.mxu0 %v8669_v60  ;;  %2220 = vmatmul.mubr.bf16.vlgmr.msra.gmra.mrb[32].mxu1 %v1122_v29  ;;  %v2639_v60 = vmul.f32 %v9665_v55, %v9522_v28 }
 0x16c   : > { %2130 = vmatprep.mubr.bf16.mxu0 %v1052_v32  ;;  %8263 = vmatprep.subr.bf16.mxu0 %v8670_v46  ;;  %v9719_v29 = vsel %vm797_vm0, %v1129_v14, %v1130_v62  ;;  %v2654_v32 = vadd.f32 %v9670_v56, %v2634_v6  ;;  %v1099_v6 = vld [vmem:[#allocation2 + $0x170] sm:$0x7f]  ;;  %v1027_v14 = vld [vmem:[#allocation2 + $0x158] sm:$0xfe] }
 0x16d   : > { %2227 = vmatprep.mubr.bf16.mxu1 %v9643_v20  ;;  %v9743_v62 = vadd.f32 %v9670_v56, %v2639_v60  ;;  %v1136_v21 = vrot.slane %v1099_v6, 7  ;;  %v1065_v25 = vrot.slane %v1027_v14, 1  ;;  %v9755_v60 = vadd.f32 %v9670_v56, %v2641_v51  ;;  %v1030_v51 = vld [vmem:[#allocation2 + $0x178] sm:$0x1]  ;;  %v1102_v6 = vld [vmem:[#allocation2 + $0x198] sm:$0x80] }
 0x16e   : > { %v2670_v37 = vmax.f32 %v2654_v32, 0.0  ;;  %v2643_v32 = vmul.f32 %v9665_v55, %v9538_v40  ;;  %v1069_v59 = vrot.slane %v1030_v51, 1  ;;  %v9771_v14 = vadd.f32 %v9670_v56, %v2642_v26  ;;  %v1177_v51 = vld [vmem:[#allocation2 + $0x100] sm:$0x1]  ;;  %v1190_v40 = vld [vmem:[#allocation2 + $0x1a0] sm:$0xfe] }
 0x16f   : > { %8264 = vmatpush3.bf16.msra.mxu0 %v8670_v46  ;;  %v9740_v46 = vadd.f32 %v9670_v56, %v2638_v36  ;;  %v9752_v36 = vadd.f32 %v9670_v56, %v2640_v44  ;;  %v9760_v41 = vsel %vm797_vm0, %v1135_v10, %v1136_v21  ;;  %v9766_v44 = vsel %vm886_vm1, %v1065_v25, %v1066_v31  ;;  %v1176_v25 = vld [vmem:[#allocation2 + $0xf8] sm:$0xfe] }
 0x170   : > { %8265 = vmatprep.subr.bf16.mxu0 %v8671_v30  ;;  %v2684_v10 = vpack.c.bf16 %v2671_v4, %v2670_v37  ;;  %v1141_v24 = vrot.slane %v1102_v6, 7  ;;  %v2673_v31 = vmax.f32 %v2657_v0, 0.0  ;;  %v1208_v37 = vrot.slane %v1176_v25, 1  ;;  %v1179_v4 = vld [vmem:[#allocation2 + $0x118] sm:$0x1] }
 0x171   : > { %v2663_v26 = vadd.f32 %v9670_v56, %v2643_v32  ;;  %v2664_v0 = vadd.f32 %v9670_v56, %v2644_v54  ;;  %v1214_v25 = vrot.slane %v1180_v45, 1  ;;  %v1182_v54 = vld [vmem:[#allocation2 + $0x140] sm:$0xfe] }
 0x172   : > { %2131 = vmatmul.mubr.bf16.gmra.mrb[36].mxu0 %v9631_v27  ;;  %v1029_v27 = vld [vmem:[#allocation2 + $0x170] sm:$0xfe]  ;;  %2692 = vst [vmem:[#allocation2 + $0xf8] sm:$0xff] %v2684_v10  ;;  %v2685_v6 = vpack.c.bf16 %v2673_v31, %v2672_v61  ;;  %v2674_v10 = vmax.f32 %v9740_v46, 0.0  ;;  %v2675_v61 = vmax.f32 %v9743_v62, 0.0  ;;  %v1217_v46 = vrot.slane %v1182_v54, 1 }
 0x173   : > { %2228 = vmatmul.mubr.bf16.gmra.mrb[36].mxu1 %v9689_v49  ;;  %2138 = vmatprep.mubr.bf16.mxu0 %v9694_v58  ;;  %v1139_v49 = vrot.slane %v1101_v43, 7  ;;  %v1068_v58 = vrot.slane %v1029_v27, 1  ;;  %v1183_v31 = vld [vmem:[#allocation2 + $0x148] sm:$0x1] }
 0x174   : > { %2235 = vmatprep.mubr.bf16.mxu1 %v9649_v48  ;;  %8266 = vmatpush3.bf16.msra.mxu0 %v8671_v30  ;;  %v1103_v30 = vld [vmem:[#allocation2 + $0x1a0] sm:$0x7f]  ;;  %2693 = vst [vmem:[#allocation2 + $0x110] sm:$0xff] %v2685_v6  ;;  %v2678_v6 = vmax.f32 %v9771_v14, 0.0 }
 0x175   : > { %8267 = vmatprep.subr.bf16.mxu0 %v8672_v52  ;;  %v9774_v21 = vsel %vm797_vm0, %v1138_v47, %v1139_v49  ;;  %v9779_v43 = vsel %vm886_vm1, %v1068_v58, %v1069_v59  ;;  %v1142_v27 = vrot.slane %v1103_v30, 7  ;;  %v1209_v47 = vrot.slane %v1177_v51, 1  ;;  %v1181_v30 = vld [vmem:[#allocation2 + $0x130] sm:$0x1] }
 0x176   : > { %v1211_v49 = vrot.slane %v1178_v63, 1  ;;  %v1212_v59 = vrot.slane %v1179_v4, 1  ;;  %v1215_v32 = vrot.slane %v1181_v30, 1  ;;  %v2665_v51 = vadd.f32 %v9670_v56, %v2645_v35  ;;  %v1185_v63 = vld [vmem:[#allocation2 + $0x160] sm:$0x1] }
 0x177   : > { %v9784_v58 = vsel %vm797_vm0, %v1141_v24, %v1142_v27  ;;  %v2676_v24 = vmax.f32 %v9752_v36, 0.0  ;;  %v1184_v27 = vld [vmem:[#allocation2 + $0x158] sm:$0xfe]  ;;  %v2677_v35 = vmax.f32 %v9755_v60, 0.0  ;;  %v2679_v36 = vmax.f32 %v2663_v26, 0.0 }
 0x178   : > { %8268 = vmatpush3.bf16.msra.mxu0 %v8672_v52  ;;  %v9789_v52 = vsel %vm886_vm1, %v1208_v37, %v1209_v47  ;;  %v9796_v45 = vsel %vm886_vm1, %v1211_v49, %v1212_v59  ;;  %v1216_v62 = vsel %vm886_vm1, %v1214_v25, %v1215_v32  ;;  %v2686_v37 = vpack.c.bf16 %v2675_v61, %v2674_v10  ;;  %v1186_v47 = vld [vmem:[#allocation2 + $0x170] sm:$0xfe]  ;;  %v1187_v59 = vld [vmem:[#allocation2 + $0x178] sm:$0x1]  ;;  %v1188_v10 = vld [vmem:[#allocation2 + $0x188] sm:$0xfe] }
 0x179   : > { %8269 = vmatprep.subr.bf16.mxu0 %v8673_v38  ;;  %v1221_v49 = vrot.slane %v1185_v63, 1  ;;  %v2687_v30 = vpack.c.bf16 %v2677_v35, %v2676_v24  ;;  %v1224_v54 = vrot.slane %v1187_v59, 1  ;;  %v2680_v25 = vmax.f32 %v2664_v0, 0.0  ;;  %v1191_v26 = vld [vmem:[#allocation2 + $0x1a8] sm:$0x1]  ;;  %v8676_v24 = vld [vmem:[#allocation10 + $0x238] sm:$0xff]  }
 0x17a   : > { %2139 = vmatmul.mubr.bf16.gmra.mrb[40].mxu0 %v9638_v53  ;;  %v1218_v53 = vrot.slane %v1183_v31, 1  ;;  %2694 = vst [vmem:[#allocation2 + $0x128] sm:$0xff] %v2686_v37  ;;  %v2688_v32 = vpack.c.bf16 %v2679_v36, %v2678_v6  ;;  %v2681_v61 = vmax.f32 %v2665_v51, 0.0  ;;  %v1189_v31 = vld [vmem:[#allocation2 + $0x190] sm:$0x1]  ;;  %v1230_v0 = vrot.slane %v1191_v26, 1 }
 0x17b   : > { %2236 = vmatmul.mubr.bf16.gmra.mrb[40].mxu1 %v9700_v9  ;;  %2146 = vmatprep.mubr.bf16.mxu0 %v9709_v22  ;;  %v1220_v9 = vrot.slane %v1184_v27, 1  ;;  %v8675_v22 = vld [vmem:[#allocation10 + $0x230] sm:$0xff]   ;;  %v1226_v27 = vrot.slane %v1188_v10, 1  ;;  %2695 = vst [vmem:[#allocation2 + $0x140] sm:$0xff] %v2687_v30  ;;  %v1227_v14 = vrot.slane %v1189_v31, 1  ;;  %v8684_v6 = vld [vmem:[#allocation12 + $0x38] sm:$0xff]  }
 0x17c   : > { %2243 = vmatprep.mubr.bf16.mxu1 %v9656_v17  ;;  %8270 = vmatpush3.bf16.msra.mxu0 %v8673_v38  ;;  %v1219_v4 = vsel %vm886_vm1, %v1217_v46, %v1218_v53  ;;  %v1223_v38 = vrot.slane %v1186_v47, 1  ;;  %v1229_v53 = vrot.slane %v1190_v40, 1  ;;  %2696 = vst [vmem:[#allocation2 + $0x158] sm:$0xff] %v2688_v32  ;;  %v2689_v37 = vpack.c.bf16 %v2681_v61, %v2680_v25  ;;  %v8677_v40 = vld [vmem:[#allocation12] sm:$0xff]  }
 0x17d   : > { %8271 = vmatprep.subr.bf16.mxu0 %v8674_v50  ;;  %v1222_v60 = vsel %vm886_vm1, %v1220_v9, %v1221_v49  ;;  %v1228_v35 = vsel %vm886_vm1, %v1226_v27, %v1227_v14  ;;  %8293 = vmatprep.subr.bf16.mxu1 %v8677_v40 }
 0x17e   : > { %v1225_v46 = vsel %vm886_vm1, %v1223_v38, %v1224_v54  ;;  %2697 = vst [vmem:[#allocation2 + $0x170] sm:$0xff] %v2689_v37  ;;  %8294 = vmatpush3.bf16.msra.mxu1 %v8677_v40 }
 0x180   : > { %8272 = vmatpush3.bf16.msra.mxu0 %v8674_v50  ;;  %v1231_v50 = vsel %vm886_vm1, %v1229_v53, %v1230_v0 }
 0x181   : > { %8273 = vmatprep.subr.bf16.mxu0 %v8675_v22 }
 0x182   : > { %2147 = vmatmul.mubr.bf16.gmra.mrb[44].mxu0 %v9643_v20  ;;  %v8678_v20 = vld [vmem:[#allocation12 + $0x8] sm:$0xff]  }
 0x183   : > { %2244 = vmatmul.mubr.bf16.gmra.mrb[44].mxu1 %v9719_v29  ;;  %2154 = vmatprep.mubr.bf16.mxu0 %v9727_v3  ;;  %v8683_v29 = vld [vmem:[#allocation12 + $0x30] sm:$0xff]  }
 0x184   : > { %2251 = vmatprep.mubr.bf16.mxu1 %v9691_v57  ;;  %8274 = vmatpush3.bf16.msra.mxu0 %v8675_v22 }
 0x185   : > { %8275 = vmatprep.subr.bf16.mxu0 %v8676_v24  ;;  %8295 = vmatprep.subr.bf16.mxu1 %v8678_v20 }
 0x186   : > { %8296 = vmatpush3.bf16.msra.mxu1 %v8678_v20 }
 0x188   : > { %8276 = vmatpush3.bf16.msra.mxu0 %v8676_v24 }
 0x18a   : > { %2155 = vmatmul.mubr.bf16.gmra.mrb[48].mxu0 %v9649_v48  ;;  %v8679_v48 = vld [vmem:[#allocation12 + $0x10] sm:$0xff]  }
 0x18b   : > { %2252 = vmatmul.mubr.bf16.gmra.mrb[48].mxu1 %v9735_v5  ;;  %2162 = vmatprep.mubr.bf16.mxu0 %v9746_v19 }
 0x18c   : > { %2259 = vmatprep.mubr.bf16.mxu1 %v9702_v16  ;;  %8297 = vmatprep.subr.bf16.mxu1 %v8679_v48 }
 0x18d   : > { %8298 = vmatpush3.bf16.msra.mxu1 %v8679_v48 }
 0x192   : > { %2163 = vmatmul.mubr.bf16.gmra.mrb[52].mxu0 %v9656_v17  ;;  %v8680_v17 = vld [vmem:[#allocation12 + $0x18] sm:$0xff]  }
 0x193   : > { %2260 = vmatmul.mubr.bf16.gmra.mrb[52].mxu1 %v9760_v41  ;;  %2170 = vmatprep.mubr.bf16.mxu0 %v9766_v44 }
 0x194   : > { %2267 = vmatprep.mubr.bf16.mxu1 %v9721_v42  ;;  %8299 = vmatprep.subr.bf16.mxu1 %v8680_v17 }
 0x195   : > { %8300 = vmatpush3.bf16.msra.mxu1 %v8680_v17 }
 0x19a   : > { %2171 = vmatmul.mubr.bf16.gmra.mrb[56].mxu0 %v9691_v57  ;;  %v8681_v57 = vld [vmem:[#allocation12 + $0x20] sm:$0xff]  }
 0x19b   : > { %2268 = vmatmul.mubr.bf16.gmra.mrb[56].mxu1 %v9774_v21  ;;  %2178 = vmatprep.mubr.bf16.mxu0 %v9779_v43 }
 0x19c   : > { %2275 = vmatprep.mubr.bf16.mxu1 %v9737_v15  ;;  %8301 = vmatprep.subr.bf16.mxu1 %v8681_v57 }
 0x19d   : > { %8302 = vmatpush3.bf16.msra.mxu1 %v8681_v57 }
 0x1a2   : > { %2179 = vmatmul.mubr.bf16.gmra.mrb[60].mxu0 %v9702_v16  ;;  %v8682_v16 = vld [vmem:[#allocation12 + $0x28] sm:$0xff]  }
 0x1a3   : > { %2276 = vmatmul.mubr.bf16.gmra.mrb[60].mxu1 %v9784_v58  ;;  %8277 = vmatprep.mubr.bf16.mxu0 %v9789_v52 }
 0x1a4   : > { %8303 = vmatprep.subr.bf16.mxu1 %v8682_v16 }
 0x1a5   : > { %8304 = vmatpush3.bf16.msra.mxu1 %v8682_v16 }
 0x1a6   : > { %8305 = vmatprep.subr.bf16.mxu1 %v8683_v29 }
 0x1a9   : > { %8306 = vmatpush3.bf16.msra.mxu1 %v8683_v29 }
 0x1aa   : > { %8278 = vmatmul.mubr.bf16.vlgmr.msra.gmra.mrb[64].mxu0 %v9796_v45  ;;  %8307 = vmatprep.subr.bf16.mxu1 %v8684_v6 }
 0x1ab   : > { %8281 = vmatprep.mubr.bf16.mxu0 %v1216_v62 }
 0x1ad   : > { %8308 = vmatpush3.bf16.msra.mxu1 %v8684_v6 }
 0x1b2   : > { %8282 = vmatmul.mubr.bf16.gmra.mrb[68].mxu0 %v1219_v4 }
 0x1b3   : > { %8285 = vmatprep.mubr.bf16.mxu0 %v1222_v60 }
 0x1ba   : > { %8286 = vmatmul.mubr.bf16.gmra.mrb[72].mxu0 %v1225_v46 }
 0x1bb   : > { %8289 = vmatprep.mubr.bf16.mxu0 %v1228_v35 }
 0x1c2   : > { %8290 = vmatmul.mubr.bf16.gmra.mrb[76].mxu0 %v1231_v50 }
 0x1fd   : > { %v7413_v42 = vpop.f32.mrb[0].mxu0 }
 0x1fe   : > { %v7477_v3 = vpop.f32.mrb[0].mxu1  ;;  %v7414_v5 = vpop.f32.mrb[1].mxu0 }
 0x1ff   : > { %v7415_v15 = vadd.f32 %v7414_v5, %v7413_v42  ;;  %v7478_v19 = vpop.f32.mrb[1].mxu1  ;;  %v7416_v41 = vpop.f32.mrb[2].mxu0 }
 0x200   : > { %v7479_v44 = vadd.f32 %v7478_v19, %v7477_v3  ;;  %v7480_v21 = vpop.f32.mrb[2].mxu1  ;;  %v7417_v43 = vpop.f32.mrb[3].mxu0 }
 0x201   : > { %v7418_v58 = vadd.f32 %v7417_v43, %v7416_v41  ;;  %v7481_v52 = vpop.f32.mrb[3].mxu1 }
 0x202   : > { %v9828_v51 = vadd.f32 %v7479_v44, %v7415_v15  ;;  %v7482_v45 = vadd.f32 %v7481_v52, %v7480_v21 }
 0x204   : > { %v9830_v62 = vadd.f32 %v7482_v45, %v7418_v58 }
 0x205   : > { %v7419_v63 = vpop.f32.mrb[4].mxu0 }
 0x206   : > { %v7483_v9 = vpop.f32.mrb[4].mxu1  ;;  %v7420_v47 = vpop.f32.mrb[5].mxu0 }
 0x207   : > { %v7421_v22 = vadd.f32 %v7420_v47, %v7419_v63  ;;  %v7484_v4 = vpop.f32.mrb[5].mxu1  ;;  %v7422_v49 = vpop.f32.mrb[6].mxu0 }
 0x208   : > { %v7485_v36 = vadd.f32 %v7484_v4, %v7483_v9  ;;  %v7486_v59 = vpop.f32.mrb[6].mxu1  ;;  %v7423_v30 = vpop.f32.mrb[7].mxu0 }
 0x209   : > { %v7424_v38 = vadd.f32 %v7423_v30, %v7422_v49  ;;  %v7487_v54 = vpop.f32.mrb[7].mxu1 }
 0x20a   : > { %v9832_v25 = vadd.f32 %v7485_v36, %v7421_v22  ;;  %v7488_v10 = vadd.f32 %v7487_v54, %v7486_v59 }
 0x20c   : > { %v9834_v60 = vadd.f32 %v7488_v10, %v7424_v38 }
 0x20d   : > { %v7425_v32 = vpop.f32.mrb[8].mxu0 }
 0x20e   : > { %v7489_v61 = vpop.f32.mrb[8].mxu1  ;;  %v7426_v31 = vpop.f32.mrb[9].mxu0 }
 0x20f   : > { %v7427_v27 = vadd.f32 %v7426_v31, %v7425_v32  ;;  %v7490_v46 = vpop.f32.mrb[9].mxu1  ;;  %v7428_v14 = vpop.f32.mrb[10].mxu0 }
 0x210   : > { %v7491_v26 = vadd.f32 %v7490_v46, %v7489_v61  ;;  %v7492_v53 = vpop.f32.mrb[10].mxu1  ;;  %v7429_v24 = vpop.f32.mrb[11].mxu0 }
 0x211   : > { %v7430_v37 = vadd.f32 %v7429_v24, %v7428_v14  ;;  %v7493_v0 = vpop.f32.mrb[11].mxu1 }
 0x212   : > { %v9836_v35 = vadd.f32 %v7491_v26, %v7427_v27  ;;  %v7494_v50 = vadd.f32 %v7493_v0, %v7492_v53 }
 0x214   : > { %v9838_v40 = vadd.f32 %v7494_v50, %v7430_v37 }
 0x215   : > { %v7431_v20 = vpop.f32.mrb[12].mxu0 }
 0x216   : > { %v7495_v48 = vpop.f32.mrb[12].mxu1  ;;  %v7432_v17 = vpop.f32.mrb[13].mxu0 }
 0x217   : > { %v7433_v57 = vadd.f32 %v7432_v17, %v7431_v20  ;;  %v7496_v16 = vpop.f32.mrb[13].mxu1  ;;  %v7434_v29 = vpop.f32.mrb[14].mxu0 }
 0x218   : > { %v7497_v42 = vadd.f32 %v7496_v16, %v7495_v48  ;;  %v7498_v3 = vpop.f32.mrb[14].mxu1  ;;  %v7435_v5 = vpop.f32.mrb[15].mxu0 }
 0x219   : > { %v7436_v15 = vadd.f32 %v7435_v5, %v7434_v29  ;;  %v7499_v19 = vpop.f32.mrb[15].mxu1 }
 0x21a   : > { %v9840_v41 = vadd.f32 %v7497_v42, %v7433_v57  ;;  %v7500_v44 = vadd.f32 %v7499_v19, %v7498_v3 }
 0x21c   : > { %v9842_v21 = vadd.f32 %v7500_v44, %v7436_v15 }
 0x21d   : > { %v7437_v43 = vpop.f32.mrb[16].mxu0 }
 0x21e   : > { %v7501_v58 = vpop.f32.mrb[16].mxu1  ;;  %v7438_v52 = vpop.f32.mrb[17].mxu0 }
 0x21f   : > { %v7439_v45 = vadd.f32 %v7438_v52, %v7437_v43  ;;  %v7502_v63 = vpop.f32.mrb[17].mxu1  ;;  %v7440_v9 = vpop.f32.mrb[18].mxu0 }
 0x220   : > { %v7503_v47 = vadd.f32 %v7502_v63, %v7501_v58  ;;  %v7504_v22 = vpop.f32.mrb[18].mxu1  ;;  %v7441_v4 = vpop.f32.mrb[19].mxu0 }
 0x221   : > { %v7442_v49 = vadd.f32 %v7441_v4, %v7440_v9  ;;  %v7505_v6 = vpop.f32.mrb[19].mxu1 }
 0x222   : > { %v9844_v36 = vadd.f32 %v7503_v47, %v7439_v45  ;;  %v7506_v59 = vadd.f32 %v7505_v6, %v7504_v22 }
 0x224   : > { %v9846_v30 = vadd.f32 %v7506_v59, %v7442_v49 }
 0x225   : > { %v7443_v38 = vpop.f32.mrb[20].mxu0 }
 0x226   : > { %v7507_v54 = vpop.f32.mrb[20].mxu1  ;;  %v7444_v10 = vpop.f32.mrb[21].mxu0 }
 0x227   : > { %v7445_v32 = vadd.f32 %v7444_v10, %v7443_v38  ;;  %v7508_v61 = vpop.f32.mrb[21].mxu1  ;;  %v7446_v31 = vpop.f32.mrb[22].mxu0 }
 0x228   : > { %v7509_v27 = vadd.f32 %v7508_v61, %v7507_v54  ;;  %v7510_v46 = vpop.f32.mrb[22].mxu1  ;;  %v7447_v14 = vpop.f32.mrb[23].mxu0 }
 0x229   : > { %v7448_v26 = vadd.f32 %v7447_v14, %v7446_v31  ;;  %v7511_v53 = vpop.f32.mrb[23].mxu1 }
 0x22a   : > { %v9848_v24 = vadd.f32 %v7509_v27, %v7445_v32  ;;  %v7512_v37 = vadd.f32 %v7511_v53, %v7510_v46 }
 0x22c   : > { %v9850_v0 = vadd.f32 %v7512_v37, %v7448_v26 }
 0x22d   : > { %v7449_v50 = vpop.f32.mrb[24].mxu0 }
 0x22e   : > { %v7513_v20 = vpop.f32.mrb[24].mxu1  ;;  %v7450_v48 = vpop.f32.mrb[25].mxu0 }
 0x22f   : > { %v7451_v17 = vadd.f32 %v7450_v48, %v7449_v50  ;;  %v7514_v57 = vpop.f32.mrb[25].mxu1  ;;  %v7452_v16 = vpop.f32.mrb[26].mxu0 }
 0x230   : > { %v7515_v29 = vadd.f32 %v7514_v57, %v7513_v20  ;;  %v7516_v42 = vpop.f32.mrb[26].mxu1  ;;  %v7453_v3 = vpop.f32.mrb[27].mxu0 }
 0x231   : > { %v7454_v5 = vadd.f32 %v7453_v3, %v7452_v16  ;;  %v7517_v15 = vpop.f32.mrb[27].mxu1 }
 0x232   : > { %v9852_v19 = vadd.f32 %v7515_v29, %v7451_v17  ;;  %v7518_v44 = vadd.f32 %v7517_v15, %v7516_v42 }
 0x234   : > { %v9854_v43 = vadd.f32 %v7518_v44, %v7454_v5 }
 0x235   : > { %v7455_v58 = vpop.f32.mrb[28].mxu0 }
 0x236   : > { %v7519_v52 = vpop.f32.mrb[28].mxu1  ;;  %v7456_v45 = vpop.f32.mrb[29].mxu0 }
 0x237   : > { %v7457_v63 = vadd.f32 %v7456_v45, %v7455_v58  ;;  %v7520_v9 = vpop.f32.mrb[29].mxu1  ;;  %v7458_v47 = vpop.f32.mrb[30].mxu0 }
 0x238   : > { %v7521_v22 = vadd.f32 %v7520_v9, %v7519_v52  ;;  %v7522_v4 = vpop.f32.mrb[30].mxu1  ;;  %v7459_v49 = vpop.f32.mrb[31].mxu0 }
 0x239   : > { %v7460_v6 = vadd.f32 %v7459_v49, %v7458_v47  ;;  %v7523_v59 = vpop.f32.mrb[31].mxu1 }
 0x23a   : > { %v9856_v38 = vadd.f32 %v7521_v22, %v7457_v63  ;;  %v7524_v54 = vadd.f32 %v7523_v59, %v7522_v4 }
 0x23c   : > { %v9858_v10 = vadd.f32 %v7524_v54, %v7460_v6 }
 0x23d   : > { %v7541_v32 = vpop.f32.mrb[32].mxu0 }
 0x23e   : > { %v7542_v61 = vpop.f32.mrb[33].mxu0  ;;  %v7605_v31 = vpop.f32.mrb[32].mxu1 }
 0x23f   : > { %v7543_v27 = vadd.f32 %v7542_v61, %v7541_v32  ;;  %v7544_v46 = vpop.f32.mrb[34].mxu0  ;;  %v7606_v14 = vpop.f32.mrb[33].mxu1 }
 0x240   : > { %v7545_v26 = vpop.f32.mrb[35].mxu0  ;;  %v7607_v53 = vadd.f32 %v7606_v14, %v7605_v31  ;;  %v7608_v37 = vpop.f32.mrb[34].mxu1 }
 0x241   : > { %v2125_v50 = vadd.f32 %v7543_v27, %v9828_v51  ;;  %v7546_v20 = vadd.f32 %v7545_v26, %v7544_v46  ;;  %v7609_v48 = vpop.f32.mrb[35].mxu1 }
 0x242   : > { %v7610_v17 = vadd.f32 %v7609_v48, %v7608_v37 }
 0x243   : > { %v2128_v57 = vadd.f32 %v7546_v20, %v9830_v62  ;;  %v9862_v16 = vadd.f32 %v7607_v53, %v2125_v50 }
 0x245   : > { %v7547_v29 = vpop.f32.mrb[36].mxu0  ;;  %v9864_v42 = vadd.f32 %v7610_v17, %v2128_v57 }
 0x246   : > { %v7548_v3 = vpop.f32.mrb[37].mxu0  ;;  %v7611_v5 = vpop.f32.mrb[36].mxu1 }
 0x247   : > { %v7549_v15 = vadd.f32 %v7548_v3, %v7547_v29  ;;  %v7550_v44 = vpop.f32.mrb[38].mxu0  ;;  %v7612_v58 = vpop.f32.mrb[37].mxu1 }
 0x248   : > { %v7551_v52 = vpop.f32.mrb[39].mxu0  ;;  %v7613_v45 = vadd.f32 %v7612_v58, %v7611_v5  ;;  %v7614_v63 = vpop.f32.mrb[38].mxu1 }
 0x249   : > { %v2133_v51 = vadd.f32 %v7549_v15, %v9832_v25  ;;  %v7552_v9 = vadd.f32 %v7551_v52, %v7550_v44  ;;  %v7615_v47 = vpop.f32.mrb[39].mxu1 }
 0x24a   : > { %v7616_v22 = vadd.f32 %v7615_v47, %v7614_v63 }
 0x24b   : > { %v2136_v62 = vadd.f32 %v7552_v9, %v9834_v60  ;;  %v9868_v4 = vadd.f32 %v7613_v45, %v2133_v51 }
 0x24d   : > { %v7553_v49 = vpop.f32.mrb[40].mxu0  ;;  %v9870_v6 = vadd.f32 %v7616_v22, %v2136_v62 }
 0x24e   : > { %v7554_v59 = vpop.f32.mrb[41].mxu0  ;;  %v7617_v54 = vpop.f32.mrb[40].mxu1 }
 0x24f   : > { %v7555_v32 = vadd.f32 %v7554_v59, %v7553_v49  ;;  %v7556_v61 = vpop.f32.mrb[42].mxu0  ;;  %v7618_v31 = vpop.f32.mrb[41].mxu1 }
 0x250   : > { %v7557_v27 = vpop.f32.mrb[43].mxu0  ;;  %v7619_v46 = vadd.f32 %v7618_v31, %v7617_v54  ;;  %v7620_v14 = vpop.f32.mrb[42].mxu1 }
 0x251   : > { %v2141_v25 = vadd.f32 %v7555_v32, %v9836_v35  ;;  %v7558_v26 = vadd.f32 %v7557_v27, %v7556_v61  ;;  %v7621_v53 = vpop.f32.mrb[43].mxu1 }
 0x252   : > { %v7622_v37 = vadd.f32 %v7621_v53, %v7620_v14 }
 0x253   : > { %v2144_v60 = vadd.f32 %v7558_v26, %v9838_v40  ;;  %v9874_v50 = vadd.f32 %v7619_v46, %v2141_v25 }
 0x255   : > { %v7559_v20 = vpop.f32.mrb[44].mxu0  ;;  %v9876_v48 = vadd.f32 %v7622_v37, %v2144_v60 }
 0x256   : > { %v7560_v17 = vpop.f32.mrb[45].mxu0  ;;  %v7623_v57 = vpop.f32.mrb[44].mxu1 }
 0x257   : > { %v7561_v29 = vadd.f32 %v7560_v17, %v7559_v20  ;;  %v7562_v3 = vpop.f32.mrb[46].mxu0  ;;  %v7624_v5 = vpop.f32.mrb[45].mxu1 }
 0x258   : > { %v7563_v15 = vpop.f32.mrb[47].mxu0  ;;  %v7625_v44 = vadd.f32 %v7624_v5, %v7623_v57  ;;  %v7626_v58 = vpop.f32.mrb[46].mxu1 }
 0x259   : > { %v2149_v35 = vadd.f32 %v7561_v29, %v9840_v41  ;;  %v7564_v52 = vadd.f32 %v7563_v15, %v7562_v3  ;;  %v7627_v45 = vpop.f32.mrb[47].mxu1 }
 0x25a   : > { %v7628_v63 = vadd.f32 %v7627_v45, %v7626_v58 }
 0x25b   : > { %v2152_v40 = vadd.f32 %v7564_v52, %v9842_v21  ;;  %v9880_v51 = vadd.f32 %v7625_v44, %v2149_v35 }
 0x25d   : > { %v7565_v9 = vpop.f32.mrb[48].mxu0  ;;  %v9882_v47 = vadd.f32 %v7628_v63, %v2152_v40 }
 0x25e   : > { %v7566_v22 = vpop.f32.mrb[49].mxu0  ;;  %v7629_v62 = vpop.f32.mrb[48].mxu1 }
 0x25f   : > { %v7567_v49 = vadd.f32 %v7566_v22, %v7565_v9  ;;  %v7568_v59 = vpop.f32.mrb[50].mxu0  ;;  %v7630_v54 = vpop.f32.mrb[49].mxu1 }
 0x260   : > { %v7569_v32 = vpop.f32.mrb[51].mxu0  ;;  %v7631_v61 = vadd.f32 %v7630_v54, %v7629_v62  ;;  %v7632_v31 = vpop.f32.mrb[50].mxu1 }
 0x261   : > { %v2157_v41 = vadd.f32 %v7567_v49, %v9844_v36  ;;  %v7570_v27 = vadd.f32 %v7569_v32, %v7568_v59  ;;  %v7633_v46 = vpop.f32.mrb[51].mxu1 }
 0x262   : > { %v7634_v14 = vadd.f32 %v7633_v46, %v7632_v31 }
 0x263   : > { %v2160_v21 = vadd.f32 %v7570_v27, %v9846_v30  ;;  %v9886_v25 = vadd.f32 %v7631_v61, %v2157_v41 }
 0x265   : > { %v7571_v26 = vpop.f32.mrb[52].mxu0  ;;  %v9888_v53 = vadd.f32 %v7634_v14, %v2160_v21 }
 0x266   : > { %v7572_v37 = vpop.f32.mrb[53].mxu0  ;;  %v7635_v60 = vpop.f32.mrb[52].mxu1 }
 0x267   : > { %v7573_v20 = vadd.f32 %v7572_v37, %v7571_v26  ;;  %v7574_v17 = vpop.f32.mrb[54].mxu0  ;;  %v7636_v57 = vpop.f32.mrb[53].mxu1 }
 0x268   : > { %v7575_v29 = vpop.f32.mrb[55].mxu0  ;;  %v7637_v3 = vadd.f32 %v7636_v57, %v7635_v60  ;;  %v7638_v5 = vpop.f32.mrb[54].mxu1 }
 0x269   : > { %v2165_v36 = vadd.f32 %v7573_v20, %v9848_v24  ;;  %v7576_v15 = vadd.f32 %v7575_v29, %v7574_v17  ;;  %v7639_v44 = vpop.f32.mrb[55].mxu1 }
 0x26a   : > { %v7640_v58 = vadd.f32 %v7639_v44, %v7638_v5  ;;  %v9909_v44 = vld [vmem:[%s10807_s26] ss:$0 sm:$0xff] }
 0x26b   : > { %v2168_v30 = vadd.f32 %v7576_v15, %v9850_v0  ;;  %v9892_v35 = vadd.f32 %v7637_v3, %v2165_v36 }
 0x26d   : > { %v7577_v52 = vpop.f32.mrb[56].mxu0  ;;  %v9894_v45 = vadd.f32 %v7640_v58, %v2168_v30 }
 0x26e   : > { %v7578_v63 = vpop.f32.mrb[57].mxu0  ;;  %v7641_v40 = vpop.f32.mrb[56].mxu1 }
 0x26f   : > { %v7579_v9 = vadd.f32 %v7578_v63, %v7577_v52  ;;  %v7580_v22 = vpop.f32.mrb[58].mxu0  ;;  %v7642_v62 = vpop.f32.mrb[57].mxu1 }
 0x270   : > { %v7581_v49 = vpop.f32.mrb[59].mxu0  ;;  %v7643_v59 = vadd.f32 %v7642_v62, %v7641_v40  ;;  %v7644_v54 = vpop.f32.mrb[58].mxu1 }
 0x271   : > { %v2173_v24 = vadd.f32 %v7579_v9, %v9852_v19  ;;  %v7582_v32 = vadd.f32 %v7581_v49, %v7580_v22  ;;  %v7645_v61 = vpop.f32.mrb[59].mxu1 }
 0x272   : > { %v7646_v31 = vadd.f32 %v7645_v61, %v7644_v54 }
 0x273   : > { %v2176_v0 = vadd.f32 %v7582_v32, %v9854_v43  ;;  %v9898_v41 = vadd.f32 %v7643_v59, %v2173_v24 }
 0x275   : > { %v7583_v27 = vpop.f32.mrb[60].mxu0  ;;  %v9900_v46 = vadd.f32 %v7646_v31, %v2176_v0 }
 0x276   : > { %v7584_v14 = vpop.f32.mrb[61].mxu0  ;;  %v7647_v21 = vpop.f32.mrb[60].mxu1 }
 0x277   : > { %v7585_v26 = vadd.f32 %v7584_v14, %v7583_v27  ;;  %v7586_v37 = vpop.f32.mrb[62].mxu0  ;;  %v7648_v60 = vpop.f32.mrb[61].mxu1 }
 0x278   : > { %v7587_v20 = vpop.f32.mrb[63].mxu0  ;;  %v7649_v17 = vadd.f32 %v7648_v60, %v7647_v21  ;;  %v7650_v57 = vpop.f32.mrb[62].mxu1 }
 0x279   : > { %v2181_v19 = vadd.f32 %v7585_v26, %v9856_v38  ;;  %v7588_v29 = vadd.f32 %v7587_v20, %v7586_v37  ;;  %v7651_v3 = vpop.f32.mrb[63].mxu1  ;;  %v9917_v38 = vld [vmem:[%s10808_s21] ss:$0 sm:$0xff] }
 0x27a   : > { %v7652_v5 = vadd.f32 %v7651_v3, %v7650_v57 }
 0x27b   : > { %v2184_v43 = vadd.f32 %v7588_v29, %v9858_v10  ;;  %v9904_v36 = vadd.f32 %v7649_v17, %v2181_v19 }
 0x27d   : > { %v8279_v15 = vpop.f32.mrb[64].mxu0  ;;  %v9911_v58 = vadd.f32 %v7652_v5, %v2184_v43 }
 0x27e   : > { %v2327_v30 = vadd.f32 %v8279_v15, %v9868_v4  ;;  %v2318_v52 = vpop.f32.mrb[65].mxu0 }
 0x27f   : > { %v2319_v10 = vadd.f32 %v2318_v52, %v9862_v16  ;;  %v8280_v63 = vpop.f32.mrb[66].mxu0 }
 0x280   : > { %v2388_v40 = vmul.f32 %v9909_v44, %v2327_v30  ;;  %v2330_v9 = vadd.f32 %v8280_v63, %v9870_v6  ;;  %v2321_v22 = vpop.f32.mrb[67].mxu0 }
 0x281   : > { %v2386_v62 = vmul.f32 %v9909_v44, %v2319_v10  ;;  %v2322_v49 = vadd.f32 %v2321_v22, %v9864_v42 }
 0x282   : > { %v2409_v4 = vadd.f32 %v9917_v38, %v2388_v40  ;;  %v2389_v59 = vmul.f32 %v9909_v44, %v2330_v9 }
 0x283   : > { %v2407_v54 = vadd.f32 %v9917_v38, %v2386_v62  ;;  %v2387_v24 = vmul.f32 %v9909_v44, %v2322_v49 }
 0x284   : > { %v2410_v16 = vadd.f32 %v9917_v38, %v2389_v59  ;;  %v2425_v31 = vmax.f32 %v2409_v4, 0.0 }
 0x285   : > { %v2408_v32 = vadd.f32 %v9917_v38, %v2387_v24  ;;  %v8283_v61 = vpop.f32.mrb[68].mxu0  ;;  %v2423_v14 = vmax.f32 %v2407_v54, 0.0 }
 0x286   : > { %v2426_v6 = vmax.f32 %v2410_v16, 0.0  ;;  %v2343_v0 = vadd.f32 %v8283_v61, %v9880_v51  ;;  %v2334_v27 = vpop.f32.mrb[69].mxu0 }
 0x287   : > { %v2424_v42 = vmax.f32 %v2408_v32, 0.0  ;;  %v2335_v21 = vadd.f32 %v2334_v27, %v9874_v50  ;;  %v8284_v26 = vpop.f32.mrb[70].mxu0 }
 0x288   : > { %v2440_v37 = vpack.c.bf16 %v2426_v6, %v2425_v31  ;;  %v2392_v60 = vmul.f32 %v9909_v44, %v2343_v0  ;;  %v2346_v20 = vadd.f32 %v8284_v26, %v9882_v47  ;;  %v2337_v17 = vpop.f32.mrb[71].mxu0 }
 0x289   : > { %v2390_v57 = vmul.f32 %v9909_v44, %v2335_v21  ;;  %v2338_v19 = vadd.f32 %v2337_v17, %v9876_v48  ;;  %v2439_v29 = vpack.c.bf16 %v2424_v42, %v2423_v14 }
 0x28a   : > { %v2413_v3 = vadd.f32 %v9917_v38, %v2392_v60  ;;  %v2393_v51 = vmul.f32 %v9909_v44, %v2346_v20 }
 0x28b   : > { %v2411_v5 = vadd.f32 %v9917_v38, %v2390_v57  ;;  %v2391_v50 = vmul.f32 %v9909_v44, %v2338_v19  ;;  %8309 = vmatprep.mubr.bf16.mxu1 %v2439_v29 }
 0x28c   : > { %v2414_v43 = vadd.f32 %v9917_v38, %v2393_v51  ;;  %8310 = vmatmul.mubr.bf16.vlgmr.msra.gmra.mrb[64].mxu1 %v2440_v37  ;;  %v2429_v30 = vmax.f32 %v2413_v3, 0.0 }
 0x28d   : > { %v2412_v47 = vadd.f32 %v9917_v38, %v2391_v50  ;;  %v8287_v15 = vpop.f32.mrb[72].mxu0  ;;  %v2427_v63 = vmax.f32 %v2411_v5, 0.0 }
 0x28e   : > { %v2430_v52 = vmax.f32 %v2414_v43, 0.0  ;;  %v2359_v48 = vadd.f32 %v8287_v15, %v9892_v35  ;;  %v2350_v10 = vpop.f32.mrb[73].mxu0 }
 0x28f   : > { %v2428_v40 = vmax.f32 %v2412_v47, 0.0  ;;  %v2351_v9 = vadd.f32 %v2350_v10, %v9886_v25  ;;  %v8288_v22 = vpop.f32.mrb[74].mxu0  ;;  %v2706_v10 = vld [vmem:[#allocation5 + $0x28] sm:$0xff] (!%p10809_p8) }
 0x290   : > { %v2396_v62 = vmul.f32 %v9909_v44, %v2359_v48  ;;  %v2362_v49 = vadd.f32 %v8288_v22, %v9894_v45  ;;  %v2353_v4 = vpop.f32.mrb[75].mxu0  ;;  %v2442_v59 = vpack.c.bf16 %v2430_v52, %v2429_v30  ;;  %v2705_v48 = vld [vmem:[#allocation5 + $0x20] sm:$0xff] (!%p10809_p8) }
 0x291   : > { %v2394_v54 = vmul.f32 %v9909_v44, %v2351_v9  ;;  %v2354_v24 = vadd.f32 %v2353_v4, %v9888_v53  ;;  %v2441_v16 = vpack.c.bf16 %v2428_v40, %v2427_v63  ;;  %v2722_v63 = vmul.f32 (!%p10809_p8), %v9665_v55, %v2706_v10  ;;  %v2707_v40 = vld [vmem:[#allocation5 + $0x30] sm:$0xff] (!%p10809_p8)  ;;  %v2708_v9 = vld [vmem:[#allocation5 + $0x38] sm:$0xff] (!%p10809_p8)  ;;  %v2709_v4 = vld [vmem:[#allocation5 + $0x40] sm:$0xff] (!%p10809_p8) }
 0x292   : > { %v2417_v32 = vadd.f32 %v9917_v38, %v2396_v62  ;;  %v2397_v35 = vmul.f32 %v9909_v44, %v2362_v49  ;;  %v2724_v49 = vmul.f32 (!%p10809_p8), %v9665_v55, %v2708_v9 }
 0x293   : > { %v2415_v61 = vadd.f32 %v9917_v38, %v2394_v54  ;;  %v2395_v25 = vmul.f32 %v9909_v44, %v2354_v24  ;;  %8313 = vmatprep.mubr.bf16.mxu1 %v2441_v16  ;;  %v2738_v62 = vadd.f32 (!%p10809_p8), %v9670_v56, %v2722_v63  ;;  %v2711_v24 = vld [vmem:[#allocation5 + $0x50] sm:$0xff] (!%p10809_p8) }
 0x294   : > { %v2418_v31 = vadd.f32 %v9917_v38, %v2397_v35  ;;  %8314 = vmatmul.mubr.bf16.gmra.mrb[68].mxu1 %v2442_v59  ;;  %v2433_v0 = vmax.f32 %v2417_v32, 0.0  ;;  %v2710_v59 = vld [vmem:[#allocation5 + $0x48] sm:$0xff] (!%p10809_p8)  ;;  %v2740_v35 = vadd.f32 (!%p10809_p8), %v9670_v56, %v2724_v49 }
 0x295   : > { %v2416_v45 = vadd.f32 %v9917_v38, %v2395_v25  ;;  %v8291_v6 = vpop.f32.mrb[76].mxu0  ;;  %v2431_v42 = vmax.f32 %v2415_v61, 0.0  ;;  %v2754_v32 = vmax.f32 (!%p10809_p8), %v2738_v62, 0.0  ;;  %v2712_v61 = vld [vmem:[#allocation5 + $0x58] sm:$0xff] (!%p10809_p8)  ;;  %v2713_v25 = vld [vmem:[#allocation5 + $0x60] sm:$0xff] (!%p10809_p8) }
 0x296   : > { %v2434_v27 = vmax.f32 %v2418_v31, 0.0  ;;  %v2375_v53 = vadd.f32 %v8291_v6, %v9904_v36  ;;  %v2366_v14 = vpop.f32.mrb[77].mxu0  ;;  %v2726_v6 = vmul.f32 (!%p10809_p8), %v9665_v55, %v2710_v59 }
 0x297   : > { %v2432_v21 = vmax.f32 %v2416_v45, 0.0  ;;  %v2367_v26 = vadd.f32 %v2366_v14, %v9898_v41  ;;  %v8292_v37 = vpop.f32.mrb[78].mxu0  ;;  %v2725_v45 = vmul.f32 (!%p10809_p8), %v9665_v55, %v2709_v4  ;;  %v2756_v14 = vmax.f32 (!%p10809_p8), %v2740_v35, 0.0 }
 0x298   : > { %v2400_v60 = vmul.f32 %v9909_v44, %v2375_v53  ;;  %v2378_v20 = vadd.f32 %v8292_v37, %v9911_v58  ;;  %v2369_v17 = vpop.f32.mrb[79].mxu0  ;;  %v2444_v57 = vpack.c.bf16 %v2434_v27, %v2433_v0  ;;  %v2714_v0 = vld [vmem:[#allocation5 + $0x68] sm:$0xff] (!%p10809_p8)  ;;  %v2715_v27 = vld [vmem:[#allocation5 + $0x70] sm:$0xff] (!%p10809_p8)  ;;  %v2728_v37 = vmul.f32 (!%p10809_p8), %v9665_v55, %v2712_v61 }
 0x299   : > { %v2398_v19 = vmul.f32 %v9909_v44, %v2367_v26  ;;  %v2370_v29 = vadd.f32 %v2369_v17, %v9900_v46  ;;  %v2443_v3 = vpack.c.bf16 %v2432_v21, %v2431_v42  ;;  %v2727_v42 = vmul.f32 (!%p10809_p8), %v9665_v55, %v2711_v24 }
 0x29a   : > { %v2421_v51 = vadd.f32 %v9917_v38, %v2400_v60  ;;  %v2401_v36 = vmul.f32 %v9909_v44, %v2378_v20  ;;  %v2741_v21 = vadd.f32 (!%p10809_p8), %v9670_v56, %v2725_v45  ;;  %v2742_v26 = vadd.f32 (!%p10809_p8), %v9670_v56, %v2726_v6  ;;  %v2716_v20 = vld [vmem:[#allocation5 + $0x78] sm:$0xff] (!%p10809_p8) }
 0x29b   : > { %v2419_v5 = vadd.f32 %v9917_v38, %v2398_v19  ;;  %v2399_v41 = vmul.f32 %v9909_v44, %v2370_v29  ;;  %8317 = vmatprep.mubr.bf16.mxu1 %v2443_v3  ;;  %v2721_v44 = vmul.f32 (!%p10809_p8), %v9665_v55, %v2705_v48  ;;  %v2729_v60 = vmul.f32 (!%p10809_p8), %v9665_v55, %v2713_v25 }
 0x29c   : > { %v2422_v50 = vadd.f32 %v9917_v38, %v2401_v36  ;;  %8318 = vmatmul.mubr.bf16.gmra.mrb[72].mxu1 %v2444_v57  ;;  %v2437_v43 = vmax.f32 %v2421_v51, 0.0  ;;  %v2743_v57 = vadd.f32 (!%p10809_p8), %v9670_v56, %v2727_v42  ;;  %v2730_v19 = vmul.f32 (!%p10809_p8), %v9665_v55, %v2714_v0 }
 0x29d   : > { %v2420_v58 = vadd.f32 %v9917_v38, %v2399_v41  ;;  %v2435_v15 = vmax.f32 %v2419_v5, 0.0  ;;  %v2723_v38 = vmul.f32 (!%p10809_p8), %v9665_v55, %v2707_v40  ;;  %v2737_v22 = vadd.f32 (!%p10809_p8), %v9670_v56, %v2721_v44 }
 0x29e   : > { %v2438_v47 = vmax.f32 %v2422_v50, 0.0  ;;  %2700 = sbr.rel (%p10809_p8) target bundleno = 682 (0x2aa), region = 100  ;;  %v2731_v29 = vmul.f32 (!%p10809_p8), %v9665_v55, %v2715_v27  ;;  %v2757_v3 = vmax.f32 (!%p10809_p8), %v2741_v21, 0.0  ;;  %v2758_v51 = vmax.f32 (!%p10809_p8), %v2742_v26, 0.0 }
 0x29f   : > { %v2436_v30 = vmax.f32 %v2420_v58, 0.0  ;;  %v2739_v54 = vadd.f32 (!%p10809_p8), %v9670_v56, %v2723_v38  ;;  %v2753_v16 = vmax.f32 (!%p10809_p8), %v2737_v22, 0.0  ;;  %v2744_v36 = vadd.f32 (!%p10809_p8), %v9670_v56, %v2728_v37 }
 0x2a0   : > { %v2446_v46 = vpack.c.bf16 %v2438_v47, %v2437_v43  ;;  %v2745_v5 = vadd.f32 (!%p10809_p8), %v9670_v56, %v2729_v60  ;;  %v2759_v41 = vmax.f32 (!%p10809_p8), %v2743_v57, 0.0  ;;  %v2746_v50 = vadd.f32 (!%p10809_p8), %v9670_v56, %v2730_v19 }
 0x2a1   : > { %v2445_v52 = vpack.c.bf16 %v2436_v30, %v2435_v15  ;;  %v2755_v31 = vmax.f32 (!%p10809_p8), %v2739_v54, 0.0  ;;  %v2767_v53 = vpack.c.bf16 (!%p10809_p8), %v2754_v32, %v2753_v16  ;;  %v2732_v58 = vmul.f32 (!%p10809_p8), %v9665_v55, %v2716_v20 }
 0x2a2   : > { %v2747_v43 = vadd.f32 (!%p10809_p8), %v9670_v56, %v2731_v29  ;;  %v2769_v47 = vpack.c.bf16 (!%p10809_p8), %v2758_v51, %v2757_v3  ;;  %v2760_v15 = vmax.f32 (!%p10809_p8), %v2744_v36, 0.0  ;;  %v2761_v30 = vmax.f32 (!%p10809_p8), %v2745_v5, 0.0 }
 0x2a3   : > { %8321 = vmatprep.mubr.bf16.mxu1 %v2445_v52  ;;  %2775 = vst [vmem:[#allocation2 + $0x38] sm:$0xff] (!%p10809_p8), %v2767_v53  ;;  %v2768_v17 = vpack.c.bf16 (!%p10809_p8), %v2756_v14, %v2755_v31  ;;  %v2748_v52 = vadd.f32 (!%p10809_p8), %v9670_v56, %v2732_v58 }
 0x2a4   : > { %8322 = vmatmul.mubr.bf16.gmra.mrb[76].mxu1 %v2446_v46  ;;  %v2762_v46 = vmax.f32 (!%p10809_p8), %v2746_v50, 0.0  ;;  %v2763_v48 = vmax.f32 (!%p10809_p8), %v2747_v43, 0.0  ;;  %2777 = vst [vmem:[#allocation2 + $0x68] sm:$0xff] (!%p10809_p8), %v2769_v47  ;;  %v2770_v10 = vpack.c.bf16 (!%p10809_p8), %v2760_v15, %v2759_v41 }
 0x2a5   : > { %2776 = vst [vmem:[#allocation2 + $0x50] sm:$0xff] %v2768_v17  ;;  %v2764_v63 = vmax.f32 %v2748_v52, 0.0 }
 0x2a6   : > { %v2771_v44 = vpack.c.bf16 %v2762_v46, %v2761_v30  ;;  %2778 = vst [vmem:[#allocation2 + $0x80] sm:$0xff] %v2770_v10 }
 0x2a7   : > { %v2772_v40 = vpack.c.bf16 %v2764_v63, %v2763_v48 }
 0x2a8   : > { %2779 = vst [vmem:[#allocation2 + $0x98] sm:$0xff] %v2771_v44 }
 0x2a9   : > { %2780 = vst [vmem:[#allocation2 + $0xb0] sm:$0xff] %v2772_v40 }
 0x2aa PF: > { %p10810_p7 = scmp.ge.s32.totalorder %s9081_s12, 1 }
 0x2ab   : > { %v2785_v9 = vld [vmem:[#allocation5 + $0x80] sm:$0xff] (!%p10810_p7)  ;;  %v2786_v38 = vld [vmem:[#allocation5 + $0x88] sm:$0xff] (!%p10810_p7)  ;;  %v2787_v22 = vld [vmem:[#allocation5 + $0x90] sm:$0xff] (!%p10810_p7) }
 0x2ac   : > { %2783 = sbr.rel (%p10810_p7) target bundleno = 701 (0x2bd), region = 104  ;;  %v2801_v62 = vmul.f32 (!%p10810_p7), %v9665_v55, %v2785_v9  ;;  %v2802_v49 = vmul.f32 (!%p10810_p7), %v9665_v55, %v2786_v38  ;;  %v2788_v4 = vld [vmem:[#allocation5 + $0x98] sm:$0xff] (!%p10810_p7)  ;;  %v2803_v59 = vmul.f32 (!%p10810_p7), %v9665_v55, %v2787_v22  ;;  %v2789_v54 = vld [vmem:[#allocation5 + $0xa0] sm:$0xff] (!%p10810_p7)  ;;  %v2790_v24 = vld [vmem:[#allocation5 + $0xa8] sm:$0xff] (!%p10810_p7) }
 0x2ad   : > { %v2804_v16 = vmul.f32 (!%p10810_p7), %v9665_v55, %v2788_v4  ;;  %v2805_v32 = vmul.f32 (!%p10810_p7), %v9665_v55, %v2789_v54  ;;  %v2806_v35 = vmul.f32 (!%p10810_p7), %v9665_v55, %v2790_v24  ;;  %v2791_v61 = vld [vmem:[#allocation5 + $0xb0] sm:$0xff] (!%p10810_p7)  ;;  %v2792_v25 = vld [vmem:[#allocation5 + $0xb8] sm:$0xff] (!%p10810_p7)  ;;  %v2793_v21 = vld [vmem:[#allocation5 + $0xc0] sm:$0xff] (!%p10810_p7) }
 0x2ae   : > { %v2817_v31 = vadd.f32 (!%p10810_p7), %v9670_v56, %v2801_v62  ;;  %v2818_v45 = vadd.f32 (!%p10810_p7), %v9670_v56, %v2802_v49  ;;  %v2819_v6 = vadd.f32 (!%p10810_p7), %v9670_v56, %v2803_v59  ;;  %v2807_v0 = vmul.f32 (!%p10810_p7), %v9665_v55, %v2791_v61  ;;  %v2794_v26 = vld [vmem:[#allocation5 + $0xc8] sm:$0xff] (!%p10810_p7)  ;;  %v2795_v57 = vld [vmem:[#allocation5 + $0xd0] sm:$0xff] (!%p10810_p7)  ;;  %v2796_v36 = vld [vmem:[#allocation5 + $0xd8] sm:$0xff] (!%p10810_p7) }
 0x2af   : > { %v2820_v27 = vadd.f32 (!%p10810_p7), %v9670_v56, %v2804_v16  ;;  %v2821_v53 = vadd.f32 (!%p10810_p7), %v9670_v56, %v2805_v32  ;;  %v2822_v14 = vadd.f32 (!%p10810_p7), %v9670_v56, %v2806_v35  ;;  %v2808_v42 = vmul.f32 (!%p10810_p7), %v9665_v55, %v2792_v25 }
 0x2b0   : > { %v2833_v37 = vmax.f32 (!%p10810_p7), %v2817_v31, 0.0  ;;  %v2834_v60 = vmax.f32 (!%p10810_p7), %v2818_v45, 0.0  ;;  %v2835_v20 = vmax.f32 (!%p10810_p7), %v2819_v6, 0.0  ;;  %v2823_v17 = vadd.f32 (!%p10810_p7), %v9670_v56, %v2807_v0 }
 0x2b1   : > { %v2836_v19 = vmax.f32 (!%p10810_p7), %v2820_v27, 0.0  ;;  %v2837_v29 = vmax.f32 (!%p10810_p7), %v2821_v53, 0.0  ;;  %v2838_v3 = vmax.f32 (!%p10810_p7), %v2822_v14, 0.0  ;;  %v2824_v51 = vadd.f32 (!%p10810_p7), %v9670_v56, %v2808_v42 }
 0x2b2   : > { %v2849_v5 = vpack.c.bf16 (!%p10810_p7), %v2834_v60, %v2833_v37  ;;  %v2839_v41 = vmax.f32 (!%p10810_p7), %v2823_v17, 0.0  ;;  %v2809_v50 = vmul.f32 (!%p10810_p7), %v9665_v55, %v2793_v21  ;;  %v2810_v58 = vmul.f32 (!%p10810_p7), %v9665_v55, %v2794_v26 }
 0x2b3   : > { %v2850_v43 = vpack.c.bf16 %v2836_v19, %v2835_v20  ;;  %v2851_v47 = vpack.c.bf16 %v2838_v3, %v2837_v29  ;;  %v2840_v15 = vmax.f32 %v2824_v51, 0.0  ;;  %v2811_v30 = vmul.f32 %v9665_v55, %v2795_v57 }
 0x2b4   : > { %2857 = vst [vmem:[#allocation2 + $0x188] sm:$0xff] %v2849_v5  ;;  %v2825_v46 = vadd.f32 %v9670_v56, %v2809_v50  ;;  %v2826_v52 = vadd.f32 %v9670_v56, %v2810_v58  ;;  %v2812_v48 = vmul.f32 %v9665_v55, %v2796_v36 }
 0x2b5   : > { %2858 = vst [vmem:[#allocation2 + $0x1a0] sm:$0xff] %v2850_v43  ;;  %2859 = vst [vmem:[#allocation2 + $0x1b8] sm:$0xff] %v2851_v47  ;;  %v2852_v10 = vpack.c.bf16 %v2840_v15, %v2839_v41  ;;  %v2827_v44 = vadd.f32 %v9670_v56, %v2811_v30 }
 0x2b6   : > { %v2841_v63 = vmax.f32 %v2825_v46, 0.0  ;;  %v2842_v40 = vmax.f32 %v2826_v52, 0.0  ;;  %v2828_v9 = vadd.f32 %v9670_v56, %v2812_v48 }
 0x2b7   : > { %2860 = vst [vmem:[#allocation2 + $0x1d0] sm:$0xff] %v2852_v10  ;;  %v2843_v38 = vmax.f32 %v2827_v44, 0.0 }
 0x2b8   : > { %v2853_v22 = vpack.c.bf16 %v2842_v40, %v2841_v63  ;;  %v2844_v62 = vmax.f32 %v2828_v9, 0.0 }
 0x2ba   : > { %2861 = vst [vmem:[#allocation2 + $0x1e8] sm:$0xff] %v2853_v22  ;;  %v2854_v49 = vpack.c.bf16 %v2844_v62, %v2843_v38 }
 0x2bc   : > { %2862 = vst [vmem:[#allocation2 + $0x200] sm:$0xff] %v2854_v49 }
 0x2bd PF: > { %v8685_v4 = vld [vmem:[#allocation10 + $0x280] sm:$0xff]   ;;  %v8689_v24 = vld [vmem:[#allocation10 + $0x288] sm:$0xff]   ;;  %v8693_v35 = vld [vmem:[#allocation10 + $0x290] sm:$0xff]   ;;  %vm2898_vm2 = vcmask 1041408   ;;  %vm2987_vm3 = vcmask 1045504   ;;  %s10811_s24 = sld [smem:[#allocation32_spill]] }
 0x2be   : > { %v8686_v59 = vld [vmem:[#allocation10 + $0x300] sm:$0xff]   ;;  %7685 = vmatprep.subr.bf16.mxu0 %v8685_v4  ;;  %v8690_v16 = vld [vmem:[#allocation10 + $0x308] sm:$0xff]   ;;  %v8694_v61 = vld [vmem:[#allocation10 + $0x310] sm:$0xff]   ;;  %s10815_s5 = sld [smem:[#allocation34_spill]]  ;;  %s10816_s23 = sld [smem:[#allocation35_spill]] }
 0x2bf   : > { %v8687_v55 = vld [vmem:[#allocation10 + $0x240] sm:$0xff]   ;;  %7749 = vmatprep.subr.bf16.mxu1 %v8686_v59  ;;  %v8691_v56 = vld [vmem:[#allocation10 + $0x248] sm:$0xff]   ;;  %v8695_v25 = vld [vmem:[#allocation10 + $0x250] sm:$0xff]   ;;  %p10817_p5 = scmp.le.s32.totalorder %s9081_s12, 0 }
 0x2c0   : > { %v8688_v54 = vld [vmem:[#allocation10 + $0x2c0] sm:$0xff]   ;;  %7686 = vmatpush3.bf16.msra.mxu0 %v8687_v55  ;;  %v8692_v32 = vld [vmem:[#allocation10 + $0x2c8] sm:$0xff]   ;;  %v8696_v31 = vld [vmem:[#allocation10 + $0x2d0] sm:$0xff]  }
 0x2c1   : > { %7750 = vmatpush3.bf16.msra.mxu1 %v8688_v54  ;;  %7687 = vmatprep.subr.bf16.mxu0 %v8689_v24  ;;  %v8697_v45 = vld [vmem:[#allocation10 + $0x298] sm:$0xff]   ;;  %v8701_v53 = vld [vmem:[#allocation10 + $0x2a0] sm:$0xff]   ;;  %v8705_v26 = vld [vmem:[#allocation10 + $0x2a8] sm:$0xff]  }
 0x2c2   : > { %7751 = vmatprep.subr.bf16.mxu1 %v8690_v16  ;;  %v8698_v6 = vld [vmem:[#allocation10 + $0x318] sm:$0xff]   ;;  %v8702_v14 = vld [vmem:[#allocation10 + $0x320] sm:$0xff]   ;;  %v8706_v37 = vld [vmem:[#allocation10 + $0x328] sm:$0xff]  }
 0x2c3   : > { %v8699_v0 = vld [vmem:[#allocation10 + $0x258] sm:$0xff]   ;;  %v8703_v42 = vld [vmem:[#allocation10 + $0x260] sm:$0xff]   ;;  %v8707_v60 = vld [vmem:[#allocation10 + $0x268] sm:$0xff]  }
 0x2c4   : > { %7688 = vmatpush3.bf16.msra.mxu0 %v8691_v56  ;;  %v8700_v27 = vld [vmem:[#allocation10 + $0x2d8] sm:$0xff]   ;;  %v8704_v21 = vld [vmem:[#allocation10 + $0x2e0] sm:$0xff]   ;;  %v8708_v20 = vld [vmem:[#allocation10 + $0x2e8] sm:$0xff]  }
 0x2c5   : > { %7752 = vmatpush3.bf16.msra.mxu1 %v8692_v32  ;;  %7689 = vmatprep.subr.bf16.mxu0 %v8693_v35  ;;  %v8709_v17 = vld [vmem:[#allocation10 + $0x2b0] sm:$0xff]   ;;  %v8713_v3 = vld [vmem:[#allocation10 + $0x2b8] sm:$0xff]   ;;  %v2939_v41 = vld [vmem:[#allocation2 + $0x68] sm:$0xff] }
 0x2c6   : > { %7753 = vmatprep.subr.bf16.mxu1 %v8694_v61  ;;  %v8710_v57 = vld [vmem:[#allocation10 + $0x330] sm:$0xff]   ;;  %v8714_v51 = vld [vmem:[#allocation10 + $0x338] sm:$0xff]   ;;  %v3028_v50 = vld [vmem:[#allocation2 + $0xc0] sm:$0xc0]  ;;  %4030 = vmatprep.mubr.bf16.mxu0 %v2939_v41 }
 0x2c7   : > { %v8711_v19 = vld [vmem:[#allocation10 + $0x270] sm:$0xff]   ;;  %v8715_v36 = vld [vmem:[#allocation10 + $0x278] sm:$0xff]   ;;  %v3029_v58 = vld [vmem:[#allocation2 + $0xc8] sm:$0x3f]  ;;  %v3060_v43 = vrot.slane %v3028_v50, 6 }
 0x2c8   : > { %7690 = vmatpush3.bf16.msra.mxu0 %v8695_v25  ;;  %v8712_v29 = vld [vmem:[#allocation10 + $0x2f0] sm:$0xff]   ;;  %v8716_v5 = vld [vmem:[#allocation10 + $0x2f8] sm:$0xff]   ;;  %v3061_v47 = vrot.slane %v3029_v58, 6  ;;  %v2866_v15 = vld [vmem:[#allocation2 + $0x60] sm:$0xc0] }
 0x2c9   : > { %7754 = vmatpush3.bf16.msra.mxu1 %v8696_v31  ;;  %7691 = vmatprep.subr.bf16.mxu0 %v8697_v45  ;;  %v2867_v30 = vld [vmem:[#allocation2 + $0x68] sm:$0x3f]  ;;  %v2899_v46 = vrot.slane %v2866_v15, 6  ;;  %v2956_v10 = vld [vmem:[#allocation2 + $0x70] sm:$0x3]  ;;  %v8717_v38 = vld [vmem:[#allocation10 + $0x380] sm:$0xff]  }
 0x2ca   : > { %7755 = vmatprep.subr.bf16.mxu1 %v8698_v6  ;;  %v2900_v52 = vrot.slane %v2867_v30, 6  ;;  %v2955_v48 = vld [vmem:[#allocation2 + $0x68] sm:$0xfc]  ;;  %v3062_v44 = vsel %vm2898_vm2, %v3060_v43, %v3061_v47  ;;  %v2989_v40 = vrot.slane %v2956_v10, 2  ;;  %v8718_v62 = vld [vmem:[#allocation10 + $0x340] sm:$0xff]   ;;  %v8722_v41 = vld [vmem:[#allocation10 + $0x350] sm:$0xff]  }
 0x2cb   : > { %v2988_v63 = vrot.slane %v2955_v48, 2  ;;  %4127 = vmatprep.mubr.bf16.mxu1 %v3062_v44  ;;  %v2940_v49 = vld [vmem:[#allocation2 + $0x80] sm:$0xff]  ;;  %v3030_v4 = vld [vmem:[#allocation2 + $0xd8] sm:$0xc0]  ;;  %v8719_v24 = vld [vmem:[#allocation10 + $0x388] sm:$0xff]  }
 0x2cc   : > { %7692 = vmatpush3.bf16.msra.mxu0 %v8699_v0  ;;  %v2901_v9 = vsel %vm2898_vm2, %v2899_v46, %v2900_v52  ;;  %v3031_v59 = vld [vmem:[#allocation2 + $0xe0] sm:$0x3f]  ;;  %v3063_v55 = vrot.slane %v3030_v4, 6  ;;  %v2868_v54 = vld [vmem:[#allocation2 + $0x78] sm:$0xc0]  ;;  %v8720_v0 = vld [vmem:[#allocation10 + $0x348] sm:$0xff]  }
 0x2cd   : > { %7756 = vmatpush3.bf16.msra.mxu1 %v8700_v27  ;;  %7693 = vmatprep.subr.bf16.mxu0 %v8701_v53  ;;  %v2990_v22 = vsel %vm2987_vm3, %v2988_v63, %v2989_v40  ;;  %v3064_v16 = vrot.slane %v3031_v59, 6  ;;  %v2869_v56 = vld [vmem:[#allocation2 + $0x80] sm:$0x3f]  ;;  %v2902_v32 = vrot.slane %v2868_v54, 6  ;;  %v2958_v25 = vld [vmem:[#allocation2 + $0x88] sm:$0x3] }
 0x2ce   : > { %7757 = vmatprep.subr.bf16.mxu1 %v8702_v14  ;;  %v2957_v35 = vld [vmem:[#allocation2 + $0x80] sm:$0xfc]  ;;  %v2903_v61 = vrot.slane %v2869_v56, 6  ;;  %v2992_v6 = vrot.slane %v2958_v25, 2  ;;  %v2941_v53 = vld [vmem:[#allocation2 + $0x98] sm:$0xff]  ;;  %v2942_v58 = vld [vmem:[#allocation2 + $0xb0] sm:$0xff] }
 0x2cf   : > { %v2991_v31 = vrot.slane %v2957_v35, 2  ;;  %v3065_v45 = vsel %vm2898_vm2, %v3063_v55, %v3064_v16  ;;  %v3032_v14 = vld [vmem:[#allocation2 + $0xf0] sm:$0xc0]  ;;  %v3034_v43 = vld [vmem:[#allocation2 + $0x108] sm:$0xc0]  ;;  %v8723_v52 = vld [vmem:[#allocation10 + $0x398] sm:$0xff]  }
 0x2d0   : > { %7694 = vmatpush3.bf16.msra.mxu0 %v8703_v42  ;;  %v2904_v27 = vsel %vm2898_vm2, %v2902_v32, %v2903_v61  ;;  %v3035_v15 = vld [vmem:[#allocation2 + $0x110] sm:$0x3f]  ;;  %v3069_v30 = vrot.slane %v3034_v43, 6  ;;  %v2872_v46 = vld [vmem:[#allocation2 + $0xa8] sm:$0xc0]  ;;  %v8725_v55 = vld [vmem:[#allocation10 + $0x400] sm:$0xff]  }
 0x2d1   : > { %7758 = vmatpush3.bf16.msra.mxu1 %v8704_v21  ;;  %7695 = vmatprep.subr.bf16.mxu0 %v8705_v26  ;;  %v2993_v42 = vsel %vm2987_vm3, %v2991_v31, %v2992_v6  ;;  %v3033_v21 = vld [vmem:[#allocation2 + $0xf8] sm:$0x3f]  ;;  %v3066_v26 = vrot.slane %v3032_v14, 6  ;;  %v3070_v48 = vrot.slane %v3035_v15, 6  ;;  %v2873_v10 = vld [vmem:[#allocation2 + $0xb0] sm:$0x3f] }
 0x2d2   : > { %7759 = vmatprep.subr.bf16.mxu1 %v8706_v37  ;;  %v2870_v37 = vld [vmem:[#allocation2 + $0x90] sm:$0xc0]  ;;  %v2908_v44 = vrot.slane %v2872_v46, 6  ;;  %v2909_v40 = vrot.slane %v2873_v10, 6  ;;  %v8726_v54 = vld [vmem:[#allocation10 + $0x3c0] sm:$0xff]   ;;  %v8732_v46 = vld [vmem:[#allocation10 + $0x368] sm:$0xff]  }
 0x2d3   : > { %v2961_v63 = vld [vmem:[#allocation2 + $0xb0] sm:$0xfc]  ;;  %v3036_v16 = vld [vmem:[#allocation2 + $0x120] sm:$0xc0]  ;;  %v3037_v56 = vld [vmem:[#allocation2 + $0x128] sm:$0x3f] }
 0x2d4   : > { %7696 = vmatpush3.bf16.msra.mxu0 %v8707_v60  ;;  %v8721_v60 = vld [vmem:[#allocation10 + $0x390] sm:$0xff]   ;;  %v2910_v4 = vsel %vm2898_vm2, %v2908_v44, %v2909_v40  ;;  %v3072_v32 = vrot.slane %v3036_v16, 6  ;;  %v2874_v35 = vld [vmem:[#allocation2 + $0xc0] sm:$0xc0]  ;;  %v3073_v25 = vrot.slane %v3037_v56, 6  ;;  %v10041_v40 = vld [vmem:[#allocation2 + $0xf8] sm:$0xff] }
 0x2d5   : > { %7760 = vmatpush3.bf16.msra.mxu1 %v8708_v20  ;;  %7697 = vmatprep.subr.bf16.mxu0 %v8709_v17  ;;  %v3067_v20 = vrot.slane %v3033_v21, 6  ;;  %v2871_v17 = vld [vmem:[#allocation2 + $0x98] sm:$0x3f]  ;;  %v8727_v61 = vld [vmem:[#allocation10 + $0x3a0] sm:$0xff]   ;;  %v2875_v31 = vld [vmem:[#allocation2 + $0xc8] sm:$0x3f] }
 0x2d6   : > { %7761 = vmatprep.subr.bf16.mxu1 %v8710_v57  ;;  %v2905_v57 = vrot.slane %v2870_v37, 6  ;;  %v2963_v6 = vld [vmem:[#allocation2 + $0xc8] sm:$0xfc]  ;;  %v3074_v14 = vsel %vm2898_vm2, %v3072_v32, %v3073_v25  ;;  %v8728_v21 = vld [vmem:[#allocation10 + $0x360] sm:$0xff]   ;;  %v2966_v43 = vld [vmem:[#allocation2 + $0xe8] sm:$0x3] }
 0x2d7   : > { %v8733_v10 = vld [vmem:[#allocation10 + $0x410] sm:$0xff]   ;;  %v2967_v16 = vld [vmem:[#allocation2 + $0xf8] sm:$0xfc] }
 0x2d8   : > { %7698 = vmatpush3.bf16.msra.mxu0 %v8711_v19  ;;  %v2959_v19 = vld [vmem:[#allocation2 + $0x98] sm:$0xfc]  ;;  %v8734_v44 = vld [vmem:[#allocation10 + $0x3d0] sm:$0xff]   ;;  %v3006_v25 = vrot.slane %v2967_v16, 2  ;;  %v3190_v16 = vld [vmem:[#allocation2 + $0x128] sm:$0x3f] }
 0x2d9   : > { %7762 = vmatpush3.bf16.msra.mxu1 %v8712_v29  ;;  %7699 = vmatprep.subr.bf16.mxu0 %v8713_v3  ;;  %v2906_v29 = vrot.slane %v2871_v17, 6  ;;  %v2960_v3 = vld [vmem:[#allocation2 + $0xa0] sm:$0x3]  ;;  %v8738_v56 = vld [vmem:[#allocation10 + $0x370] sm:$0xff]  }
 0x2da   : > { %7763 = vmatprep.subr.bf16.mxu1 %v8714_v51  ;;  %v2994_v51 = vrot.slane %v2959_v19, 2  ;;  %v10035_v17 = vld [vmem:[#allocation2 + $0xe0] sm:$0xff] }
 0x2db   : > { %v2907_v50 = vsel %vm2898_vm2, %v2905_v57, %v2906_v29  ;;  %v3038_v57 = vld [vmem:[#allocation2 + $0x138] sm:$0xc0]  ;;  %v3039_v19 = vld [vmem:[#allocation2 + $0x140] sm:$0x3f] }
 0x2dc   : > { %7700 = vmatpush3.bf16.msra.mxu0 %v8715_v36  ;;  %v3068_v36 = vsel %vm2898_vm2, %v3066_v26, %v3067_v20  ;;  %v8730_v20 = vld [vmem:[#allocation10 + $0x3c8] sm:$0xff]   ;;  %v3075_v29 = vrot.slane %v3038_v57, 6  ;;  %v2881_v57 = vld [vmem:[#allocation2 + $0x110] sm:$0x3f] }
 0x2dd   : > { %7764 = vmatpush3.bf16.msra.mxu1 %v8716_v5  ;;  %7813 = vmatprep.subr.bf16.mxu0 %v8717_v38  ;;  %v2995_v5 = vrot.slane %v2960_v3, 2  ;;  %v2997_v38 = vrot.slane %v2961_v63, 2  ;;  %v2876_v3 = vld [vmem:[#allocation2 + $0xd8] sm:$0xc0] }
 0x2de   : > { %7877 = vmatprep.subr.bf16.mxu1 %v8725_v55  ;;  %v8735_v63 = vld [vmem:[#allocation10 + $0x418] sm:$0xff]  }
 0x2df   : > { %4031 = vmatmul.mubr.bf16.vlgmr.msra.gmra.mrb[80].mxu0 %v2901_v9  ;;  %v2996_v47 = vsel %vm2987_vm3, %v2994_v51, %v2995_v5  ;;  %v2962_v9 = vld [vmem:[#allocation2 + $0xb8] sm:$0x3]  ;;  %v8731_v51 = vld [vmem:[#allocation10 + $0x3a8] sm:$0xff]   ;;  %v2877_v5 = vld [vmem:[#allocation2 + $0xe0] sm:$0x3f] }
 0x2e0   : > { %4128 = vmatmul.mubr.bf16.vlgmr.msra.gmra.mrb[80].mxu1 %v2990_v22  ;;  %7814 = vmatpush3.bf16.msra.mxu0 %v8718_v62  ;;  %v3071_v22 = vsel %vm2898_vm2, %v3069_v30, %v3070_v48  ;;  %v2998_v62 = vrot.slane %v2962_v9, 2  ;;  %v3004_v30 = vrot.slane %v2966_v43, 2  ;;  %v3040_v9 = vld [vmem:[#allocation2 + $0x150] sm:$0xc0]  ;;  %v2879_v55 = vld [vmem:[#allocation2 + $0xf8] sm:$0x3f] }
 0x2e1   : > { %4038 = vmatprep.mubr.bf16.mxu0 %v2940_v49  ;;  %7815 = vmatprep.subr.bf16.mxu0 %v8719_v24  ;;  %v8724_v49 = vld [vmem:[#allocation10 + $0x358] sm:$0xff]   ;;  %v10030_v24 = vld [vmem:[#allocation2 + $0xc8] sm:$0xff] }
 0x2e2   : > { %4135 = vmatprep.mubr.bf16.mxu1 %v3065_v45  ;;  %v2999_v59 = vsel %vm2987_vm3, %v2997_v38, %v2998_v62  ;;  %v2911_v45 = vrot.slane %v2874_v35, 6  ;;  %7878 = vmatpush3.bf16.msra.mxu1 %v8726_v54  ;;  %v3041_v38 = vld [vmem:[#allocation2 + $0x158] sm:$0x3f]  ;;  %v2918_v35 = vrot.slane %v2879_v55, 6  ;;  %v10073_v55 = vld [vmem:[#allocation2 + $0x128] sm:$0xff] }
 0x2e3   : > { %v8736_v62 = vld [vmem:[#allocation10 + $0x3d8] sm:$0xff]  }
 0x2e4   : > { %7816 = vmatpush3.bf16.msra.mxu0 %v8720_v0  ;;  %v2912_v0 = vrot.slane %v2875_v31, 6 }
 0x2e5   : > { %7817 = vmatprep.subr.bf16.mxu0 %v8721_v60  ;;  %v8729_v60 = vld [vmem:[#allocation10 + $0x408] sm:$0xff]  }
 0x2e6   : > { %v2913_v26 = vsel %vm2898_vm2, %v2911_v45, %v2912_v0  ;;  %7879 = vmatprep.subr.bf16.mxu1 %v8729_v60  ;;  %v8739_v45 = vld [vmem:[#allocation10 + $0x420] sm:$0xff]   ;;  %v8742_v60 = vld [vmem:[#allocation10 + $0x3e8] sm:$0xff]  }
 0x2e7   : > { %4039 = vmatmul.mubr.bf16.gmra.mrb[84].mxu0 %v2904_v27  ;;  %v2964_v27 = vld [vmem:[#allocation2 + $0xd0] sm:$0x3]  ;;  %7880 = vmatpush3.bf16.msra.mxu1 %v8730_v20  ;;  %v2880_v20 = vld [vmem:[#allocation2 + $0x108] sm:$0xc0] }
 0x2e8   : > { %4136 = vmatmul.mubr.bf16.gmra.mrb[84].mxu1 %v2993_v42  ;;  %4046 = vmatprep.mubr.bf16.mxu0 %v2941_v53  ;;  %v3000_v53 = vrot.slane %v2963_v6, 2  ;;  %v3001_v42 = vrot.slane %v2964_v27, 2  ;;  %v8740_v27 = vld [vmem:[#allocation10 + $0x3e0] sm:$0xff]  }
 0x2e9   : > { %4143 = vmatprep.mubr.bf16.mxu1 %v3068_v36  ;;  %7818 = vmatpush3.bf16.msra.mxu0 %v8722_v41  ;;  %v3076_v36 = vrot.slane %v3039_v19, 6  ;;  %v2914_v41 = vrot.slane %v2876_v3, 6  ;;  %v2921_v3 = vrot.slane %v2881_v57, 6 }
 0x2ea   : > { %7819 = vmatprep.subr.bf16.mxu0 %v8723_v52  ;;  %v3002_v37 = vsel %vm2987_vm3, %v3000_v53, %v3001_v42  ;;  %7881 = vmatprep.subr.bf16.mxu1 %v8733_v10  ;;  %v8741_v53 = vld [vmem:[#allocation10 + $0x428] sm:$0xff]  }
 0x2eb   : > { %v3077_v15 = vsel %vm2898_vm2, %v3075_v29, %v3076_v36  ;;  %7882 = vmatpush3.bf16.msra.mxu1 %v8734_v44  ;;  %v3042_v42 = vld [vmem:[#allocation2 + $0x168] sm:$0xc0]  ;;  %v2920_v29 = vrot.slane %v2880_v20, 6  ;;  %v2970_v36 = vld [vmem:[#allocation2 + $0x118] sm:$0x3] }
 0x2ec   : > { %7883 = vmatprep.subr.bf16.mxu1 %v8735_v63  ;;  %v8748_v63 = vld [vmem:[#allocation10 + $0x3f8] sm:$0xff]   ;;  %v3192_v20 = vld [vmem:[#allocation2 + $0x140] sm:$0x3f] }
 0x2ed   : > { %7820 = vmatpush3.bf16.msra.mxu0 %v8724_v49  ;;  %v3079_v49 = vrot.slane %v3041_v38, 6  ;;  %v10062_v38 = vld [vmem:[%s10811_s24 + $0x2] ss:$0 sm:$0xff] }
 0x2ee   : > { %7821 = vmatprep.subr.bf16.mxu0 %v8727_v61  ;;  %v2968_v61 = vld [vmem:[#allocation2 + $0x100] sm:$0x3] }
 0x2ef   : > { %4047 = vmatmul.mubr.bf16.gmra.mrb[88].mxu0 %v2907_v50  ;;  %v2965_v50 = vld [vmem:[#allocation2 + $0xe0] sm:$0xfc]  ;;  %v3007_v31 = vrot.slane %v2968_v61, 2  ;;  %7884 = vmatpush3.bf16.msra.mxu1 %v8736_v62 }
 0x2f0   : > { %4144 = vmatmul.mubr.bf16.gmra.mrb[88].mxu1 %v2996_v47  ;;  %4054 = vmatprep.mubr.bf16.mxu0 %v2942_v58  ;;  %v2915_v58 = vrot.slane %v2877_v5, 6  ;;  %v3003_v47 = vrot.slane %v2965_v50, 2  ;;  %v2922_v50 = vsel %vm2898_vm2, %v2920_v29, %v2921_v3  ;;  %v3225_v29 = vrot.slane %v3192_v20, 6  ;;  %v3120_v3 = vld [vmem:[#allocation2 + $0xf8] sm:$0xfc] }
 0x2f1   : > { %4151 = vmatprep.mubr.bf16.mxu1 %v3071_v22  ;;  %7822 = vmatpush3.bf16.msra.mxu0 %v8728_v21  ;;  %v3078_v22 = vrot.slane %v3040_v9, 6  ;;  %v3008_v0 = vsel %vm2987_vm3, %v3006_v25, %v3007_v31  ;;  %v3043_v21 = vld [vmem:[#allocation2 + $0x170] sm:$0x3f]  ;;  %v10057_v9 = vld [vmem:[%s10749_s2 + $0x2] ss:$0 sm:$0xff]  ;;  %v3222_v25 = vrot.slane %v3190_v16, 6 }
 0x2f2   : > { %7823 = vmatprep.subr.bf16.mxu0 %v8731_v51  ;;  %v2916_v52 = vsel %vm2898_vm2, %v2914_v41, %v2915_v58  ;;  %v3005_v48 = vsel %vm2987_vm3, %v3003_v47, %v3004_v30  ;;  %7885 = vmatprep.subr.bf16.mxu1 %v8739_v45  ;;  %v2969_v51 = vld [vmem:[#allocation2 + $0x110] sm:$0xfc]  ;;  %v3010_v41 = vrot.slane %v2970_v36, 2  ;;  %v8743_v58 = vld [vmem:[#allocation10 + $0x3b8] sm:$0xff]   ;;  %v4764_v62 = vmul.f32 %v10057_v9, %v9463_v1  ;;  %v3118_v31 = vld [vmem:[#allocation2 + $0xe0] sm:$0xfc] }
 0x2f3   : > { %v3080_v32 = vsel %vm2898_vm2, %v3078_v22, %v3079_v49  ;;  %7886 = vmatpush3.bf16.msra.mxu1 %v8740_v27  ;;  %v3009_v5 = vrot.slane %v2969_v51, 2  ;;  %v8744_v47 = vld [vmem:[#allocation10 + $0x378] sm:$0xff]   ;;  %v8746_v30 = vld [vmem:[#allocation10 + $0x3f0] sm:$0xff]   ;;  %v4765_v49 = vmul.f32 %v10057_v9, %v9466_v2  ;;  %v4769_v1 = vmul.f32 %v10057_v9, %v9496_v12  ;;  %v3119_v45 = vld [vmem:[#allocation2 + $0xe8] sm:$0x3] }
 0x2f4   : > { %7887 = vmatprep.subr.bf16.mxu1 %v8741_v53  ;;  %v4770_v2 = vmul.f32 %v10057_v9, %v9499_v13  ;;  %v10089_v53 = vld [vmem:[#allocation2 + $0x140] sm:$0xff]  ;;  %v3127_v20 = vld [vmem:[#allocation2 + $0x148] sm:$0x3] }
 0x2f5   : > { %7824 = vmatpush3.bf16.msra.mxu0 %v8732_v46  ;;  %v3011_v43 = vsel %vm2987_vm3, %v3009_v5, %v3010_v41  ;;  %v8747_v46 = vld [vmem:[#allocation10 + $0x438] sm:$0xff]   ;;  %v3121_v51 = vld [vmem:[#allocation2 + $0x100] sm:$0x3]  ;;  %v4789_v36 = vadd.f32 %v10062_v38, %v4769_v1 }
 0x2f7   : > { %4055 = vmatmul.mubr.bf16.gmra.mrb[92].mxu0 %v2910_v4  ;;  %v2878_v4 = vld [vmem:[#allocation2 + $0xf0] sm:$0xc0]  ;;  %7888 = vmatpush3.bf16.msra.mxu1 %v8742_v60 }
 0x2f8   : > { %4152 = vmatmul.mubr.bf16.gmra.mrb[92].mxu1 %v2999_v59  ;;  %4062 = vmatprep.mubr.bf16.mxu0 %v10030_v24  ;;  %v8737_v59 = vld [vmem:[#allocation10 + $0x3b0] sm:$0xff]   ;;  %v2917_v54 = vrot.slane %v2878_v4, 6  ;;  %v10069_v4 = vld [vmem:[#allocation10 + $0x440] sm:$0xff]  }
 0x2f9   : > { %4159 = vmatprep.mubr.bf16.mxu1 %v3074_v14  ;;  %7825 = vmatprep.subr.bf16.mxu0 %v8737_v59  ;;  %v10048_v14 = vld [vmem:[#allocation2 + $0x110] sm:$0xff]  ;;  %v4766_v59 = vmul.f32 %v10057_v9, %v9483_v7  ;;  %v4785_v7 = vadd.f32 %v10062_v38, %v4765_v49  ;;  %v3123_v49 = vld [vmem:[#allocation2 + $0x118] sm:$0x3] }
 0x2fa   : > { %7826 = vmatpush3.bf16.msra.mxu0 %v8738_v56  ;;  %v2919_v6 = vsel %vm2898_vm2, %v2917_v54, %v2918_v35  ;;  %v3189_v54 = vld [vmem:[#allocation2 + $0x120] sm:$0xc0]  ;;  %v4767_v56 = vmul.f32 %v10057_v9, %v9486_v8  ;;  %v4784_v35 = vadd.f32 %v10062_v38, %v4764_v62  ;;  %v3151_v8 = vrot.slane %v3118_v31, 2  ;;  %v3122_v62 = vld [vmem:[#allocation2 + $0x110] sm:$0xfc] }
 0x2fb   : > { %7827 = vmatprep.subr.bf16.mxu0 %v8743_v58  ;;  %v3221_v61 = vrot.slane %v3189_v54, 6  ;;  %v3154_v58 = vrot.slane %v3120_v3, 2  ;;  %v3157_v54 = vrot.slane %v3122_v62, 2  ;;  %v3158_v16 = vrot.slane %v3123_v49, 2  ;;  %v10128_v3 = vld [vmem:[#allocation2 + $0x1a0] sm:$0xff] }
 0x2fc   : > { %v4787_v12 = vadd.f32 %v10062_v38, %v4767_v56  ;;  %v4800_v13 = vmax.f32 %v4784_v35, 0.0  ;;  %v3195_v35 = vld [vmem:[#allocation2 + $0x168] sm:$0xc0]  ;;  %v8753_v49 = vld [vmem:[#allocation10 + $0x460] sm:$0xff]  }
 0x2fd   : > { %v3223_v27 = vsel %vm2898_vm2, %v3221_v61, %v3222_v25  ;;  %v10113_v61 = vsel %vm2987_vm3, %v3157_v54, %v3158_v16  ;;  %v3196_v25 = vld [vmem:[#allocation2 + $0x170] sm:$0x3f]  ;;  %v3230_v31 = vrot.slane %v3195_v35, 6  ;;  %v10813_v54 = vld [vmem:[#allocation30_spill] sm:$0xff]  ;;  %v3131_v35 = vld [vmem:[#allocation2 + $0x178] sm:$0x3] }
 0x2fe   : > { %7828 = vmatpush3.bf16.msra.mxu0 %v8744_v47  ;;  %v4803_v60 = vmax.f32 %v4787_v12, 0.0  ;;  %v4771_v47 = vmul.f32 %v10057_v9, %v9508_v18  ;;  %v4778_v16 = vmul.f32 %v10057_v9, %v10813_v54  ;;  %v3284_v54 = vld [vmem:[#allocation2 + $0x178] sm:$0x3] }
 0x2ff   : > { %4063 = vmatmul.mubr.bf16.gmra.mrb[96].mxu0 %v2913_v26  ;;  %v3081_v26 = vrot.slane %v3042_v42, 6  ;;  %8325 = vmatprep.subr.bf16.mxu0 %v10069_v4  ;;  %v3191_v42 = vld [vmem:[#allocation2 + $0x138] sm:$0xc0] }
 0x300   : > { %4160 = vmatmul.mubr.bf16.gmra.mrb[96].mxu1 %v3002_v37  ;;  %4070 = vmatprep.mubr.bf16.mxu0 %v10035_v17  ;;  %v3082_v37 = vrot.slane %v3043_v21, 6  ;;  %v3224_v57 = vrot.slane %v3191_v42, 6  ;;  %v4791_v18 = vadd.f32 %v10062_v38, %v4771_v47 }
 0x301   : > { %4167 = vmatprep.mubr.bf16.mxu1 %v3077_v15  ;;  %v8745_v15 = vld [vmem:[#allocation10 + $0x430] sm:$0xff]  }
 0x302   : > { %v3083_v19 = vsel %vm2898_vm2, %v3081_v26, %v3082_v37  ;;  %7889 = vmatprep.subr.bf16.mxu1 %v8745_v15  ;;  %v10098_v15 = vsel %vm2898_vm2, %v3224_v57, %v3225_v29  ;;  %v4807_v1 = vmax.f32 %v4791_v18, 0.0  ;;  %v3164_v29 = vrot.slane %v3127_v20, 2  ;;  %v3130_v18 = vld [vmem:[#allocation2 + $0x170] sm:$0xfc] }
 0x303   : > { %7890 = vmatpush3.bf16.msra.mxu1 %v8746_v30  ;;  %v4805_v30 = vmax.f32 %v4789_v36, 0.0  ;;  %v4774_v36 = vmul.f32 %v10057_v9, %v9527_v33  ;;  %v4776_v33 = vmul.f32 %v10057_v9, %v9535_v39 }
 0x304   : > { %7891 = vmatprep.subr.bf16.mxu1 %v8747_v46  ;;  %v10100_v46 = vld [vmem:[#allocation2 + $0x158] sm:$0xff] }
 0x307   : > { %4071 = vmatmul.mubr.bf16.gmra.mrb[100].mxu0 %v2916_v52  ;;  %v3116_v52 = vld [vmem:[#allocation2 + $0xc8] sm:$0xfc]  ;;  %7892 = vmatpush3.bf16.msra.mxu1 %v8748_v63 }
 0x308   : > { %4168 = vmatmul.mubr.bf16.gmra.mrb[100].mxu1 %v3005_v48  ;;  %4078 = vmatprep.mubr.bf16.mxu0 %v10041_v40  ;;  %v3117_v48 = vld [vmem:[#allocation2 + $0xd0] sm:$0x3]  ;;  %v3148_v10 = vrot.slane %v3116_v52, 2  ;;  %v3193_v52 = vld [vmem:[#allocation2 + $0x150] sm:$0xc0] }
 0x309   : > { %4175 = vmatprep.mubr.bf16.mxu1 %v3080_v32  ;;  %v3149_v44 = vrot.slane %v3117_v48, 2  ;;  %v4768_v32 = vmul.f32 %v10057_v9, %v9493_v11  ;;  %v3152_v11 = vrot.slane %v3119_v45, 2  ;;  %v3194_v48 = vld [vmem:[#allocation2 + $0x158] sm:$0x3f]  ;;  %v3227_v63 = vrot.slane %v3193_v52, 6 }
 0x30a   : > { %v3124_v45 = vld [vmem:[#allocation2 + $0x128] sm:$0xfc] }
 0x30b   : > { %v3150_v22 = vsel %vm2987_vm3, %v3148_v10, %v3149_v44  ;;  %v4788_v21 = vadd.f32 %v10062_v38, %v4768_v32  ;;  %v3153_v26 = vsel %vm2987_vm3, %v3151_v8, %v3152_v11  ;;  %v4790_v10 = vadd.f32 %v10062_v38, %v4770_v2  ;;  %v10109_v2 = vld [vmem:[#allocation2 + $0x170] sm:$0xff] }
 0x30c   : > { %v3231_v8 = vrot.slane %v3196_v25, 6  ;;  %v3125_v11 = vld [vmem:[#allocation2 + $0x130] sm:$0x3]  ;;  %v3169_v25 = vrot.slane %v3130_v18, 2 }
 0x30d   : > { %v4804_v5 = vmax.f32 %v4788_v21, 0.0  ;;  %v4806_v56 = vmax.f32 %v4790_v10, 0.0  ;;  %v3161_v12 = vrot.slane %v3125_v11, 2  ;;  %v3126_v21 = vld [vmem:[#allocation2 + $0x140] sm:$0xfc]  ;;  %v10144_v10 = vld [vmem:[#allocation2 + $0x1b8] sm:$0xff] }
 0x30e   : > { %v3163_v57 = vrot.slane %v3126_v21, 2 }
 0x30f   : > { %4079 = vmatmul.mubr.bf16.gmra.mrb[104].mxu0 %v2919_v6  ;;  %v4786_v6 = vadd.f32 %v10062_v38, %v4766_v59  ;;  %v4818_v59 = vpack.c.bf16 %v4805_v30, %v4804_v5  ;;  %v8752_v5 = vld [vmem:[#allocation10 + $0x458] sm:$0xff]   ;;  %v3129_v30 = vld [vmem:[#allocation2 + $0x160] sm:$0x3] }
 0x310   : > { %4176 = vmatmul.mubr.bf16.gmra.mrb[104].mxu1 %v3008_v0  ;;  %4086 = vmatprep.mubr.bf16.mxu0 %v10048_v14  ;;  %v4801_v0 = vmax.f32 %v4785_v7, 0.0  ;;  %v8751_v7 = vld [vmem:[#allocation10 + $0x450] sm:$0xff]  }
 0x311   : > { %4183 = vmatprep.mubr.bf16.mxu1 %v3083_v19  ;;  %v4802_v37 = vmax.f32 %v4786_v6, 0.0  ;;  %4826 = vst [vmem:[#allocation2 + $0xf8] sm:$0xff] %v4818_v59  ;;  %v3160_v6 = vrot.slane %v3124_v45, 2  ;;  %v4794_v59 = vadd.f32 %v10062_v38, %v4774_v36  ;;  %v3170_v45 = vrot.slane %v3131_v35, 2 }
 0x312   : > { %v4816_v19 = vpack.c.bf16 %v4801_v0, %v4800_v13  ;;  %v10116_v13 = vld [vmem:[#allocation2 + $0x188] sm:$0xff]  ;;  %v10119_v0 = vsel %vm2898_vm2, %v3230_v31, %v3231_v8 }
 0x313   : > { %v4817_v41 = vpack.c.bf16 %v4803_v60, %v4802_v37  ;;  %v10124_v37 = vsel %vm2987_vm3, %v3160_v6, %v3161_v12  ;;  %v3203_v8 = vld [vmem:[#allocation2 + $0x1c8] sm:$0xc0]  ;;  %v4796_v6 = vadd.f32 %v10062_v38, %v4776_v33  ;;  %v10171_v20 = vsel %vm2987_vm3, %v3169_v25, %v3170_v45 }
 0x314   : > { %4824 = vst [vmem:[#allocation2 + $0xc8] sm:$0xff] %v4816_v19  ;;  %v4773_v19 = vmul.f32 %v10057_v9, %v9522_v28  ;;  %v10139_v28 = vsel %vm2987_vm3, %v3163_v57, %v3164_v29  ;;  %v3285_v25 = vld [vmem:[#allocation2 + $0x188] sm:$0xfc] }
 0x315   : > { %4825 = vst [vmem:[#allocation2 + $0xe0] sm:$0xff] %v4817_v41  ;;  %v3200_v41 = vld [vmem:[#allocation2 + $0x1a0] sm:$0x3f]  ;;  %v4812_v18 = vmax.f32 %v4796_v6, 0.0 }
 0x316   : > { %v3237_v47 = vrot.slane %v3200_v41, 6  ;;  %v3279_v41 = vld [vmem:[#allocation2 + $0x140] sm:$0xfc] }
 0x317   : > { %4087 = vmatmul.mubr.bf16.gmra.mrb[108].mxu0 %v2922_v50  ;;  %v8750_v50 = vld [vmem:[#allocation10 + $0x448] sm:$0xff]  }
 0x318   : > { %4184 = vmatmul.mubr.bf16.gmra.mrb[108].mxu1 %v3011_v43  ;;  %4224 = vmatprep.mubr.bf16.mxu0 %v3150_v22  ;;  %v3155_v43 = vrot.slane %v3121_v51, 2  ;;  %v3228_v22 = vrot.slane %v3194_v48, 6  ;;  %v3199_v51 = vld [vmem:[#allocation2 + $0x198] sm:$0xc0]  ;;  %v3167_v48 = vrot.slane %v3129_v30, 2 }
 0x319   : > { %4321 = vmatprep.mubr.bf16.mxu1 %v10073_v55 }
 0x31a   : > { %v3156_v44 = vsel %vm2987_vm3, %v3154_v58, %v3155_v43  ;;  %v10107_v32 = vsel %vm2898_vm2, %v3227_v63, %v3228_v22  ;;  %v3128_v58 = vld [vmem:[#allocation2 + $0x158] sm:$0xfc]  ;;  %v4775_v43 = vmul.f32 %v10057_v9, %v9530_v34  ;;  %v3201_v63 = vld [vmem:[#allocation2 + $0x1b0] sm:$0xc0]  ;;  %v10812_v22 = vld [vmem:[#allocation29_spill] sm:$0xff] }
 0x31b   : > { %v3166_v52 = vrot.slane %v3128_v58, 2  ;;  %v4777_v62 = vmul.f32 %v10057_v9, %v10812_v22  ;;  %v4810_v58 = vmax.f32 %v4794_v59, 0.0 }
 0x31c   : > { %v4795_v11 = vadd.f32 %v10062_v38, %v4775_v43  ;;  %v4798_v43 = vadd.f32 %v10062_v38, %v4778_v16 }
 0x31e   : > { %v4814_v35 = vmax.f32 %v4798_v43, 0.0 }
 0x31f   : > { %4225 = vmatmul.mubr.bf16.vlgmr.msra.gmra.mrb[112].mxu0 %v10030_v24  ;;  %v4819_v24 = vpack.c.bf16 %v4807_v1, %v4806_v56  ;;  %v10158_v56 = vsel %vm2987_vm3, %v3166_v52, %v3167_v48  ;;  %v3312_v52 = vrot.slane %v3279_v41, 2  ;;  %v3281_v48 = vld [vmem:[#allocation2 + $0x158] sm:$0xfc] }
 0x320   : > { %8326 = vmatpush3.bf16.msra.mxu0 %v10069_v4  ;;  %4322 = vmatmul.mubr.bf16.vlgmr.msra.gmra.mrb[112].mxu1 %v3223_v27  ;;  %v3197_v4 = vld [vmem:[#allocation2 + $0x180] sm:$0xc0]  ;;  %v3198_v27 = vld [vmem:[#allocation2 + $0x188] sm:$0x3f]  ;;  %v3315_v22 = vrot.slane %v3281_v48, 2 }
 0x321   : > { %4232 = vmatprep.mubr.bf16.mxu0 %v3153_v26  ;;  %8327 = vmatprep.subr.bf16.mxu0 %v8750_v50  ;;  %4827 = vst [vmem:[#allocation2 + $0x110] sm:$0xff] %v4819_v24  ;;  %v3233_v42 = vrot.slane %v3197_v4, 6  ;;  %v4772_v26 = vmul.f32 %v10057_v9, %v9517_v23  ;;  %v3234_v60 = vrot.slane %v3198_v27, 6  ;;  %v10162_v24 = vld [vmem:[#allocation2 + $0x1d0] sm:$0xff]  ;;  %v3242_v27 = vrot.slane %v3203_v8, 6 }
 0x322   : > { %4329 = vmatprep.mubr.bf16.mxu1 %v10089_v53  ;;  %v3204_v4 = vld [vmem:[#allocation2 + $0x1d0] sm:$0x3f]  ;;  %v3321_v8 = vrot.slane %v3285_v25, 2 }
 0x323   : > { %v10133_v23 = vsel %vm2898_vm2, %v3233_v42, %v3234_v60  ;;  %v4792_v34 = vadd.f32 %v10062_v38, %v4772_v26  ;;  %v3277_v42 = vld [vmem:[#allocation2 + $0x128] sm:$0xfc]  ;;  %v4797_v26 = vadd.f32 %v10062_v38, %v4777_v62  ;;  %v3243_v57 = vrot.slane %v3204_v4, 6  ;;  %v8756_v4 = vld [vmem:[#allocation10 + $0x478] sm:$0xff]  }
 0x324   : > { %8328 = vmatpush3.bf16.msra.mxu0 %v8750_v50  ;;  %v3236_v50 = vrot.slane %v3199_v51, 6  ;;  %v8754_v60 = vld [vmem:[#allocation10 + $0x468] sm:$0xff]   ;;  %v3309_v29 = vrot.slane %v3277_v42, 2 }
 0x325   : > { %8329 = vmatprep.subr.bf16.mxu0 %v8751_v7  ;;  %v4808_v21 = vmax.f32 %v4792_v34, 0.0  ;;  %v4813_v59 = vmax.f32 %v4797_v26, 0.0 }
 0x326   : > { %v10152_v39 = vsel %vm2898_vm2, %v3236_v50, %v3237_v47  ;;  %v3280_v50 = vld [vmem:[#allocation2 + $0x148] sm:$0x3] }
 0x327   : > { %4233 = vmatmul.mubr.bf16.gmra.mrb[116].mxu0 %v10035_v17  ;;  %v4793_v17 = vadd.f32 %v10062_v38, %v4773_v19  ;;  %v3278_v19 = vld [vmem:[#allocation2 + $0x130] sm:$0x3]  ;;  %v3313_v33 = vrot.slane %v3280_v50, 2  ;;  %v3292_v50 = vld [vmem:[#allocation2 + $0x1d8] sm:$0x3] }
 0x328   : > { %4330 = vmatmul.mubr.bf16.gmra.mrb[116].mxu1 %v10098_v15  ;;  %4240 = vmatprep.mubr.bf16.mxu0 %v3156_v44  ;;  %v3202_v15 = vld [vmem:[#allocation2 + $0x1b8] sm:$0x3f]  ;;  %v3239_v44 = vrot.slane %v3201_v63, 6  ;;  %v3310_v36 = vrot.slane %v3278_v19, 2  ;;  %v3282_v63 = vld [vmem:[#allocation2 + $0x160] sm:$0x3] }
 0x329   : > { %4337 = vmatprep.mubr.bf16.mxu1 %v10100_v46  ;;  %8330 = vmatpush3.bf16.msra.mxu0 %v8751_v7  ;;  %v3240_v1 = vrot.slane %v3202_v15, 6  ;;  %v10814_v7 = vld [vmem:[#allocation31_spill] sm:$0xff]  ;;  %v4809_v51 = vmax.f32 %v4793_v17, 0.0  ;;  %v4811_v17 = vmax.f32 %v4795_v11, 0.0  ;;  %v3316_v62 = vrot.slane %v3282_v63, 2 }
 0x32a   : > { %8331 = vmatprep.subr.bf16.mxu0 %v8752_v5  ;;  %v4779_v31 = vmul.f32 %v10057_v9, %v10814_v7  ;;  %v10182_v34 = vsel %vm2987_vm3, %v3309_v29, %v3310_v36  ;;  %v3283_v15 = vld [vmem:[#allocation2 + $0x170] sm:$0xfc]  ;;  %v3286_v7 = vld [vmem:[#allocation2 + $0x190] sm:$0x3]  ;;  %v3287_v11 = vld [vmem:[#allocation2 + $0x1a0] sm:$0xfc] }
 0x32b   : > { %v10167_v12 = vsel %vm2898_vm2, %v3239_v44, %v3240_v1  ;;  %v4820_v30 = vpack.c.bf16 %v4809_v51, %v4808_v21  ;;  %v3314_v44 = vsel %vm2987_vm3, %v3312_v52, %v3313_v33  ;;  %v3317_v16 = vsel %vm2987_vm3, %v3315_v22, %v3316_v62  ;;  %v3289_v21 = vld [vmem:[#allocation2 + $0x1b8] sm:$0xfc]  ;;  %v3290_v29 = vld [vmem:[#allocation2 + $0x1c0] sm:$0x3]  ;;  %v3291_v36 = vld [vmem:[#allocation2 + $0x1d0] sm:$0xfc] }
 0x32c   : > { %v4799_v47 = vadd.f32 %v10062_v38, %v4779_v31  ;;  %v3319_v1 = vrot.slane %v3284_v54, 2  ;;  %v4822_v31 = vpack.c.bf16 %v4813_v59, %v4812_v18  ;;  %v3324_v42 = vrot.slane %v3287_v11, 2 }
 0x32d   : > { %8332 = vmatpush3.bf16.msra.mxu0 %v8752_v5  ;;  %v10177_v5 = vsel %vm2898_vm2, %v3242_v27, %v3243_v57  ;;  %4828 = vst [vmem:[#allocation2 + $0x128] sm:$0xff] %v4820_v30  ;;  %v3288_v27 = vld [vmem:[#allocation2 + $0x1a8] sm:$0x3]  ;;  %v3327_v51 = vrot.slane %v3289_v21, 2  ;;  %v3328_v41 = vrot.slane %v3290_v29, 2 }
 0x32e   : > { %8333 = vmatprep.subr.bf16.mxu0 %v8753_v49  ;;  %v4815_v45 = vmax.f32 %v4799_v47, 0.0  ;;  %4830 = vst [vmem:[#allocation2 + $0x158] sm:$0xff] %v4822_v31  ;;  %v3325_v19 = vrot.slane %v3288_v27, 2  ;;  %v3331_v47 = vrot.slane %v3292_v50, 2 }
 0x32f   : > { %4241 = vmatmul.mubr.bf16.gmra.mrb[120].mxu0 %v10041_v40  ;;  %v8755_v40 = vld [vmem:[#allocation10 + $0x470] sm:$0xff]  }
 0x330   : > { %4338 = vmatmul.mubr.bf16.gmra.mrb[120].mxu1 %v10107_v32  ;;  %4248 = vmatprep.mubr.bf16.mxu0 %v10113_v61  ;;  %v3318_v32 = vrot.slane %v3283_v15, 2  ;;  %v4821_v61 = vpack.c.bf16 %v4811_v17, %v4810_v58  ;;  %v4823_v26 = vpack.c.bf16 %v4815_v45, %v4814_v35  ;;  %v3330_v58 = vrot.slane %v3291_v36, 2 }
 0x331   : > { %4345 = vmatprep.mubr.bf16.mxu1 %v10109_v2  ;;  %8334 = vmatpush3.bf16.msra.mxu0 %v8753_v49  ;;  %v3322_v49 = vrot.slane %v3286_v7, 2  ;;  %v3326_v43 = vsel %vm2987_vm3, %v3324_v42, %v3325_v19 }
 0x332   : > { %8335 = vmatprep.subr.bf16.mxu0 %v8754_v60  ;;  %4829 = vst [vmem:[#allocation2 + $0x140] sm:$0xff] %v4821_v61  ;;  %v3320_v6 = vsel %vm2987_vm3, %v3318_v32, %v3319_v1  ;;  %4831 = vst [vmem:[#allocation2 + $0x170] sm:$0xff] %v4823_v26  ;;  %v3332_v30 = vsel %vm2987_vm3, %v3330_v58, %v3331_v47 }
 0x333   : > { %v3323_v57 = vsel %vm2987_vm3, %v3321_v8, %v3322_v49 }
 0x335   : > { %8336 = vmatpush3.bf16.msra.mxu0 %v8754_v60  ;;  %v3329_v60 = vsel %vm2987_vm3, %v3327_v51, %v3328_v41 }
 0x336   : > { %8337 = vmatprep.subr.bf16.mxu0 %v8755_v40 }
 0x337   : > { %4249 = vmatmul.mubr.bf16.gmra.mrb[124].mxu0 %v10048_v14  ;;  %v8757_v14 = vld [vmem:[#allocation12 + $0x40] sm:$0xff]  }
 0x338   : > { %4346 = vmatmul.mubr.bf16.gmra.mrb[124].mxu1 %v10119_v0  ;;  %4256 = vmatprep.mubr.bf16.mxu0 %v10124_v37  ;;  %v8763_v0 = vld [vmem:[#allocation12 + $0x70] sm:$0xff]  }
 0x339   : > { %4353 = vmatprep.mubr.bf16.mxu1 %v10116_v13  ;;  %8338 = vmatpush3.bf16.msra.mxu0 %v8755_v40  ;;  %v8762_v13 = vld [vmem:[#allocation12 + $0x68] sm:$0xff]   ;;  %v8764_v40 = vld [vmem:[#allocation12 + $0x78] sm:$0xff]  }
 0x33a   : > { %8339 = vmatprep.subr.bf16.mxu0 %v8756_v4  ;;  %8357 = vmatprep.subr.bf16.mxu1 %v8757_v14 }
 0x33b   : > { %8358 = vmatpush3.bf16.msra.mxu1 %v8757_v14 }
 0x33d   : > { %8340 = vmatpush3.bf16.msra.mxu0 %v8756_v4 }
 0x33f   : > { %4257 = vmatmul.mubr.bf16.gmra.mrb[128].mxu0 %v10073_v55  ;;  %v8758_v55 = vld [vmem:[#allocation12 + $0x48] sm:$0xff]  }
 0x340   : > { %4354 = vmatmul.mubr.bf16.gmra.mrb[128].mxu1 %v10133_v23  ;;  %4264 = vmatprep.mubr.bf16.mxu0 %v10139_v28 }
 0x341   : > { %4361 = vmatprep.mubr.bf16.mxu1 %v10128_v3  ;;  %8359 = vmatprep.subr.bf16.mxu1 %v8758_v55 }
 0x342   : > { %8360 = vmatpush3.bf16.msra.mxu1 %v8758_v55 }
 0x347   : > { %4265 = vmatmul.mubr.bf16.gmra.mrb[132].mxu0 %v10089_v53  ;;  %v8759_v53 = vld [vmem:[#allocation12 + $0x50] sm:$0xff]  }
 0x348   : > { %4362 = vmatmul.mubr.bf16.gmra.mrb[132].mxu1 %v10152_v39  ;;  %4272 = vmatprep.mubr.bf16.mxu0 %v10158_v56 }
 0x349   : > { %4369 = vmatprep.mubr.bf16.mxu1 %v10144_v10  ;;  %8361 = vmatprep.subr.bf16.mxu1 %v8759_v53 }
 0x34a   : > { %8362 = vmatpush3.bf16.msra.mxu1 %v8759_v53 }
 0x34f   : > { %4273 = vmatmul.mubr.bf16.gmra.mrb[136].mxu0 %v10100_v46  ;;  %v8760_v46 = vld [vmem:[#allocation12 + $0x58] sm:$0xff]  }
 0x350   : > { %4370 = vmatmul.mubr.bf16.gmra.mrb[136].mxu1 %v10167_v12  ;;  %4280 = vmatprep.mubr.bf16.mxu0 %v10171_v20 }
 0x351   : > { %4377 = vmatprep.mubr.bf16.mxu1 %v10162_v24  ;;  %8363 = vmatprep.subr.bf16.mxu1 %v8760_v46 }
 0x352   : > { %8364 = vmatpush3.bf16.msra.mxu1 %v8760_v46 }
 0x357   : > { %4281 = vmatmul.mubr.bf16.gmra.mrb[140].mxu0 %v10109_v2  ;;  %v8761_v2 = vld [vmem:[#allocation12 + $0x60] sm:$0xff]  }
 0x358   : > { %4378 = vmatmul.mubr.bf16.gmra.mrb[140].mxu1 %v10177_v5  ;;  %8341 = vmatprep.mubr.bf16.mxu0 %v10182_v34 }
 0x359   : > { %8365 = vmatprep.subr.bf16.mxu1 %v8761_v2 }
 0x35a   : > { %8366 = vmatpush3.bf16.msra.mxu1 %v8761_v2 }
 0x35b   : > { %8367 = vmatprep.subr.bf16.mxu1 %v8762_v13 }
 0x35e   : > { %8368 = vmatpush3.bf16.msra.mxu1 %v8762_v13 }
 0x35f   : > { %8342 = vmatmul.mubr.bf16.vlgmr.msra.gmra.mrb[144].mxu0 %v3314_v44  ;;  %8369 = vmatprep.subr.bf16.mxu1 %v8763_v0 }
 0x360   : > { %8345 = vmatprep.mubr.bf16.mxu0 %v3317_v16 }
 0x362   : > { %8370 = vmatpush3.bf16.msra.mxu1 %v8763_v0 }
 0x363   : > { %8371 = vmatprep.subr.bf16.mxu1 %v8764_v40 }
 0x366   : > { %8372 = vmatpush3.bf16.msra.mxu1 %v8764_v40 }
 0x367   : > { %8346 = vmatmul.mubr.bf16.gmra.mrb[148].mxu0 %v3320_v6 }
 0x368   : > { %8349 = vmatprep.mubr.bf16.mxu0 %v3323_v57 }
 0x36f   : > { %8350 = vmatmul.mubr.bf16.gmra.mrb[152].mxu0 %v3326_v43 }
 0x370   : > { %8353 = vmatprep.mubr.bf16.mxu0 %v3329_v60 }
 0x377   : > { %8354 = vmatmul.mubr.bf16.gmra.mrb[156].mxu0 %v3332_v30 }
 0x3b2   : > { %v7701_v37 = vpop.f32.mrb[80].mxu0 }
 0x3b3   : > { %v7765_v3 = vpop.f32.mrb[80].mxu1  ;;  %v7702_v23 = vpop.f32.mrb[81].mxu0 }
 0x3b4   : > { %v7703_v28 = vadd.f32 %v7702_v23, %v7701_v37  ;;  %v7766_v10 = vpop.f32.mrb[81].mxu1  ;;  %v7704_v39 = vpop.f32.mrb[82].mxu0 }
 0x3b5   : > { %v7767_v56 = vadd.f32 %v7766_v10, %v7765_v3  ;;  %v7768_v24 = vpop.f32.mrb[82].mxu1  ;;  %v7705_v12 = vpop.f32.mrb[83].mxu0 }
 0x3b6   : > { %v7706_v20 = vadd.f32 %v7705_v12, %v7704_v39  ;;  %v7769_v5 = vpop.f32.mrb[83].mxu1 }
 0x3b7   : > { %v10211_v52 = vadd.f32 %v7767_v56, %v7703_v28  ;;  %v7770_v33 = vadd.f32 %v7769_v5, %v7768_v24 }
 0x3b9   : > { %v10213_v48 = vadd.f32 %v7770_v33, %v7706_v20 }
 0x3ba   : > { %v7707_v63 = vpop.f32.mrb[84].mxu0 }
 0x3bb   : > { %v7771_v34 = vpop.f32.mrb[84].mxu1  ;;  %v7708_v17 = vpop.f32.mrb[85].mxu0 }
 0x3bc   : > { %v7709_v22 = vadd.f32 %v7708_v17, %v7707_v63  ;;  %v7772_v62 = vpop.f32.mrb[85].mxu1  ;;  %v7710_v15 = vpop.f32.mrb[86].mxu0 }
 0x3bd   : > { %v7773_v44 = vadd.f32 %v7772_v62, %v7771_v34  ;;  %v7774_v18 = vpop.f32.mrb[86].mxu1  ;;  %v7711_v59 = vpop.f32.mrb[87].mxu0 }
 0x3be   : > { %v7712_v54 = vadd.f32 %v7711_v59, %v7710_v15  ;;  %v7775_v32 = vpop.f32.mrb[87].mxu1 }
 0x3bf   : > { %v10215_v61 = vadd.f32 %v7773_v44, %v7709_v22  ;;  %v7776_v16 = vadd.f32 %v7775_v32, %v7774_v18 }
 0x3c1   : > { %v10217_v1 = vadd.f32 %v7776_v16, %v7712_v54 }
 0x3c2   : > { %v7713_v35 = vpop.f32.mrb[88].mxu0 }
 0x3c3   : > { %v7777_v25 = vpop.f32.mrb[88].mxu1  ;;  %v7714_v7 = vpop.f32.mrb[89].mxu0 }
 0x3c4   : > { %v7715_v31 = vadd.f32 %v7714_v7, %v7713_v35  ;;  %v7778_v45 = vpop.f32.mrb[89].mxu1  ;;  %v7716_v8 = vpop.f32.mrb[90].mxu0 }
 0x3c5   : > { %v7779_v49 = vadd.f32 %v7778_v45, %v7777_v25  ;;  %v7780_v11 = vpop.f32.mrb[90].mxu1  ;;  %v7717_v4 = vpop.f32.mrb[91].mxu0 }
 0x3c6   : > { %v7718_v6 = vadd.f32 %v7717_v4, %v7716_v8  ;;  %v7781_v27 = vpop.f32.mrb[91].mxu1 }
 0x3c7   : > { %v10219_v42 = vadd.f32 %v7779_v49, %v7715_v31  ;;  %v7782_v21 = vadd.f32 %v7781_v27, %v7780_v11 }
 0x3c9   : > { %v10221_v26 = vadd.f32 %v7782_v21, %v7718_v6 }
 0x3ca   : > { %v7719_v57 = vpop.f32.mrb[92].mxu0 }
 0x3cb   : > { %v7783_v19 = vpop.f32.mrb[92].mxu1  ;;  %v7720_v29 = vpop.f32.mrb[93].mxu0 }
 0x3cc   : > { %v7721_v51 = vadd.f32 %v7720_v29, %v7719_v57  ;;  %v7784_v36 = vpop.f32.mrb[93].mxu1  ;;  %v7722_v41 = vpop.f32.mrb[94].mxu0 }
 0x3cd   : > { %v7785_v50 = vadd.f32 %v7784_v36, %v7783_v19  ;;  %v7786_v58 = vpop.f32.mrb[94].mxu1  ;;  %v7723_v43 = vpop.f32.mrb[95].mxu0 }
 0x3ce   : > { %v7724_v47 = vadd.f32 %v7723_v43, %v7722_v41  ;;  %v7787_v60 = vpop.f32.mrb[95].mxu1 }
 0x3cf   : > { %v10223_v30 = vadd.f32 %v7785_v50, %v7721_v51  ;;  %v7788_v14 = vadd.f32 %v7787_v60, %v7786_v58 }
 0x3d1   : > { %v10225_v55 = vadd.f32 %v7788_v14, %v7724_v47 }
 0x3d2   : > { %v7725_v53 = vpop.f32.mrb[96].mxu0 }
 0x3d3   : > { %v7789_v46 = vpop.f32.mrb[96].mxu1  ;;  %v7726_v2 = vpop.f32.mrb[97].mxu0 }
 0x3d4   : > { %v7727_v13 = vadd.f32 %v7726_v2, %v7725_v53  ;;  %v7790_v0 = vpop.f32.mrb[97].mxu1  ;;  %v7728_v37 = vpop.f32.mrb[98].mxu0 }
 0x3d5   : > { %v7791_v3 = vadd.f32 %v7790_v0, %v7789_v46  ;;  %v7792_v23 = vpop.f32.mrb[98].mxu1  ;;  %v7729_v28 = vpop.f32.mrb[99].mxu0 }
 0x3d6   : > { %v7730_v10 = vadd.f32 %v7729_v28, %v7728_v37  ;;  %v7793_v39 = vpop.f32.mrb[99].mxu1 }
 0x3d7   : > { %v10227_v56 = vadd.f32 %v7791_v3, %v7727_v13  ;;  %v7794_v24 = vadd.f32 %v7793_v39, %v7792_v23 }
 0x3d9   : > { %v10229_v12 = vadd.f32 %v7794_v24, %v7730_v10 }
 0x3da   : > { %v7731_v20 = vpop.f32.mrb[100].mxu0 }
 0x3db   : > { %v7795_v5 = vpop.f32.mrb[100].mxu1  ;;  %v7732_v33 = vpop.f32.mrb[101].mxu0 }
 0x3dc   : > { %v7733_v63 = vadd.f32 %v7732_v33, %v7731_v20  ;;  %v7796_v34 = vpop.f32.mrb[101].mxu1  ;;  %v7734_v17 = vpop.f32.mrb[102].mxu0 }
 0x3dd   : > { %v7797_v22 = vadd.f32 %v7796_v34, %v7795_v5  ;;  %v7798_v62 = vpop.f32.mrb[102].mxu1  ;;  %v7735_v15 = vpop.f32.mrb[103].mxu0 }
 0x3de   : > { %v7736_v40 = vadd.f32 %v7735_v15, %v7734_v17  ;;  %v7799_v44 = vpop.f32.mrb[103].mxu1 }
 0x3df   : > { %v10231_v18 = vadd.f32 %v7797_v22, %v7733_v63  ;;  %v7800_v59 = vadd.f32 %v7799_v44, %v7798_v62 }
 0x3e1   : > { %v10233_v54 = vadd.f32 %v7800_v59, %v7736_v40 }
 0x3e2   : > { %v7737_v32 = vpop.f32.mrb[104].mxu0 }
 0x3e3   : > { %v7801_v16 = vpop.f32.mrb[104].mxu1  ;;  %v7738_v35 = vpop.f32.mrb[105].mxu0 }
 0x3e4   : > { %v7739_v25 = vadd.f32 %v7738_v35, %v7737_v32  ;;  %v7802_v7 = vpop.f32.mrb[105].mxu1  ;;  %v7740_v31 = vpop.f32.mrb[106].mxu0 }
 0x3e5   : > { %v7803_v45 = vadd.f32 %v7802_v7, %v7801_v16  ;;  %v7804_v8 = vpop.f32.mrb[106].mxu1  ;;  %v7741_v49 = vpop.f32.mrb[107].mxu0 }
 0x3e6   : > { %v7742_v11 = vadd.f32 %v7741_v49, %v7740_v31  ;;  %v7805_v4 = vpop.f32.mrb[107].mxu1 }
 0x3e7   : > { %v10235_v6 = vadd.f32 %v7803_v45, %v7739_v25  ;;  %v7806_v27 = vadd.f32 %v7805_v4, %v7804_v8 }
 0x3e9   : > { %v10237_v21 = vadd.f32 %v7806_v27, %v7742_v11 }
 0x3ea   : > { %v7743_v57 = vpop.f32.mrb[108].mxu0 }
 0x3eb   : > { %v7807_v19 = vpop.f32.mrb[108].mxu1  ;;  %v7744_v29 = vpop.f32.mrb[109].mxu0 }
 0x3ec   : > { %v7745_v51 = vadd.f32 %v7744_v29, %v7743_v57  ;;  %v7808_v36 = vpop.f32.mrb[109].mxu1  ;;  %v7746_v41 = vpop.f32.mrb[110].mxu0 }
 0x3ed   : > { %v7809_v50 = vadd.f32 %v7808_v36, %v7807_v19  ;;  %v7810_v58 = vpop.f32.mrb[110].mxu1  ;;  %v7747_v43 = vpop.f32.mrb[111].mxu0 }
 0x3ee   : > { %v7748_v47 = vadd.f32 %v7747_v43, %v7746_v41  ;;  %v7811_v60 = vpop.f32.mrb[111].mxu1 }
 0x3ef   : > { %v10239_v14 = vadd.f32 %v7809_v50, %v7745_v51  ;;  %v7812_v53 = vadd.f32 %v7811_v60, %v7810_v58 }
 0x3f1   : > { %v10241_v46 = vadd.f32 %v7812_v53, %v7748_v47 }
 0x3f2   : > { %v7829_v2 = vpop.f32.mrb[112].mxu0 }
 0x3f3   : > { %v7830_v13 = vpop.f32.mrb[113].mxu0  ;;  %v7893_v0 = vpop.f32.mrb[112].mxu1 }
 0x3f4   : > { %v7831_v37 = vadd.f32 %v7830_v13, %v7829_v2  ;;  %v7832_v3 = vpop.f32.mrb[114].mxu0  ;;  %v7894_v23 = vpop.f32.mrb[113].mxu1 }
 0x3f5   : > { %v7833_v28 = vpop.f32.mrb[115].mxu0  ;;  %v7895_v10 = vadd.f32 %v7894_v23, %v7893_v0  ;;  %v7896_v39 = vpop.f32.mrb[114].mxu1 }
 0x3f6   : > { %v4227_v24 = vadd.f32 %v7831_v37, %v10211_v52  ;;  %v7834_v20 = vadd.f32 %v7833_v28, %v7832_v3  ;;  %v7897_v5 = vpop.f32.mrb[115].mxu1 }
 0x3f7   : > { %v7898_v33 = vadd.f32 %v7897_v5, %v7896_v39 }
 0x3f8   : > { %v4230_v63 = vadd.f32 %v7834_v20, %v10213_v48  ;;  %v10245_v34 = vadd.f32 %v7895_v10, %v4227_v24 }
 0x3fa   : > { %v7835_v17 = vpop.f32.mrb[116].mxu0  ;;  %v10247_v22 = vadd.f32 %v7898_v33, %v4230_v63 }
 0x3fb   : > { %v7836_v62 = vpop.f32.mrb[117].mxu0  ;;  %v7899_v15 = vpop.f32.mrb[116].mxu1 }
 0x3fc   : > { %v7837_v40 = vadd.f32 %v7836_v62, %v7835_v17  ;;  %v7838_v44 = vpop.f32.mrb[118].mxu0  ;;  %v7900_v59 = vpop.f32.mrb[117].mxu1 }
 0x3fd   : > { %v7839_v32 = vpop.f32.mrb[119].mxu0  ;;  %v7901_v16 = vadd.f32 %v7900_v59, %v7899_v15  ;;  %v7902_v35 = vpop.f32.mrb[118].mxu1 }
 0x3fe   : > { %v4235_v52 = vadd.f32 %v7837_v40, %v10215_v61  ;;  %v7840_v25 = vadd.f32 %v7839_v32, %v7838_v44  ;;  %v7903_v7 = vpop.f32.mrb[119].mxu1 }
 0x3ff   : > { %v7904_v31 = vadd.f32 %v7903_v7, %v7902_v35 }
 0x400   : > { %v4238_v48 = vadd.f32 %v7840_v25, %v10217_v1  ;;  %v10251_v45 = vadd.f32 %v7901_v16, %v4235_v52 }
 0x402   : > { %v7841_v8 = vpop.f32.mrb[120].mxu0  ;;  %v10253_v49 = vadd.f32 %v7904_v31, %v4238_v48 }
 0x403   : > { %v7842_v11 = vpop.f32.mrb[121].mxu0  ;;  %v7905_v4 = vpop.f32.mrb[120].mxu1 }
 0x404   : > { %v7843_v27 = vadd.f32 %v7842_v11, %v7841_v8  ;;  %v7844_v57 = vpop.f32.mrb[122].mxu0  ;;  %v7906_v19 = vpop.f32.mrb[121].mxu1 }
 0x405   : > { %v7845_v29 = vpop.f32.mrb[123].mxu0  ;;  %v7907_v51 = vadd.f32 %v7906_v19, %v7905_v4  ;;  %v7908_v36 = vpop.f32.mrb[122].mxu1 }
 0x406   : > { %v4243_v61 = vadd.f32 %v7843_v27, %v10219_v42  ;;  %v7846_v41 = vadd.f32 %v7845_v29, %v7844_v57  ;;  %v7909_v50 = vpop.f32.mrb[123].mxu1 }
 0x407   : > { %v7910_v58 = vadd.f32 %v7909_v50, %v7908_v36 }
 0x408   : > { %v4246_v1 = vadd.f32 %v7846_v41, %v10221_v26  ;;  %v10257_v43 = vadd.f32 %v7907_v51, %v4243_v61 }
 0x40a   : > { %v7847_v47 = vpop.f32.mrb[124].mxu0  ;;  %v10259_v60 = vadd.f32 %v7910_v58, %v4246_v1 }
 0x40b   : > { %v7848_v53 = vpop.f32.mrb[125].mxu0  ;;  %v7911_v2 = vpop.f32.mrb[124].mxu1 }
 0x40c   : > { %v7849_v13 = vadd.f32 %v7848_v53, %v7847_v47  ;;  %v7850_v0 = vpop.f32.mrb[126].mxu0  ;;  %v7912_v37 = vpop.f32.mrb[125].mxu1 }
 0x40d   : > { %v7851_v3 = vpop.f32.mrb[127].mxu0  ;;  %v7913_v23 = vadd.f32 %v7912_v37, %v7911_v2  ;;  %v7914_v28 = vpop.f32.mrb[126].mxu1 }
 0x40e   : > { %v4251_v42 = vadd.f32 %v7849_v13, %v10223_v30  ;;  %v7852_v10 = vadd.f32 %v7851_v3, %v7850_v0  ;;  %v7915_v39 = vpop.f32.mrb[127].mxu1 }
 0x40f   : > { %v7916_v24 = vadd.f32 %v7915_v39, %v7914_v28 }
 0x410   : > { %v4254_v26 = vadd.f32 %v7852_v10, %v10225_v55  ;;  %v10263_v20 = vadd.f32 %v7913_v23, %v4251_v42 }
 0x412   : > { %v7853_v5 = vpop.f32.mrb[128].mxu0  ;;  %v10265_v33 = vadd.f32 %v7916_v24, %v4254_v26 }
 0x413   : > { %v7854_v63 = vpop.f32.mrb[129].mxu0  ;;  %v7917_v17 = vpop.f32.mrb[128].mxu1 }
 0x414   : > { %v7855_v62 = vadd.f32 %v7854_v63, %v7853_v5  ;;  %v7856_v15 = vpop.f32.mrb[130].mxu0  ;;  %v7918_v40 = vpop.f32.mrb[129].mxu1 }
 0x415   : > { %v7857_v44 = vpop.f32.mrb[131].mxu0  ;;  %v7919_v59 = vadd.f32 %v7918_v40, %v7917_v17  ;;  %v7920_v32 = vpop.f32.mrb[130].mxu1 }
 0x416   : > { %v4259_v30 = vadd.f32 %v7855_v62, %v10227_v56  ;;  %v7858_v16 = vadd.f32 %v7857_v44, %v7856_v15  ;;  %v7921_v35 = vpop.f32.mrb[131].mxu1 }
 0x417   : > { %v7922_v52 = vadd.f32 %v7921_v35, %v7920_v32 }
 0x418   : > { %v4262_v55 = vadd.f32 %v7858_v16, %v10229_v12  ;;  %v10269_v25 = vadd.f32 %v7919_v59, %v4259_v30 }
 0x41a   : > { %v7859_v7 = vpop.f32.mrb[132].mxu0  ;;  %v10271_v31 = vadd.f32 %v7922_v52, %v4262_v55  ;;  %v10292_v52 = vld [vmem:[%s10815_s5 + $0x1] ss:$0 sm:$0xff] }
 0x41b   : > { %v7860_v48 = vpop.f32.mrb[133].mxu0  ;;  %v7923_v8 = vpop.f32.mrb[132].mxu1 }
 0x41c   : > { %v7861_v11 = vadd.f32 %v7860_v48, %v7859_v7  ;;  %v7862_v4 = vpop.f32.mrb[134].mxu0  ;;  %v7924_v27 = vpop.f32.mrb[133].mxu1 }
 0x41d   : > { %v7863_v57 = vpop.f32.mrb[135].mxu0  ;;  %v7925_v19 = vadd.f32 %v7924_v27, %v7923_v8  ;;  %v7926_v29 = vpop.f32.mrb[134].mxu1 }
 0x41e   : > { %v4267_v56 = vadd.f32 %v7861_v11, %v10231_v18  ;;  %v7864_v51 = vadd.f32 %v7863_v57, %v7862_v4  ;;  %v7927_v36 = vpop.f32.mrb[135].mxu1 }
 0x41f   : > { %v7928_v61 = vadd.f32 %v7927_v36, %v7926_v29 }
 0x420   : > { %v4270_v12 = vadd.f32 %v7864_v51, %v10233_v54  ;;  %v10275_v41 = vadd.f32 %v7925_v19, %v4267_v56 }
 0x422   : > { %v7865_v50 = vpop.f32.mrb[136].mxu0  ;;  %v10277_v58 = vadd.f32 %v7928_v61, %v4270_v12 }
 0x423   : > { %v7866_v1 = vpop.f32.mrb[137].mxu0  ;;  %v7929_v47 = vpop.f32.mrb[136].mxu1 }
 0x424   : > { %v7867_v53 = vadd.f32 %v7866_v1, %v7865_v50  ;;  %v7868_v2 = vpop.f32.mrb[138].mxu0  ;;  %v7930_v13 = vpop.f32.mrb[137].mxu1 }
 0x425   : > { %v7869_v0 = vpop.f32.mrb[139].mxu0  ;;  %v7931_v37 = vadd.f32 %v7930_v13, %v7929_v47  ;;  %v7932_v3 = vpop.f32.mrb[138].mxu1 }
 0x426   : > { %v4275_v18 = vadd.f32 %v7867_v53, %v10235_v6  ;;  %v7870_v23 = vadd.f32 %v7869_v0, %v7868_v2  ;;  %v7933_v28 = vpop.f32.mrb[139].mxu1 }
 0x427   : > { %v7934_v42 = vadd.f32 %v7933_v28, %v7932_v3 }
 0x428   : > { %v4278_v54 = vadd.f32 %v7870_v23, %v10237_v21  ;;  %v10281_v10 = vadd.f32 %v7931_v37, %v4275_v18 }
 0x42a   : > { %v7871_v39 = vpop.f32.mrb[140].mxu0  ;;  %v10283_v24 = vadd.f32 %v7934_v42, %v4278_v54 }
 0x42b   : > { %v7872_v26 = vpop.f32.mrb[141].mxu0  ;;  %v7935_v5 = vpop.f32.mrb[140].mxu1 }
 0x42c   : > { %v7873_v63 = vadd.f32 %v7872_v26, %v7871_v39  ;;  %v7874_v17 = vpop.f32.mrb[142].mxu0  ;;  %v7936_v62 = vpop.f32.mrb[141].mxu1 }
 0x42d   : > { %v7875_v15 = vpop.f32.mrb[143].mxu0  ;;  %v7937_v40 = vadd.f32 %v7936_v62, %v7935_v5  ;;  %v7938_v44 = vpop.f32.mrb[142].mxu1 }
 0x42e   : > { %v4283_v6 = vadd.f32 %v7873_v63, %v10239_v14  ;;  %v7876_v59 = vadd.f32 %v7875_v15, %v7874_v17  ;;  %v7939_v32 = vpop.f32.mrb[143].mxu1  ;;  %v10300_v14 = vld [vmem:[%s10816_s23 + $0x1] ss:$0 sm:$0xff] }
 0x42f   : > { %v7940_v30 = vadd.f32 %v7939_v32, %v7938_v44 }
 0x430   : > { %v4286_v21 = vadd.f32 %v7876_v59, %v10241_v46  ;;  %v10287_v16 = vadd.f32 %v7937_v40, %v4283_v6 }
 0x432   : > { %v8343_v35 = vpop.f32.mrb[144].mxu0  ;;  %v10294_v55 = vadd.f32 %v7940_v30, %v4286_v21 }
 0x433   : > { %v4429_v7 = vadd.f32 %v8343_v35, %v10251_v45  ;;  %v4420_v48 = vpop.f32.mrb[145].mxu0 }
 0x434   : > { %v4421_v46 = vadd.f32 %v4420_v48, %v10245_v34  ;;  %v8344_v8 = vpop.f32.mrb[146].mxu0 }
 0x435   : > { %v4490_v11 = vmul.f32 %v10292_v52, %v4429_v7  ;;  %v4432_v4 = vadd.f32 %v8344_v8, %v10253_v49  ;;  %v4423_v27 = vpop.f32.mrb[147].mxu0 }
 0x436   : > { %v4488_v57 = vmul.f32 %v10292_v52, %v4421_v46  ;;  %v4424_v19 = vadd.f32 %v4423_v27, %v10247_v22 }
 0x437   : > { %v4511_v45 = vadd.f32 %v10300_v14, %v4490_v11  ;;  %v4491_v29 = vmul.f32 %v10292_v52, %v4432_v4 }
 0x438   : > { %v4509_v56 = vadd.f32 %v10300_v14, %v4488_v57  ;;  %v4489_v51 = vmul.f32 %v10292_v52, %v4424_v19 }
 0x439   : > { %v4512_v34 = vadd.f32 %v10300_v14, %v4491_v29  ;;  %v4527_v12 = vmax.f32 %v4511_v45, 0.0 }
 0x43a   : > { %v4510_v36 = vadd.f32 %v10300_v14, %v4489_v51  ;;  %v8347_v61 = vpop.f32.mrb[148].mxu0  ;;  %v4525_v47 = vmax.f32 %v4509_v56, 0.0 }
 0x43b   : > { %v4528_v49 = vmax.f32 %v4512_v34, 0.0  ;;  %v4445_v50 = vadd.f32 %v8347_v61, %v10263_v20  ;;  %v4436_v1 = vpop.f32.mrb[149].mxu0 }
 0x43c   : > { %v4526_v22 = vmax.f32 %v4510_v36, 0.0  ;;  %v4437_v53 = vadd.f32 %v4436_v1, %v10257_v43  ;;  %v8348_v2 = vpop.f32.mrb[150].mxu0 }
 0x43d   : > { %v4542_v13 = vpack.c.bf16 %v4528_v49, %v4527_v12  ;;  %v4494_v0 = vmul.f32 %v10292_v52, %v4445_v50  ;;  %v4448_v37 = vadd.f32 %v8348_v2, %v10265_v33  ;;  %v4439_v3 = vpop.f32.mrb[151].mxu0 }
 0x43e   : > { %v4492_v18 = vmul.f32 %v10292_v52, %v4437_v53  ;;  %v4440_v23 = vadd.f32 %v4439_v3, %v10259_v60  ;;  %v4541_v28 = vpack.c.bf16 %v4526_v22, %v4525_v47  ;;  %v4839_v3 = vld [vmem:[#allocation5 + $0x20] sm:$0xff] (!%p10817_p5) }
 0x43f   : > { %v4515_v42 = vadd.f32 %v10300_v14, %v4494_v0  ;;  %v4495_v20 = vmul.f32 %v10292_v52, %v4448_v37 }
 0x440   : > { %v4513_v54 = vadd.f32 %v10300_v14, %v4492_v18  ;;  %v4493_v43 = vmul.f32 %v10292_v52, %v4440_v23  ;;  %8373 = vmatprep.mubr.bf16.mxu1 %v4541_v28  ;;  %v4840_v18 = vld [vmem:[#allocation5 + $0x28] sm:$0xff] (!%p10817_p5)  ;;  %v4841_v28 = vld [vmem:[#allocation5 + $0x30] sm:$0xff] (!%p10817_p5) }
 0x441   : > { %v4516_v39 = vadd.f32 %v10300_v14, %v4495_v20  ;;  %8374 = vmatmul.mubr.bf16.vlgmr.msra.gmra.mrb[64].mxu1 %v4542_v13  ;;  %v4531_v5 = vmax.f32 %v4515_v42, 0.0  ;;  %v4856_v23 = vmul.f32 (!%p10817_p5), %v10057_v9, %v4840_v18  ;;  %v4842_v42 = vld [vmem:[#allocation5 + $0x38] sm:$0xff] (!%p10817_p5) }
 0x442   : > { %v4514_v33 = vadd.f32 %v10300_v14, %v4493_v43  ;;  %v8351_v26 = vpop.f32.mrb[152].mxu0  ;;  %v4529_v62 = vmax.f32 %v4513_v54, 0.0  ;;  %v4858_v43 = vmul.f32 (!%p10817_p5), %v10057_v9, %v4842_v42 }
 0x443   : > { %v4532_v63 = vmax.f32 %v4516_v39, 0.0  ;;  %v4461_v60 = vadd.f32 %v8351_v26, %v10275_v41  ;;  %v4452_v17 = vpop.f32.mrb[153].mxu0  ;;  %v4872_v54 = vadd.f32 (!%p10817_p5), %v10062_v38, %v4856_v23  ;;  %v4843_v39 = vld [vmem:[#allocation5 + $0x40] sm:$0xff] (!%p10817_p5) }
 0x444   : > { %v4530_v15 = vmax.f32 %v4514_v33, 0.0  ;;  %v4453_v40 = vadd.f32 %v4452_v17, %v10269_v25  ;;  %v8352_v44 = vpop.f32.mrb[154].mxu0  ;;  %v4844_v33 = vld [vmem:[#allocation5 + $0x48] sm:$0xff] (!%p10817_p5)  ;;  %v4874_v17 = vadd.f32 (!%p10817_p5), %v10062_v38, %v4858_v43 }
 0x445   : > { %v4498_v6 = vmul.f32 %v10292_v52, %v4461_v60  ;;  %v4464_v59 = vadd.f32 %v8352_v44, %v10277_v58  ;;  %v4455_v32 = vpop.f32.mrb[155].mxu0  ;;  %v4544_v30 = vpack.c.bf16 %v4532_v63, %v4531_v5  ;;  %v4845_v5 = vld [vmem:[#allocation5 + $0x50] sm:$0xff] (!%p10817_p5)  ;;  %v4888_v60 = vmax.f32 (!%p10817_p5), %v4872_v54, 0.0 }
 0x446   : > { %v4496_v21 = vmul.f32 %v10292_v52, %v4453_v40  ;;  %v4456_v35 = vadd.f32 %v4455_v32, %v10271_v31  ;;  %v4543_v7 = vpack.c.bf16 %v4530_v15, %v4529_v62  ;;  %v4846_v62 = vld [vmem:[#allocation5 + $0x58] sm:$0xff] (!%p10817_p5)  ;;  %v4847_v15 = vld [vmem:[#allocation5 + $0x60] sm:$0xff] (!%p10817_p5)  ;;  %v4859_v44 = vmul.f32 (!%p10817_p5), %v10057_v9, %v4843_v39  ;;  %v4849_v32 = vld [vmem:[#allocation5 + $0x70] sm:$0xff] (!%p10817_p5) }
 0x447   : > { %v4519_v48 = vadd.f32 %v10300_v14, %v4498_v6  ;;  %v4499_v41 = vmul.f32 %v10292_v52, %v4464_v59  ;;  %v4860_v6 = vmul.f32 (!%p10817_p5), %v10057_v9, %v4844_v33  ;;  %v4848_v59 = vld [vmem:[#allocation5 + $0x68] sm:$0xff] (!%p10817_p5) }
 0x448   : > { %v4517_v46 = vadd.f32 %v10300_v14, %v4496_v21  ;;  %v4497_v25 = vmul.f32 %v10292_v52, %v4456_v35  ;;  %8377 = vmatprep.mubr.bf16.mxu1 %v4543_v7  ;;  %v4890_v21 = vmax.f32 (!%p10817_p5), %v4874_v17, 0.0  ;;  %v4861_v35 = vmul.f32 (!%p10817_p5), %v10057_v9, %v4845_v5 }
 0x449   : > { %v4520_v8 = vadd.f32 %v10300_v14, %v4499_v41  ;;  %8378 = vmatmul.mubr.bf16.gmra.mrb[68].mxu1 %v4544_v30  ;;  %v4535_v4 = vmax.f32 %v4519_v48, 0.0  ;;  %v4875_v7 = vadd.f32 (!%p10817_p5), %v10062_v38, %v4859_v44  ;;  %v4876_v48 = vadd.f32 (!%p10817_p5), %v10062_v38, %v4860_v6 }
 0x44a   : > { %v4518_v58 = vadd.f32 %v10300_v14, %v4497_v25  ;;  %v8355_v11 = vpop.f32.mrb[156].mxu0  ;;  %v4533_v19 = vmax.f32 %v4517_v46, 0.0  ;;  %v4862_v41 = vmul.f32 (!%p10817_p5), %v10057_v9, %v4846_v62  ;;  %v4863_v46 = vmul.f32 (!%p10817_p5), %v10057_v9, %v4847_v15  ;;  %v4850_v25 = vld [vmem:[#allocation5 + $0x78] sm:$0xff] (!%p10817_p5) }
 0x44b   : > { %v4536_v27 = vmax.f32 %v4520_v8, 0.0  ;;  %v4477_v31 = vadd.f32 %v8355_v11, %v10287_v16  ;;  %v4468_v57 = vpop.f32.mrb[157].mxu0  ;;  %v4864_v11 = vmul.f32 (!%p10817_p5), %v10057_v9, %v4848_v59 }
 0x44c   : > { %v4534_v45 = vmax.f32 %v4518_v58, 0.0  ;;  %v4469_v29 = vadd.f32 %v4468_v57, %v10281_v10  ;;  %v8356_v56 = vpop.f32.mrb[158].mxu0  ;;  %v4877_v58 = vadd.f32 (!%p10817_p5), %v10062_v38, %v4861_v35  ;;  %v4878_v57 = vadd.f32 (!%p10817_p5), %v10062_v38, %v4862_v41 }
 0x44d   : > { %v4502_v51 = vmul.f32 %v10292_v52, %v4477_v31  ;;  %v4480_v34 = vadd.f32 %v8356_v56, %v10294_v55  ;;  %v4471_v36 = vpop.f32.mrb[159].mxu0  ;;  %v4546_v61 = vpack.c.bf16 %v4536_v27, %v4535_v4  ;;  %v4865_v4 = vmul.f32 (!%p10817_p5), %v10057_v9, %v4849_v32 }
 0x44e   : > { %v4500_v12 = vmul.f32 %v10292_v52, %v4469_v29  ;;  %v4472_v49 = vadd.f32 %v4471_v36, %v10283_v24  ;;  %v4545_v50 = vpack.c.bf16 %v4534_v45, %v4533_v19  ;;  %v4891_v27 = vmax.f32 (!%p10817_p5), %v4875_v7, 0.0 }
 0x44f   : > { %v4523_v1 = vadd.f32 %v10300_v14, %v4502_v51  ;;  %v4503_v16 = vmul.f32 %v10292_v52, %v4480_v34  ;;  %v4892_v31 = vmax.f32 (!%p10817_p5), %v4876_v48, 0.0  ;;  %v4879_v19 = vadd.f32 (!%p10817_p5), %v10062_v38, %v4863_v46 }
 0x450   : > { %v4521_v47 = vadd.f32 %v10300_v14, %v4500_v12  ;;  %v4501_v10 = vmul.f32 %v10292_v52, %v4472_v49  ;;  %8381 = vmatprep.mubr.bf16.mxu1 %v4545_v50  ;;  %v4855_v52 = vmul.f32 (!%p10817_p5), %v10057_v9, %v4839_v3  ;;  %v4893_v45 = vmax.f32 (!%p10817_p5), %v4877_v58, 0.0 }
 0x451   : > { %v4524_v22 = vadd.f32 %v10300_v14, %v4503_v16  ;;  %8382 = vmatmul.mubr.bf16.gmra.mrb[72].mxu1 %v4546_v61  ;;  %v4539_v53 = vmax.f32 %v4523_v1, 0.0  ;;  %v4880_v29 = vadd.f32 (!%p10817_p5), %v10062_v38, %v4864_v11  ;;  %v4866_v56 = vmul.f32 (!%p10817_p5), %v10057_v9, %v4850_v25 }
 0x452   : > { %v4522_v55 = vadd.f32 %v10300_v14, %v4501_v10  ;;  %v4537_v13 = vmax.f32 %v4521_v47, 0.0  ;;  %v4857_v14 = vmul.f32 (!%p10817_p5), %v10057_v9, %v4841_v28  ;;  %v4871_v20 = vadd.f32 (!%p10817_p5), %v10062_v38, %v4855_v52 }
 0x453   : > { %v4540_v2 = vmax.f32 %v4524_v22, 0.0  ;;  %4834 = sbr.rel (%p10817_p5) target bundleno = 1116 (0x45c), region = 108  ;;  %v4881_v51 = vadd.f32 (!%p10817_p5), %v10062_v38, %v4865_v4  ;;  %v4903_v34 = vpack.c.bf16 (!%p10817_p5), %v4892_v31, %v4891_v27  ;;  %v4894_v36 = vmax.f32 (!%p10817_p5), %v4878_v57, 0.0 }
 0x454   : > { %v4538_v0 = vmax.f32 %v4522_v55, 0.0  ;;  %v4873_v26 = vadd.f32 (!%p10817_p5), %v10062_v38, %v4857_v14  ;;  %v4887_v63 = vmax.f32 (!%p10817_p5), %v4871_v20, 0.0  ;;  %v4895_v61 = vmax.f32 (!%p10817_p5), %v4879_v19, 0.0 }
 0x455   : > { %v4548_v24 = vpack.c.bf16 %v4540_v2, %v4539_v53  ;;  %v4896_v12 = vmax.f32 (!%p10817_p5), %v4880_v29, 0.0  ;;  %v4882_v49 = vadd.f32 (!%p10817_p5), %v10062_v38, %v4866_v56  ;;  %v4897_v50 = vmax.f32 (!%p10817_p5), %v4881_v51, 0.0  ;;  %4911 = vst [vmem:[#allocation2 + $0x68] sm:$0xff] (!%p10817_p5), %v4903_v34 }
 0x456   : > { %v4547_v37 = vpack.c.bf16 %v4538_v0, %v4537_v13  ;;  %v4889_v40 = vmax.f32 (!%p10817_p5), %v4873_v26, 0.0  ;;  %v4901_v30 = vpack.c.bf16 (!%p10817_p5), %v4888_v60, %v4887_v63  ;;  %v4904_v1 = vpack.c.bf16 (!%p10817_p5), %v4894_v36, %v4893_v45 }
 0x457   : > { %v4905_v16 = vpack.c.bf16 (!%p10817_p5), %v4896_v12, %v4895_v61  ;;  %v4898_v47 = vmax.f32 (!%p10817_p5), %v4882_v49, 0.0 }
 0x458   : > { %8385 = vmatprep.mubr.bf16.mxu1 %v4547_v37  ;;  %4909 = vst [vmem:[#allocation2 + $0x38] sm:$0xff] (!%p10817_p5), %v4901_v30  ;;  %v4902_v8 = vpack.c.bf16 (!%p10817_p5), %v4890_v21, %v4889_v40  ;;  %4912 = vst [vmem:[#allocation2 + $0x80] sm:$0xff] (!%p10817_p5), %v4904_v1 }
 0x459   : > { %8386 = vmatmul.mubr.bf16.gmra.mrb[76].mxu1 %v4548_v24  ;;  %4913 = vst [vmem:[#allocation2 + $0x98] sm:$0xff] (!%p10817_p5), %v4905_v16  ;;  %v4906_v10 = vpack.c.bf16 (!%p10817_p5), %v4898_v47, %v4897_v50 }
 0x45a   : > { %4910 = vst [vmem:[#allocation2 + $0x50] sm:$0xff] %v4902_v8 }
 0x45b   : > { %4914 = vst [vmem:[#allocation2 + $0xb0] sm:$0xff] %v4906_v10 }
 0x45c PF: > { %p10818_p3 = scmp.ge.s32.totalorder %s9081_s12, 1 }
 0x45d   : > { %v4919_v22 = vld [vmem:[#allocation5 + $0x80] sm:$0xff] (!%p10818_p3)  ;;  %v4920_v55 = vld [vmem:[#allocation5 + $0x88] sm:$0xff] (!%p10818_p3)  ;;  %v4921_v53 = vld [vmem:[#allocation5 + $0x90] sm:$0xff] (!%p10818_p3) }
 0x45e   : > { %4917 = sbr.rel (%p10818_p3) target bundleno = 1135 (0x46f), region = 112  ;;  %v4935_v2 = vmul.f32 (!%p10818_p3), %v10057_v9, %v4919_v22  ;;  %v4936_v13 = vmul.f32 (!%p10818_p3), %v10057_v9, %v4920_v55  ;;  %v4922_v0 = vld [vmem:[#allocation5 + $0x98] sm:$0xff] (!%p10818_p3)  ;;  %v4937_v24 = vmul.f32 (!%p10818_p3), %v10057_v9, %v4921_v53  ;;  %v4923_v37 = vld [vmem:[#allocation5 + $0xa0] sm:$0xff] (!%p10818_p3)  ;;  %v4924_v3 = vld [vmem:[#allocation5 + $0xa8] sm:$0xff] (!%p10818_p3) }
 0x45f   : > { %v4938_v18 = vmul.f32 (!%p10818_p3), %v10057_v9, %v4922_v0  ;;  %v4939_v52 = vmul.f32 (!%p10818_p3), %v10057_v9, %v4923_v37  ;;  %v4940_v23 = vmul.f32 (!%p10818_p3), %v10057_v9, %v4924_v3  ;;  %v4925_v28 = vld [vmem:[#allocation5 + $0xb0] sm:$0xff] (!%p10818_p3)  ;;  %v4926_v42 = vld [vmem:[#allocation5 + $0xb8] sm:$0xff] (!%p10818_p3)  ;;  %v4927_v63 = vld [vmem:[#allocation5 + $0xc0] sm:$0xff] (!%p10818_p3) }
 0x460   : > { %v4951_v14 = vadd.f32 (!%p10818_p3), %v10062_v38, %v4935_v2  ;;  %v4952_v20 = vadd.f32 (!%p10818_p3), %v10062_v38, %v4936_v13  ;;  %v4953_v54 = vadd.f32 (!%p10818_p3), %v10062_v38, %v4937_v24  ;;  %v4941_v43 = vmul.f32 (!%p10818_p3), %v10057_v9, %v4925_v28  ;;  %v4928_v60 = vld [vmem:[#allocation5 + $0xc8] sm:$0xff] (!%p10818_p3)  ;;  %v4929_v44 = vld [vmem:[#allocation5 + $0xd0] sm:$0xff] (!%p10818_p3)  ;;  %v4930_v21 = vld [vmem:[#allocation5 + $0xd8] sm:$0xff] (!%p10818_p3) }
 0x461   : > { %v4954_v39 = vadd.f32 (!%p10818_p3), %v10062_v38, %v4938_v18  ;;  %v4955_v33 = vadd.f32 (!%p10818_p3), %v10062_v38, %v4939_v52  ;;  %v4956_v26 = vadd.f32 (!%p10818_p3), %v10062_v38, %v4940_v23  ;;  %v4942_v5 = vmul.f32 (!%p10818_p3), %v10057_v9, %v4926_v42 }
 0x462   : > { %v4967_v17 = vmax.f32 (!%p10818_p3), %v4951_v14, 0.0  ;;  %v4968_v62 = vmax.f32 (!%p10818_p3), %v4952_v20, 0.0  ;;  %v4969_v15 = vmax.f32 (!%p10818_p3), %v4953_v54, 0.0  ;;  %v4957_v40 = vadd.f32 (!%p10818_p3), %v10062_v38, %v4941_v43 }
 0x463   : > { %v4970_v6 = vmax.f32 (!%p10818_p3), %v4954_v39, 0.0  ;;  %v4971_v59 = vmax.f32 (!%p10818_p3), %v4955_v33, 0.0  ;;  %v4972_v32 = vmax.f32 (!%p10818_p3), %v4956_v26, 0.0  ;;  %v4958_v30 = vadd.f32 (!%p10818_p3), %v10062_v38, %v4942_v5 }
 0x464   : > { %v4983_v35 = vpack.c.bf16 (!%p10818_p3), %v4968_v62, %v4967_v17  ;;  %v4973_v7 = vmax.f32 (!%p10818_p3), %v4957_v40, 0.0  ;;  %v4943_v48 = vmul.f32 (!%p10818_p3), %v10057_v9, %v4927_v63  ;;  %v4944_v41 = vmul.f32 (!%p10818_p3), %v10057_v9, %v4928_v60 }
 0x465   : > { %v4984_v46 = vpack.c.bf16 %v4970_v6, %v4969_v15  ;;  %v4985_v25 = vpack.c.bf16 %v4972_v32, %v4971_v59  ;;  %v4974_v8 = vmax.f32 %v4958_v30, 0.0  ;;  %v4945_v58 = vmul.f32 %v10057_v9, %v4929_v44 }
 0x466   : > { %4991 = vst [vmem:[#allocation2 + $0x188] sm:$0xff] %v4983_v35  ;;  %v4959_v11 = vadd.f32 %v10062_v38, %v4943_v48  ;;  %v4960_v4 = vadd.f32 %v10062_v38, %v4944_v41  ;;  %v4946_v27 = vmul.f32 %v10057_v9, %v4930_v21 }
 0x467   : > { %4992 = vst [vmem:[#allocation2 + $0x1a0] sm:$0xff] %v4984_v46  ;;  %4993 = vst [vmem:[#allocation2 + $0x1b8] sm:$0xff] %v4985_v25  ;;  %v4986_v31 = vpack.c.bf16 %v4974_v8, %v4973_v7  ;;  %v4961_v57 = vadd.f32 %v10062_v38, %v4945_v58 }
 0x468   : > { %v4975_v19 = vmax.f32 %v4959_v11, 0.0  ;;  %v4976_v45 = vmax.f32 %v4960_v4, 0.0  ;;  %v4962_v29 = vadd.f32 %v10062_v38, %v4946_v27 }
 0x469   : > { %4994 = vst [vmem:[#allocation2 + $0x1d0] sm:$0xff] %v4986_v31  ;;  %v4977_v56 = vmax.f32 %v4961_v57, 0.0 }
 0x46a   : > { %v4987_v51 = vpack.c.bf16 %v4976_v45, %v4975_v19  ;;  %v4978_v34 = vmax.f32 %v4962_v29, 0.0 }
 0x46c   : > { %4995 = vst [vmem:[#allocation2 + $0x1e8] sm:$0xff] %v4987_v51  ;;  %v4988_v36 = vpack.c.bf16 %v4978_v34, %v4977_v56 }
 0x46e   : > { %4996 = vst [vmem:[#allocation2 + $0x200] sm:$0xff] %v4988_v36 }
 0x46f PF: > { %v8765_v61 = vld [vmem:[#allocation10 + $0x4c0] sm:$0xff]   ;;  %v8769_v50 = vld [vmem:[#allocation10 + $0x4c8] sm:$0xff]   ;;  %v8773_v47 = vld [vmem:[#allocation10 + $0x4d0] sm:$0xff]   ;;  %vm5032_vm4 = vcmask 1042432   ;;  %vm5121_vm5 = vcmask 1044480   ;;  %s10819_s26 = sld [smem:[#allocation34_spill]] }
 0x470   : > { %v8766_v12 = vld [vmem:[#allocation10 + $0x540] sm:$0xff]   ;;  %7973 = vmatprep.subr.bf16.mxu0 %v8765_v61  ;;  %v8770_v1 = vld [vmem:[#allocation10 + $0x548] sm:$0xff]   ;;  %v8774_v10 = vld [vmem:[#allocation10 + $0x550] sm:$0xff]   ;;  %s10820_s21 = sld [smem:[#allocation35_spill]]  ;;  %s10821_s18 = sld [smem:[#allocation37_spill]] }
 0x471   : > { %v8767_v9 = vld [vmem:[#allocation10 + $0x480] sm:$0xff]   ;;  %8037 = vmatprep.subr.bf16.mxu1 %v8766_v12  ;;  %v8771_v38 = vld [vmem:[#allocation10 + $0x488] sm:$0xff]   ;;  %v8775_v22 = vld [vmem:[#allocation10 + $0x490] sm:$0xff]   ;;  %s7396_s28 = sshll.u32 %s9081_s12, 4  ;;  %s7387_s24 = sshll.u32 %s9085_s13, 5 }
 0x472   : > { %v8768_v49 = vld [vmem:[#allocation10 + $0x500] sm:$0xff]   ;;  %7974 = vmatpush3.bf16.msra.mxu0 %v8767_v9  ;;  %v8772_v16 = vld [vmem:[#allocation10 + $0x508] sm:$0xff]   ;;  %v8776_v55 = vld [vmem:[#allocation10 + $0x510] sm:$0xff]   ;;  %s6961_s25 = sadd.s32 %s7396_s28, %s7387_s24  ;;  %s6964_s5 = sshll.u32 %s9452_s8, 4  ;;  %s10690_s5 = int_to_ptr.vmem [resolvable:$true] %s6964_s5 }
 0x473   : > { %8038 = vmatpush3.bf16.msra.mxu1 %v8768_v49  ;;  %7975 = vmatprep.subr.bf16.mxu0 %v8769_v50  ;;  %v8777_v53 = vld [vmem:[#allocation10 + $0x4d8] sm:$0xff]   ;;  %v8781_v24 = vld [vmem:[#allocation10 + $0x4e0] sm:$0xff]   ;;  %v8785_v52 = vld [vmem:[#allocation10 + $0x4e8] sm:$0xff]   ;;  %s7388_s17 = sshll.u32 %s6961_s25, 7  ;;  %s10822_s6 = sld [smem:[#allocation28_spill]] }
 0x474   : > { %8039 = vmatprep.subr.bf16.mxu1 %v8770_v1  ;;  %v8778_v2 = vld [vmem:[#allocation10 + $0x558] sm:$0xff]   ;;  %v8782_v37 = vld [vmem:[#allocation10 + $0x560] sm:$0xff]   ;;  %v8786_v23 = vld [vmem:[#allocation10 + $0x568] sm:$0xff]   ;;  %s10823_s3 = sld [smem:[#allocation38_spill]]  ;;  %s6948_s19 = scalar_lea.sflag [#allocation9], %s9365_s29 }
 0x475   : > { %v8779_v13 = vld [vmem:[#allocation10 + $0x498] sm:$0xff]   ;;  %v8783_v3 = vld [vmem:[#allocation10 + $0x4a0] sm:$0xff]   ;;  %v8787_v28 = vld [vmem:[#allocation10 + $0x4a8] sm:$0xff]   ;;  %s8987_s30 = scalar_lea.vmem %s10690_s5, 2048 }
 0x476   : > { %7976 = vmatpush3.bf16.msra.mxu0 %v8771_v38  ;;  %v8780_v0 = vld [vmem:[#allocation10 + $0x518] sm:$0xff]   ;;  %v8784_v18 = vld [vmem:[#allocation10 + $0x520] sm:$0xff]   ;;  %v8788_v42 = vld [vmem:[#allocation10 + $0x528] sm:$0xff]   ;;  %p8988_p12 = scmp.ne.s32.totalorder %s10690_s5, %s8987_s30 }
 0x477   : > { %8040 = vmatpush3.bf16.msra.mxu1 %v8772_v16  ;;  %7977 = vmatprep.subr.bf16.mxu0 %v8773_v47  ;;  %v8789_v14 = vld [vmem:[#allocation10 + $0x4f0] sm:$0xff]   ;;  %v8793_v39 = vld [vmem:[#allocation10 + $0x4f8] sm:$0xff]   ;;  %v5162_v60 = vld [vmem:[#allocation2 + $0xc0] sm:$0xe0] }
 0x478   : > { %8041 = vmatprep.subr.bf16.mxu1 %v8774_v10  ;;  %v8790_v20 = vld [vmem:[#allocation10 + $0x570] sm:$0xff]   ;;  %v8794_v33 = vld [vmem:[#allocation10 + $0x578] sm:$0xff]   ;;  %v5163_v17 = vld [vmem:[#allocation2 + $0xc8] sm:$0x1f]  ;;  %v5194_v62 = vrot.slane %v5162_v60, 5 }
 0x479   : > { %v8791_v54 = vld [vmem:[#allocation10 + $0x4b0] sm:$0xff]   ;;  %v8795_v26 = vld [vmem:[#allocation10 + $0x4b8] sm:$0xff]   ;;  %v5195_v15 = vrot.slane %v5163_v17, 5  ;;  %v5090_v30 = vld [vmem:[#allocation2 + $0x40] sm:$0x7]  ;;  %p10824_p11 = scmp.ne.s32.totalorder %s10822_s6, 0 }
 0x47a   : > { %7978 = vmatpush3.bf16.msra.mxu0 %v8775_v22  ;;  %v8792_v43 = vld [vmem:[#allocation10 + $0x530] sm:$0xff]   ;;  %v8796_v5 = vld [vmem:[#allocation10 + $0x538] sm:$0xff]   ;;  %v5123_v7 = vrot.slane %v5090_v30, 3  ;;  %v8797_v41 = vld [vmem:[#allocation10 + $0x5c0] sm:$0xff]   ;;  %s10688_s23 = scalar_lea.hbm %s10823_s3, %s7388_s17 }
 0x47b   : > { %8042 = vmatpush3.bf16.msra.mxu1 %v8776_v55  ;;  %7979 = vmatprep.subr.bf16.mxu0 %v8777_v53  ;;  %v5073_v63 = vld [vmem:[#allocation2 + $0x38] sm:$0xff]  ;;  %v5000_v40 = vld [vmem:[#allocation2 + $0x30] sm:$0xe0]  ;;  %v5196_v21 = vsel %vm5032_vm4, %v5194_v62, %v5195_v15  ;;  %v8798_v25 = vld [vmem:[#allocation10 + $0x580] sm:$0xff]   ;;  %p8989_p1 = pnand %p8988_p12, %p10824_p11 }
 0x47c   : > { %8043 = vmatprep.subr.bf16.mxu1 %v8778_v2  ;;  %6164 = vmatprep.mubr.bf16.mxu0 %v5073_v63  ;;  %v5001_v44 = vld [vmem:[#allocation2 + $0x38] sm:$0x1f]  ;;  %v5033_v6 = vrot.slane %v5000_v40, 5  ;;  %v5074_v8 = vld [vmem:[#allocation2 + $0x50] sm:$0xff]  ;;  %v5164_v58 = vld [vmem:[#allocation2 + $0xd8] sm:$0xe0] }
 0x47d   : > { %v5034_v59 = vrot.slane %v5001_v44, 5  ;;  %v5089_v32 = vld [vmem:[#allocation2 + $0x38] sm:$0xf8]  ;;  %6261 = vmatprep.mubr.bf16.mxu1 %v5196_v21  ;;  %v5165_v11 = vld [vmem:[#allocation2 + $0xe0] sm:$0x1f]  ;;  %v5197_v4 = vrot.slane %v5164_v58, 5  ;;  %p8990_p9 = pneg %p8989_p1 }
 0x47e   : > { %7980 = vmatpush3.bf16.msra.mxu0 %v8779_v13  ;;  %v5122_v35 = vrot.slane %v5089_v32, 3  ;;  %v5002_v27 = vld [vmem:[#allocation2 + $0x48] sm:$0xe0]  ;;  %v5198_v57 = vrot.slane %v5165_v11, 5  ;;  %v5003_v19 = vld [vmem:[#allocation2 + $0x50] sm:$0x1f] }
 0x47f   : > { %8044 = vmatpush3.bf16.msra.mxu1 %v8780_v0  ;;  %7981 = vmatprep.subr.bf16.mxu0 %v8781_v24  ;;  %v5035_v48 = vsel %vm5032_vm4, %v5033_v6, %v5034_v59  ;;  %v8799_v31 = vld [vmem:[#allocation10 + $0x5c8] sm:$0xff]   ;;  %v5036_v45 = vrot.slane %v5002_v27, 5  ;;  %v5091_v29 = vld [vmem:[#allocation2 + $0x50] sm:$0xf8]  ;;  %v5037_v56 = vrot.slane %v5003_v19, 5  ;;  %v8804_v40 = vld [vmem:[#allocation10 + $0x598] sm:$0xff]  }
 0x480   : > { %8045 = vmatprep.subr.bf16.mxu1 %v8782_v37  ;;  %v5124_v46 = vsel %vm5121_vm5, %v5122_v35, %v5123_v7  ;;  %v5092_v51 = vld [vmem:[#allocation2 + $0x58] sm:$0x7]  ;;  %v5125_v34 = vrot.slane %v5091_v29, 3  ;;  %v5199_v36 = vsel %vm5032_vm4, %v5197_v4, %v5198_v57  ;;  %v8800_v12 = vld [vmem:[#allocation10 + $0x588] sm:$0xff]   ;;  %v5166_v50 = vld [vmem:[#allocation2 + $0xf0] sm:$0xe0] }
 0x481   : > { %v5126_v61 = vrot.slane %v5092_v51, 3  ;;  %v5038_v9 = vsel %vm5032_vm4, %v5036_v45, %v5037_v56  ;;  %v5075_v49 = vld [vmem:[#allocation2 + $0x68] sm:$0xff]  ;;  %v5167_v38 = vld [vmem:[#allocation2 + $0xf8] sm:$0x1f]  ;;  %v5200_v16 = vrot.slane %v5166_v50, 5  ;;  %v8801_v10 = vld [vmem:[#allocation10 + $0x5d0] sm:$0xff]  }
 0x482   : > { %7982 = vmatpush3.bf16.msra.mxu0 %v8783_v3  ;;  %v5004_v47 = vld [vmem:[#allocation2 + $0x60] sm:$0xe0]  ;;  %v5201_v22 = vrot.slane %v5167_v38, 5  ;;  %v5005_v55 = vld [vmem:[#allocation2 + $0x68] sm:$0x1f]  ;;  %v5077_v30 = vld [vmem:[#allocation2 + $0x98] sm:$0xff] }
 0x483   : > { %8046 = vmatpush3.bf16.msra.mxu1 %v8784_v18  ;;  %7983 = vmatprep.subr.bf16.mxu0 %v8785_v52  ;;  %v5127_v1 = vsel %vm5121_vm5, %v5125_v34, %v5126_v61  ;;  %v5039_v53 = vrot.slane %v5004_v47, 5  ;;  %v5093_v2 = vld [vmem:[#allocation2 + $0x68] sm:$0xf8]  ;;  %v5040_v13 = vrot.slane %v5005_v55, 5  ;;  %v5094_v0 = vld [vmem:[#allocation2 + $0x70] sm:$0x7] }
 0x484   : > { %8047 = vmatprep.subr.bf16.mxu1 %v8786_v23  ;;  %v5128_v24 = vrot.slane %v5093_v2, 3  ;;  %v5202_v37 = vsel %vm5032_vm4, %v5200_v16, %v5201_v22  ;;  %v5129_v3 = vrot.slane %v5094_v0, 3  ;;  %v8802_v18 = vld [vmem:[#allocation10 + $0x590] sm:$0xff]   ;;  %v5076_v23 = vld [vmem:[#allocation2 + $0x80] sm:$0xff]  ;;  %v5096_v60 = vld [vmem:[#allocation2 + $0x88] sm:$0x7] }
 0x485   : > { %v5041_v52 = vsel %vm5032_vm4, %v5039_v53, %v5040_v13  ;;  %v5132_v15 = vrot.slane %v5096_v60, 3  ;;  %v8805_v59 = vld [vmem:[#allocation10 + $0x640] sm:$0xff]   ;;  %v5171_v35 = vld [vmem:[#allocation2 + $0x128] sm:$0x1f]  ;;  %v5097_v58 = vld [vmem:[#allocation2 + $0x98] sm:$0xf8] }
 0x486   : > { %7984 = vmatpush3.bf16.msra.mxu0 %v8787_v28  ;;  %v5168_v28 = vld [vmem:[#allocation2 + $0x108] sm:$0xe0]  ;;  %v8806_v32 = vld [vmem:[#allocation10 + $0x600] sm:$0xff]   ;;  %v5134_v27 = vrot.slane %v5097_v58, 3  ;;  %v5078_v34 = vld [vmem:[#allocation2 + $0xb0] sm:$0xff] }
 0x487   : > { %8048 = vmatpush3.bf16.msra.mxu1 %v8788_v42  ;;  %7985 = vmatprep.subr.bf16.mxu0 %v8789_v14  ;;  %v5130_v42 = vsel %vm5121_vm5, %v5128_v24, %v5129_v3  ;;  %v5169_v14 = vld [vmem:[#allocation2 + $0x110] sm:$0x1f]  ;;  %v5170_v21 = vld [vmem:[#allocation2 + $0x120] sm:$0xe0]  ;;  %v5098_v4 = vld [vmem:[#allocation2 + $0xa0] sm:$0x7] }
 0x488   : > { %8049 = vmatprep.subr.bf16.mxu1 %v8790_v20  ;;  %v5203_v20 = vrot.slane %v5168_v28, 5  ;;  %v5206_v7 = vrot.slane %v5170_v21, 5  ;;  %v5135_v57 = vrot.slane %v5098_v4, 3  ;;  %v8808_v19 = vld [vmem:[#allocation10 + $0x5a0] sm:$0xff]   ;;  %v8809_v56 = vld [vmem:[#allocation10 + $0x648] sm:$0xff]   ;;  %v8813_v24 = vld [vmem:[#allocation10 + $0x650] sm:$0xff]  }
 0x489   : > { %v8810_v51 = vld [vmem:[#allocation10 + $0x608] sm:$0xff]   ;;  %v5173_v61 = vld [vmem:[#allocation2 + $0x140] sm:$0x1f]  ;;  %v5099_v16 = vld [vmem:[#allocation2 + $0xb0] sm:$0xf8] }
 0x48a   : > { %7986 = vmatpush3.bf16.msra.mxu0 %v8791_v54  ;;  %v5006_v54 = vld [vmem:[#allocation2 + $0x78] sm:$0xe0]  ;;  %v5136_v29 = vsel %vm5121_vm5, %v5134_v27, %v5135_v57  ;;  %v5210_v50 = vrot.slane %v5173_v61, 5  ;;  %v5137_v22 = vrot.slane %v5099_v16, 3  ;;  %v8812_v2 = vld [vmem:[#allocation10 + $0x5a8] sm:$0xff]  }
 0x48b   : > { %8050 = vmatpush3.bf16.msra.mxu1 %v8792_v43  ;;  %7987 = vmatprep.subr.bf16.mxu0 %v8793_v39  ;;  %v8803_v43 = vld [vmem:[#allocation10 + $0x5d8] sm:$0xff]   ;;  %v5204_v39 = vrot.slane %v5169_v14, 5  ;;  %v5102_v60 = vld [vmem:[#allocation2 + $0xd0] sm:$0x7]  ;;  %v5104_v4 = vld [vmem:[#allocation2 + $0xe8] sm:$0x7] }
 0x48c   : > { %8051 = vmatprep.subr.bf16.mxu1 %v8794_v33  ;;  %v5007_v33 = vld [vmem:[#allocation2 + $0x80] sm:$0x1f]  ;;  %v8815_v3 = vld [vmem:[#allocation10 + $0x658] sm:$0xff]   ;;  %v5177_v21 = vld [vmem:[#allocation2 + $0x170] sm:$0x1f] }
 0x48d   : > { %v5043_v63 = vrot.slane %v5007_v33, 5  ;;  %v5205_v62 = vsel %vm5032_vm4, %v5203_v20, %v5204_v39  ;;  %v5012_v20 = vld [vmem:[#allocation2 + $0xc0] sm:$0xe0]  ;;  %v5101_v33 = vld [vmem:[#allocation2 + $0xc8] sm:$0xf8] }
 0x48e   : > { %7988 = vmatpush3.bf16.msra.mxu0 %v8795_v26  ;;  %v5042_v26 = vrot.slane %v5006_v54, 5  ;;  %v8817_v54 = vld [vmem:[#allocation10 + $0x5f0] sm:$0xff]   ;;  %v5051_v39 = vrot.slane %v5012_v20, 5  ;;  %v5255_v20 = vld [vmem:[#allocation2 + $0x100] sm:$0x7] }
 0x48f   : > { %8052 = vmatpush3.bf16.msra.mxu1 %v8796_v5  ;;  %8101 = vmatprep.subr.bf16.mxu0 %v8797_v41  ;;  %v5095_v5 = vld [vmem:[#allocation2 + $0x80] sm:$0xf8]  ;;  %v5251_v61 = vld [vmem:[#allocation2 + $0xd0] sm:$0x7]  ;;  %v5323_v16 = vld [vmem:[#allocation2 + $0x150] sm:$0xe0] }
 0x490   : > { %v5131_v17 = vrot.slane %v5095_v5, 3  ;;  %v5044_v44 = vsel %vm5032_vm4, %v5042_v26, %v5043_v63  ;;  %v8807_v41 = vld [vmem:[#allocation10 + $0x5e0] sm:$0xff]   ;;  %8165 = vmatprep.subr.bf16.mxu1 %v8805_v59  ;;  %v8818_v26 = vld [vmem:[#allocation10 + $0x5b0] sm:$0xff]   ;;  %v8821_v59 = vld [vmem:[#allocation10 + $0x668] sm:$0xff]  }
 0x491   : > { %6165 = vmatmul.mubr.bf16.vlgmr.msra.gmra.mrb[160].mxu0 %v5035_v48  ;;  %v5008_v48 = vld [vmem:[#allocation2 + $0x90] sm:$0xe0] }
 0x492   : > { %6262 = vmatmul.mubr.bf16.vlgmr.msra.gmra.mrb[144].mxu1 %v5124_v46  ;;  %8102 = vmatpush3.bf16.msra.mxu0 %v8798_v25  ;;  %v5133_v6 = vsel %vm5121_vm5, %v5131_v17, %v5132_v15  ;;  %v5207_v46 = vrot.slane %v5171_v35, 5  ;;  %v5009_v25 = vld [vmem:[#allocation2 + $0x98] sm:$0x1f]  ;;  %v5140_v17 = vrot.slane %v5101_v33, 3  ;;  %v8819_v15 = vld [vmem:[#allocation10 + $0x660] sm:$0xff]  }
 0x493   : > { %6172 = vmatprep.mubr.bf16.mxu0 %v5074_v8  ;;  %8103 = vmatprep.subr.bf16.mxu0 %v8799_v31  ;;  %v5045_v8 = vrot.slane %v5008_v48, 5  ;;  %v5046_v11 = vrot.slane %v5009_v25, 5  ;;  %v8822_v48 = vld [vmem:[#allocation10 + $0x628] sm:$0xff]  }
 0x494   : > { %6269 = vmatprep.mubr.bf16.mxu1 %v5199_v36  ;;  %8166 = vmatpush3.bf16.msra.mxu1 %v8806_v32  ;;  %v5208_v31 = vsel %vm5032_vm4, %v5206_v7, %v5207_v46  ;;  %v5172_v36 = vld [vmem:[#allocation2 + $0x138] sm:$0xe0]  ;;  %v10425_v32 = vld [vmem:[#allocation2 + $0xe0] sm:$0xff]  ;;  %v5216_v7 = vrot.slane %v5177_v21, 5 }
 0x495   : > { %v5047_v45 = vsel %vm5032_vm4, %v5045_v8, %v5046_v11  ;;  %8167 = vmatprep.subr.bf16.mxu1 %v8809_v56  ;;  %v5015_v46 = vld [vmem:[#allocation2 + $0xe0] sm:$0x1f]  ;;  %v8825_v56 = vld [vmem:[#allocation10 + $0x670] sm:$0xff]  }
 0x496   : > { %8104 = vmatpush3.bf16.msra.mxu0 %v8800_v12  ;;  %v5209_v12 = vrot.slane %v5172_v36, 5  ;;  %v5055_v58 = vrot.slane %v5015_v46, 5  ;;  %v5103_v11 = vld [vmem:[#allocation2 + $0xe0] sm:$0xf8]  ;;  %v5250_v36 = vld [vmem:[#allocation2 + $0xc8] sm:$0xf8] }
 0x497   : > { %8105 = vmatprep.subr.bf16.mxu0 %v8801_v10  ;;  %v5100_v10 = vld [vmem:[#allocation2 + $0xb8] sm:$0x7]  ;;  %v5143_v27 = vrot.slane %v5103_v11, 3  ;;  %v10450_v21 = vld [vmem:[#allocation2 + $0x1a0] sm:$0xff] }
 0x498   : > { %8168 = vmatpush3.bf16.msra.mxu1 %v8810_v51  ;;  %v5211_v55 = vsel %vm5032_vm4, %v5209_v12, %v5210_v50  ;;  %v5138_v53 = vrot.slane %v5100_v10, 3  ;;  %v8826_v51 = vld [vmem:[#allocation10 + $0x630] sm:$0xff]   ;;  %v5282_v12 = vrot.slane %v5250_v36, 3  ;;  %v5355_v10 = vrot.slane %v5323_v16, 5  ;;  %v5261_v36 = vld [vmem:[#allocation2 + $0x148] sm:$0x7] }
 0x499   : > { %6173 = vmatmul.mubr.bf16.gmra.mrb[164].mxu0 %v5038_v9  ;;  %v5010_v9 = vld [vmem:[#allocation2 + $0xa8] sm:$0xe0]  ;;  %8169 = vmatprep.subr.bf16.mxu1 %v8813_v24  ;;  %v5262_v16 = vld [vmem:[#allocation2 + $0x158] sm:$0xf8] }
 0x49a   : > { %6270 = vmatmul.mubr.bf16.gmra.mrb[148].mxu1 %v5127_v1  ;;  %6180 = vmatprep.mubr.bf16.mxu0 %v5075_v49  ;;  %v8811_v49 = vld [vmem:[#allocation10 + $0x5e8] sm:$0xff]   ;;  %v5011_v1 = vld [vmem:[#allocation2 + $0xb0] sm:$0x1f]  ;;  %v5048_v38 = vrot.slane %v5010_v9, 5  ;;  %v5139_v0 = vsel %vm5121_vm5, %v5137_v22, %v5138_v53  ;;  %v5283_v9 = vrot.slane %v5251_v61, 3 }
 0x49b   : > { %6277 = vmatprep.mubr.bf16.mxu1 %v5202_v37  ;;  %8106 = vmatpush3.bf16.msra.mxu0 %v8802_v18  ;;  %v5049_v47 = vrot.slane %v5011_v1, 5  ;;  %v8814_v37 = vld [vmem:[#allocation10 + $0x610] sm:$0xff]   ;;  %v10419_v18 = vld [vmem:[#allocation2 + $0xc8] sm:$0xff]  ;;  %v8829_v1 = vld [vmem:[#allocation10 + $0x680] sm:$0xff]  }
 0x49c   : > { %8107 = vmatprep.subr.bf16.mxu0 %v8803_v43  ;;  %8170 = vmatpush3.bf16.msra.mxu1 %v8814_v37  ;;  %v5013_v43 = vld [vmem:[#allocation2 + $0xc8] sm:$0x1f]  ;;  %v5284_v50 = vsel %vm5121_vm5, %v5282_v12, %v5283_v9  ;;  %v5252_v22 = vld [vmem:[#allocation2 + $0xe0] sm:$0xf8]  ;;  %v5325_v24 = vld [vmem:[#allocation2 + $0x168] sm:$0xe0] }
 0x49d   : > { %v5050_v13 = vsel %vm5032_vm4, %v5048_v38, %v5049_v47  ;;  %8171 = vmatprep.subr.bf16.mxu1 %v8815_v3  ;;  %v5052_v63 = vrot.slane %v5013_v43, 5  ;;  %v10432_v38 = vld [vmem:[#allocation2 + $0x158] sm:$0xff]  ;;  %v5253_v53 = vld [vmem:[#allocation2 + $0xe8] sm:$0x7]  ;;  %v5326_v3 = vld [vmem:[#allocation2 + $0x170] sm:$0x1f] }
 0x49e   : > { %v5324_v47 = vld [vmem:[#allocation2 + $0x158] sm:$0x1f]  ;;  %v5289_v43 = vrot.slane %v5255_v20, 3  ;;  %v5298_v12 = vrot.slane %v5261_v36, 3  ;;  %v10469_v9 = vld [vmem:[#allocation2 + $0x1d0] sm:$0xff] }
 0x49f   : > { %8108 = vmatpush3.bf16.msra.mxu0 %v8804_v40  ;;  %v5053_v40 = vsel %vm5032_vm4, %v5051_v39, %v5052_v63  ;;  %v10441_v39 = vld [vmem:[#allocation2 + $0x188] sm:$0xff]  ;;  %v5256_v63 = vld [vmem:[#allocation2 + $0x110] sm:$0xf8] }
 0x4a0   : > { %8109 = vmatprep.subr.bf16.mxu0 %v8807_v41  ;;  %v5014_v41 = vld [vmem:[#allocation2 + $0xd8] sm:$0xe0] }
 0x4a1   : > { %6181 = vmatmul.mubr.bf16.gmra.mrb[168].mxu0 %v5041_v52  ;;  %v5174_v52 = vld [vmem:[#allocation2 + $0x150] sm:$0xe0]  ;;  %v5054_v8 = vrot.slane %v5014_v41, 5 }
 0x4a2   : > { %6278 = vmatmul.mubr.bf16.gmra.mrb[152].mxu1 %v5130_v42  ;;  %6188 = vmatprep.mubr.bf16.mxu0 %v5076_v23  ;;  %v5175_v23 = vld [vmem:[#allocation2 + $0x158] sm:$0x1f]  ;;  %v5212_v28 = vrot.slane %v5174_v52, 5  ;;  %v5358_v52 = vrot.slane %v5325_v24, 5  ;;  %v10478_v24 = vld [vmem:[#allocation2 + $0x1e8] sm:$0xff] }
 0x4a3   : > { %6285 = vmatprep.mubr.bf16.mxu1 %v5205_v62  ;;  %8110 = vmatpush3.bf16.msra.mxu0 %v8808_v19  ;;  %v8816_v42 = vld [vmem:[#allocation10 + $0x618] sm:$0xff]   ;;  %v5213_v14 = vrot.slane %v5175_v23, 5  ;;  %v5141_v62 = vrot.slane %v5102_v60, 3  ;;  %v5056_v57 = vsel %vm5032_vm4, %v5054_v8, %v5055_v58  ;;  %v5259_v8 = vld [vmem:[#allocation2 + $0x130] sm:$0x7] }
 0x4a4   : > { %8111 = vmatprep.subr.bf16.mxu0 %v8811_v49  ;;  %8172 = vmatpush3.bf16.msra.mxu1 %v8816_v42  ;;  %v8823_v19 = vld [vmem:[#allocation10 + $0x5f8] sm:$0xff]   ;;  %v8831_v58 = vld [vmem:[#allocation10 + $0x690] sm:$0xff]  }
 0x4a5   : > { %v5214_v5 = vsel %vm5032_vm4, %v5212_v28, %v5213_v14  ;;  %8173 = vmatprep.subr.bf16.mxu1 %v8819_v15  ;;  %v8828_v49 = vld [vmem:[#allocation10 + $0x638] sm:$0xff]   ;;  %v5359_v14 = vrot.slane %v5326_v3, 5  ;;  %v5335_v3 = vld [vmem:[#allocation2 + $0x1e0] sm:$0xe0] }
 0x4a6   : > { %v5254_v23 = vld [vmem:[#allocation2 + $0xf8] sm:$0xf8]  ;;  %v5257_v15 = vld [vmem:[#allocation2 + $0x118] sm:$0x7]  ;;  %v5373_v20 = vrot.slane %v5335_v3, 5 }
 0x4a7   : > { %8112 = vmatpush3.bf16.msra.mxu0 %v8812_v2  ;;  %v5285_v2 = vrot.slane %v5252_v22, 3  ;;  %v10437_v28 = vld [vmem:[#allocation2 + $0xf8] sm:$0xff]  ;;  %v5360_v33 = vsel %vm5032_vm4, %v5358_v52, %v5359_v14  ;;  %v5336_v52 = vld [vmem:[#allocation2 + $0x1e8] sm:$0x1f] }
 0x4a8   : > { %8113 = vmatprep.subr.bf16.mxu0 %v8817_v54  ;;  %v5288_v54 = vrot.slane %v5254_v23, 3  ;;  %v5264_v23 = vld [vmem:[#allocation2 + $0x170] sm:$0xf8] }
 0x4a9   : > { %6189 = vmatmul.mubr.bf16.gmra.mrb[172].mxu0 %v5044_v44  ;;  %v5142_v44 = vsel %vm5121_vm5, %v5140_v17, %v5141_v62 }
 0x4aa   : > { %6286 = vmatmul.mubr.bf16.gmra.mrb[156].mxu1 %v5133_v6  ;;  %6196 = vmatprep.mubr.bf16.mxu0 %v5077_v30  ;;  %v8820_v6 = vld [vmem:[#allocation10 + $0x620] sm:$0xff]   ;;  %v5176_v30 = vld [vmem:[#allocation2 + $0x168] sm:$0xe0]  ;;  %v5290_v60 = vsel %vm5121_vm5, %v5288_v54, %v5289_v43  ;;  %v5265_v54 = vld [vmem:[#allocation2 + $0x178] sm:$0x7]  ;;  %v5303_v43 = vrot.slane %v5264_v23, 3 }
 0x4ab   : > { %6293 = vmatprep.mubr.bf16.mxu1 %v5208_v31  ;;  %8114 = vmatpush3.bf16.msra.mxu0 %v8818_v26  ;;  %v5215_v35 = vrot.slane %v5176_v30, 5  ;;  %v5144_v31 = vrot.slane %v5104_v4, 3  ;;  %v5327_v26 = vld [vmem:[#allocation2 + $0x180] sm:$0xe0]  ;;  %v5295_v4 = vrot.slane %v5259_v8, 3 }
 0x4ac   : > { %8174 = vmatpush3.bf16.msra.mxu1 %v8820_v6  ;;  %8115 = vmatprep.subr.bf16.mxu0 %v8823_v19  ;;  %v5361_v17 = vrot.slane %v5327_v26, 5  ;;  %v8830_v6 = vld [vmem:[#allocation10 + $0x688] sm:$0xff]   ;;  %v10487_v26 = vld [vmem:[#allocation2 + $0x200] sm:$0xff] }
 0x4ad   : > { %8175 = vmatprep.subr.bf16.mxu1 %v8821_v59  ;;  %v5217_v25 = vsel %vm5032_vm4, %v5215_v35, %v5216_v7  ;;  %v5292_v59 = vrot.slane %v5257_v15, 3  ;;  %v5329_v35 = vld [vmem:[#allocation2 + $0x198] sm:$0xe0]  ;;  %v5330_v7 = vld [vmem:[#allocation2 + $0x1a0] sm:$0x1f] }
 0x4ae   : > { %v5364_v41 = vrot.slane %v5329_v35, 5  ;;  %v5365_v46 = vrot.slane %v5330_v7, 5  ;;  %v5413_v7 = vld [vmem:[#allocation2 + $0x170] sm:$0xf8] }
 0x4b0   : > { %8176 = vmatpush3.bf16.msra.mxu1 %v8822_v48 }
 0x4b1   : > { %6197 = vmatmul.mubr.bf16.gmra.mrb[176].mxu0 %v5047_v45  ;;  %v5145_v45 = vsel %vm5121_vm5, %v5143_v27, %v5144_v31  ;;  %8177 = vmatprep.subr.bf16.mxu1 %v8825_v56  ;;  %v10456_v27 = vld [vmem:[#allocation2 + $0x128] sm:$0xff]  ;;  %v10459_v31 = vsel %vm5032_vm4, %v5364_v41, %v5365_v46  ;;  %v5260_v56 = vld [vmem:[#allocation2 + $0x140] sm:$0xf8]  ;;  %v5414_v41 = vld [vmem:[#allocation2 + $0x178] sm:$0x7] }
 0x4b2   : > { %6294 = vmatmul.mubr.bf16.gmra.mrb[160].mxu1 %v5136_v29  ;;  %6204 = vmatprep.mubr.bf16.mxu0 %v5078_v34  ;;  %v8824_v29 = vld [vmem:[#allocation10 + $0x5b8] sm:$0xff]   ;;  %v5297_v61 = vrot.slane %v5260_v56, 3  ;;  %v5447_v8 = vrot.slane %v5414_v41, 3  ;;  %v5418_v56 = vld [vmem:[#allocation2 + $0x1a8] sm:$0x7] }
 0x4b3   : > { %6301 = vmatprep.mubr.bf16.mxu1 %v5211_v55  ;;  %8116 = vmatpush3.bf16.msra.mxu0 %v8824_v29  ;;  %v8827_v34 = vld [vmem:[#allocation10 + $0x678] sm:$0xff]   ;;  %v5356_v55 = vrot.slane %v5324_v47, 5 }
 0x4b4   : > { %8178 = vmatpush3.bf16.msra.mxu1 %v8826_v51  ;;  %8389 = vmatprep.subr.bf16.mxu0 %v8829_v1  ;;  %v10467_v51 = vld [vmem:[#allocation2 + $0x140] sm:$0xff]  ;;  %v8832_v47 = vld [vmem:[#allocation10 + $0x698] sm:$0xff]  }
 0x4b5   : > { %8179 = vmatprep.subr.bf16.mxu1 %v8827_v34  ;;  %v5357_v37 = vsel %vm5032_vm4, %v5355_v10, %v5356_v55  ;;  %v10475_v10 = vsel %vm5121_vm5, %v5297_v61, %v5298_v12  ;;  %v5453_v12 = vrot.slane %v5418_v56, 3 }
 0x4b8   : > { %8180 = vmatpush3.bf16.msra.mxu1 %v8828_v49 }
 0x4b9   : > { %6205 = vmatmul.mubr.bf16.gmra.mrb[180].mxu0 %v5050_v13  ;;  %v5286_v13 = vrot.slane %v5253_v53, 3  ;;  %v5263_v53 = vld [vmem:[#allocation2 + $0x160] sm:$0x7] }
 0x4ba   : > { %6302 = vmatmul.mubr.bf16.gmra.mrb[164].mxu1 %v5139_v0  ;;  %6212 = vmatprep.mubr.bf16.mxu0 %v10419_v18  ;;  %v10434_v0 = vld [vmem:[#allocation2 + $0x170] sm:$0xff] }
 0x4bb   : > { %6309 = vmatprep.mubr.bf16.mxu1 %v5214_v5  ;;  %v5287_v42 = vsel %vm5121_vm5, %v5285_v2, %v5286_v13  ;;  %v5328_v5 = vld [vmem:[#allocation2 + $0x188] sm:$0x1f]  ;;  %v5300_v2 = vrot.slane %v5262_v16, 3  ;;  %v5301_v13 = vrot.slane %v5263_v53, 3 }
 0x4bc   : > { %v5362_v62 = vrot.slane %v5328_v5, 5 }
 0x4bd   : > { %v10485_v14 = vsel %vm5121_vm5, %v5300_v2, %v5301_v13  ;;  %v5423_v2 = vld [vmem:[#allocation2 + $0x1e8] sm:$0xf8]  ;;  %v5424_v13 = vld [vmem:[#allocation2 + $0x1f0] sm:$0x7] }
 0x4be   : > { %v10448_v30 = vsel %vm5032_vm4, %v5361_v17, %v5362_v62  ;;  %v5411_v17 = vld [vmem:[#allocation2 + $0x158] sm:$0xf8]  ;;  %v5462_v23 = vrot.slane %v5424_v13, 3 }
 0x4c1   : > { %6213 = vmatmul.mubr.bf16.gmra.mrb[184].mxu0 %v5053_v40  ;;  %v5291_v40 = vrot.slane %v5256_v63, 3  ;;  %v5337_v63 = vld [vmem:[#allocation2 + $0x1f8] sm:$0xe0] }
 0x4c2   : > { %6310 = vmatmul.mubr.bf16.gmra.mrb[168].mxu1 %v5142_v44  ;;  %6220 = vmatprep.mubr.bf16.mxu0 %v10425_v32  ;;  %v10445_v44 = vld [vmem:[#allocation2 + $0x110] sm:$0xff]  ;;  %v5376_v62 = vrot.slane %v5337_v63, 5 }
 0x4c3   : > { %6317 = vmatprep.mubr.bf16.mxu1 %v5217_v25  ;;  %v10454_v48 = vsel %vm5121_vm5, %v5291_v40, %v5292_v59  ;;  %v5258_v25 = vld [vmem:[#allocation2 + $0x128] sm:$0xf8]  ;;  %v5412_v40 = vld [vmem:[#allocation2 + $0x160] sm:$0x7] }
 0x4c4   : > { %v5294_v11 = vrot.slane %v5258_v25, 3  ;;  %v8834_v59 = vld [vmem:[#allocation10 + $0x6a8] sm:$0xff]   ;;  %v5444_v35 = vrot.slane %v5412_v40, 3  ;;  %v5446_v25 = vrot.slane %v5413_v7, 3 }
 0x4c6   : > { %v10465_v19 = vsel %vm5121_vm5, %v5294_v11, %v5295_v4  ;;  %v5416_v11 = vld [vmem:[#allocation2 + $0x190] sm:$0x7]  ;;  %v5448_v36 = vsel %vm5121_vm5, %v5446_v25, %v5447_v8 }
 0x4c9   : > { %6221 = vmatmul.mubr.bf16.gmra.mrb[188].mxu0 %v5056_v57  ;;  %v5331_v57 = vld [vmem:[#allocation2 + $0x1b0] sm:$0xe0] }
 0x4ca   : > { %6318 = vmatmul.mubr.bf16.gmra.mrb[172].mxu1 %v5145_v45  ;;  %6358 = vmatprep.mubr.bf16.mxu0 %v5284_v50  ;;  %v5332_v45 = vld [vmem:[#allocation2 + $0x1b8] sm:$0x1f]  ;;  %v5367_v29 = vrot.slane %v5331_v57, 5  ;;  %v5333_v50 = vld [vmem:[#allocation2 + $0x1c8] sm:$0xe0] }
 0x4cb   : > { %6455 = vmatprep.mubr.bf16.mxu1 %v10432_v38  ;;  %v5368_v34 = vrot.slane %v5332_v45, 5  ;;  %v5370_v22 = vrot.slane %v5333_v50, 5  ;;  %v5450_v45 = vrot.slane %v5416_v11, 3  ;;  %v5419_v50 = vld [vmem:[#allocation2 + $0x1b8] sm:$0xf8] }
 0x4cc   : > { %v5455_v16 = vrot.slane %v5419_v50, 3 }
 0x4cd   : > { %v10472_v49 = vsel %vm5032_vm4, %v5367_v29, %v5368_v34  ;;  %v5417_v29 = vld [vmem:[#allocation2 + $0x1a0] sm:$0xf8]  ;;  %v8835_v34 = vld [vmem:[#allocation10 + $0x6b0] sm:$0xff]  }
 0x4ce   : > { %v5452_v61 = vrot.slane %v5417_v29, 3 }
 0x4d1   : > { %6359 = vmatmul.mubr.bf16.vlgmr.msra.gmra.mrb[192].mxu0 %v10419_v18  ;;  %v10461_v18 = vld [vmem:[#allocation2 + $0x1b8] sm:$0xff] }
 0x4d2   : > { %8390 = vmatpush3.bf16.msra.mxu0 %v8829_v1  ;;  %6456 = vmatmul.mubr.bf16.vlgmr.msra.gmra.mrb[176].mxu1 %v5357_v37  ;;  %v5334_v1 = vld [vmem:[#allocation2 + $0x1d0] sm:$0x1f] }
 0x4d3   : > { %6366 = vmatprep.mubr.bf16.mxu0 %v5287_v42  ;;  %8391 = vmatprep.subr.bf16.mxu0 %v8830_v6  ;;  %v5371_v55 = vrot.slane %v5334_v1, 5  ;;  %v8833_v42 = vld [vmem:[#allocation10 + $0x6a0] sm:$0xff]  }
 0x4d4   : > { %6463 = vmatprep.mubr.bf16.mxu1 %v10434_v0  ;;  %v5420_v1 = vld [vmem:[#allocation2 + $0x1c0] sm:$0x7] }
 0x4d5   : > { %v10481_v37 = vsel %vm5032_vm4, %v5370_v22, %v5371_v55  ;;  %v5421_v22 = vld [vmem:[#allocation2 + $0x1d0] sm:$0xf8]  ;;  %v5422_v55 = vld [vmem:[#allocation2 + $0x1d8] sm:$0x7] }
 0x4d6   : > { %8392 = vmatpush3.bf16.msra.mxu0 %v8830_v6  ;;  %v5443_v6 = vrot.slane %v5411_v17, 3  ;;  %v5459_v53 = vrot.slane %v5422_v55, 3 }
 0x4d7   : > { %8393 = vmatprep.subr.bf16.mxu0 %v8831_v58 }
 0x4d8   : > { %v5445_v4 = vsel %vm5121_vm5, %v5443_v6, %v5444_v35 }
 0x4d9   : > { %6367 = vmatmul.mubr.bf16.gmra.mrb[196].mxu0 %v10425_v32  ;;  %v5374_v32 = vrot.slane %v5336_v52, 5  ;;  %v5461_v52 = vrot.slane %v5423_v2, 3 }
 0x4da   : > { %6464 = vmatmul.mubr.bf16.gmra.mrb[180].mxu1 %v5360_v33  ;;  %6374 = vmatprep.mubr.bf16.mxu0 %v5290_v60  ;;  %v5304_v33 = vrot.slane %v5265_v54, 3  ;;  %v5338_v60 = vld [vmem:[#allocation2 + $0x200] sm:$0x1f] }
 0x4db   : > { %6471 = vmatprep.mubr.bf16.mxu1 %v10441_v39  ;;  %8394 = vmatpush3.bf16.msra.mxu0 %v8831_v58  ;;  %v10490_v5 = vsel %vm5032_vm4, %v5373_v20, %v5374_v32  ;;  %v5377_v15 = vrot.slane %v5338_v60, 5  ;;  %v5415_v58 = vld [vmem:[#allocation2 + $0x188] sm:$0xf8]  ;;  %v5425_v20 = vld [vmem:[#allocation2 + $0x200] sm:$0xf8] }
 0x4dc   : > { %8395 = vmatprep.subr.bf16.mxu0 %v8832_v47  ;;  %v10493_v39 = vsel %vm5121_vm5, %v5303_v43, %v5304_v33  ;;  %v5449_v57 = vrot.slane %v5415_v58, 3  ;;  %v5464_v54 = vrot.slane %v5425_v20, 3  ;;  %v5463_v33 = vsel %vm5121_vm5, %v5461_v52, %v5462_v23 }
 0x4dd   : > { %v10496_v46 = vsel %vm5032_vm4, %v5376_v62, %v5377_v15 }
 0x4df   : > { %8396 = vmatpush3.bf16.msra.mxu0 %v8832_v47  ;;  %v5456_v47 = vrot.slane %v5420_v1, 3 }
 0x4e0   : > { %8397 = vmatprep.subr.bf16.mxu0 %v8833_v42 }
 0x4e1   : > { %6375 = vmatmul.mubr.bf16.gmra.mrb[200].mxu0 %v10437_v28  ;;  %v5451_v28 = vsel %vm5121_vm5, %v5449_v57, %v5450_v45  ;;  %v5457_v3 = vsel %vm5121_vm5, %v5455_v16, %v5456_v47 }
 0x4e2   : > { %6472 = vmatmul.mubr.bf16.gmra.mrb[184].mxu1 %v10448_v30  ;;  %6382 = vmatprep.mubr.bf16.mxu0 %v10454_v48  ;;  %v5454_v30 = vsel %vm5121_vm5, %v5452_v61, %v5453_v12  ;;  %v5458_v48 = vrot.slane %v5421_v22, 3 }
 0x4e3   : > { %6479 = vmatprep.mubr.bf16.mxu1 %v10450_v21  ;;  %8398 = vmatpush3.bf16.msra.mxu0 %v8833_v42  ;;  %v5426_v21 = vld [vmem:[#allocation2 + $0x208] sm:$0x7]  ;;  %v8836_v42 = vld [vmem:[#allocation10 + $0x6b8] sm:$0xff]  }
 0x4e4   : > { %8399 = vmatprep.subr.bf16.mxu0 %v8834_v59  ;;  %v5460_v32 = vsel %vm5121_vm5, %v5458_v48, %v5459_v53  ;;  %v5465_v43 = vrot.slane %v5426_v21, 3 }
 0x4e6   : > { %v5466_v63 = vsel %vm5121_vm5, %v5464_v54, %v5465_v43 }
 0x4e7   : > { %8400 = vmatpush3.bf16.msra.mxu0 %v8834_v59 }
 0x4e8   : > { %8401 = vmatprep.subr.bf16.mxu0 %v8835_v34 }
 0x4e9   : > { %6383 = vmatmul.mubr.bf16.gmra.mrb[204].mxu0 %v10445_v44  ;;  %v8837_v44 = vld [vmem:[#allocation12 + $0x80] sm:$0xff]  }
 0x4ea   : > { %6480 = vmatmul.mubr.bf16.gmra.mrb[188].mxu1 %v10459_v31  ;;  %6390 = vmatprep.mubr.bf16.mxu0 %v10465_v19  ;;  %v8841_v31 = vld [vmem:[#allocation12 + $0xa0] sm:$0xff]   ;;  %v8843_v19 = vld [vmem:[#allocation12 + $0xb0] sm:$0xff]  }
 0x4eb   : > { %6487 = vmatprep.mubr.bf16.mxu1 %v10461_v18  ;;  %8402 = vmatpush3.bf16.msra.mxu0 %v8835_v34  ;;  %v8842_v18 = vld [vmem:[#allocation12 + $0xa8] sm:$0xff]  }
 0x4ec   : > { %8403 = vmatprep.subr.bf16.mxu0 %v8836_v42  ;;  %8421 = vmatprep.subr.bf16.mxu1 %v8837_v44 }
 0x4ed   : > { %8422 = vmatpush3.bf16.msra.mxu1 %v8837_v44 }
 0x4ef   : > { %8404 = vmatpush3.bf16.msra.mxu0 %v8836_v42 }
 0x4f1   : > { %6391 = vmatmul.mubr.bf16.gmra.mrb[208].mxu0 %v10456_v27  ;;  %v8839_v27 = vld [vmem:[#allocation12 + $0x90] sm:$0xff]  }
 0x4f2   : > { %6488 = vmatmul.mubr.bf16.gmra.mrb[192].mxu1 %v10472_v49  ;;  %6398 = vmatprep.mubr.bf16.mxu0 %v10475_v10 }
 0x4f3   : > { %6495 = vmatprep.mubr.bf16.mxu1 %v10469_v9 }
 0x4f9   : > { %6399 = vmatmul.mubr.bf16.gmra.mrb[212].mxu0 %v10467_v51 }
 0x4fa   : > { %6496 = vmatmul.mubr.bf16.gmra.mrb[196].mxu1 %v10481_v37  ;;  %6406 = vmatprep.mubr.bf16.mxu0 %v10485_v14 }
 0x4fb   : > { %6503 = vmatprep.mubr.bf16.mxu1 %v10478_v24 }
 0x501   : > { %6407 = vmatmul.mubr.bf16.gmra.mrb[216].mxu0 %v10432_v38  ;;  %v8838_v38 = vld [vmem:[#allocation12 + $0x88] sm:$0xff]  }
 0x502   : > { %6504 = vmatmul.mubr.bf16.gmra.mrb[200].mxu1 %v10490_v5  ;;  %6414 = vmatprep.mubr.bf16.mxu0 %v10493_v39 }
 0x503   : > { %6511 = vmatprep.mubr.bf16.mxu1 %v10487_v26  ;;  %8423 = vmatprep.subr.bf16.mxu1 %v8838_v38 }
 0x504   : > { %8424 = vmatpush3.bf16.msra.mxu1 %v8838_v38 }
 0x505   : > { %8425 = vmatprep.subr.bf16.mxu1 %v8839_v27 }
 0x508   : > { %8426 = vmatpush3.bf16.msra.mxu1 %v8839_v27 }
 0x509   : > { %6415 = vmatmul.mubr.bf16.gmra.mrb[220].mxu0 %v10434_v0  ;;  %v8840_v0 = vld [vmem:[#allocation12 + $0x98] sm:$0xff]  }
 0x50a   : > { %6512 = vmatmul.mubr.bf16.gmra.mrb[204].mxu1 %v10496_v46  ;;  %8405 = vmatprep.mubr.bf16.mxu0 %v5445_v4  ;;  %v8844_v46 = vld [vmem:[#allocation12 + $0xb8] sm:$0xff]  }
 0x50b   : > { %8427 = vmatprep.subr.bf16.mxu1 %v8840_v0 }
 0x50c   : > { %8428 = vmatpush3.bf16.msra.mxu1 %v8840_v0 }
 0x50d   : > { %8429 = vmatprep.subr.bf16.mxu1 %v8841_v31 }
 0x510   : > { %8430 = vmatpush3.bf16.msra.mxu1 %v8841_v31 }
 0x511   : > { %8406 = vmatmul.mubr.bf16.vlgmr.msra.gmra.mrb[224].mxu0 %v5448_v36  ;;  %8431 = vmatprep.subr.bf16.mxu1 %v8842_v18 }
 0x512   : > { %8409 = vmatprep.mubr.bf16.mxu0 %v5451_v28 }
 0x514   : > { %8432 = vmatpush3.bf16.msra.mxu1 %v8842_v18 }
 0x515   : > { %8433 = vmatprep.subr.bf16.mxu1 %v8843_v19 }
 0x518   : > { %8434 = vmatpush3.bf16.msra.mxu1 %v8843_v19 }
 0x519   : > { %8410 = vmatmul.mubr.bf16.gmra.mrb[228].mxu0 %v5454_v30  ;;  %8435 = vmatprep.subr.bf16.mxu1 %v8844_v46 }
 0x51a   : > { %8413 = vmatprep.mubr.bf16.mxu0 %v5457_v3 }
 0x51c   : > { %8436 = vmatpush3.bf16.msra.mxu1 %v8844_v46 }
 0x521   : > { %8414 = vmatmul.mubr.bf16.gmra.mrb[232].mxu0 %v5460_v32 }
 0x522   : > { %8417 = vmatprep.mubr.bf16.mxu0 %v5463_v33 }
 0x529   : > { %8418 = vmatmul.mubr.bf16.gmra.mrb[236].mxu0 %v5466_v63 }
 0x564   : > { %v7989_v51 = vpop.f32.mrb[160].mxu0 }
 0x565   : > { %v8053_v9 = vpop.f32.mrb[144].mxu1  ;;  %v7990_v49 = vpop.f32.mrb[161].mxu0 }
 0x566   : > { %v7991_v10 = vadd.f32 %v7990_v49, %v7989_v51  ;;  %v8054_v24 = vpop.f32.mrb[145].mxu1  ;;  %v7992_v37 = vpop.f32.mrb[162].mxu0 }
 0x567   : > { %v8055_v14 = vadd.f32 %v8054_v24, %v8053_v9  ;;  %v8056_v26 = vpop.f32.mrb[146].mxu1  ;;  %v7993_v5 = vpop.f32.mrb[163].mxu0 }
 0x568   : > { %v7994_v60 = vadd.f32 %v7993_v5, %v7992_v37  ;;  %v8057_v17 = vpop.f32.mrb[147].mxu1 }
 0x569   : > { %v10528_v39 = vadd.f32 %v8055_v14, %v7991_v10  ;;  %v8058_v62 = vadd.f32 %v8057_v17, %v8056_v26 }
 0x56b   : > { %v10530_v15 = vadd.f32 %v8058_v62, %v7994_v60 }
 0x56c   : > { %v7995_v40 = vpop.f32.mrb[164].mxu0 }
 0x56d   : > { %v8059_v6 = vpop.f32.mrb[148].mxu1  ;;  %v7996_v59 = vpop.f32.mrb[165].mxu0 }
 0x56e   : > { %v7997_v35 = vadd.f32 %v7996_v59, %v7995_v40  ;;  %v8060_v7 = vpop.f32.mrb[149].mxu1  ;;  %v7998_v41 = vpop.f32.mrb[166].mxu0 }
 0x56f   : > { %v8061_v25 = vadd.f32 %v8060_v7, %v8059_v6  ;;  %v8062_v8 = vpop.f32.mrb[150].mxu1  ;;  %v7999_v58 = vpop.f32.mrb[167].mxu0 }
 0x570   : > { %v8000_v11 = vadd.f32 %v7999_v58, %v7998_v41  ;;  %v8063_v4 = vpop.f32.mrb[151].mxu1 }
 0x571   : > { %v10532_v57 = vadd.f32 %v8061_v25, %v7997_v35  ;;  %v8064_v45 = vadd.f32 %v8063_v4, %v8062_v8 }
 0x573   : > { %v10534_v29 = vadd.f32 %v8064_v45, %v8000_v11 }
 0x574   : > { %v8001_v56 = vpop.f32.mrb[168].mxu0 }
 0x575   : > { %v8065_v34 = vpop.f32.mrb[152].mxu1  ;;  %v8002_v36 = vpop.f32.mrb[169].mxu0 }
 0x576   : > { %v8003_v61 = vadd.f32 %v8002_v36, %v8001_v56  ;;  %v8066_v12 = vpop.f32.mrb[153].mxu1  ;;  %v8004_v50 = vpop.f32.mrb[170].mxu0 }
 0x577   : > { %v8067_v1 = vadd.f32 %v8066_v12, %v8065_v34  ;;  %v8068_v28 = vpop.f32.mrb[154].mxu1  ;;  %v8005_v16 = vpop.f32.mrb[171].mxu0 }
 0x578   : > { %v8006_v47 = vadd.f32 %v8005_v16, %v8004_v50  ;;  %v8069_v22 = vpop.f32.mrb[155].mxu1 }
 0x579   : > { %v10536_v55 = vadd.f32 %v8067_v1, %v8003_v61  ;;  %v8070_v30 = vadd.f32 %v8069_v22, %v8068_v28 }
 0x57b   : > { %v10538_v48 = vadd.f32 %v8070_v30, %v8006_v47 }
 0x57c   : > { %v8007_v53 = vpop.f32.mrb[172].mxu0 }
 0x57d   : > { %v8071_v2 = vpop.f32.mrb[156].mxu1  ;;  %v8008_v13 = vpop.f32.mrb[173].mxu0 }
 0x57e   : > { %v8009_v3 = vadd.f32 %v8008_v13, %v8007_v53  ;;  %v8072_v52 = vpop.f32.mrb[157].mxu1  ;;  %v8010_v23 = vpop.f32.mrb[174].mxu0 }
 0x57f   : > { %v8073_v20 = vadd.f32 %v8072_v52, %v8071_v2  ;;  %v8074_v21 = vpop.f32.mrb[158].mxu1  ;;  %v8011_v42 = vpop.f32.mrb[175].mxu0 }
 0x580   : > { %v8012_v32 = vadd.f32 %v8011_v42, %v8010_v23  ;;  %v8075_v54 = vpop.f32.mrb[159].mxu1 }
 0x581   : > { %v10540_v43 = vadd.f32 %v8073_v20, %v8009_v3  ;;  %v8076_v33 = vadd.f32 %v8075_v54, %v8074_v21 }
 0x583   : > { %v10542_v63 = vadd.f32 %v8076_v33, %v8012_v32 }
 0x584   : > { %v8013_v44 = vpop.f32.mrb[176].mxu0 }
 0x585   : > { %v8077_v38 = vpop.f32.mrb[160].mxu1  ;;  %v8014_v27 = vpop.f32.mrb[177].mxu0 }
 0x586   : > { %v8015_v0 = vadd.f32 %v8014_v27, %v8013_v44  ;;  %v8078_v31 = vpop.f32.mrb[161].mxu1  ;;  %v8016_v18 = vpop.f32.mrb[178].mxu0 }
 0x587   : > { %v8079_v19 = vadd.f32 %v8078_v31, %v8077_v38  ;;  %v8080_v51 = vpop.f32.mrb[162].mxu1  ;;  %v8017_v9 = vpop.f32.mrb[179].mxu0 }
 0x588   : > { %v8018_v49 = vadd.f32 %v8017_v9, %v8016_v18  ;;  %v8081_v10 = vpop.f32.mrb[163].mxu1 }
 0x589   : > { %v10544_v24 = vadd.f32 %v8079_v19, %v8015_v0  ;;  %v8082_v37 = vadd.f32 %v8081_v10, %v8080_v51 }
 0x58b   : > { %v10546_v14 = vadd.f32 %v8082_v37, %v8018_v49 }
 0x58c   : > { %v8019_v26 = vpop.f32.mrb[180].mxu0 }
 0x58d   : > { %v8083_v5 = vpop.f32.mrb[164].mxu1  ;;  %v8020_v60 = vpop.f32.mrb[181].mxu0 }
 0x58e   : > { %v8021_v17 = vadd.f32 %v8020_v60, %v8019_v26  ;;  %v8084_v62 = vpop.f32.mrb[165].mxu1  ;;  %v8022_v40 = vpop.f32.mrb[182].mxu0 }
 0x58f   : > { %v8085_v6 = vadd.f32 %v8084_v62, %v8083_v5  ;;  %v8086_v59 = vpop.f32.mrb[166].mxu1  ;;  %v8023_v35 = vpop.f32.mrb[183].mxu0 }
 0x590   : > { %v8024_v7 = vadd.f32 %v8023_v35, %v8022_v40  ;;  %v8087_v41 = vpop.f32.mrb[167].mxu1 }
 0x591   : > { %v10548_v46 = vadd.f32 %v8085_v6, %v8021_v17  ;;  %v8088_v25 = vadd.f32 %v8087_v41, %v8086_v59 }
 0x593   : > { %v10550_v8 = vadd.f32 %v8088_v25, %v8024_v7 }
 0x594   : > { %v8025_v58 = vpop.f32.mrb[184].mxu0 }
 0x595   : > { %v8089_v11 = vpop.f32.mrb[168].mxu1  ;;  %v8026_v4 = vpop.f32.mrb[185].mxu0 }
 0x596   : > { %v8027_v45 = vadd.f32 %v8026_v4, %v8025_v58  ;;  %v8090_v56 = vpop.f32.mrb[169].mxu1  ;;  %v8028_v34 = vpop.f32.mrb[186].mxu0 }
 0x597   : > { %v8091_v36 = vadd.f32 %v8090_v56, %v8089_v11  ;;  %v8092_v61 = vpop.f32.mrb[170].mxu1  ;;  %v8029_v12 = vpop.f32.mrb[187].mxu0 }
 0x598   : > { %v8030_v50 = vadd.f32 %v8029_v12, %v8028_v34  ;;  %v8093_v1 = vpop.f32.mrb[171].mxu1 }
 0x599   : > { %v10552_v28 = vadd.f32 %v8091_v36, %v8027_v45  ;;  %v8094_v16 = vadd.f32 %v8093_v1, %v8092_v61 }
 0x59b   : > { %v10554_v47 = vadd.f32 %v8094_v16, %v8030_v50 }
 0x59c   : > { %v8031_v22 = vpop.f32.mrb[188].mxu0 }
 0x59d   : > { %v8095_v30 = vpop.f32.mrb[172].mxu1  ;;  %v8032_v53 = vpop.f32.mrb[189].mxu0 }
 0x59e   : > { %v8033_v2 = vadd.f32 %v8032_v53, %v8031_v22  ;;  %v8096_v13 = vpop.f32.mrb[173].mxu1  ;;  %v8034_v3 = vpop.f32.mrb[190].mxu0 }
 0x59f   : > { %v8097_v52 = vadd.f32 %v8096_v13, %v8095_v30  ;;  %v8098_v23 = vpop.f32.mrb[174].mxu1  ;;  %v8035_v20 = vpop.f32.mrb[191].mxu0 }
 0x5a0   : > { %v8036_v21 = vadd.f32 %v8035_v20, %v8034_v3  ;;  %v8099_v42 = vpop.f32.mrb[175].mxu1 }
 0x5a1   : > { %v10556_v32 = vadd.f32 %v8097_v52, %v8033_v2  ;;  %v8100_v54 = vadd.f32 %v8099_v42, %v8098_v23 }
 0x5a3   : > { %v10558_v33 = vadd.f32 %v8100_v54, %v8036_v21 }
 0x5a4   : > { %v8117_v44 = vpop.f32.mrb[192].mxu0 }
 0x5a5   : > { %v8118_v38 = vpop.f32.mrb[193].mxu0  ;;  %v8181_v27 = vpop.f32.mrb[176].mxu1 }
 0x5a6   : > { %v8119_v0 = vadd.f32 %v8118_v38, %v8117_v44  ;;  %v8120_v31 = vpop.f32.mrb[194].mxu0  ;;  %v8182_v18 = vpop.f32.mrb[177].mxu1 }
 0x5a7   : > { %v8121_v19 = vpop.f32.mrb[195].mxu0  ;;  %v8183_v51 = vadd.f32 %v8182_v18, %v8181_v27  ;;  %v8184_v9 = vpop.f32.mrb[178].mxu1 }
 0x5a8   : > { %v6361_v49 = vadd.f32 %v8119_v0, %v10528_v39  ;;  %v8122_v10 = vadd.f32 %v8121_v19, %v8120_v31  ;;  %v8185_v37 = vpop.f32.mrb[179].mxu1 }
 0x5a9   : > { %v8186_v26 = vadd.f32 %v8185_v37, %v8184_v9 }
 0x5aa   : > { %v6364_v5 = vadd.f32 %v8122_v10, %v10530_v15  ;;  %v10562_v60 = vadd.f32 %v8183_v51, %v6361_v49 }
 0x5ac   : > { %v8123_v17 = vpop.f32.mrb[196].mxu0  ;;  %v10564_v62 = vadd.f32 %v8186_v26, %v6364_v5 }
 0x5ad   : > { %v8124_v40 = vpop.f32.mrb[197].mxu0  ;;  %v8187_v6 = vpop.f32.mrb[180].mxu1 }
 0x5ae   : > { %v8125_v59 = vadd.f32 %v8124_v40, %v8123_v17  ;;  %v8126_v35 = vpop.f32.mrb[198].mxu0  ;;  %v8188_v7 = vpop.f32.mrb[181].mxu1 }
 0x5af   : > { %v8127_v41 = vpop.f32.mrb[199].mxu0  ;;  %v8189_v25 = vadd.f32 %v8188_v7, %v8187_v6  ;;  %v8190_v58 = vpop.f32.mrb[182].mxu1 }
 0x5b0   : > { %v6369_v39 = vadd.f32 %v8125_v59, %v10532_v57  ;;  %v8128_v11 = vadd.f32 %v8127_v41, %v8126_v35  ;;  %v8191_v4 = vpop.f32.mrb[183].mxu1 }
 0x5b1   : > { %v8192_v45 = vadd.f32 %v8191_v4, %v8190_v58 }
 0x5b2   : > { %v6372_v15 = vadd.f32 %v8128_v11, %v10534_v29  ;;  %v10568_v56 = vadd.f32 %v8189_v25, %v6369_v39 }
 0x5b4   : > { %v8129_v34 = vpop.f32.mrb[200].mxu0  ;;  %v10570_v36 = vadd.f32 %v8192_v45, %v6372_v15 }
 0x5b5   : > { %v8130_v61 = vpop.f32.mrb[201].mxu0  ;;  %v8193_v12 = vpop.f32.mrb[184].mxu1 }
 0x5b6   : > { %v8131_v50 = vadd.f32 %v8130_v61, %v8129_v34  ;;  %v8132_v1 = vpop.f32.mrb[202].mxu0  ;;  %v8194_v16 = vpop.f32.mrb[185].mxu1 }
 0x5b7   : > { %v8133_v22 = vpop.f32.mrb[203].mxu0  ;;  %v8195_v30 = vadd.f32 %v8194_v16, %v8193_v12  ;;  %v8196_v53 = vpop.f32.mrb[186].mxu1 }
 0x5b8   : > { %v6377_v57 = vadd.f32 %v8131_v50, %v10536_v55  ;;  %v8134_v2 = vadd.f32 %v8133_v22, %v8132_v1  ;;  %v8197_v13 = vpop.f32.mrb[187].mxu1 }
 0x5b9   : > { %v8198_v3 = vadd.f32 %v8197_v13, %v8196_v53 }
 0x5ba   : > { %v6380_v29 = vadd.f32 %v8134_v2, %v10538_v48  ;;  %v10574_v52 = vadd.f32 %v8195_v30, %v6377_v57 }
 0x5bc   : > { %v8135_v23 = vpop.f32.mrb[204].mxu0  ;;  %v10576_v20 = vadd.f32 %v8198_v3, %v6380_v29 }
 0x5bd   : > { %v8136_v21 = vpop.f32.mrb[205].mxu0  ;;  %v8199_v42 = vpop.f32.mrb[188].mxu1 }
 0x5be   : > { %v8137_v54 = vadd.f32 %v8136_v21, %v8135_v23  ;;  %v8138_v44 = vpop.f32.mrb[206].mxu0  ;;  %v8200_v38 = vpop.f32.mrb[189].mxu1 }
 0x5bf   : > { %v8139_v27 = vpop.f32.mrb[207].mxu0  ;;  %v8201_v0 = vadd.f32 %v8200_v38, %v8199_v42  ;;  %v8202_v31 = vpop.f32.mrb[190].mxu1 }
 0x5c0   : > { %v6385_v55 = vadd.f32 %v8137_v54, %v10540_v43  ;;  %v8140_v18 = vadd.f32 %v8139_v27, %v8138_v44  ;;  %v8203_v19 = vpop.f32.mrb[191].mxu1 }
 0x5c1   : > { %v8204_v51 = vadd.f32 %v8203_v19, %v8202_v31 }
 0x5c2   : > { %v6388_v48 = vadd.f32 %v8140_v18, %v10542_v63  ;;  %v10580_v9 = vadd.f32 %v8201_v0, %v6385_v55 }
 0x5c4   : > { %v8141_v49 = vpop.f32.mrb[208].mxu0  ;;  %v10582_v10 = vadd.f32 %v8204_v51, %v6388_v48 }
 0x5c5   : > { %v8142_v37 = vpop.f32.mrb[209].mxu0  ;;  %v8205_v26 = vpop.f32.mrb[192].mxu1 }
 0x5c6   : > { %v8143_v5 = vadd.f32 %v8142_v37, %v8141_v49  ;;  %v8144_v17 = vpop.f32.mrb[210].mxu0  ;;  %v8206_v40 = vpop.f32.mrb[193].mxu1 }
 0x5c7   : > { %v8145_v6 = vpop.f32.mrb[211].mxu0  ;;  %v8207_v59 = vadd.f32 %v8206_v40, %v8205_v26  ;;  %v8208_v35 = vpop.f32.mrb[194].mxu1 }
 0x5c8   : > { %v6393_v43 = vadd.f32 %v8143_v5, %v10544_v24  ;;  %v8146_v7 = vadd.f32 %v8145_v6, %v8144_v17  ;;  %v8209_v41 = vpop.f32.mrb[195].mxu1 }
 0x5c9   : > { %v8210_v25 = vadd.f32 %v8209_v41, %v8208_v35 }
 0x5ca   : > { %v6396_v63 = vadd.f32 %v8146_v7, %v10546_v14  ;;  %v10586_v58 = vadd.f32 %v8207_v59, %v6393_v43  ;;  %v10609_v7 = vld [vmem:[%s10819_s26 + $0x2] ss:$0 sm:$0xff]  ;;  %s9109_s26 = smov [#allocation13]  }
 0x5cb   : > { %s8991_s27 = sshll.u32 %s9109_s26, 4  ;;  %s8992_s27 = int_to_ptr.vmem [resolvable:$false] %s8991_s27 }
 0x5cc   : > { %v8147_v39 = vpop.f32.mrb[212].mxu0  ;;  %v10588_v11 = vadd.f32 %v8210_v25, %v6396_v63  ;;  %s8993_s20 = scalar_lea.vmem %s8992_s27, 4096  ;;  %p8994_p0 = scmp.lt.s32.totalorder %s10690_s5, %s8992_s27 }
 0x5cd   : > { %v8148_v4 = vpop.f32.mrb[213].mxu0  ;;  %v8211_v45 = vpop.f32.mrb[196].mxu1  ;;  %p8995_p10 = scmp.lt.s32.totalorder %s8993_s20, %s8987_s30 }
 0x5ce   : > { %v8149_v15 = vadd.f32 %v8148_v4, %v8147_v39  ;;  %v8150_v34 = vpop.f32.mrb[214].mxu0  ;;  %v8212_v61 = vpop.f32.mrb[197].mxu1 }
 0x5cf   : > { %v8151_v12 = vpop.f32.mrb[215].mxu0  ;;  %v8213_v50 = vadd.f32 %v8212_v61, %v8211_v45  ;;  %v8214_v1 = vpop.f32.mrb[198].mxu1  ;;  %p8996_p2 = por %p8995_p10, %p8994_p0 }
 0x5d0   : > { %v6401_v24 = vadd.f32 %v8149_v15, %v10548_v46  ;;  %v8152_v16 = vadd.f32 %v8151_v12, %v8150_v34  ;;  %v8215_v22 = vpop.f32.mrb[199].mxu1 }
 0x5d1   : > { %v8216_v30 = vadd.f32 %v8215_v22, %v8214_v1  ;;  %p8997_p13 = pnand %p8996_p2, %p8990_p9 }
 0x5d2   : > { %v6404_v14 = vadd.f32 %v8152_v16, %v10550_v8  ;;  %v10592_v53 = vadd.f32 %v8213_v50, %v6401_v24 }
 0x5d4   : > { %v8153_v57 = vpop.f32.mrb[216].mxu0  ;;  %v10594_v2 = vadd.f32 %v8216_v30, %v6404_v14 }
 0x5d5   : > { %v8154_v13 = vpop.f32.mrb[217].mxu0  ;;  %v8217_v3 = vpop.f32.mrb[200].mxu1 }
 0x5d6   : > { %v8155_v29 = vadd.f32 %v8154_v13, %v8153_v57  ;;  %v8156_v23 = vpop.f32.mrb[218].mxu0  ;;  %v8218_v21 = vpop.f32.mrb[201].mxu1 }
 0x5d7   : > { %v8157_v42 = vpop.f32.mrb[219].mxu0  ;;  %v8219_v54 = vadd.f32 %v8218_v21, %v8217_v3  ;;  %v8220_v44 = vpop.f32.mrb[202].mxu1 }
 0x5d8   : > { %v6409_v46 = vadd.f32 %v8155_v29, %v10552_v28  ;;  %v8158_v38 = vadd.f32 %v8157_v42, %v8156_v23  ;;  %v8221_v27 = vpop.f32.mrb[203].mxu1 }
 0x5d9   : > { %v8222_v0 = vadd.f32 %v8221_v27, %v8220_v44 }
 0x5da   : > { %v6412_v8 = vadd.f32 %v8158_v38, %v10554_v47  ;;  %v10598_v31 = vadd.f32 %v8219_v54, %v6409_v46 }
 0x5dc   : > { %v8159_v55 = vpop.f32.mrb[220].mxu0  ;;  %v10600_v18 = vadd.f32 %v8222_v0, %v6412_v8 }
 0x5dd   : > { %v8160_v19 = vpop.f32.mrb[221].mxu0  ;;  %v8223_v51 = vpop.f32.mrb[204].mxu1 }
 0x5de   : > { %v8161_v48 = vadd.f32 %v8160_v19, %v8159_v55  ;;  %v8162_v49 = vpop.f32.mrb[222].mxu0  ;;  %v8224_v37 = vpop.f32.mrb[205].mxu1 }
 0x5df   : > { %v8163_v26 = vpop.f32.mrb[223].mxu0  ;;  %v8225_v5 = vadd.f32 %v8224_v37, %v8223_v51  ;;  %v8226_v17 = vpop.f32.mrb[206].mxu1 }
 0x5e0   : > { %v6417_v28 = vadd.f32 %v8161_v48, %v10556_v32  ;;  %v8164_v40 = vadd.f32 %v8163_v26, %v8162_v49  ;;  %v8227_v6 = vpop.f32.mrb[207].mxu1  ;;  %v10617_v32 = vld [vmem:[%s10820_s21 + $0x2] ss:$0 sm:$0xff] }
 0x5e1   : > { %v8228_v59 = vadd.f32 %v8227_v6, %v8226_v17 }
 0x5e2   : > { %v6420_v47 = vadd.f32 %v8164_v40, %v10558_v33  ;;  %v10604_v35 = vadd.f32 %v8225_v5, %v6417_v28 }
 0x5e4   : > { %v8407_v43 = vpop.f32.mrb[224].mxu0  ;;  %v10611_v41 = vadd.f32 %v8228_v59, %v6420_v47 }
 0x5e5   : > { %v6563_v25 = vadd.f32 %v8407_v43, %v10568_v56  ;;  %v6554_v63 = vpop.f32.mrb[225].mxu0 }
 0x5e6   : > { %v6555_v33 = vadd.f32 %v6554_v63, %v10562_v60  ;;  %v8408_v39 = vpop.f32.mrb[226].mxu0 }
 0x5e7   : > { %v6624_v4 = vmul.f32 %v10609_v7, %v6563_v25  ;;  %v6566_v45 = vadd.f32 %v8408_v39, %v10570_v36  ;;  %v6557_v15 = vpop.f32.mrb[227].mxu0 }
 0x5e8   : > { %v6622_v34 = vmul.f32 %v10609_v7, %v6555_v33  ;;  %v6558_v61 = vadd.f32 %v6557_v15, %v10564_v62 }
 0x5e9   : > { %v6645_v56 = vadd.f32 %v10617_v32, %v6624_v4  ;;  %v6625_v12 = vmul.f32 %v10609_v7, %v6566_v45 }
 0x5ea   : > { %v6643_v50 = vadd.f32 %v10617_v32, %v6622_v34  ;;  %v6623_v1 = vmul.f32 %v10609_v7, %v6558_v61 }
 0x5eb   : > { %v6646_v60 = vadd.f32 %v10617_v32, %v6625_v12  ;;  %v6661_v22 = vmax.f32 %v6645_v56, 0.0 }
 0x5ec   : > { %v6644_v24 = vadd.f32 %v10617_v32, %v6623_v1  ;;  %v8411_v16 = vpop.f32.mrb[228].mxu0  ;;  %v6659_v57 = vmax.f32 %v6643_v50, 0.0 }
 0x5ed   : > { %v6662_v36 = vmax.f32 %v6646_v60, 0.0  ;;  %v6579_v30 = vadd.f32 %v8411_v16, %v10580_v9  ;;  %v6570_v14 = vpop.f32.mrb[229].mxu0 }
 0x5ee   : > { %v6660_v62 = vmax.f32 %v6644_v24, 0.0  ;;  %v6571_v13 = vadd.f32 %v6570_v14, %v10574_v52  ;;  %v8412_v3 = vpop.f32.mrb[230].mxu0 }
 0x5ef   : > { %v6676_v29 = vpack.c.bf16 %v6662_v36, %v6661_v22  ;;  %v6628_v23 = vmul.f32 %v10609_v7, %v6579_v30  ;;  %v6582_v21 = vadd.f32 %v8412_v3, %v10582_v10  ;;  %v6573_v42 = vpop.f32.mrb[231].mxu0 }
 0x5f0   : > { %v6626_v54 = vmul.f32 %v10609_v7, %v6571_v13  ;;  %v6574_v44 = vadd.f32 %v6573_v42, %v10576_v20  ;;  %v6675_v46 = vpack.c.bf16 %v6660_v62, %v6659_v57 }
 0x5f1   : > { %v6649_v38 = vadd.f32 %v10617_v32, %v6628_v23  ;;  %v6629_v9 = vmul.f32 %v10609_v7, %v6582_v21 }
 0x5f2   : > { %v6647_v27 = vadd.f32 %v10617_v32, %v6626_v54  ;;  %v6627_v52 = vmul.f32 %v10609_v7, %v6574_v44  ;;  %8437 = vmatprep.mubr.bf16.mxu1 %v6675_v46 }
 0x5f3   : > { %v6650_v0 = vadd.f32 %v10617_v32, %v6629_v9  ;;  %8438 = vmatmul.mubr.bf16.vlgmr.msra.gmra.mrb[64].mxu1 %v6676_v29  ;;  %v6665_v55 = vmax.f32 %v6649_v38, 0.0 }
 0x5f4   : > { %v6648_v10 = vadd.f32 %v10617_v32, %v6627_v52  ;;  %v8415_v8 = vpop.f32.mrb[232].mxu0  ;;  %v6663_v48 = vmax.f32 %v6647_v27, 0.0 }
 0x5f5   : > { %v6666_v19 = vmax.f32 %v6650_v0, 0.0  ;;  %v6595_v20 = vadd.f32 %v8415_v8, %v10592_v53  ;;  %v6586_v51 = vpop.f32.mrb[233].mxu0 }
 0x5f6   : > { %v6664_v49 = vmax.f32 %v6648_v10, 0.0  ;;  %v6587_v37 = vadd.f32 %v6586_v51, %v10586_v58  ;;  %v8416_v26 = vpop.f32.mrb[234].mxu0 }
 0x5f7   : > { %v6632_v5 = vmul.f32 %v10609_v7, %v6595_v20  ;;  %v6598_v17 = vadd.f32 %v8416_v26, %v10594_v2  ;;  %v6589_v28 = vpop.f32.mrb[235].mxu0  ;;  %v6678_v40 = vpack.c.bf16 %v6666_v19, %v6665_v55 }
 0x5f8   : > { %v6630_v6 = vmul.f32 %v10609_v7, %v6587_v37  ;;  %v6590_v59 = vadd.f32 %v6589_v28, %v10588_v11  ;;  %v6677_v47 = vpack.c.bf16 %v6664_v49, %v6663_v48 }
 0x5f9   : > { %v6653_v43 = vadd.f32 %v10617_v32, %v6632_v5  ;;  %v6633_v53 = vmul.f32 %v10609_v7, %v6598_v17 }
 0x5fa   : > { %v6651_v25 = vadd.f32 %v10617_v32, %v6630_v6  ;;  %v6631_v58 = vmul.f32 %v10609_v7, %v6590_v59  ;;  %8441 = vmatprep.mubr.bf16.mxu1 %v6677_v47 }
 0x5fb   : > { %v6654_v63 = vadd.f32 %v10617_v32, %v6633_v53  ;;  %8442 = vmatmul.mubr.bf16.gmra.mrb[68].mxu1 %v6678_v40  ;;  %v6669_v39 = vmax.f32 %v6653_v43, 0.0 }
 0x5fc   : > { %v6652_v2 = vadd.f32 %v10617_v32, %v6631_v58  ;;  %v8419_v33 = vpop.f32.mrb[236].mxu0  ;;  %v6667_v15 = vmax.f32 %v6651_v25, 0.0 }
 0x5fd   : > { %v6670_v4 = vmax.f32 %v6654_v63, 0.0  ;;  %v6611_v11 = vadd.f32 %v8419_v33, %v10604_v35  ;;  %v6602_v45 = vpop.f32.mrb[237].mxu0 }
 0x5fe   : > { %v6668_v34 = vmax.f32 %v6652_v2, 0.0  ;;  %v6603_v61 = vadd.f32 %v6602_v45, %v10598_v31  ;;  %v8420_v56 = vpop.f32.mrb[238].mxu0 }
 0x5ff   : > { %v6636_v12 = vmul.f32 %v10609_v7, %v6611_v11  ;;  %v6614_v50 = vadd.f32 %v8420_v56, %v10611_v41  ;;  %v6605_v1 = vpop.f32.mrb[239].mxu0  ;;  %v6680_v60 = vpack.c.bf16 %v6670_v4, %v6669_v39 }
 0x600   : > { %v6634_v24 = vmul.f32 %v10609_v7, %v6603_v61  ;;  %v6606_v16 = vadd.f32 %v6605_v1, %v10600_v18  ;;  %v6679_v22 = vpack.c.bf16 %v6668_v34, %v6667_v15 }
 0x601   : > { %v6657_v36 = vadd.f32 %v10617_v32, %v6636_v12  ;;  %v6637_v35 = vmul.f32 %v10609_v7, %v6614_v50 }
 0x602   : > { %v6655_v30 = vadd.f32 %v10617_v32, %v6634_v24  ;;  %v6635_v31 = vmul.f32 %v10609_v7, %v6606_v16  ;;  %8445 = vmatprep.mubr.bf16.mxu1 %v6679_v22  ;;  %v7383_v7 = vld [vmem:[%s10821_s18] ss:$0 sm:$0xff] }
 0x603   : > { %v6658_v14 = vadd.f32 %v10617_v32, %v6637_v35  ;;  %8446 = vmatmul.mubr.bf16.gmra.mrb[72].mxu1 %v6680_v60  ;;  %v6673_v57 = vmax.f32 %v6657_v36, 0.0 }
 0x604   : > { %v6656_v41 = vadd.f32 %v10617_v32, %v6635_v31  ;;  %v6671_v18 = vmax.f32 %v6655_v30, 0.0 }
 0x605   : > { %v6674_v62 = vmax.f32 %v6658_v14, 0.0 }
 0x606   : > { %v6672_v13 = vmax.f32 %v6656_v41, 0.0 }
 0x607   : > { %v6682_v3 = vpack.c.bf16 %v6674_v62, %v6673_v57 }
 0x608   : > { %v6681_v29 = vpack.c.bf16 %v6672_v13, %v6671_v18 }
 0x60a   : > { %8449 = vmatprep.mubr.bf16.mxu1 %v6681_v29 }
 0x60b   : > { %8450 = vmatmul.mubr.bf16.gmra.mrb[76].mxu1 %v6682_v3 }
 0x6c6   : > { %v8439_v23 = vpop.f32.mrb[64].mxu1 }
 0x6c7   : > { %v6917_v21 = vadd.f32 %v8439_v23, %v7383_v7  ;;  %v6781_v42 = vpop.f32.mrb[65].mxu1 }
 0x6c8   : > { %v6915_v32 = vadd.f32 %v7383_v7, %v6781_v42  ;;  %v8440_v54 = vpop.f32.mrb[66].mxu1 }
 0x6c9   : > { %6933 = vst [vmem:[%s9452_s8 + $0x10] sm:$0xff] %v6917_v21  ;;  %v6918_v44 = vadd.f32 %v8440_v54, %v7383_v7  ;;  %v6784_v46 = vpop.f32.mrb[67].mxu1 }
 0x6ca   : > { %6931 = vst [vmem:[%s9452_s8] sm:$0xff] %v6915_v32  ;;  %v6916_v38 = vadd.f32 %v7383_v7, %v6784_v46 }
 0x6cb   : > { %6934 = vst [vmem:[%s9452_s8 + $0x18] sm:$0xff] %v6918_v44 }
 0x6cc   : > { %6932 = vst [vmem:[%s9452_s8 + $0x8] sm:$0xff] %v6916_v38 }
 0x6ce   : > { %v8443_v9 = vpop.f32.mrb[68].mxu1 }
 0x6cf   : > { %v6921_v27 = vadd.f32 %v8443_v9, %v7383_v7  ;;  %v6797_v52 = vpop.f32.mrb[69].mxu1 }
 0x6d0   : > { %v6919_v0 = vadd.f32 %v7383_v7, %v6797_v52  ;;  %v8444_v10 = vpop.f32.mrb[70].mxu1 }
 0x6d1   : > { %6937 = vst [vmem:[%s9452_s8 + $0x30] sm:$0xff] %v6921_v27  ;;  %v6922_v8 = vadd.f32 %v8444_v10, %v7383_v7  ;;  %v6800_v55 = vpop.f32.mrb[71].mxu1 }
 0x6d2   : > { %6935 = vst [vmem:[%s9452_s8 + $0x20] sm:$0xff] %v6919_v0  ;;  %v6920_v19 = vadd.f32 %v7383_v7, %v6800_v55 }
 0x6d3   : > { %6938 = vst [vmem:[%s9452_s8 + $0x38] sm:$0xff] %v6922_v8 }
 0x6d4   : > { %6936 = vst [vmem:[%s9452_s8 + $0x28] sm:$0xff] %v6920_v19 }
 0x6d6   : > { %v8447_v20 = vpop.f32.mrb[72].mxu1 }
 0x6d7   : > { %v6925_v51 = vadd.f32 %v8447_v20, %v7383_v7  ;;  %v6813_v48 = vpop.f32.mrb[73].mxu1 }
 0x6d8   : > { %v6923_v49 = vadd.f32 %v7383_v7, %v6813_v48  ;;  %v8448_v37 = vpop.f32.mrb[74].mxu1 }
 0x6d9   : > { %6941 = vst [vmem:[%s9452_s8 + $0x50] sm:$0xff] %v6925_v51  ;;  %v6926_v26 = vadd.f32 %v8448_v37, %v7383_v7  ;;  %v6816_v5 = vpop.f32.mrb[75].mxu1 }
 0x6da   : > { %6939 = vst [vmem:[%s9452_s8 + $0x40] sm:$0xff] %v6923_v49  ;;  %v6924_v17 = vadd.f32 %v7383_v7, %v6816_v5 }
 0x6db   : > { %6942 = vst [vmem:[%s9452_s8 + $0x58] sm:$0xff] %v6926_v26 }
 0x6dc   : > { %6940 = vst [vmem:[%s9452_s8 + $0x48] sm:$0xff] %v6924_v17 }
 0x6de   : > { %v8451_v28 = vpop.f32.mrb[76].mxu1 }
 0x6df   : > { %v6929_v40 = vadd.f32 %v8451_v28, %v7383_v7  ;;  %v6829_v6 = vpop.f32.mrb[77].mxu1 }
 0x6e0   : > { %v6927_v59 = vadd.f32 %v7383_v7, %v6829_v6  ;;  %v8452_v47 = vpop.f32.mrb[78].mxu1 }
 0x6e1   : > { %6945 = vst [vmem:[%s9452_s8 + $0x70] sm:$0xff] %v6929_v40  ;;  %v6930_v43 = vadd.f32 %v8452_v47, %v7383_v7  ;;  %v6832_v53 = vpop.f32.mrb[79].mxu1 }
 0x6e2   : > { %6943 = vst [vmem:[%s9452_s8 + $0x60] sm:$0xff] %v6927_v59  ;;  %v6928_v25 = vadd.f32 %v7383_v7, %v6832_v53 }
 0x6e3   : > { %6946 = vst [vmem:[%s9452_s8 + $0x78] sm:$0xff] %v6930_v43 }
 0x6e4   : > { %6944 = vst [vmem:[%s9452_s8 + $0x68] sm:$0xff] %v6928_v25 }
 0x6e5   : > { %9000 = shalt.err (!%p8997_p13)
}
 0x6e6   : > { %s9001_s8 = scalar_lea.hbm %s10688_s23, 2048  ;;  %s9005_s7 = scalar_lea.hbm %s10823_s3, 8192 }
 0x6e7   : > { %p9002_p6 = scmp.ne.s32.totalorder %s10688_s23, %s9001_s8  ;;  %p9006_p7 = scmp.lt.u32.totalorder %s10688_s23, %s10823_s3 }
 0x6e8   : > { %p9007_p5 = scmp.lt.u32.totalorder %s9005_s7, %s9001_s8  ;;  %p9009_p12 = scmp.lt.u32.totalorder %s9001_s8, %s10688_s23 }
 0x6e9   : > { %p9003_p4 = pnand %p9002_p6, %p10824_p11 }
 0x6ea   : > { %p9008_p3 = por %p9007_p5, %p9006_p7 }
 0x6eb   : > { %p9004_p8 = pneg %p9003_p4 }
 0x6ec   : > { %p9010_p1 = por %p9009_p12, %p9008_p3 }
 0x6ee   : > { %p9011_p9 = pnand %p9010_p1, %p9004_p8 }
 0x6f0   : > { %9014 = shalt.err (!%p9011_p9)
}
 0x6f1   : > { %s9110_s24 = smov 128   ;;  %s9111_s25 = smov 8  }
 0x6f2   : > { %8503 = dma.vmem_to_hbm [thread:$0]  (%p10824_p11), %s10690_s5, 2048, %s10688_s23, %s6948_s19, %s9110_s24, %s9110_s24, %s9111_s25  }
 0x6f3 PF: > { %s10825_s17 = sld [smem:[#allocation25_spill]]  ;;  %s10826_s12 = sld [smem:[#allocation26_spill]] }
 0x6f4   : > { %p8529_p0 = scmp.ge.s32.totalorder %s9097_s16, 2 }
 0x6f9   : > { %s6979_s13 = sand.u32 1, %s10825_s17   ;;  %p10827_p10 = scmp.ne.s32.totalorder %s10826_s12, 0 }
 0x6fa   : > { %s6980_s30 = scalar_lea.sflag [#allocation9], %s6979_s13 }
 0x6fb   : > { %p8517_p2 = pnand %p8529_p0, %p10827_p10 }
 0x6fd   : > { %9064 = dma.done.wait (!%p8517_p2), %s6980_s30, 2048  }
 0x6fe   : > { %9066 = vsyncadd (!%p8517_p2), %s6980_s30, 4294965248  ;;  %s26_s16 = sadd.s32 1, %s9097_s16   ;;  %s10828_s29 = sld [smem:[#allocation27_spill]] }
 0x6ff   : > { %p23_p13 = scmp.ge.s32.totalorder %s26_s16, 6   ;;  %s10829_s30 = smov %s9073_s10 }
 0x700   : > { %s10830_s10 = smov %s9077_s11  ;;  %s10831_s11 = smov %s9317_s4 }
 0x701   : > { %s10832_s12 = smov %s9089_s14  ;;  %s10833_s13 = smov %s9093_s15 }
 0x702   : > { %s10835_s15 = smov %s10841_s9  ;;  %25 = sbr.rel (!%p23_p13) target bundleno = 16 (0x10), region = 172 }
 0x704   : > { %s10834_s14 = smov %s10828_s29 }
 0x709   :  { %6985 = vsyncpa [#allocation8], 1 }
 0x70a   :  { %6987 = vsyncpa [#allocation8 + $0x1], 1 }
 0x70b   :  { %6988 = vsyncpa [#allocation11], 1 }
 0x70c   :  { %6989 = vsyncpa [#allocation9], 1 }
 0x70d   :  { %6991 = vsyncpa [#allocation9 + $0x1], 1 }
 0x70e   :  { %6992 = vsyncmov [#allocation6] }
 0x711   :  { %s6993_s5 = vpop.sfrf %6992 }
 0x712   :  { %p7391_p11 = scmp.ne.s32.totalorder %s6993_s5, 0 }
 0x714   :  { %6997 = shalt.err (%p7391_p11)  }
 0x715   :  { %6999 = vsyncmov [#allocation6 + $0x1] }
 0x718   :  { %s7000_s4 = vpop.sfrf %6999 }
 0x719   :  { %p7392_p6 = scmp.ne.s32.totalorder %s7000_s4, 0 }
 0x71b   :  { %7004 = shalt.err (%p7392_p6)  }

</bundles_post_ra>
